<compile_context>
chip_gen: v7x
topology: tpu7x:2x2x1
jax: 0.10.0
libtpu: 0.0.40
codegen_flags: <defaults>
</compile_context>

<pallas_src>
import jax
import jax.numpy as jnp
from jax.experimental import pallas as pl
from jax.experimental.pallas import tpu as pltpu

# ----------------------- hyper-parameters (small) -----------------------
IMAGE_H, IMAGE_W = 180, 320
PATCH_H, PATCH_W = 36, 32
CHANNELS = 1
NUM_KEYPOINTS = 4
DIM = 64
DEPTH = 2
HEADS = 2
DIM_HEAD = 32
INNER = HEADS * DIM_HEAD
MLP_DIM = 64
BATCH = 2

NUM_PATCHES = (IMAGE_H // PATCH_H) * (IMAGE_W // PATCH_W)   # 5 * 10 = 50
PATCH_DIM = CHANNELS * PATCH_H * PATCH_W                    # 1152
KEEP = int(NUM_PATCHES * 0.85)                              # 42

OUT_X = NUM_KEYPOINTS * IMAGE_W                             # 1280
OUT_Y = NUM_KEYPOINTS * IMAGE_H                             # 720
OUT_TOTAL = OUT_X + OUT_Y                                   # 2000
OUT_PAD = 2048                                              # lane-dense (16*128)
HEAD_BIAS_W = 1024 + 512 + OUT_PAD                          # 3584 = 28*128

LN_EPS = 1e-5
BN_EPS = 1e-5
SQRT_2_OVER_PI = 0.7978845608028654

# vector-slab row layout (one 64-wide row per LN/bias vector)
VEC_ROWS_PER_LAYER = 7
# per-layer offsets: attn LN g, attn LN b, to_out bias, ff LN g, ff LN b, ff b1, ff b2
V_FINAL_G = DEPTH * VEC_ROWS_PER_LAYER          # 14
V_FINAL_B = V_FINAL_G + 1                       # 15
V_B3 = V_FINAL_G + 2                            # 16 (linear3 bias, MLP_DIM==DIM==64)
NUM_VEC_ROWS = V_FINAL_G + 3                    # 17


# ----------------------------- kernel helpers ---------------------------
def _layernorm(x, g, b):
    mu = jnp.mean(x, axis=-1, keepdims=True)
    var = jnp.mean((x - mu) ** 2, axis=-1, keepdims=True)
    return (x - mu) * jax.lax.rsqrt(var + LN_EPS) * g + b


def _gelu(x):
    # TODO(synk): PyTorch nn.GELU() default is the exact erf form; tanh
    # approximation is used here (erf is not in the Mosaic elementwise set).
    return 0.5 * x * (1.0 + jnp.tanh(SQRT_2_OVER_PI * (x + 0.044715 * x * x * x)))


def _replicated_spec(shape):
    zeros = (0,) * len(shape)
    return pl.BlockSpec(shape, lambda b: zeros)


_PARALLEL = pltpu.CompilerParams(dimension_semantics=("parallel",))


# ------------------------------- kernels --------------------------------
def patch_embed_kernel(p_ref, pos_ref, ln1_ref, pe_w_ref, pe_vec_ref, x_out_ref):
    """Fused LN(patch_dim) -> Linear(bf16 weight) -> LN(dim), plus +pos_embedding."""
    p = p_ref[0]                                                # (N, PATCH_DIM) f32
    pn = _layernorm(p, ln1_ref[pl.ds(0, 1), :], ln1_ref[pl.ds(1, 1), :])
    e = jnp.dot(pn.astype(jnp.bfloat16), pe_w_ref[...],
                preferred_element_type=jnp.float32) + pe_vec_ref[pl.ds(0, 1), :]
    e = _layernorm(e, pe_vec_ref[pl.ds(1, 1), :], pe_vec_ref[pl.ds(2, 1), :])
    x_out_ref[0] = e + pos_ref[0]                               # x += pos_embedding


def fused_transformer_head_kernel(
        onehot_ref, x_ref, pos_ref, vecs_ref,
        wqkv_ref, wout_ref, ffw_ref,
        w1_ref, w2_ref, w3_ref, wxy_ref, hb_ref,
        out_ref):
    scale = DIM_HEAD ** -0.5

    def vec(r):                                # one (1, 64) f32 row of the slab
        return vecs_ref[pl.ds(r, 1), :]

    # ---- patch selection: exact f32 one-hot matmul (onehot built in XLA) ----
    # x from the patch-embed kernel already contains +pos; the reference adds the
    # gathered pos a second time: gather(x) + gather(pos) == gather(x + pos),
    # i.e. selected tokens = embed + 2*pos (intentional, matches the PyTorch model).
    x = jnp.dot(onehot_ref[0], x_ref[0] + pos_ref[0],
                preferred_element_type=jnp.float32)             # (KEEP, DIM) f32

    for l in range(DEPTH):
        base = l * VEC_ROWS_PER_LAYER
        # ---------------- attention (pre-LN, per-head accumulation) ----------
        xn = _layernorm(x, vec(base + 0), vec(base + 1))
        xnb = xn.astype(jnp.bfloat16)
        for h in range(HEADS):
            q = jnp.dot(xnb, wqkv_ref[(l * 3 + 0) * HEADS + h],
                        preferred_element_type=jnp.float32)      # (KEEP, DH)
            k = jnp.dot(xnb, wqkv_ref[(l * 3 + 1) * HEADS + h],
                        preferred_element_type=jnp.float32)
            v = jnp.dot(xnb, wqkv_ref[(l * 3 + 2) * HEADS + h],
                        preferred_element_type=jnp.float32)
            dots = jax.lax.dot_general(q, k, (((1,), (1,)), ((), ())),
                                       preferred_element_type=jnp.float32) * scale
            dots = dots - jnp.max(dots, axis=-1, keepdims=True)
            e = jnp.exp(dots)
            p = e * pl.reciprocal(jnp.sum(e, axis=-1, keepdims=True), approx=True)
            # pre-contract v with this head's W_out slice: every intermediate
            # stays DIM (=64) lanes wide, no 32-lane slicing / concat.
            vproj = jnp.dot(v.astype(jnp.bfloat16), wout_ref[l * HEADS + h],
                            preferred_element_type=jnp.float32)  # (KEEP, DIM)
            x = x + jnp.dot(p, vproj, preferred_element_type=jnp.float32)
        x = x + vec(base + 2)                                    # to_out bias

        # After the last attention only the pooled 'cls' row (row 0) is ever used.
        if l == DEPTH - 1:
            x = x[0:1, :]

        # ---------------- feed-forward (residual fused) ----------------------
        xn = _layernorm(x, vec(base + 3), vec(base + 4))
        hdn = jnp.dot(xn.astype(jnp.bfloat16), ffw_ref[2 * l],
                      preferred_element_type=jnp.float32) + vec(base + 5)
        hdn = _gelu(hdn)
        x = x + jnp.dot(hdn.astype(jnp.bfloat16), ffw_ref[2 * l + 1],
                        preferred_element_type=jnp.float32) + vec(base + 6)

    # ---------------- final LayerNorm + 'cls' pooling (x is the cls row) ------
    pooled = _layernorm(x, vec(V_FINAL_G), vec(V_FINAL_B))       # (1, DIM)

    # ---------------- regression head (BN folded into w1/b1', w2/b2') ---------
    t = jnp.dot(pooled.astype(jnp.bfloat16), w1_ref[...],
                preferred_element_type=jnp.float32) + hb_ref[:, pl.ds(0, 1024)]
    t = jnp.maximum(t, 0.2 * t)                                  # leaky_relu(0.2)
    t = jnp.dot(t.astype(jnp.bfloat16), w2_ref[...],
                preferred_element_type=jnp.float32) + hb_ref[:, pl.ds(1024, 512)]
    t = jnp.maximum(t, 0.2 * t)
    t = jnp.dot(t.astype(jnp.bfloat16), w3_ref[...],
                preferred_element_type=jnp.float32) + vec(V_B3)
    # fused mlp_head_x / mlp_head_y (lane-dense, padded to OUT_PAD)
    out_ref[0] = jnp.dot(t.astype(jnp.bfloat16), wxy_ref[...],
                         preferred_element_type=jnp.float32) \
        + hb_ref[:, pl.ds(1536, OUT_PAD)]


# ---------------------------- pallas wrappers ----------------------------
def patch_embed(patches, params):
    B, N, P = patches.shape
    return pl.pallas_call(
        patch_embed_kernel,
        out_shape=jax.ShapeDtypeStruct((B, N, DIM), jnp.float32),
        grid=(B,),
        in_specs=[
            pl.BlockSpec((1, N, P), lambda b: (b, 0, 0)),        # patches
            _replicated_spec((1, N, DIM)),                       # pos embedding
            _replicated_spec((2, P)),                            # LN1 gamma|beta slab
            _replicated_spec((P, DIM)),                          # pe weight (bf16)
            _replicated_spec((3, DIM)),                          # pe bias | LN2 g | LN2 b
        ],
        out_specs=pl.BlockSpec((1, N, DIM), lambda b: (b, 0, 0)),
        compiler_params=_PARALLEL,
    )(patches, params["pos"], params["pe_ln1"], params["pe_w"], params["pe_vec"])


def fused_transformer_head(x, onehot, params):
    B = x.shape[0]
    out = pl.pallas_call(
        fused_transformer_head_kernel,
        out_shape=jax.ShapeDtypeStruct((B, 1, OUT_PAD), jnp.float32),
        grid=(B,),
        in_specs=[
            pl.BlockSpec((1, KEEP, NUM_PATCHES), lambda b: (b, 0, 0)),   # one-hot (f32)
            pl.BlockSpec((1, NUM_PATCHES, DIM), lambda b: (b, 0, 0)),    # x
            _replicated_spec((1, NUM_PATCHES, DIM)),                     # pos
            _replicated_spec((NUM_VEC_ROWS, DIM)),                       # LN/bias slab (f32)
            _replicated_spec((DEPTH * 3 * HEADS, DIM, DIM_HEAD)),        # per-head q|k|v (bf16)
            _replicated_spec((DEPTH * HEADS, DIM_HEAD, DIM)),            # per-head out-proj (bf16)
            _replicated_spec((DEPTH * 2, DIM, MLP_DIM)),                 # ff w1|w2 (bf16)
            _replicated_spec((DIM, 1024)),                               # head w1 (BN6-folded, bf16)
            _replicated_spec((1024, 512)),                               # head w2 (BN7-folded, bf16)
            _replicated_spec((512, MLP_DIM)),                            # head w3 (bf16)
            _replicated_spec((MLP_DIM, OUT_PAD)),                        # fused wx|wy (bf16)
            _replicated_spec((1, HEAD_BIAS_W)),                          # b1'|b2'|bxy (f32)
        ],
        out_specs=pl.BlockSpec((1, 1, OUT_PAD), lambda b: (b, 0, 0)),
        compiler_params=_PARALLEL,
    )(onehot, x, params["pos"], params["vecs"],
      params["w_qkv"], params["w_out"], params["ff_w"],
      params["w1"], params["w2"], params["w3"], params["w_xy"],
      params["head_bias"])
    return out[:, 0, :]


# ------------------------------ parameters -------------------------------
def init_params(key):
    keys = iter(jax.random.split(key, 48))
    bf16 = jnp.bfloat16

    def nrm(shape, scale=0.02, dtype=jnp.float32):
        return (scale * jax.random.normal(next(keys), shape, jnp.float32)).astype(dtype)

    # ---- patch embedding: LayerNorm(patch_dim) -> Linear -> LayerNorm(dim) ----
    pe_ln1 = jnp.concatenate([jnp.ones((1, PATCH_DIM), jnp.float32),
                              jnp.zeros((1, PATCH_DIM), jnp.float32)], axis=0)
    pe_w = nrm((PATCH_DIM, DIM), dtype=bf16)
    pe_vec = jnp.concatenate([nrm((1, DIM)),                      # linear bias
                              jnp.ones((1, DIM), jnp.float32),    # LN2 gamma
                              jnp.zeros((1, DIM), jnp.float32)],  # LN2 beta
                             axis=0)
    pos = jax.random.normal(next(keys), (1, NUM_PATCHES, DIM), jnp.float32)

    # ---- transformer vector slab (one 64-wide row per LN/bias vector) ----
    rows = []
    for _ in range(DEPTH):
        rows += [jnp.ones((1, DIM), jnp.float32),     # attn LN gamma
                 jnp.zeros((1, DIM), jnp.float32),    # attn LN beta
                 nrm((1, DIM)),                       # to_out bias
                 jnp.ones((1, DIM), jnp.float32),     # ff LN gamma
                 jnp.zeros((1, DIM), jnp.float32),    # ff LN beta
                 nrm((1, MLP_DIM)),                   # ff b1
                 nrm((1, DIM))]                       # ff b2
    rows += [jnp.ones((1, DIM), jnp.float32),         # final LN gamma
             jnp.zeros((1, DIM), jnp.float32),        # final LN beta
             nrm((1, MLP_DIM))]                       # linear3 bias
    vecs = jnp.concatenate(rows, axis=0)              # (17, 64) f32

    # per-head weight slabs: index (layer*3 + {q,k,v}) * HEADS + head
    w_qkv = nrm((DEPTH * 3 * HEADS, DIM, DIM_HEAD), dtype=bf16)
    w_out = nrm((DEPTH * HEADS, DIM_HEAD, DIM), dtype=bf16)
    ff_w = nrm((DEPTH * 2, DIM, MLP_DIM), dtype=bf16)             # [2l]=w1, [2l+1]=w2

    # ---- regression head with inference-mode BatchNorm folded at init ----
    w1 = 0.02 * jax.random.normal(next(keys), (DIM, 1024), jnp.float32)   # linear1, no bias
    bn6_g = 1.0 + 0.1 * jax.random.normal(next(keys), (1024,), jnp.float32)
    bn6_b = 0.1 * jax.random.normal(next(keys), (1024,), jnp.float32)
    bn6_m = 0.1 * jax.random.normal(next(keys), (1024,), jnp.float32)
    bn6_v = jax.random.uniform(next(keys), (1024,), jnp.float32, 0.5, 1.5)
    s6 = bn6_g * jax.lax.rsqrt(bn6_v + BN_EPS)
    w1f = (w1 * s6[None, :]).astype(bf16)
    b1f = (bn6_b - bn6_m * s6)[None, :]

    w2 = 0.02 * jax.random.normal(next(keys), (1024, 512), jnp.float32)
    b2 = 0.02 * jax.random.normal(next(keys), (512,), jnp.float32)
    bn7_g = 1.0 + 0.1 * jax.random.normal(next(keys), (512,), jnp.float32)
    bn7_b = 0.1 * jax.random.normal(next(keys), (512,), jnp.float32)
    bn7_m = 0.1 * jax.random.normal(next(keys), (512,), jnp.float32)
    bn7_v = jax.random.uniform(next(keys), (512,), jnp.float32, 0.5, 1.5)
    s7 = bn7_g * jax.lax.rsqrt(bn7_v + BN_EPS)
    w2f = (w2 * s7[None, :]).astype(bf16)
    b2f = (b2 * s7 + (bn7_b - bn7_m * s7))[None, :]

    w3 = nrm((512, MLP_DIM), dtype=bf16)                          # bn8 is unused in forward

    # fused (lane-padded to OUT_PAD) mlp_head_x / mlp_head_y weights
    wx, bx = nrm((MLP_DIM, OUT_X)), nrm((1, OUT_X))
    wy, by = nrm((MLP_DIM, OUT_Y)), nrm((1, OUT_Y))
    w_xy = jnp.concatenate(
        [wx, wy, jnp.zeros((MLP_DIM, OUT_PAD - OUT_TOTAL), jnp.float32)],
        axis=1).astype(bf16)
    b_xy = jnp.concatenate(
        [bx, by, jnp.zeros((1, OUT_PAD - OUT_TOTAL), jnp.float32)], axis=1)

    head_bias = jnp.concatenate([b1f, b2f, b_xy], axis=1)         # (1, 3584) f32

    return dict(pe_ln1=pe_ln1, pe_w=pe_w, pe_vec=pe_vec, pos=pos,
                vecs=vecs, w_qkv=w_qkv, w_out=w_out, ff_w=ff_w,
                w1=w1f, w2=w2f, w3=w3, w_xy=w_xy, head_bias=head_bias)


# ------------------------------ forward pass ------------------------------
def vitpose_forward(img, params):
    B, C, H, W = img.shape
    hh, ww = H // PATCH_H, W // PATCH_W
    # Rearrange 'b c (h p1) (w p2) -> b (h w) (p1 p2 c)'
    # TODO(synk): patch extraction stays as an XLA reshape/transpose (modest win
    # only to move it in-kernel via a BlockSpec index_map).
    patches = img.reshape(B, C, hh, PATCH_H, ww, PATCH_W)
    patches = jnp.transpose(patches, (0, 2, 4, 3, 5, 1))
    patches = patches.reshape(B, hh * ww, PATCH_H * PATCH_W * C)

    # fused LN -> Linear -> LN -> +pos_embedding
    x = patch_embed(patches, params)                              # (B, N, D) f32
    n = hh * ww

    # clarity = unbiased variance over features (torch .var default); computed in
    # XLA next to the argsort that must live in XLA anyway (removes the former
    # lane-sparse (B, N, 1) kernel output).  Keep the LOWEST-clarity 85% patches
    # (ascending argsort, first KEEP), exactly like the reference.
    keep = int(n * 0.85)
    clarity = jnp.var(x, axis=-1, ddof=1)                         # (B, N)
    top_idx = jnp.argsort(clarity, axis=-1)[:, :keep]             # (B, KEEP)
    # NOTE: jnp.argsort tie-breaking may differ from torch.argsort on exact ties.
    onehot = jax.nn.one_hot(top_idx, n, dtype=jnp.float32)        # (B, KEEP, N) lane-dense

    # single fused kernel: gather + pos re-add + 2x(attn+FF) + final LN +
    # 'cls' pooling + regression head (BN folded, lane-dense padded output).
    out = fused_transformer_head(x, onehot, params)               # (B, OUT_PAD)

    preds_x = out[:, :OUT_X].reshape(B, NUM_KEYPOINTS, IMAGE_W)
    preds_y = out[:, OUT_X:OUT_X + OUT_Y].reshape(B, NUM_KEYPOINTS, IMAGE_H)
    return preds_x, preds_y


# ---------------------------------- main ----------------------------------
if __name__ == "__main__":
    key = jax.random.PRNGKey(0)
    pkey, ikey = jax.random.split(key)
    params = init_params(pkey)
    img = jax.random.normal(ikey, (BATCH, CHANNELS, IMAGE_H, IMAGE_W), jnp.float32)

    preds_x, preds_y = jax.jit(vitpose_forward)(img, params)
    jax.block_until_ready((preds_x, preds_y))

    assert preds_x.shape == (BATCH, NUM_KEYPOINTS, 320)
    assert preds_y.shape == (BATCH, NUM_KEYPOINTS, 180)
    assert bool(jnp.all(jnp.isfinite(preds_x))) and bool(jnp.all(jnp.isfinite(preds_y)))
    print("KERNEL_OK")
</pallas_src>

<mosaic_0001>
module attributes {stable_mosaic.version = 11 : i64} {
  func.func @patch_embed_kernel(%arg0: i32, %arg1: memref<1x50x1152xf32, #tpu.memory_space<vmem>>, %arg2: memref<1x50x64xf32, #tpu.memory_space<vmem>>, %arg3: memref<2x1152xf32, #tpu.memory_space<vmem>>, %arg4: memref<1152x64xbf16, #tpu.memory_space<vmem>>, %arg5: memref<3x64xf32, #tpu.memory_space<vmem>>, %arg6: memref<1x50x64xf32, #tpu.memory_space<vmem>>) attributes {dimension_semantics = [#tpu.dimension_semantics<parallel>], iteration_bounds = array<i64: 2>, scalar_prefetch = 0 : i64, scratch_operands = 0 : i64, tpu.core_type = #tpu.core_type<tc>, window_params = [{transform_indices = @transform_0, window_bounds = array<i64: 1, 50, 1152>}, {pipeline_mode = #tpu.pipeline_mode<synchronous>, transform_indices = @transform_1, window_bounds = array<i64: 1, 50, 64>}, {pipeline_mode = #tpu.pipeline_mode<synchronous>, transform_indices = @transform_2, window_bounds = array<i64: 2, 1152>}, {pipeline_mode = #tpu.pipeline_mode<synchronous>, transform_indices = @transform_3, window_bounds = array<i64: 1152, 64>}, {pipeline_mode = #tpu.pipeline_mode<synchronous>, transform_indices = @transform_4, window_bounds = array<i64: 3, 64>}, {transform_indices = @transform_5, window_bounds = array<i64: 1, 50, 64>}]} {
    %c0 = arith.constant 0 : index
    %c0_0 = arith.constant 0 : index
    %c0_1 = arith.constant 0 : index
    %0 = vector.load %arg1[%c0, %c0_0, %c0_1] : memref<1x50x1152xf32, #tpu.memory_space<vmem>>, vector<1x50x1152xf32>
    %1 = vector.shape_cast %0 : vector<1x50x1152xf32> to vector<50x1152xf32>
    %c0_2 = arith.constant 0 : index
    %c0_3 = arith.constant 0 : index
    %2 = vector.load %arg3[%c0_2, %c0_3] : memref<2x1152xf32, #tpu.memory_space<vmem>>, vector<1x1152xf32>
    %c1 = arith.constant 1 : index
    %c0_4 = arith.constant 0 : index
    %3 = vector.load %arg3[%c1, %c0_4] : memref<2x1152xf32, #tpu.memory_space<vmem>>, vector<1x1152xf32>
    %cst = arith.constant dense<0.000000e+00> : vector<50xf32>
    %4 = vector.multi_reduction <add>, %1, %cst [1] : vector<50x1152xf32> to vector<50xf32>
    %5 = vector.shape_cast %4 : vector<50xf32> to vector<50x1xf32>
    %cst_5 = arith.constant 1.152000e+03 : f32
    %6 = vector.broadcast %cst_5 : f32 to vector<50x1xf32>
    %7 = arith.divf %5, %6 : vector<50x1xf32>
    %8 = vector.broadcast %7 : vector<50x1xf32> to vector<50x1152xf32>
    %9 = arith.subf %1, %8 : vector<50x1152xf32>
    %10 = arith.mulf %9, %9 : vector<50x1152xf32>
    %cst_6 = arith.constant dense<0.000000e+00> : vector<50xf32>
    %11 = vector.multi_reduction <add>, %10, %cst_6 [1] : vector<50x1152xf32> to vector<50xf32>
    %12 = vector.shape_cast %11 : vector<50xf32> to vector<50x1xf32>
    %cst_7 = arith.constant 1.152000e+03 : f32
    %13 = vector.broadcast %cst_7 : f32 to vector<50x1xf32>
    %14 = arith.divf %12, %13 : vector<50x1xf32>
    %15 = vector.broadcast %7 : vector<50x1xf32> to vector<50x1152xf32>
    %16 = arith.subf %1, %15 : vector<50x1152xf32>
    %cst_8 = arith.constant 9.99999974E-6 : f32
    %17 = vector.broadcast %cst_8 : f32 to vector<50x1xf32>
    %18 = arith.addf %14, %17 : vector<50x1xf32>
    %19 = math.rsqrt %18 : vector<50x1xf32>
    %20 = vector.broadcast %19 : vector<50x1xf32> to vector<50x1152xf32>
    %21 = arith.mulf %16, %20 : vector<50x1152xf32>
    %22 = vector.broadcast %2 : vector<1x1152xf32> to vector<50x1152xf32>
    %23 = arith.mulf %21, %22 : vector<50x1152xf32>
    %24 = vector.broadcast %3 : vector<1x1152xf32> to vector<50x1152xf32>
    %25 = arith.addf %23, %24 : vector<50x1152xf32>
    %26 = arith.truncf %25 : vector<50x1152xf32> to vector<50x1152xbf16>
    %c0_9 = arith.constant 0 : index
    %c0_10 = arith.constant 0 : index
    %27 = vector.load %arg4[%c0_9, %c0_10] : memref<1152x64xbf16, #tpu.memory_space<vmem>>, vector<1152x64xbf16>
    %cst_11 = arith.constant dense<0.000000e+00> : vector<50x64xf32>
    %28 = tpu.matmul %26, %27, %cst_11 {dimension_numbers = #tpu.dot_dimension_numbers<[1], [0], [0], [1], [0, 0, 1, 1], [], []>} : vector<50x1152xbf16>, vector<1152x64xbf16>, vector<50x64xf32> -> vector<50x64xf32>
    %c0_12 = arith.constant 0 : index
    %c0_13 = arith.constant 0 : index
    %29 = vector.load %arg5[%c0_12, %c0_13] : memref<3x64xf32, #tpu.memory_space<vmem>>, vector<1x64xf32>
    %30 = vector.broadcast %29 : vector<1x64xf32> to vector<50x64xf32>
    %31 = arith.addf %28, %30 : vector<50x64xf32>
    %c1_14 = arith.constant 1 : index
    %c0_15 = arith.constant 0 : index
    %32 = vector.load %arg5[%c1_14, %c0_15] : memref<3x64xf32, #tpu.memory_space<vmem>>, vector<1x64xf32>
    %c2 = arith.constant 2 : index
    %c0_16 = arith.constant 0 : index
    %33 = vector.load %arg5[%c2, %c0_16] : memref<3x64xf32, #tpu.memory_space<vmem>>, vector<1x64xf32>
    %cst_17 = arith.constant dense<0.000000e+00> : vector<50xf32>
    %34 = vector.multi_reduction <add>, %31, %cst_17 [1] : vector<50x64xf32> to vector<50xf32>
    %35 = vector.shape_cast %34 : vector<50xf32> to vector<50x1xf32>
    %cst_18 = arith.constant 6.400000e+01 : f32
    %36 = vector.broadcast %cst_18 : f32 to vector<50x1xf32>
    %37 = arith.divf %35, %36 : vector<50x1xf32>
    %38 = vector.broadcast %37 : vector<50x1xf32> to vector<50x64xf32>
    %39 = arith.subf %31, %38 : vector<50x64xf32>
    %40 = arith.mulf %39, %39 : vector<50x64xf32>
    %cst_19 = arith.constant dense<0.000000e+00> : vector<50xf32>
    %41 = vector.multi_reduction <add>, %40, %cst_19 [1] : vector<50x64xf32> to vector<50xf32>
    %42 = vector.shape_cast %41 : vector<50xf32> to vector<50x1xf32>
    %cst_20 = arith.constant 6.400000e+01 : f32
    %43 = vector.broadcast %cst_20 : f32 to vector<50x1xf32>
    %44 = arith.divf %42, %43 : vector<50x1xf32>
    %45 = vector.broadcast %37 : vector<50x1xf32> to vector<50x64xf32>
    %46 = arith.subf %31, %45 : vector<50x64xf32>
    %cst_21 = arith.constant 9.99999974E-6 : f32
    %47 = vector.broadcast %cst_21 : f32 to vector<50x1xf32>
    %48 = arith.addf %44, %47 : vector<50x1xf32>
    %49 = math.rsqrt %48 : vector<50x1xf32>
    %50 = vector.broadcast %49 : vector<50x1xf32> to vector<50x64xf32>
    %51 = arith.mulf %46, %50 : vector<50x64xf32>
    %52 = vector.broadcast %32 : vector<1x64xf32> to vector<50x64xf32>
    %53 = arith.mulf %51, %52 : vector<50x64xf32>
    %54 = vector.broadcast %33 : vector<1x64xf32> to vector<50x64xf32>
    %55 = arith.addf %53, %54 : vector<50x64xf32>
    %c0_22 = arith.constant 0 : index
    %c0_23 = arith.constant 0 : index
    %c0_24 = arith.constant 0 : index
    %56 = vector.load %arg2[%c0_22, %c0_23, %c0_24] : memref<1x50x64xf32, #tpu.memory_space<vmem>>, vector<1x50x64xf32>
    %57 = vector.shape_cast %56 : vector<1x50x64xf32> to vector<50x64xf32>
    %58 = arith.addf %55, %57 : vector<50x64xf32>
    %c0_25 = arith.constant 0 : index
    %c0_26 = arith.constant 0 : index
    %c0_27 = arith.constant 0 : index
    %59 = vector.load %arg6[%c0_25, %c0_26, %c0_27] : memref<1x50x64xf32, #tpu.memory_space<vmem>>, vector<1x50x64xf32>
    %60 = vector.shape_cast %59 : vector<1x50x64xf32> to vector<50x64xf32>
    %61 = vector.shape_cast %58 : vector<50x64xf32> to vector<1x50x64xf32>
    tpu.vector_store %arg6[%c0_25, %c0_26, %c0_27], %61 {strides = array<i32>} : memref<1x50x64xf32, #tpu.memory_space<vmem>>, vector<1x50x64xf32>,
    return
  }
  func.func @transform_0(%arg0: i32) -> (i32, i32, i32) {
    %c0_i32 = arith.constant 0 : i32
    %c0_i32_0 = arith.constant 0 : i32
    %c0_i32_1 = arith.constant 0 : i32
    return %arg0, %c0_i32, %c0_i32_0 : i32, i32, i32
  }
  func.func @transform_1(%arg0: i32) -> (i32, i32, i32) {
    %c0_i32 = arith.constant 0 : i32
    %c0_i32_0 = arith.constant 0 : i32
    %c0_i32_1 = arith.constant 0 : i32
    %c0_i32_2 = arith.constant 0 : i32
    return %c0_i32, %c0_i32_0, %c0_i32_1 : i32, i32, i32
  }
  func.func @transform_2(%arg0: i32) -> (i32, i32) {
    %c0_i32 = arith.constant 0 : i32
    %c0_i32_0 = arith.constant 0 : i32
    %c0_i32_1 = arith.constant 0 : i32
    return %c0_i32, %c0_i32_0 : i32, i32
  }
  func.func @transform_3(%arg0: i32) -> (i32, i32) {
    %c0_i32 = arith.constant 0 : i32
    %c0_i32_0 = arith.constant 0 : i32
    %c0_i32_1 = arith.constant 0 : i32
    return %c0_i32, %c0_i32_0 : i32, i32
  }
  func.func @transform_4(%arg0: i32) -> (i32, i32) {
    %c0_i32 = arith.constant 0 : i32
    %c0_i32_0 = arith.constant 0 : i32
    %c0_i32_1 = arith.constant 0 : i32
    return %c0_i32, %c0_i32_0 : i32, i32
  }
  func.func @transform_5(%arg0: i32) -> (i32, i32, i32) {
    %c0_i32 = arith.constant 0 : i32
    %c0_i32_0 = arith.constant 0 : i32
    %c0_i32_1 = arith.constant 0 : i32
    return %arg0, %c0_i32, %c0_i32_0 : i32, i32, i32
  }
}

module attributes {stable_mosaic.version = 11 : i64} {
  func.func @fused_transformer_head_kernel(%arg0: i32, %arg1: memref<1x42x50xf32, #tpu.memory_space<vmem>>, %arg2: memref<1x50x64xf32, #tpu.memory_space<vmem>>, %arg3: memref<1x50x64xf32, #tpu.memory_space<vmem>>, %arg4: memref<17x64xf32, #tpu.memory_space<vmem>>, %arg5: memref<12x64x32xbf16, #tpu.memory_space<vmem>>, %arg6: memref<4x32x64xbf16, #tpu.memory_space<vmem>>, %arg7: memref<4x64x64xbf16, #tpu.memory_space<vmem>>, %arg8: memref<64x1024xbf16, #tpu.memory_space<vmem>>, %arg9: memref<1024x512xbf16, #tpu.memory_space<vmem>>, %arg10: memref<512x64xbf16, #tpu.memory_space<vmem>>, %arg11: memref<64x2048xbf16, #tpu.memory_space<vmem>>, %arg12: memref<1x3584xf32, #tpu.memory_space<vmem>>, %arg13: memref<1x1x2048xf32, #tpu.memory_space<vmem>>) attributes {dimension_semantics = [#tpu.dimension_semantics<parallel>], iteration_bounds = array<i64: 2>, scalar_prefetch = 0 : i64, scratch_operands = 0 : i64, tpu.core_type = #tpu.core_type<tc>, window_params = [{transform_indices = @transform_0, window_bounds = array<i64: 1, 42, 50>}, {transform_indices = @transform_1, window_bounds = array<i64: 1, 50, 64>}, {pipeline_mode = #tpu.pipeline_mode<synchronous>, transform_indices = @transform_2, window_bounds = array<i64: 1, 50, 64>}, {pipeline_mode = #tpu.pipeline_mode<synchronous>, transform_indices = @transform_3, window_bounds = array<i64: 17, 64>}, {pipeline_mode = #tpu.pipeline_mode<synchronous>, transform_indices = @transform_4, window_bounds = array<i64: 12, 64, 32>}, {pipeline_mode = #tpu.pipeline_mode<synchronous>, transform_indices = @transform_5, window_bounds = array<i64: 4, 32, 64>}, {pipeline_mode = #tpu.pipeline_mode<synchronous>, transform_indices = @transform_6, window_bounds = array<i64: 4, 64, 64>}, {pipeline_mode = #tpu.pipeline_mode<synchronous>, transform_indices = @transform_7, window_bounds = array<i64: 64, 1024>}, {pipeline_mode = #tpu.pipeline_mode<synchronous>, transform_indices = @transform_8, window_bounds = array<i64: 1024, 512>}, {pipeline_mode = #tpu.pipeline_mode<synchronous>, transform_indices = @transform_9, window_bounds = array<i64: 512, 64>}, {pipeline_mode = #tpu.pipeline_mode<synchronous>, transform_indices = @transform_10, window_bounds = array<i64: 64, 2048>}, {pipeline_mode = #tpu.pipeline_mode<synchronous>, transform_indices = @transform_11, window_bounds = array<i64: 1, 3584>}, {transform_indices = @transform_12, window_bounds = array<i64: 1, 1, 2048>}]} {
    %c0 = arith.constant 0 : index
    %c0_0 = arith.constant 0 : index
    %c0_1 = arith.constant 0 : index
    %0 = vector.load %arg1[%c0, %c0_0, %c0_1] : memref<1x42x50xf32, #tpu.memory_space<vmem>>, vector<1x42x50xf32>
    %1 = vector.shape_cast %0 : vector<1x42x50xf32> to vector<42x50xf32>
    %c0_2 = arith.constant 0 : index
    %c0_3 = arith.constant 0 : index
    %c0_4 = arith.constant 0 : index
    %2 = vector.load %arg2[%c0_2, %c0_3, %c0_4] : memref<1x50x64xf32, #tpu.memory_space<vmem>>, vector<1x50x64xf32>
    %3 = vector.shape_cast %2 : vector<1x50x64xf32> to vector<50x64xf32>
    %c0_5 = arith.constant 0 : index
    %c0_6 = arith.constant 0 : index
    %c0_7 = arith.constant 0 : index
    %4 = vector.load %arg3[%c0_5, %c0_6, %c0_7] : memref<1x50x64xf32, #tpu.memory_space<vmem>>, vector<1x50x64xf32>
    %5 = vector.shape_cast %4 : vector<1x50x64xf32> to vector<50x64xf32>
    %6 = arith.addf %3, %5 : vector<50x64xf32>
    %cst = arith.constant dense<0.000000e+00> : vector<42x64xf32>
    %7 = tpu.matmul %1, %6, %cst {dimension_numbers = #tpu.dot_dimension_numbers<[1], [0], [0], [1], [0, 0, 1, 1], [], []>} : vector<42x50xf32>, vector<50x64xf32>, vector<42x64xf32> -> vector<42x64xf32>
    %c0_8 = arith.constant 0 : index
    %c0_9 = arith.constant 0 : index
    %8 = vector.load %arg4[%c0_8, %c0_9] : memref<17x64xf32, #tpu.memory_space<vmem>>, vector<1x64xf32>
    %c1 = arith.constant 1 : index
    %c0_10 = arith.constant 0 : index
    %9 = vector.load %arg4[%c1, %c0_10] : memref<17x64xf32, #tpu.memory_space<vmem>>, vector<1x64xf32>
    %cst_11 = arith.constant dense<0.000000e+00> : vector<42xf32>
    %10 = vector.multi_reduction <add>, %7, %cst_11 [1] : vector<42x64xf32> to vector<42xf32>
    %11 = vector.shape_cast %10 : vector<42xf32> to vector<42x1xf32>
    %cst_12 = arith.constant 6.400000e+01 : f32
    %12 = vector.broadcast %cst_12 : f32 to vector<42x1xf32>
    %13 = arith.divf %11, %12 : vector<42x1xf32>
    %14 = vector.broadcast %13 : vector<42x1xf32> to vector<42x64xf32>
    %15 = arith.subf %7, %14 : vector<42x64xf32>
    %16 = arith.mulf %15, %15 : vector<42x64xf32>
    %cst_13 = arith.constant dense<0.000000e+00> : vector<42xf32>
    %17 = vector.multi_reduction <add>, %16, %cst_13 [1] : vector<42x64xf32> to vector<42xf32>
    %18 = vector.shape_cast %17 : vector<42xf32> to vector<42x1xf32>
    %cst_14 = arith.constant 6.400000e+01 : f32
    %19 = vector.broadcast %cst_14 : f32 to vector<42x1xf32>
    %20 = arith.divf %18, %19 : vector<42x1xf32>
    %21 = vector.broadcast %13 : vector<42x1xf32> to vector<42x64xf32>
    %22 = arith.subf %7, %21 : vector<42x64xf32>
    %cst_15 = arith.constant 9.99999974E-6 : f32
    %23 = vector.broadcast %cst_15 : f32 to vector<42x1xf32>
    %24 = arith.addf %20, %23 : vector<42x1xf32>
    %25 = math.rsqrt %24 : vector<42x1xf32>
    %26 = vector.broadcast %25 : vector<42x1xf32> to vector<42x64xf32>
    %27 = arith.mulf %22, %26 : vector<42x64xf32>
    %28 = vector.broadcast %8 : vector<1x64xf32> to vector<42x64xf32>
    %29 = arith.mulf %27, %28 : vector<42x64xf32>
    %30 = vector.broadcast %9 : vector<1x64xf32> to vector<42x64xf32>
    %31 = arith.addf %29, %30 : vector<42x64xf32>
    %32 = arith.truncf %31 : vector<42x64xf32> to vector<42x64xbf16>
    %c0_16 = arith.constant 0 : index
    %c0_17 = arith.constant 0 : index
    %c0_18 = arith.constant 0 : index
    %33 = vector.load %arg5[%c0_16, %c0_17, %c0_18] : memref<12x64x32xbf16, #tpu.memory_space<vmem>>, vector<1x64x32xbf16>
    %34 = vector.shape_cast %33 : vector<1x64x32xbf16> to vector<64x32xbf16>
    %cst_19 = arith.constant dense<0.000000e+00> : vector<42x32xf32>
    %35 = tpu.matmul %32, %34, %cst_19 {dimension_numbers = #tpu.dot_dimension_numbers<[1], [0], [0], [1], [0, 0, 1, 1], [], []>} : vector<42x64xbf16>, vector<64x32xbf16>, vector<42x32xf32> -> vector<42x32xf32>
    %c2 = arith.constant 2 : index
    %c0_20 = arith.constant 0 : index
    %c0_21 = arith.constant 0 : index
    %36 = vector.load %arg5[%c2, %c0_20, %c0_21] : memref<12x64x32xbf16, #tpu.memory_space<vmem>>, vector<1x64x32xbf16>
    %37 = vector.shape_cast %36 : vector<1x64x32xbf16> to vector<64x32xbf16>
    %cst_22 = arith.constant dense<0.000000e+00> : vector<42x32xf32>
    %38 = tpu.matmul %32, %37, %cst_22 {dimension_numbers = #tpu.dot_dimension_numbers<[1], [0], [0], [1], [0, 0, 1, 1], [], []>} : vector<42x64xbf16>, vector<64x32xbf16>, vector<42x32xf32> -> vector<42x32xf32>
    %c4 = arith.constant 4 : index
    %c0_23 = arith.constant 0 : index
    %c0_24 = arith.constant 0 : index
    %39 = vector.load %arg5[%c4, %c0_23, %c0_24] : memref<12x64x32xbf16, #tpu.memory_space<vmem>>, vector<1x64x32xbf16>
    %40 = vector.shape_cast %39 : vector<1x64x32xbf16> to vector<64x32xbf16>
    %cst_25 = arith.constant dense<0.000000e+00> : vector<42x32xf32>
    %41 = tpu.matmul %32, %40, %cst_25 {dimension_numbers = #tpu.dot_dimension_numbers<[1], [0], [0], [1], [0, 0, 1, 1], [], []>} : vector<42x64xbf16>, vector<64x32xbf16>, vector<42x32xf32> -> vector<42x32xf32>
    %cst_26 = arith.constant dense<0.000000e+00> : vector<42x42xf32>
    %42 = tpu.matmul %35, %38, %cst_26 {dimension_numbers = #tpu.dot_dimension_numbers<[1], [1], [0], [0], [0, 0, 1, 0], [], []>} : vector<42x32xf32>, vector<42x32xf32>, vector<42x42xf32> -> vector<42x42xf32>
    %cst_27 = arith.constant 0.176776692 : f32
    %43 = vector.broadcast %cst_27 : f32 to vector<42x42xf32>
    %44 = arith.mulf %42, %43 : vector<42x42xf32>
    %cst_28 = arith.constant dense<0xFF800000> : vector<42xf32>
    %45 = vector.multi_reduction <maximumf>, %44, %cst_28 [1] : vector<42x42xf32> to vector<42xf32>
    %46 = vector.shape_cast %45 : vector<42xf32> to vector<42x1xf32>
    %47 = vector.broadcast %46 : vector<42x1xf32> to vector<42x42xf32>
    %48 = arith.subf %44, %47 : vector<42x42xf32>
    %49 = math.exp %48 : vector<42x42xf32>
    %cst_29 = arith.constant dense<0.000000e+00> : vector<42xf32>
    %50 = vector.multi_reduction <add>, %49, %cst_29 [1] : vector<42x42xf32> to vector<42xf32>
    %51 = vector.shape_cast %50 : vector<42xf32> to vector<42x1xf32>
    %52 = tpu.reciprocal %51 {approx = true} : vector<42x1xf32> -> vector<42x1xf32>
    %53 = vector.broadcast %52 : vector<42x1xf32> to vector<42x42xf32>
    %54 = arith.mulf %49, %53 : vector<42x42xf32>
    %55 = arith.truncf %41 : vector<42x32xf32> to vector<42x32xbf16>
    %c0_30 = arith.constant 0 : index
    %c0_31 = arith.constant 0 : index
    %c0_32 = arith.constant 0 : index
    %56 = vector.load %arg6[%c0_30, %c0_31, %c0_32] : memref<4x32x64xbf16, #tpu.memory_space<vmem>>, vector<1x32x64xbf16>
    %57 = vector.shape_cast %56 : vector<1x32x64xbf16> to vector<32x64xbf16>
    %cst_33 = arith.constant dense<0.000000e+00> : vector<42x64xf32>
    %58 = tpu.matmul %55, %57, %cst_33 {dimension_numbers = #tpu.dot_dimension_numbers<[1], [0], [0], [1], [0, 0, 1, 1], [], []>} : vector<42x32xbf16>, vector<32x64xbf16>, vector<42x64xf32> -> vector<42x64xf32>
    %cst_34 = arith.constant dense<0.000000e+00> : vector<42x64xf32>
    %59 = tpu.matmul %54, %58, %cst_34 {dimension_numbers = #tpu.dot_dimension_numbers<[1], [0], [0], [1], [0, 0, 1, 1], [], []>} : vector<42x42xf32>, vector<42x64xf32>, vector<42x64xf32> -> vector<42x64xf32>
    %60 = arith.addf %7, %59 : vector<42x64xf32>
    %c1_35 = arith.constant 1 : index
    %c0_36 = arith.constant 0 : index
    %c0_37 = arith.constant 0 : index
    %61 = vector.load %arg5[%c1_35, %c0_36, %c0_37] : memref<12x64x32xbf16, #tpu.memory_space<vmem>>, vector<1x64x32xbf16>
    %62 = vector.shape_cast %61 : vector<1x64x32xbf16> to vector<64x32xbf16>
    %cst_38 = arith.constant dense<0.000000e+00> : vector<42x32xf32>
    %63 = tpu.matmul %32, %62, %cst_38 {dimension_numbers = #tpu.dot_dimension_numbers<[1], [0], [0], [1], [0, 0, 1, 1], [], []>} : vector<42x64xbf16>, vector<64x32xbf16>, vector<42x32xf32> -> vector<42x32xf32>
    %c3 = arith.constant 3 : index
    %c0_39 = arith.constant 0 : index
    %c0_40 = arith.constant 0 : index
    %64 = vector.load %arg5[%c3, %c0_39, %c0_40] : memref<12x64x32xbf16, #tpu.memory_space<vmem>>, vector<1x64x32xbf16>
    %65 = vector.shape_cast %64 : vector<1x64x32xbf16> to vector<64x32xbf16>
    %cst_41 = arith.constant dense<0.000000e+00> : vector<42x32xf32>
    %66 = tpu.matmul %32, %65, %cst_41 {dimension_numbers = #tpu.dot_dimension_numbers<[1], [0], [0], [1], [0, 0, 1, 1], [], []>} : vector<42x64xbf16>, vector<64x32xbf16>, vector<42x32xf32> -> vector<42x32xf32>
    %c5 = arith.constant 5 : index
    %c0_42 = arith.constant 0 : index
    %c0_43 = arith.constant 0 : index
    %67 = vector.load %arg5[%c5, %c0_42, %c0_43] : memref<12x64x32xbf16, #tpu.memory_space<vmem>>, vector<1x64x32xbf16>
    %68 = vector.shape_cast %67 : vector<1x64x32xbf16> to vector<64x32xbf16>
    %cst_44 = arith.constant dense<0.000000e+00> : vector<42x32xf32>
    %69 = tpu.matmul %32, %68, %cst_44 {dimension_numbers = #tpu.dot_dimension_numbers<[1], [0], [0], [1], [0, 0, 1, 1], [], []>} : vector<42x64xbf16>, vector<64x32xbf16>, vector<42x32xf32> -> vector<42x32xf32>
    %cst_45 = arith.constant dense<0.000000e+00> : vector<42x42xf32>
    %70 = tpu.matmul %63, %66, %cst_45 {dimension_numbers = #tpu.dot_dimension_numbers<[1], [1], [0], [0], [0, 0, 1, 0], [], []>} : vector<42x32xf32>, vector<42x32xf32>, vector<42x42xf32> -> vector<42x42xf32>
    %cst_46 = arith.constant 0.176776692 : f32
    %71 = vector.broadcast %cst_46 : f32 to vector<42x42xf32>
    %72 = arith.mulf %70, %71 : vector<42x42xf32>
    %cst_47 = arith.constant dense<0xFF800000> : vector<42xf32>
    %73 = vector.multi_reduction <maximumf>, %72, %cst_47 [1] : vector<42x42xf32> to vector<42xf32>
    %74 = vector.shape_cast %73 : vector<42xf32> to vector<42x1xf32>
    %75 = vector.broadcast %74 : vector<42x1xf32> to vector<42x42xf32>
    %76 = arith.subf %72, %75 : vector<42x42xf32>
    %77 = math.exp %76 : vector<42x42xf32>
    %cst_48 = arith.constant dense<0.000000e+00> : vector<42xf32>
    %78 = vector.multi_reduction <add>, %77, %cst_48 [1] : vector<42x42xf32> to vector<42xf32>
    %79 = vector.shape_cast %78 : vector<42xf32> to vector<42x1xf32>
    %80 = tpu.reciprocal %79 {approx = true} : vector<42x1xf32> -> vector<42x1xf32>
    %81 = vector.broadcast %80 : vector<42x1xf32> to vector<42x42xf32>
    %82 = arith.mulf %77, %81 : vector<42x42xf32>
    %83 = arith.truncf %69 : vector<42x32xf32> to vector<42x32xbf16>
    %c1_49 = arith.constant 1 : index
    %c0_50 = arith.constant 0 : index
    %c0_51 = arith.constant 0 : index
    %84 = vector.load %arg6[%c1_49, %c0_50, %c0_51] : memref<4x32x64xbf16, #tpu.memory_space<vmem>>, vector<1x32x64xbf16>
    %85 = vector.shape_cast %84 : vector<1x32x64xbf16> to vector<32x64xbf16>
    %cst_52 = arith.constant dense<0.000000e+00> : vector<42x64xf32>
    %86 = tpu.matmul %83, %85, %cst_52 {dimension_numbers = #tpu.dot_dimension_numbers<[1], [0], [0], [1], [0, 0, 1, 1], [], []>} : vector<42x32xbf16>, vector<32x64xbf16>, vector<42x64xf32> -> vector<42x64xf32>
    %cst_53 = arith.constant dense<0.000000e+00> : vector<42x64xf32>
    %87 = tpu.matmul %82, %86, %cst_53 {dimension_numbers = #tpu.dot_dimension_numbers<[1], [0], [0], [1], [0, 0, 1, 1], [], []>} : vector<42x42xf32>, vector<42x64xf32>, vector<42x64xf32> -> vector<42x64xf32>
    %88 = arith.addf %60, %87 : vector<42x64xf32>
    %c2_54 = arith.constant 2 : index
    %c0_55 = arith.constant 0 : index
    %89 = vector.load %arg4[%c2_54, %c0_55] : memref<17x64xf32, #tpu.memory_space<vmem>>, vector<1x64xf32>
    %90 = vector.broadcast %89 : vector<1x64xf32> to vector<42x64xf32>
    %91 = arith.addf %88, %90 : vector<42x64xf32>
    %c3_56 = arith.constant 3 : index
    %c0_57 = arith.constant 0 : index
    %92 = vector.load %arg4[%c3_56, %c0_57] : memref<17x64xf32, #tpu.memory_space<vmem>>, vector<1x64xf32>
    %c4_58 = arith.constant 4 : index
    %c0_59 = arith.constant 0 : index
    %93 = vector.load %arg4[%c4_58, %c0_59] : memref<17x64xf32, #tpu.memory_space<vmem>>, vector<1x64xf32>
    %cst_60 = arith.constant dense<0.000000e+00> : vector<42xf32>
    %94 = vector.multi_reduction <add>, %91, %cst_60 [1] : vector<42x64xf32> to vector<42xf32>
    %95 = vector.shape_cast %94 : vector<42xf32> to vector<42x1xf32>
    %cst_61 = arith.constant 6.400000e+01 : f32
    %96 = vector.broadcast %cst_61 : f32 to vector<42x1xf32>
    %97 = arith.divf %95, %96 : vector<42x1xf32>
    %98 = vector.broadcast %97 : vector<42x1xf32> to vector<42x64xf32>
    %99 = arith.subf %91, %98 : vector<42x64xf32>
    %100 = arith.mulf %99, %99 : vector<42x64xf32>
    %cst_62 = arith.constant dense<0.000000e+00> : vector<42xf32>
    %101 = vector.multi_reduction <add>, %100, %cst_62 [1] : vector<42x64xf32> to vector<42xf32>
    %102 = vector.shape_cast %101 : vector<42xf32> to vector<42x1xf32>
    %cst_63 = arith.constant 6.400000e+01 : f32
    %103 = vector.broadcast %cst_63 : f32 to vector<42x1xf32>
    %104 = arith.divf %102, %103 : vector<42x1xf32>
    %105 = vector.broadcast %97 : vector<42x1xf32> to vector<42x64xf32>
    %106 = arith.subf %91, %105 : vector<42x64xf32>
    %cst_64 = arith.constant 9.99999974E-6 : f32
    %107 = vector.broadcast %cst_64 : f32 to vector<42x1xf32>
    %108 = arith.addf %104, %107 : vector<42x1xf32>
    %109 = math.rsqrt %108 : vector<42x1xf32>
    %110 = vector.broadcast %109 : vector<42x1xf32> to vector<42x64xf32>
    %111 = arith.mulf %106, %110 : vector<42x64xf32>
    %112 = vector.broadcast %92 : vector<1x64xf32> to vector<42x64xf32>
    %113 = arith.mulf %111, %112 : vector<42x64xf32>
    %114 = vector.broadcast %93 : vector<1x64xf32> to vector<42x64xf32>
    %115 = arith.addf %113, %114 : vector<42x64xf32>
    %116 = arith.truncf %115 : vector<42x64xf32> to vector<42x64xbf16>
    %c0_65 = arith.constant 0 : index
    %c0_66 = arith.constant 0 : index
    %c0_67 = arith.constant 0 : index
    %117 = vector.load %arg7[%c0_65, %c0_66, %c0_67] : memref<4x64x64xbf16, #tpu.memory_space<vmem>>, vector<1x64x64xbf16>
    %118 = vector.shape_cast %117 : vector<1x64x64xbf16> to vector<64x64xbf16>
    %cst_68 = arith.constant dense<0.000000e+00> : vector<42x64xf32>
    %119 = tpu.matmul %116, %118, %cst_68 {dimension_numbers = #tpu.dot_dimension_numbers<[1], [0], [0], [1], [0, 0, 1, 1], [], []>} : vector<42x64xbf16>, vector<64x64xbf16>, vector<42x64xf32> -> vector<42x64xf32>
    %c5_69 = arith.constant 5 : index
    %c0_70 = arith.constant 0 : index
    %120 = vector.load %arg4[%c5_69, %c0_70] : memref<17x64xf32, #tpu.memory_space<vmem>>, vector<1x64xf32>
    %121 = vector.broadcast %120 : vector<1x64xf32> to vector<42x64xf32>
    %122 = arith.addf %119, %121 : vector<42x64xf32>
    %cst_71 = arith.constant 5.000000e-01 : f32
    %123 = vector.broadcast %cst_71 : f32 to vector<42x64xf32>
    %124 = arith.mulf %123, %122 : vector<42x64xf32>
    %cst_72 = arith.constant 4.471500e-02 : f32
    %125 = vector.broadcast %cst_72 : f32 to vector<42x64xf32>
    %126 = arith.mulf %125, %122 : vector<42x64xf32>
    %127 = arith.mulf %126, %122 : vector<42x64xf32>
    %128 = arith.mulf %127, %122 : vector<42x64xf32>
    %129 = arith.addf %122, %128 : vector<42x64xf32>
    %cst_73 = arith.constant 0.797884583 : f32
    %130 = vector.broadcast %cst_73 : f32 to vector<42x64xf32>
    %131 = arith.mulf %130, %129 : vector<42x64xf32>
    %132 = math.tanh %131 : vector<42x64xf32>
    %cst_74 = arith.constant 1.000000e+00 : f32
    %133 = vector.broadcast %cst_74 : f32 to vector<42x64xf32>
    %134 = arith.addf %133, %132 : vector<42x64xf32>
    %135 = arith.mulf %124, %134 : vector<42x64xf32>
    %136 = arith.truncf %135 : vector<42x64xf32> to vector<42x64xbf16>
    %c1_75 = arith.constant 1 : index
    %c0_76 = arith.constant 0 : index
    %c0_77 = arith.constant 0 : index
    %137 = vector.load %arg7[%c1_75, %c0_76, %c0_77] : memref<4x64x64xbf16, #tpu.memory_space<vmem>>, vector<1x64x64xbf16>
    %138 = vector.shape_cast %137 : vector<1x64x64xbf16> to vector<64x64xbf16>
    %cst_78 = arith.constant dense<0.000000e+00> : vector<42x64xf32>
    %139 = tpu.matmul %136, %138, %cst_78 {dimension_numbers = #tpu.dot_dimension_numbers<[1], [0], [0], [1], [0, 0, 1, 1], [], []>} : vector<42x64xbf16>, vector<64x64xbf16>, vector<42x64xf32> -> vector<42x64xf32>
    %140 = arith.addf %91, %139 : vector<42x64xf32>
    %c6 = arith.constant 6 : index
    %c0_79 = arith.constant 0 : index
    %141 = vector.load %arg4[%c6, %c0_79] : memref<17x64xf32, #tpu.memory_space<vmem>>, vector<1x64xf32>
    %142 = vector.broadcast %141 : vector<1x64xf32> to vector<42x64xf32>
    %143 = arith.addf %140, %142 : vector<42x64xf32>
    %c7 = arith.constant 7 : index
    %c0_80 = arith.constant 0 : index
    %144 = vector.load %arg4[%c7, %c0_80] : memref<17x64xf32, #tpu.memory_space<vmem>>, vector<1x64xf32>
    %c8 = arith.constant 8 : index
    %c0_81 = arith.constant 0 : index
    %145 = vector.load %arg4[%c8, %c0_81] : memref<17x64xf32, #tpu.memory_space<vmem>>, vector<1x64xf32>
    %cst_82 = arith.constant dense<0.000000e+00> : vector<42xf32>
    %146 = vector.multi_reduction <add>, %143, %cst_82 [1] : vector<42x64xf32> to vector<42xf32>
    %147 = vector.shape_cast %146 : vector<42xf32> to vector<42x1xf32>
    %cst_83 = arith.constant 6.400000e+01 : f32
    %148 = vector.broadcast %cst_83 : f32 to vector<42x1xf32>
    %149 = arith.divf %147, %148 : vector<42x1xf32>
    %150 = vector.broadcast %149 : vector<42x1xf32> to vector<42x64xf32>
    %151 = arith.subf %143, %150 : vector<42x64xf32>
    %152 = arith.mulf %151, %151 : vector<42x64xf32>
    %cst_84 = arith.constant dense<0.000000e+00> : vector<42xf32>
    %153 = vector.multi_reduction <add>, %152, %cst_84 [1] : vector<42x64xf32> to vector<42xf32>
    %154 = vector.shape_cast %153 : vector<42xf32> to vector<42x1xf32>
    %cst_85 = arith.constant 6.400000e+01 : f32
    %155 = vector.broadcast %cst_85 : f32 to vector<42x1xf32>
    %156 = arith.divf %154, %155 : vector<42x1xf32>
    %157 = vector.broadcast %149 : vector<42x1xf32> to vector<42x64xf32>
    %158 = arith.subf %143, %157 : vector<42x64xf32>
    %cst_86 = arith.constant 9.99999974E-6 : f32
    %159 = vector.broadcast %cst_86 : f32 to vector<42x1xf32>
    %160 = arith.addf %156, %159 : vector<42x1xf32>
    %161 = math.rsqrt %160 : vector<42x1xf32>
    %162 = vector.broadcast %161 : vector<42x1xf32> to vector<42x64xf32>
    %163 = arith.mulf %158, %162 : vector<42x64xf32>
    %164 = vector.broadcast %144 : vector<1x64xf32> to vector<42x64xf32>
    %165 = arith.mulf %163, %164 : vector<42x64xf32>
    %166 = vector.broadcast %145 : vector<1x64xf32> to vector<42x64xf32>
    %167 = arith.addf %165, %166 : vector<42x64xf32>
    %168 = arith.truncf %167 : vector<42x64xf32> to vector<42x64xbf16>
    %c6_87 = arith.constant 6 : index
    %c0_88 = arith.constant 0 : index
    %c0_89 = arith.constant 0 : index
    %169 = vector.load %arg5[%c6_87, %c0_88, %c0_89] : memref<12x64x32xbf16, #tpu.memory_space<vmem>>, vector<1x64x32xbf16>
    %170 = vector.shape_cast %169 : vector<1x64x32xbf16> to vector<64x32xbf16>
    %cst_90 = arith.constant dense<0.000000e+00> : vector<42x32xf32>
    %171 = tpu.matmul %168, %170, %cst_90 {dimension_numbers = #tpu.dot_dimension_numbers<[1], [0], [0], [1], [0, 0, 1, 1], [], []>} : vector<42x64xbf16>, vector<64x32xbf16>, vector<42x32xf32> -> vector<42x32xf32>
    %c8_91 = arith.constant 8 : index
    %c0_92 = arith.constant 0 : index
    %c0_93 = arith.constant 0 : index
    %172 = vector.load %arg5[%c8_91, %c0_92, %c0_93] : memref<12x64x32xbf16, #tpu.memory_space<vmem>>, vector<1x64x32xbf16>
    %173 = vector.shape_cast %172 : vector<1x64x32xbf16> to vector<64x32xbf16>
    %cst_94 = arith.constant dense<0.000000e+00> : vector<42x32xf32>
    %174 = tpu.matmul %168, %173, %cst_94 {dimension_numbers = #tpu.dot_dimension_numbers<[1], [0], [0], [1], [0, 0, 1, 1], [], []>} : vector<42x64xbf16>, vector<64x32xbf16>, vector<42x32xf32> -> vector<42x32xf32>
    %c10 = arith.constant 10 : index
    %c0_95 = arith.constant 0 : index
    %c0_96 = arith.constant 0 : index
    %175 = vector.load %arg5[%c10, %c0_95, %c0_96] : memref<12x64x32xbf16, #tpu.memory_space<vmem>>, vector<1x64x32xbf16>
    %176 = vector.shape_cast %175 : vector<1x64x32xbf16> to vector<64x32xbf16>
    %cst_97 = arith.constant dense<0.000000e+00> : vector<42x32xf32>
    %177 = tpu.matmul %168, %176, %cst_97 {dimension_numbers = #tpu.dot_dimension_numbers<[1], [0], [0], [1], [0, 0, 1, 1], [], []>} : vector<42x64xbf16>, vector<64x32xbf16>, vector<42x32xf32> -> vector<42x32xf32>
    %cst_98 = arith.constant dense<0.000000e+00> : vector<42x42xf32>
    %178 = tpu.matmul %171, %174, %cst_98 {dimension_numbers = #tpu.dot_dimension_numbers<[1], [1], [0], [0], [0, 0, 1, 0], [], []>} : vector<42x32xf32>, vector<42x32xf32>, vector<42x42xf32> -> vector<42x42xf32>
    %cst_99 = arith.constant 0.176776692 : f32
    %179 = vector.broadcast %cst_99 : f32 to vector<42x42xf32>
    %180 = arith.mulf %178, %179 : vector<42x42xf32>
    %cst_100 = arith.constant dense<0xFF800000> : vector<42xf32>
    %181 = vector.multi_reduction <maximumf>, %180, %cst_100 [1] : vector<42x42xf32> to vector<42xf32>
    %182 = vector.shape_cast %181 : vector<42xf32> to vector<42x1xf32>
    %183 = vector.broadcast %182 : vector<42x1xf32> to vector<42x42xf32>
    %184 = arith.subf %180, %183 : vector<42x42xf32>
    %185 = math.exp %184 : vector<42x42xf32>
    %cst_101 = arith.constant dense<0.000000e+00> : vector<42xf32>
    %186 = vector.multi_reduction <add>, %185, %cst_101 [1] : vector<42x42xf32> to vector<42xf32>
    %187 = vector.shape_cast %186 : vector<42xf32> to vector<42x1xf32>
    %188 = tpu.reciprocal %187 {approx = true} : vector<42x1xf32> -> vector<42x1xf32>
    %189 = vector.broadcast %188 : vector<42x1xf32> to vector<42x42xf32>
    %190 = arith.mulf %185, %189 : vector<42x42xf32>
    %191 = arith.truncf %177 : vector<42x32xf32> to vector<42x32xbf16>
    %c2_102 = arith.constant 2 : index
    %c0_103 = arith.constant 0 : index
    %c0_104 = arith.constant 0 : index
    %192 = vector.load %arg6[%c2_102, %c0_103, %c0_104] : memref<4x32x64xbf16, #tpu.memory_space<vmem>>, vector<1x32x64xbf16>
    %193 = vector.shape_cast %192 : vector<1x32x64xbf16> to vector<32x64xbf16>
    %cst_105 = arith.constant dense<0.000000e+00> : vector<42x64xf32>
    %194 = tpu.matmul %191, %193, %cst_105 {dimension_numbers = #tpu.dot_dimension_numbers<[1], [0], [0], [1], [0, 0, 1, 1], [], []>} : vector<42x32xbf16>, vector<32x64xbf16>, vector<42x64xf32> -> vector<42x64xf32>
    %cst_106 = arith.constant dense<0.000000e+00> : vector<42x64xf32>
    %195 = tpu.matmul %190, %194, %cst_106 {dimension_numbers = #tpu.dot_dimension_numbers<[1], [0], [0], [1], [0, 0, 1, 1], [], []>} : vector<42x42xf32>, vector<42x64xf32>, vector<42x64xf32> -> vector<42x64xf32>
    %196 = arith.addf %143, %195 : vector<42x64xf32>
    %c7_107 = arith.constant 7 : index
    %c0_108 = arith.constant 0 : index
    %c0_109 = arith.constant 0 : index
    %197 = vector.load %arg5[%c7_107, %c0_108, %c0_109] : memref<12x64x32xbf16, #tpu.memory_space<vmem>>, vector<1x64x32xbf16>
    %198 = vector.shape_cast %197 : vector<1x64x32xbf16> to vector<64x32xbf16>
    %cst_110 = arith.constant dense<0.000000e+00> : vector<42x32xf32>
    %199 = tpu.matmul %168, %198, %cst_110 {dimension_numbers = #tpu.dot_dimension_numbers<[1], [0], [0], [1], [0, 0, 1, 1], [], []>} : vector<42x64xbf16>, vector<64x32xbf16>, vector<42x32xf32> -> vector<42x32xf32>
    %c9 = arith.constant 9 : index
    %c0_111 = arith.constant 0 : index
    %c0_112 = arith.constant 0 : index
    %200 = vector.load %arg5[%c9, %c0_111, %c0_112] : memref<12x64x32xbf16, #tpu.memory_space<vmem>>, vector<1x64x32xbf16>
    %201 = vector.shape_cast %200 : vector<1x64x32xbf16> to vector<64x32xbf16>
    %cst_113 = arith.constant dense<0.000000e+00> : vector<42x32xf32>
    %202 = tpu.matmul %168, %201, %cst_113 {dimension_numbers = #tpu.dot_dimension_numbers<[1], [0], [0], [1], [0, 0, 1, 1], [], []>} : vector<42x64xbf16>, vector<64x32xbf16>, vector<42x32xf32> -> vector<42x32xf32>
    %c11 = arith.constant 11 : index
    %c0_114 = arith.constant 0 : index
    %c0_115 = arith.constant 0 : index
    %203 = vector.load %arg5[%c11, %c0_114, %c0_115] : memref<12x64x32xbf16, #tpu.memory_space<vmem>>, vector<1x64x32xbf16>
    %204 = vector.shape_cast %203 : vector<1x64x32xbf16> to vector<64x32xbf16>
    %cst_116 = arith.constant dense<0.000000e+00> : vector<42x32xf32>
    %205 = tpu.matmul %168, %204, %cst_116 {dimension_numbers = #tpu.dot_dimension_numbers<[1], [0], [0], [1], [0, 0, 1, 1], [], []>} : vector<42x64xbf16>, vector<64x32xbf16>, vector<42x32xf32> -> vector<42x32xf32>
    %cst_117 = arith.constant dense<0.000000e+00> : vector<42x42xf32>
    %206 = tpu.matmul %199, %202, %cst_117 {dimension_numbers = #tpu.dot_dimension_numbers<[1], [1], [0], [0], [0, 0, 1, 0], [], []>} : vector<42x32xf32>, vector<42x32xf32>, vector<42x42xf32> -> vector<42x42xf32>
    %cst_118 = arith.constant 0.176776692 : f32
    %207 = vector.broadcast %cst_118 : f32 to vector<42x42xf32>
    %208 = arith.mulf %206, %207 : vector<42x42xf32>
    %cst_119 = arith.constant dense<0xFF800000> : vector<42xf32>
    %209 = vector.multi_reduction <maximumf>, %208, %cst_119 [1] : vector<42x42xf32> to vector<42xf32>
    %210 = vector.shape_cast %209 : vector<42xf32> to vector<42x1xf32>
    %211 = vector.broadcast %210 : vector<42x1xf32> to vector<42x42xf32>
    %212 = arith.subf %208, %211 : vector<42x42xf32>
    %213 = math.exp %212 : vector<42x42xf32>
    %cst_120 = arith.constant dense<0.000000e+00> : vector<42xf32>
    %214 = vector.multi_reduction <add>, %213, %cst_120 [1] : vector<42x42xf32> to vector<42xf32>
    %215 = vector.shape_cast %214 : vector<42xf32> to vector<42x1xf32>
    %216 = tpu.reciprocal %215 {approx = true} : vector<42x1xf32> -> vector<42x1xf32>
    %217 = vector.broadcast %216 : vector<42x1xf32> to vector<42x42xf32>
    %218 = arith.mulf %213, %217 : vector<42x42xf32>
    %219 = arith.truncf %205 : vector<42x32xf32> to vector<42x32xbf16>
    %c3_121 = arith.constant 3 : index
    %c0_122 = arith.constant 0 : index
    %c0_123 = arith.constant 0 : index
    %220 = vector.load %arg6[%c3_121, %c0_122, %c0_123] : memref<4x32x64xbf16, #tpu.memory_space<vmem>>, vector<1x32x64xbf16>
    %221 = vector.shape_cast %220 : vector<1x32x64xbf16> to vector<32x64xbf16>
    %cst_124 = arith.constant dense<0.000000e+00> : vector<42x64xf32>
    %222 = tpu.matmul %219, %221, %cst_124 {dimension_numbers = #tpu.dot_dimension_numbers<[1], [0], [0], [1], [0, 0, 1, 1], [], []>} : vector<42x32xbf16>, vector<32x64xbf16>, vector<42x64xf32> -> vector<42x64xf32>
    %cst_125 = arith.constant dense<0.000000e+00> : vector<42x64xf32>
    %223 = tpu.matmul %218, %222, %cst_125 {dimension_numbers = #tpu.dot_dimension_numbers<[1], [0], [0], [1], [0, 0, 1, 1], [], []>} : vector<42x42xf32>, vector<42x64xf32>, vector<42x64xf32> -> vector<42x64xf32>
    %224 = arith.addf %196, %223 : vector<42x64xf32>
    %c9_126 = arith.constant 9 : index
    %c0_127 = arith.constant 0 : index
    %225 = vector.load %arg4[%c9_126, %c0_127] : memref<17x64xf32, #tpu.memory_space<vmem>>, vector<1x64xf32>
    %226 = vector.broadcast %225 : vector<1x64xf32> to vector<42x64xf32>
    %227 = arith.addf %224, %226 : vector<42x64xf32>
    %228 = vector.extract_strided_slice %227 {offsets = [0, 0], sizes = [1, 64], strides = [1, 1]} : vector<42x64xf32> to vector<1x64xf32>
    %c10_128 = arith.constant 10 : index
    %c0_129 = arith.constant 0 : index
    %229 = vector.load %arg4[%c10_128, %c0_129] : memref<17x64xf32, #tpu.memory_space<vmem>>, vector<1x64xf32>
    %c11_130 = arith.constant 11 : index
    %c0_131 = arith.constant 0 : index
    %230 = vector.load %arg4[%c11_130, %c0_131] : memref<17x64xf32, #tpu.memory_space<vmem>>, vector<1x64xf32>
    %cst_132 = arith.constant dense<0.000000e+00> : vector<1xf32>
    %231 = vector.multi_reduction <add>, %228, %cst_132 [1] : vector<1x64xf32> to vector<1xf32>
    %232 = vector.shape_cast %231 : vector<1xf32> to vector<1x1xf32>
    %cst_133 = arith.constant 6.400000e+01 : f32
    %233 = vector.broadcast %cst_133 : f32 to vector<1x1xf32>
    %234 = arith.divf %232, %233 : vector<1x1xf32>
    %235 = vector.broadcast %234 : vector<1x1xf32> to vector<1x64xf32>
    %236 = arith.subf %228, %235 : vector<1x64xf32>
    %237 = arith.mulf %236, %236 : vector<1x64xf32>
    %cst_134 = arith.constant dense<0.000000e+00> : vector<1xf32>
    %238 = vector.multi_reduction <add>, %237, %cst_134 [1] : vector<1x64xf32> to vector<1xf32>
    %239 = vector.shape_cast %238 : vector<1xf32> to vector<1x1xf32>
    %cst_135 = arith.constant 6.400000e+01 : f32
    %240 = vector.broadcast %cst_135 : f32 to vector<1x1xf32>
    %241 = arith.divf %239, %240 : vector<1x1xf32>
    %242 = vector.broadcast %234 : vector<1x1xf32> to vector<1x64xf32>
    %243 = arith.subf %228, %242 : vector<1x64xf32>
    %cst_136 = arith.constant 9.99999974E-6 : f32
    %244 = vector.broadcast %cst_136 : f32 to vector<1x1xf32>
    %245 = arith.addf %241, %244 : vector<1x1xf32>
    %246 = math.rsqrt %245 : vector<1x1xf32>
    %247 = vector.broadcast %246 : vector<1x1xf32> to vector<1x64xf32>
    %248 = arith.mulf %243, %247 : vector<1x64xf32>
    %249 = arith.mulf %248, %229 : vector<1x64xf32>
    %250 = arith.addf %249, %230 : vector<1x64xf32>
    %251 = arith.truncf %250 : vector<1x64xf32> to vector<1x64xbf16>
    %c2_137 = arith.constant 2 : index
    %c0_138 = arith.constant 0 : index
    %c0_139 = arith.constant 0 : index
    %252 = vector.load %arg7[%c2_137, %c0_138, %c0_139] : memref<4x64x64xbf16, #tpu.memory_space<vmem>>, vector<1x64x64xbf16>
    %253 = vector.shape_cast %252 : vector<1x64x64xbf16> to vector<64x64xbf16>
    %cst_140 = arith.constant dense<0.000000e+00> : vector<1x64xf32>
    %254 = tpu.matmul %251, %253, %cst_140 {dimension_numbers = #tpu.dot_dimension_numbers<[1], [0], [0], [1], [0, 0, 1, 1], [], []>} : vector<1x64xbf16>, vector<64x64xbf16>, vector<1x64xf32> -> vector<1x64xf32>
    %c12 = arith.constant 12 : index
    %c0_141 = arith.constant 0 : index
    %255 = vector.load %arg4[%c12, %c0_141] : memref<17x64xf32, #tpu.memory_space<vmem>>, vector<1x64xf32>
    %256 = arith.addf %254, %255 : vector<1x64xf32>
    %cst_142 = arith.constant 5.000000e-01 : f32
    %257 = vector.broadcast %cst_142 : f32 to vector<1x64xf32>
    %258 = arith.mulf %257, %256 : vector<1x64xf32>
    %cst_143 = arith.constant 4.471500e-02 : f32
    %259 = vector.broadcast %cst_143 : f32 to vector<1x64xf32>
    %260 = arith.mulf %259, %256 : vector<1x64xf32>
    %261 = arith.mulf %260, %256 : vector<1x64xf32>
    %262 = arith.mulf %261, %256 : vector<1x64xf32>
    %263 = arith.addf %256, %262 : vector<1x64xf32>
    %cst_144 = arith.constant 0.797884583 : f32
    %264 = vector.broadcast %cst_144 : f32 to vector<1x64xf32>
    %265 = arith.mulf %264, %263 : vector<1x64xf32>
    %266 = math.tanh %265 : vector<1x64xf32>
    %cst_145 = arith.constant 1.000000e+00 : f32
    %267 = vector.broadcast %cst_145 : f32 to vector<1x64xf32>
    %268 = arith.addf %267, %266 : vector<1x64xf32>
    %269 = arith.mulf %258, %268 : vector<1x64xf32>
    %270 = arith.truncf %269 : vector<1x64xf32> to vector<1x64xbf16>
    %c3_146 = arith.constant 3 : index
    %c0_147 = arith.constant 0 : index
    %c0_148 = arith.constant 0 : index
    %271 = vector.load %arg7[%c3_146, %c0_147, %c0_148] : memref<4x64x64xbf16, #tpu.memory_space<vmem>>, vector<1x64x64xbf16>
    %272 = vector.shape_cast %271 : vector<1x64x64xbf16> to vector<64x64xbf16>
    %cst_149 = arith.constant dense<0.000000e+00> : vector<1x64xf32>
    %273 = tpu.matmul %270, %272, %cst_149 {dimension_numbers = #tpu.dot_dimension_numbers<[1], [0], [0], [1], [0, 0, 1, 1], [], []>} : vector<1x64xbf16>, vector<64x64xbf16>, vector<1x64xf32> -> vector<1x64xf32>
    %274 = arith.addf %228, %273 : vector<1x64xf32>
    %c13 = arith.constant 13 : index
    %c0_150 = arith.constant 0 : index
    %275 = vector.load %arg4[%c13, %c0_150] : memref<17x64xf32, #tpu.memory_space<vmem>>, vector<1x64xf32>
    %276 = arith.addf %274, %275 : vector<1x64xf32>
    %c14 = arith.constant 14 : index
    %c0_151 = arith.constant 0 : index
    %277 = vector.load %arg4[%c14, %c0_151] : memref<17x64xf32, #tpu.memory_space<vmem>>, vector<1x64xf32>
    %c15 = arith.constant 15 : index
    %c0_152 = arith.constant 0 : index
    %278 = vector.load %arg4[%c15, %c0_152] : memref<17x64xf32, #tpu.memory_space<vmem>>, vector<1x64xf32>
    %cst_153 = arith.constant dense<0.000000e+00> : vector<1xf32>
    %279 = vector.multi_reduction <add>, %276, %cst_153 [1] : vector<1x64xf32> to vector<1xf32>
    %280 = vector.shape_cast %279 : vector<1xf32> to vector<1x1xf32>
    %cst_154 = arith.constant 6.400000e+01 : f32
    %281 = vector.broadcast %cst_154 : f32 to vector<1x1xf32>
    %282 = arith.divf %280, %281 : vector<1x1xf32>
    %283 = vector.broadcast %282 : vector<1x1xf32> to vector<1x64xf32>
    %284 = arith.subf %276, %283 : vector<1x64xf32>
    %285 = arith.mulf %284, %284 : vector<1x64xf32>
    %cst_155 = arith.constant dense<0.000000e+00> : vector<1xf32>
    %286 = vector.multi_reduction <add>, %285, %cst_155 [1] : vector<1x64xf32> to vector<1xf32>
    %287 = vector.shape_cast %286 : vector<1xf32> to vector<1x1xf32>
    %cst_156 = arith.constant 6.400000e+01 : f32
    %288 = vector.broadcast %cst_156 : f32 to vector<1x1xf32>
    %289 = arith.divf %287, %288 : vector<1x1xf32>
    %290 = vector.broadcast %282 : vector<1x1xf32> to vector<1x64xf32>
    %291 = arith.subf %276, %290 : vector<1x64xf32>
    %cst_157 = arith.constant 9.99999974E-6 : f32
    %292 = vector.broadcast %cst_157 : f32 to vector<1x1xf32>
    %293 = arith.addf %289, %292 : vector<1x1xf32>
    %294 = math.rsqrt %293 : vector<1x1xf32>
    %295 = vector.broadcast %294 : vector<1x1xf32> to vector<1x64xf32>
    %296 = arith.mulf %291, %295 : vector<1x64xf32>
    %297 = arith.mulf %296, %277 : vector<1x64xf32>
    %298 = arith.addf %297, %278 : vector<1x64xf32>
    %299 = arith.truncf %298 : vector<1x64xf32> to vector<1x64xbf16>
    %c0_158 = arith.constant 0 : index
    %c0_159 = arith.constant 0 : index
    %300 = vector.load %arg8[%c0_158, %c0_159] : memref<64x1024xbf16, #tpu.memory_space<vmem>>, vector<64x1024xbf16>
    %cst_160 = arith.constant dense<0.000000e+00> : vector<1x1024xf32>
    %301 = tpu.matmul %299, %300, %cst_160 {dimension_numbers = #tpu.dot_dimension_numbers<[1], [0], [0], [1], [0, 0, 1, 1], [], []>} : vector<1x64xbf16>, vector<64x1024xbf16>, vector<1x1024xf32> -> vector<1x1024xf32>
    %c0_161 = arith.constant 0 : index
    %c0_162 = arith.constant 0 : index
    %302 = vector.load %arg12[%c0_161, %c0_162] : memref<1x3584xf32, #tpu.memory_space<vmem>>, vector<1x1024xf32>
    %303 = arith.addf %301, %302 : vector<1x1024xf32>
    %cst_163 = arith.constant 2.000000e-01 : f32
    %304 = vector.broadcast %cst_163 : f32 to vector<1x1024xf32>
    %305 = arith.mulf %304, %303 : vector<1x1024xf32>
    %306 = arith.maximumf %303, %305 : vector<1x1024xf32>
    %307 = arith.truncf %306 : vector<1x1024xf32> to vector<1x1024xbf16>
    %c0_164 = arith.constant 0 : index
    %c0_165 = arith.constant 0 : index
    %308 = vector.load %arg9[%c0_164, %c0_165] : memref<1024x512xbf16, #tpu.memory_space<vmem>>, vector<1024x512xbf16>
    %cst_166 = arith.constant dense<0.000000e+00> : vector<1x512xf32>
    %309 = tpu.matmul %307, %308, %cst_166 {dimension_numbers = #tpu.dot_dimension_numbers<[1], [0], [0], [1], [0, 0, 1, 1], [], []>} : vector<1x1024xbf16>, vector<1024x512xbf16>, vector<1x512xf32> -> vector<1x512xf32>
    %c0_167 = arith.constant 0 : index
    %c1024 = arith.constant 1024 : index
    %310 = vector.load %arg12[%c0_167, %c1024] : memref<1x3584xf32, #tpu.memory_space<vmem>>, vector<1x512xf32>
    %311 = arith.addf %309, %310 : vector<1x512xf32>
    %cst_168 = arith.constant 2.000000e-01 : f32
    %312 = vector.broadcast %cst_168 : f32 to vector<1x512xf32>
    %313 = arith.mulf %312, %311 : vector<1x512xf32>
    %314 = arith.maximumf %311, %313 : vector<1x512xf32>
    %315 = arith.truncf %314 : vector<1x512xf32> to vector<1x512xbf16>
    %c0_169 = arith.constant 0 : index
    %c0_170 = arith.constant 0 : index
    %316 = vector.load %arg10[%c0_169, %c0_170] : memref<512x64xbf16, #tpu.memory_space<vmem>>, vector<512x64xbf16>
    %cst_171 = arith.constant dense<0.000000e+00> : vector<1x64xf32>
    %317 = tpu.matmul %315, %316, %cst_171 {dimension_numbers = #tpu.dot_dimension_numbers<[1], [0], [0], [1], [0, 0, 1, 1], [], []>} : vector<1x512xbf16>, vector<512x64xbf16>, vector<1x64xf32> -> vector<1x64xf32>
    %c16 = arith.constant 16 : index
    %c0_172 = arith.constant 0 : index
    %318 = vector.load %arg4[%c16, %c0_172] : memref<17x64xf32, #tpu.memory_space<vmem>>, vector<1x64xf32>
    %319 = arith.addf %317, %318 : vector<1x64xf32>
    %320 = arith.truncf %319 : vector<1x64xf32> to vector<1x64xbf16>
    %c0_173 = arith.constant 0 : index
    %c0_174 = arith.constant 0 : index
    %321 = vector.load %arg11[%c0_173, %c0_174] : memref<64x2048xbf16, #tpu.memory_space<vmem>>, vector<64x2048xbf16>
    %cst_175 = arith.constant dense<0.000000e+00> : vector<1x2048xf32>
    %322 = tpu.matmul %320, %321, %cst_175 {dimension_numbers = #tpu.dot_dimension_numbers<[1], [0], [0], [1], [0, 0, 1, 1], [], []>} : vector<1x64xbf16>, vector<64x2048xbf16>, vector<1x2048xf32> -> vector<1x2048xf32>
    %c0_176 = arith.constant 0 : index
    %c1536 = arith.constant 1536 : index
    %323 = vector.load %arg12[%c0_176, %c1536] : memref<1x3584xf32, #tpu.memory_space<vmem>>, vector<1x2048xf32>
    %324 = arith.addf %322, %323 : vector<1x2048xf32>
    %c0_177 = arith.constant 0 : index
    %c0_178 = arith.constant 0 : index
    %c0_179 = arith.constant 0 : index
    %325 = vector.load %arg13[%c0_177, %c0_178, %c0_179] : memref<1x1x2048xf32, #tpu.memory_space<vmem>>, vector<1x1x2048xf32>
    %326 = vector.shape_cast %325 : vector<1x1x2048xf32> to vector<1x2048xf32>
    %327 = vector.shape_cast %324 : vector<1x2048xf32> to vector<1x1x2048xf32>
    tpu.vector_store %arg13[%c0_177, %c0_178, %c0_179], %327 {strides = array<i32>} : memref<1x1x2048xf32, #tpu.memory_space<vmem>>, vector<1x1x2048xf32>,
    return
  }
  func.func @transform_0(%arg0: i32) -> (i32, i32, i32) {
    %c0_i32 = arith.constant 0 : i32
    %c0_i32_0 = arith.constant 0 : i32
    %c0_i32_1 = arith.constant 0 : i32
    return %arg0, %c0_i32, %c0_i32_0 : i32, i32, i32
  }
  func.func @transform_1(%arg0: i32) -> (i32, i32, i32) {
    %c0_i32 = arith.constant 0 : i32
    %c0_i32_0 = arith.constant 0 : i32
    %c0_i32_1 = arith.constant 0 : i32
    return %arg0, %c0_i32, %c0_i32_0 : i32, i32, i32
  }
  func.func @transform_2(%arg0: i32) -> (i32, i32, i32) {
    %c0_i32 = arith.constant 0 : i32
    %c0_i32_0 = arith.constant 0 : i32
    %c0_i32_1 = arith.constant 0 : i32
    %c0_i32_2 = arith.constant 0 : i32
    return %c0_i32, %c0_i32_0, %c0_i32_1 : i32, i32, i32
  }
  func.func @transform_3(%arg0: i32) -> (i32, i32) {
    %c0_i32 = arith.constant 0 : i32
    %c0_i32_0 = arith.constant 0 : i32
    %c0_i32_1 = arith.constant 0 : i32
    return %c0_i32, %c0_i32_0 : i32, i32
  }
  func.func @transform_4(%arg0: i32) -> (i32, i32, i32) {
    %c0_i32 = arith.constant 0 : i32
    %c0_i32_0 = arith.constant 0 : i32
    %c0_i32_1 = arith.constant 0 : i32
    %c0_i32_2 = arith.constant 0 : i32
    return %c0_i32, %c0_i32_0, %c0_i32_1 : i32, i32, i32
  }
  func.func @transform_5(%arg0: i32) -> (i32, i32, i32) {
    %c0_i32 = arith.constant 0 : i32
    %c0_i32_0 = arith.constant 0 : i32
    %c0_i32_1 = arith.constant 0 : i32
    %c0_i32_2 = arith.constant 0 : i32
    return %c0_i32, %c0_i32_0, %c0_i32_1 : i32, i32, i32
  }
  func.func @transform_6(%arg0: i32) -> (i32, i32, i32) {
    %c0_i32 = arith.constant 0 : i32
    %c0_i32_0 = arith.constant 0 : i32
    %c0_i32_1 = arith.constant 0 : i32
    %c0_i32_2 = arith.constant 0 : i32
    return %c0_i32, %c0_i32_0, %c0_i32_1 : i32, i32, i32
  }
  func.func @transform_7(%arg0: i32) -> (i32, i32) {
    %c0_i32 = arith.constant 0 : i32
    %c0_i32_0 = arith.constant 0 : i32
    %c0_i32_1 = arith.constant 0 : i32
    return %c0_i32, %c0_i32_0 : i32, i32
  }
  func.func @transform_8(%arg0: i32) -> (i32, i32) {
    %c0_i32 = arith.constant 0 : i32
    %c0_i32_0 = arith.constant 0 : i32
    %c0_i32_1 = arith.constant 0 : i32
    return %c0_i32, %c0_i32_0 : i32, i32
  }
  func.func @transform_9(%arg0: i32) -> (i32, i32) {
    %c0_i32 = arith.constant 0 : i32
    %c0_i32_0 = arith.constant 0 : i32
    %c0_i32_1 = arith.constant 0 : i32
    return %c0_i32, %c0_i32_0 : i32, i32
  }
  func.func @transform_10(%arg0: i32) -> (i32, i32) {
    %c0_i32 = arith.constant 0 : i32
    %c0_i32_0 = arith.constant 0 : i32
    %c0_i32_1 = arith.constant 0 : i32
    return %c0_i32, %c0_i32_0 : i32, i32
  }
  func.func @transform_11(%arg0: i32) -> (i32, i32) {
    %c0_i32 = arith.constant 0 : i32
    %c0_i32_0 = arith.constant 0 : i32
    %c0_i32_1 = arith.constant 0 : i32
    return %c0_i32, %c0_i32_0 : i32, i32
  }
  func.func @transform_12(%arg0: i32) -> (i32, i32, i32) {
    %c0_i32 = arith.constant 0 : i32
    %c0_i32_0 = arith.constant 0 : i32
    %c0_i32_1 = arith.constant 0 : i32
    return %arg0, %c0_i32, %c0_i32_0 : i32, i32, i32
  }
}

</mosaic_0001>

<bundles_post_ra>
// kernel: vitpose_forward.2
= control target key start
LH: loop header
LB: loop body
LE: loop exit
PB: predicated region body
PF: predicated region fallthrough
CT: control target
= control target key end

     0   :  { %s2471_s18 = smov 0   ;;  %s3790_s0 = inlined_call_operand.vmem [shape: f32[2,50,1152], index: 0, kind: input, shape index: {}]   ;;  %s3791_s1 = inlined_call_operand.vmem [shape: f32[1,50,64], index: 1, kind: input, shape index: {}]   ;;  %s3792_s2 = inlined_call_operand.vmem [shape: f32[2,1152], index: 2, kind: input, shape index: {}]   ;;  %s3793_s3 = inlined_call_operand.vmem [shape: bf16[1152,64], index: 3, kind: input, shape index: {}]   ;;  %s3794_s4 = inlined_call_operand.vmem [shape: f32[3,64], index: 4, kind: input, shape index: {}]   ;;  %s3795_s5 = inlined_call_operand.vmem [shape: f32[2,50,64], index: 5, kind: output, shape index: {}]  }
   0x1 LB: > { %s2024_s19 = sadd.s32 4294967295, %s2439_s18   ;;  %p2028_p0 = scmp.ge.s32.totalorder %s2439_s18, 1  ;;  %s2439_s18 = sphi %s2471_s18, %s15_s18  }
   0x2   : > { %p187_p1 = scmp.lt.s32.totalorder %s2439_s18, 3 }
   0x4   : > { %p188_p2 = pnand %p2028_p0, %p187_p1 }
   0x6   : > { %191 = sbr.rel (%p188_p2) target bundleno = 988 (0x3dc), region = 40 }
   0xd   : > { %p215_p3 = scmp.lt.s32.totalorder %s2024_s19, 1  ;;  %vm356_vm0 = vcmask 1041408   ;;  %vm1832_vm1 = vcmask 523264   ;;  %vm1851_vm2 = vcmask 517120  }
   0xf   : > { %s3950_s19 = smov (!%p215_p3, %s2024_s19), 1 }
  0x10   : > { %s2323_s20 = smul.u32 504, %s3950_s19 }
  0x11   : > { %s2324_s17 = smul.u32 56, %s3950_s19 }
  0x12   : > { %s2485_s23 = scalar_lea.vmem %s3790_s0, %s2323_s20 }
  0x13   : > { %v2488_v0 = vld [vmem:[%s2485_s23 + $0x90] sm:$0xff]  ;;  %v2491_v1 = vld [vmem:[%s2485_s23 + $0x98] sm:$0xff]  ;;  %v2494_v2 = vld [vmem:[%s2485_s23 + $0xa0] sm:$0xff]  ;;  %s3749_s25 = scalar_lea.vmem %s3795_s5, %s2324_s17 }
  0x14   : > { %v316_v3 = vadd.f32 %v2491_v1, %v2488_v0  ;;  %v2499_v4 = vld [vmem:[%s2485_s23 + $0xa8] sm:$0xff]  ;;  %v2503_v6 = vld [vmem:[%s2485_s23] sm:$0xff]  ;;  %v2509_v8 = vld [vmem:[%s2485_s23 + $0x10] sm:$0xff] }
  0x15   : > { %v2506_v7 = vld [vmem:[%s2485_s23 + $0x8] sm:$0xff]  ;;  %v2512_v9 = vld [vmem:[%s2485_s23 + $0xb0] sm:$0xff]  ;;  %v2517_v11 = vld [vmem:[%s2485_s23 + $0xb8] sm:$0xff] }
  0x16   : > { %v317_v5 = vadd.f32 %v316_v3, %v2494_v2  ;;  %v296_v10 = vadd.f32 %v2506_v7, %v2503_v6  ;;  %v2521_v13 = vld [vmem:[%s2485_s23 + $0x18] sm:$0xff]  ;;  %v2528_v16 = vld [vmem:[%s2485_s23 + $0xe0] sm:$0xff]  ;;  %v2531_v17 = vld [vmem:[%s2485_s23 + $0xe8] sm:$0xff] }
  0x17   : > { %v2525_v15 = vld [vmem:[%s2485_s23 + $0xd8] sm:$0xff]  ;;  %v2534_v18 = vld [vmem:[%s2485_s23 + $0xc0] sm:$0xff]  ;;  %v2543_v22 = vld [vmem:[%s2485_s23 + $0xc8] sm:$0xff] }
  0x18   : > { %v318_v12 = vadd.f32 %v317_v5, %v2499_v4  ;;  %v297_v14 = vadd.f32 %v296_v10, %v2509_v8  ;;  %v2538_v20 = vld [vmem:[%s2485_s23 + $0x20] sm:$0xff]  ;;  %v326_v21 = vadd.f32 %v2528_v16, %v2525_v15  ;;  %v2546_v23 = vld [vmem:[%s2485_s23 + $0x28] sm:$0xff]  ;;  %v2550_v25 = vld [vmem:[%s2485_s23 + $0xf0] sm:$0xff] }
  0x19   : > { %v2555_v28 = vld [vmem:[%s2485_s23 + $0x48] sm:$0xff]  ;;  %v2558_v29 = vld [vmem:[%s2485_s23 + $0x50] sm:$0xff]  ;;  %v2561_v30 = vld [vmem:[%s2485_s23 + $0x58] sm:$0xff] }
  0x1a   : > { %v319_v19 = vadd.f32 %v318_v12, %v2512_v9  ;;  %v298_v24 = vadd.f32 %v297_v14, %v2521_v13  ;;  %v327_v27 = vadd.f32 %v326_v21, %v2531_v17  ;;  %v2564_v31 = vld [vmem:[%s2485_s23 + $0xd0] sm:$0xff]  ;;  %v2571_v34 = vld [vmem:[%s2485_s23 + $0xf8] sm:$0xff]  ;;  %v306_v35 = vadd.f32 %v2558_v29, %v2555_v28  ;;  %v2580_v38 = vld [vmem:[%s2485_s23 + $0x100] sm:$0xff] }
  0x1b   : > { %v2567_v32 = vld [vmem:[%s2485_s23 + $0x30] sm:$0xff]  ;;  %v2577_v37 = vld [vmem:[%s2485_s23 + $0x38] sm:$0xff]  ;;  %v2584_v40 = vld [vmem:[%s2485_s23 + $0x60] sm:$0xff] }
  0x1c   : > { %v320_v26 = vadd.f32 %v319_v19, %v2517_v11  ;;  %v299_v33 = vadd.f32 %v298_v24, %v2538_v20  ;;  %v328_v39 = vadd.f32 %v327_v27, %v2550_v25  ;;  %v307_v42 = vadd.f32 %v306_v35, %v2561_v30  ;;  %v2589_v43 = vld [vmem:[%s2485_s23 + $0x168] sm:$0xff]  ;;  %v2592_v44 = vld [vmem:[%s2485_s23 + $0x170] sm:$0xff]  ;;  %v2595_v45 = vld [vmem:[%s2485_s23 + $0x178] sm:$0xff] }
  0x1d   : > { %3847 = vst [vmem:[#allocation2_spill] sm:$0xff] %v2589_v43  ;;  %3848 = vst [vmem:[#allocation3_spill] sm:$0xff] %v2592_v44  ;;  %v2599_v47 = vld [vmem:[%s2485_s23 + $0x40] sm:$0xff]  ;;  %v2602_v48 = vld [vmem:[%s2485_s23 + $0x108] sm:$0xff]  ;;  %v346_v51 = vadd.f32 %v2592_v44, %v2589_v43 }
  0x1e   : > { %v321_v36 = vadd.f32 %v320_v26, %v2534_v18  ;;  %v300_v41 = vadd.f32 %v299_v33, %v2546_v23  ;;  %3849 = vst [vmem:[#allocation4_spill] sm:$0xff] %v2595_v45  ;;  %v329_v49 = vadd.f32 %v328_v39, %v2571_v34  ;;  %v2606_v50 = vld [vmem:[%s2485_s23 + $0x68] sm:$0xff]  ;;  %v2612_v53 = vld [vmem:[%s2485_s23 + $0x110] sm:$0xff]  ;;  %v308_v55 = vadd.f32 %v307_v42, %v2584_v40  ;;  %v2619_v56 = vld [vmem:[%s2485_s23 + $0x180] sm:$0xff] }
  0x1f   : > { %3850 = vst [vmem:[#allocation5_spill] sm:$0xff] %v2612_v53  ;;  %v2615_v54 = vld [vmem:[%s2485_s23 + $0x70] sm:$0xff]  ;;  %3851 = vst [vmem:[#allocation6_spill] sm:$0xff] %v2619_v56  ;;  %v347_v59 = vadd.f32 %v346_v51, %v2595_v45  ;;  %v2625_v60 = vld [vmem:[%s2485_s23 + $0x120] sm:$0xff] }
  0x20   : > { %v322_v46 = vadd.f32 %v321_v36, %v2543_v22  ;;  %v301_v52 = vadd.f32 %v300_v41, %v2567_v32  ;;  %v330_v58 = vadd.f32 %v329_v49, %v2580_v38  ;;  %v2628_v61 = vld [vmem:[%s2485_s23 + $0x128] sm:$0xff]  ;;  %v2631_v62 = vld [vmem:[%s2485_s23 + $0x130] sm:$0xff]  ;;  %v2635_v3 = vld [vmem:[%s2485_s23 + $0x118] sm:$0xff]  ;;  %v309_v10 = vadd.f32 %v308_v55, %v2606_v50 }
  0x21   : > { %v2638_v5 = vld [vmem:[%s2485_s23 + $0x78] sm:$0xff]  ;;  %v2642_v12 = vld [vmem:[%s2485_s23 + $0x188] sm:$0xff]  ;;  %v336_v14 = vadd.f32 %v2628_v61, %v2625_v60  ;;  %v2648_v21 = vld [vmem:[%s2485_s23 + $0x80] sm:$0xff]  ;;  %v348_v26 = vadd.f32 %v347_v59, %v2619_v56 }
  0x22   : > { %v323_v57 = vadd.f32 %v322_v46, %v2564_v31  ;;  %v302_v63 = vadd.f32 %v301_v52, %v2577_v37  ;;  %3852 = vst [vmem:[#allocation7_spill] sm:$0xff] %v2642_v12  ;;  %v331_v19 = vadd.f32 %v330_v58, %v2602_v48  ;;  %v2651_v24 = vld [vmem:[%s2485_s23 + $0x190] sm:$0xff]  ;;  %v2655_v27 = vld [vmem:[%s2485_s23 + $0x138] sm:$0xff]  ;;  %v2658_v33 = vld [vmem:[%s2485_s23 + $0x140] sm:$0xff]  ;;  %v310_v36 = vadd.f32 %v309_v10, %v2615_v54 }
  0x23   : > { %3853 = vst [vmem:[#allocation8_spill] sm:$0xff] %v2651_v24  ;;  %3854 = vst [vmem:[#allocation9_spill] sm:$0xff] %v2655_v27  ;;  %v2663_v39 = vld [vmem:[%s2485_s23 + $0x198] sm:$0xff]  ;;  %v337_v41 = vadd.f32 %v336_v14, %v2631_v62  ;;  %v2667_v42 = vld [vmem:[%s2485_s23 + $0x1b0] sm:$0x3]  ;;  %v349_v55 = vadd.f32 %v348_v26, %v2642_v12 }
  0x24   : > { %324 = vadd.xlane.f32.xlu1 %v323_v57  ;;  %v303_v35 = vadd.f32 %v302_v63, %v2599_v47  ;;  %3855 = vst [vmem:[#allocation10_spill] sm:$0xff] %v2663_v39  ;;  %3856 = vst [vmem:[#allocation11_spill] sm:$0xff] %v2667_v42  ;;  %v2670_v46 = vld [vmem:[%s2485_s23 + $0x1b8] sm:$0x3]  ;;  %v2673_v49 = vld [vmem:[%s2485_s23 + $0x1c0] sm:$0x3]  ;;  %v332_v51 = vadd.f32 %v331_v19, %v2612_v53  ;;  %v311_v10 = vadd.f32 %v310_v36, %v2638_v5 }
  0x25   : > { %3857 = vst [vmem:[#allocation12_spill] sm:$0xff] %v2670_v46  ;;  %3858 = vst [vmem:[#allocation13_spill] sm:$0xff] %v2673_v49  ;;  %v2677_v52 = vld [vmem:[%s2485_s23 + $0x88] sm:$0xff]  ;;  %v2687_v59 = vld [vmem:[%s2485_s23 + $0x1d0] sm:$0x3]  ;;  %v338_v19 = vadd.f32 %v337_v41, %v2655_v27  ;;  %v350_v44 = vadd.f32 %v349_v55, %v2651_v24  ;;  %v358_v36 = vsel %vm356_vm0, %v2670_v46, 0.0 }
  0x26   : > { %v2681_v57 = vld [vmem:[%s2485_s23 + $0x148] sm:$0xff]  ;;  %3861 = vst [vmem:[#allocation16_spill] sm:$0xff] %v2687_v59  ;;  %v2690_v63 = vld [vmem:[%s2485_s23 + $0x1d8] sm:$0x3]  ;;  %304 = vadd.xlane.f32.xlu0 %v303_v35  ;;  %v2694_v14 = vld [vmem:[%s2485_s23 + $0x1a0] sm:$0xff]  ;;  %v333_v45 = vadd.f32 %v332_v51, %v2635_v3  ;;  %v357_v35 = vsel %vm356_vm0, %v2667_v42, 0.0  ;;  %v312_v43 = vadd.f32 %v311_v10, %v2648_v21 }
  0x27   : > { %3859 = vst [vmem:[#allocation14_spill] sm:$0xff] %v2681_v57  ;;  %v2684_v58 = vld [vmem:[%s2485_s23 + $0x1c8] sm:$0x3]  ;;  %3862 = vst [vmem:[#allocation17_spill] sm:$0xff] %v2690_v63  ;;  %v2698_v56 = vld [vmem:[%s2485_s23 + $0x1e0] sm:$0x3]  ;;  %v339_v53 = vadd.f32 %v338_v19, %v2658_v33  ;;  %v359_v27 = vadd.f32 %v358_v36, %v357_v35  ;;  %v351_v55 = vadd.f32 %v350_v44, %v2663_v39 }
  0x28   : > { %3860 = vst [vmem:[#allocation15_spill] sm:$0xff] %v2684_v58  ;;  %3863 = vst [vmem:[#allocation18_spill] sm:$0xff] %v2694_v14  ;;  %v2701_v26 = vld [vmem:[%s2485_s23 + $0x1e8] sm:$0x3]  ;;  %v2704_v12 = vld [vmem:[%s2485_s23 + $0x1f0] sm:$0x3]  ;;  %334 = vadd.xlane.f32.xlu1 %v333_v45  ;;  %v313_v19 = vadd.f32 %v312_v43, %v2677_v52 }
  0x29   : > { %3864 = vst [vmem:[#allocation19_spill] sm:$0xff] %v2698_v56  ;;  %3865 = vst [vmem:[#allocation20_spill] sm:$0xff] %v2701_v26  ;;  %v2714_v41 = vld [vmem:[%s2485_s23 + $0x1a8] sm:$0xff]  ;;  %v360_v51 = vsel %vm356_vm0, %v2673_v49, 0.0  ;;  %v2721_v24 = vld [vmem:[%s2485_s23 + $0x150] sm:$0xff]  ;;  %v362_v42 = vsel %vm356_vm0, %v2684_v58, 0.0  ;;  %v340_v36 = vadd.f32 %v339_v53, %v2681_v57  ;;  %v352_v39 = vadd.f32 %v351_v55, %v2694_v14 }
  0x2a   : > { %v364_v10 = vsel %vm356_vm0, %v2687_v59, 0.0  ;;  %v366_v46 = vsel %vm356_vm0, %v2690_v63, 0.0  ;;  %v2731_v35 = vld [vmem:[%s2485_s23 + $0x158] sm:$0xff]  ;;  %v361_v45 = vadd.f32 %v360_v51, %v359_v27  ;;  %v368_v44 = vsel %vm356_vm0, %v2698_v56, 0.0  ;;  %v2738_v49 = vld [vmem:[%s2485_s23 + $0x160] sm:$0xff]  ;;  %314 = vadd.xlane.f32.xlu0 %v313_v19 }
  0x2b   : > { %v370_v59 = vsel %vm356_vm0, %v2701_v26, 0.0  ;;  %v372_v63 = vsel %vm356_vm0, %v2704_v12, 0.0  ;;  %v341_v43 = vadd.f32 %v340_v36, %v2721_v24  ;;  %v353_v53 = vadd.f32 %v352_v39, %v2714_v41  ;;  %v2333_v19 = vld [vmem:[%s3793_s3 + $0x40] sm:$0xff]  }
  0x2c   : > { %v363_v58 = vadd.f32 %v362_v42, %v361_v45  ;;  %v2334_v39 = vld [vmem:[%s3793_s3] sm:$0xff]   ;;  %2111 = vmatprep.subr.bf16.mxu0 %v2333_v19 }
  0x2d   : > { %v342_v27 = vadd.f32 %v341_v43, %v2731_v35  ;;  %354 = vadd.xlane.f32.xlu1 %v353_v53  ;;  %v2335_v42 = vld [vmem:[%s3793_s3 + $0xc0] sm:$0xff]   ;;  %2112 = vmatpush3.bf16.msra.mxu0 %v2334_v39 }
  0x2e   : > { %v365_v51 = vadd.f32 %v364_v10, %v363_v58  ;;  %2151 = vmatprep.subr.bf16.mxu1 %v2335_v42 }
  0x2f   : > { %v343_v55 = vadd.f32 %v342_v27, %v2738_v49 }
  0x30   : > { %v367_v56 = vadd.f32 %v366_v46, %v365_v51  ;;  %v2336_v46 = vld [vmem:[%s3793_s3 + $0x80] sm:$0xff]  }
  0x31   : > { %344 = vadd.xlane.f32.xlu0 %v343_v55  ;;  %2152 = vmatpush3.bf16.msra.mxu1 %v2336_v46 }
  0x32   : > { %v369_v14 = vadd.f32 %v368_v44, %v367_v56  ;;  %v2337_v56 = vld [vmem:[%s3793_s3 + $0x48] sm:$0xff]  }
  0x33   : > { %2113 = vmatprep.subr.bf16.mxu0 %v2337_v56 }
  0x34   : > { %v371_v57 = vadd.f32 %v370_v59, %v369_v14 }
  0x36   : > { %v373_v26 = vadd.f32 %v372_v63, %v371_v57 }
  0x38   : > { %374 = vadd.xlane.f32.xlu0 %v373_v26 }
  0xb1   : > { %v325_v57 = vpop.xlane.xlu1 %324 }
  0xb2   : > { %v379_v58 = vmul.f32 0.00086805556, %v325_v57 }
  0xb3   : > { %v305_v59 = vpop.xlane.xlu0 %304 }
  0xb4   : > { %v377_v63 = vmul.f32 0.00086805556, %v305_v59  ;;  %v2764_v14 = vsub.f32 %v2488_v0, %v379_v58  ;;  %v2767_v26 = vsub.f32 %v2491_v1, %v379_v58  ;;  %v2776_v45 = vsub.f32 %v2494_v2, %v379_v58 }
  0xb5   : > { %v2779_v44 = vsub.f32 %v2499_v4, %v379_v58  ;;  %v2788_v1 = vsub.f32 %v2512_v9, %v379_v58  ;;  %v2804_v9 = vsub.f32 %v2534_v18, %v379_v58  ;;  %v2825_v39 = vsub.f32 %v2564_v31, %v379_v58 }
  0xb6   : > { %v2770_v10 = vsub.f32 %v2503_v6, %v377_v63  ;;  %v2773_v36 = vsub.f32 %v2506_v7, %v377_v63  ;;  %v2782_v43 = vsub.f32 %v2509_v8, %v377_v63  ;;  %v2785_v0 = vsub.f32 %v2521_v13, %v377_v63  ;;  %v335_v13 = vpop.xlane.xlu1 %334 }
  0xb7   : > { %3866 = vst [vmem:[#allocation21_spill] sm:$0xff] %v2788_v1  ;;  %v2791_v6 = vsub.f32 %v2517_v11, %v379_v58  ;;  %v2794_v7 = vsub.f32 %v2538_v20, %v377_v63  ;;  %v2797_v2 = vsub.f32 %v2546_v23, %v377_v63  ;;  %v315_v53 = vpop.xlane.xlu0 %314  ;;  %3868 = vst [vmem:[#allocation23_spill] sm:$0xff] %v2804_v9  ;;  %v2829_v46 = vmul.f32 0.00086805556, %v335_v13 }
  0xb8   : > { %v447_v4 = vmul.f32 %v2770_v10, %v2770_v10  ;;  %v448_v8 = vmul.f32 %v2773_v36, %v2773_v36  ;;  %v2807_v11 = vsub.f32 %v2543_v22, %v379_v58  ;;  %v465_v20 = vmul.f32 %v2764_v14, %v2764_v14  ;;  %3872 = vst [vmem:[#allocation27_spill] sm:$0xff] %v2825_v39 }
  0xb9   : > { %3867 = vst [vmem:[#allocation22_spill] sm:$0xff] %v2791_v6  ;;  %v466_v23 = vmul.f32 %v2767_v26, %v2767_v26  ;;  %v378_v27 = vmul.f32 0.00086805556, %v315_v53  ;;  %v2814_v51 = vsub.f32 %v2567_v32, %v377_v63  ;;  %v2817_v55 = vsub.f32 %v2577_v37, %v377_v63 }
  0xba   : > { %3869 = vst [vmem:[#allocation24_spill] sm:$0xff] %v2807_v11  ;;  %v2820_v19 = vsub.f32 %v2599_v47, %v377_v63  ;;  %v449_v18 = vmul.f32 %v2782_v43, %v2782_v43  ;;  %v510_v22 = vadd.f32 %v448_v8, %v447_v4  ;;  %v467_v42 = vmul.f32 %v2776_v45, %v2776_v45  ;;  %v355_v13 = vpop.xlane.xlu1 %354 }
  0xbb   : > { %3870 = vst [vmem:[#allocation25_spill] sm:$0xff] %v2814_v51  ;;  %v450_v32 = vmul.f32 %v2785_v0, %v2785_v0  ;;  %v451_v37 = vmul.f32 %v2794_v7, %v2794_v7  ;;  %v452_v47 = vmul.f32 %v2797_v2, %v2797_v2  ;;  %v468_v57 = vmul.f32 %v2779_v44, %v2779_v44 }
  0xbc   : > { %3871 = vst [vmem:[#allocation26_spill] sm:$0xff] %v2820_v19  ;;  %v511_v56 = vadd.f32 %v510_v22, %v449_v18  ;;  %v530_v31 = vadd.f32 %v466_v23, %v465_v20  ;;  %v2840_v58 = vsub.f32 %v2555_v28, %v378_v27  ;;  %v453_v59 = vmul.f32 %v2814_v51, %v2814_v51 }
  0xbd   : > { %v454_v63 = vmul.f32 %v2817_v55, %v2817_v55  ;;  %v455_v4 = vmul.f32 %v2820_v19, %v2820_v19  ;;  %v2849_v8 = vsub.f32 %v2558_v29, %v378_v27  ;;  %v469_v20 = vmul.f32 %v2788_v1, %v2788_v1 }
  0xbe   : > { %v512_v53 = vadd.f32 %v511_v56, %v450_v32  ;;  %v470_v28 = vmul.f32 %v2791_v6, %v2791_v6  ;;  %v531_v23 = vadd.f32 %v530_v31, %v467_v42  ;;  %v345_v18 = vpop.xlane.xlu0 %344  ;;  %v471_v22 = vmul.f32 %v2804_v9, %v2804_v9 }
  0xbf   : > { %v472_v51 = vmul.f32 %v2807_v11, %v2807_v11  ;;  %v2860_v19 = vsub.f32 %v2561_v30, %v378_v27  ;;  %v456_v29 = vmul.f32 %v2840_v58, %v2840_v58  ;;  %v473_v56 = vmul.f32 %v2825_v39, %v2825_v39 }
  0xc0   : > { %v513_v32 = vadd.f32 %v512_v53, %v451_v37  ;;  %v532_v1 = vadd.f32 %v531_v23, %v468_v57  ;;  %v457_v42 = vmul.f32 %v2849_v8, %v2849_v8  ;;  %v2868_v31 = vmul.f32 0.00086805556, %v355_v13 }
  0xc1   : > { %v2871_v9 = vsub.f32 %v2584_v40, %v378_v27  ;;  %v2874_v11 = vsub.f32 %v2606_v50, %v378_v27  ;;  %v2877_v30 = vsub.f32 %v2615_v54, %v378_v27  ;;  %v2879_v6 = vmul.f32 0.00086805556, %v345_v18 }
  0xc2   : > { %v514_v37 = vadd.f32 %v513_v32, %v452_v47  ;;  %v533_v53 = vadd.f32 %v532_v1, %v469_v20  ;;  %v2882_v57 = vsub.f32 %v2638_v5, %v378_v27  ;;  %v458_v13 = vmul.f32 %v2860_v19, %v2860_v19 }
  0xc3   : > { %v520_v23 = vadd.f32 %v457_v42, %v456_v29  ;;  %v2888_v40 = vsub.f32 %v2525_v15, %v2829_v46  ;;  %v2892_v50 = vsub.f32 %v2528_v16, %v2829_v46  ;;  %v2895_v47 = vsub.f32 %v2648_v21, %v378_v27 }
  0xc4   : > { %v515_v54 = vadd.f32 %v514_v37, %v453_v59  ;;  %v534_v18 = vadd.f32 %v533_v53, %v470_v28  ;;  %v2899_v5 = vsub.f32 %v2531_v17, %v2829_v46  ;;  %v2902_v1 = vsub.f32 %v2677_v52, %v378_v27 }
  0xc5   : > { %v459_v15 = vmul.f32 %v2871_v9, %v2871_v9  ;;  %v460_v20 = vmul.f32 %v2874_v11, %v2874_v11  ;;  %v521_v16 = vadd.f32 %v520_v23, %v458_v13  ;;  %v461_v21 = vmul.f32 %v2877_v30, %v2877_v30  ;;  %v375_v17 = vpop.xlane.xlu0 %374 }
  0xc6   : > { %3873 = vst [vmem:[#allocation28_spill] sm:$0xff] %v2902_v1  ;;  %v516_v29 = vadd.f32 %v515_v54, %v454_v63  ;;  %v535_v59 = vadd.f32 %v534_v18, %v471_v22  ;;  %v2912_v28 = vsub.f32 %v2550_v25, %v2829_v46  ;;  %v462_v52 = vmul.f32 %v2882_v57, %v2882_v57 }
  0xc7   : > { %v522_v27 = vadd.f32 %v521_v16, %v459_v15  ;;  %v474_v32 = vmul.f32 %v2888_v40, %v2888_v40  ;;  %v475_v42 = vmul.f32 %v2892_v50, %v2892_v50  ;;  %v2922_v37 = vsub.f32 %v2571_v34, %v2829_v46 }
  0xc8   : > { %v517_v63 = vadd.f32 %v516_v29, %v455_v4  ;;  %v536_v22 = vadd.f32 %v535_v59, %v472_v51  ;;  %v476_v25 = vmul.f32 %v2899_v5, %v2899_v5  ;;  %v463_v53 = vmul.f32 %v2895_v47, %v2895_v47 }
  0xc9   : > { %3874 = vst [vmem:[#allocation29_spill] sm:$0xff] %v2922_v37  ;;  %v464_v13 = vmul.f32 %v2902_v1, %v2902_v1  ;;  %v523_v23 = vadd.f32 %v522_v27, %v460_v20  ;;  %v2932_v54 = vsub.f32 %v2580_v38, %v2829_v46  ;;  %v2934_v4 = vmul.f32 0.00086805556, %v375_v17  ;;  %v3895_v1 = vld [vmem:[#allocation11_spill] sm:$0xff] }
  0xca   : > { %518 = vadd.xlane.f32.xlu1 %v517_v63  ;;  %v477_v34 = vmul.f32 %v2912_v28, %v2912_v28  ;;  %v540_v51 = vadd.f32 %v475_v42, %v474_v32  ;;  %v2940_v18 = vsub.f32 %v2625_v60, %v2879_v6  ;;  %v2944_v16 = vsub.f32 %v2602_v48, %v2829_v46  ;;  %v3877_v60 = vld [vmem:[#allocation9_spill] sm:$0xff] }
  0xcb   : > { %3875 = vst [vmem:[#allocation30_spill] sm:$0xff] %v2932_v54  ;;  %v524_v15 = vadd.f32 %v523_v23, %v461_v21  ;;  %v2948_v38 = vsub.f32 %v2628_v61, %v2879_v6  ;;  %v2952_v20 = vsub.f32 %v2631_v62, %v2879_v6  ;;  %v537_v29 = vadd.f32 %v536_v22, %v473_v56  ;;  %v3878_v48 = vld [vmem:[#allocation5_spill] sm:$0xff] }
  0xcc   : > { %3876 = vst [vmem:[#allocation31_spill] sm:$0xff] %v2944_v16  ;;  %v478_v59 = vmul.f32 %v2922_v37, %v2922_v37  ;;  %v541_v17 = vadd.f32 %v540_v51, %v476_v25  ;;  %v2958_v21 = vsub.f32 %v3877_v60, %v2879_v6  ;;  %v2962_v32 = vsub.f32 %v3878_v48, %v2829_v46  ;;  %v3886_v60 = vld [vmem:[#allocation3_spill] sm:$0xff]  ;;  %v3887_v48 = vld [vmem:[#allocation4_spill] sm:$0xff] }
  0xcd   : > { %v525_v27 = vadd.f32 %v524_v15, %v462_v52  ;;  %v479_v61 = vmul.f32 %v2932_v54, %v2932_v54  ;;  %v483_v62 = vmul.f32 %v2940_v18, %v2940_v18  ;;  %v2970_v42 = vsub.f32 %v2658_v33, %v2879_v6 }
  0xce   : > { %3879 = vst [vmem:[#allocation9_spill] sm:$0xff] %v2962_v32  ;;  %538 = vadd.xlane.f32.xlu1 %v537_v29  ;;  %v542_v56 = vadd.f32 %v541_v17, %v477_v34  ;;  %v484_v63 = vmul.f32 %v2948_v38, %v2948_v38  ;;  %v485_v52 = vmul.f32 %v2952_v20, %v2952_v20  ;;  %v3882_v34 = vld [vmem:[#allocation14_spill] sm:$0xff] }
  0xcf   : > { %3880 = vst [vmem:[#allocation5_spill] sm:$0xff] %v2970_v42  ;;  %v526_v22 = vadd.f32 %v525_v27, %v463_v53  ;;  %v2978_v25 = vsub.f32 %v2635_v3, %v2829_v46  ;;  %v480_v23 = vmul.f32 %v2944_v16, %v2944_v16  ;;  %v2984_v51 = vsub.f32 %v3882_v34, %v2879_v6  ;;  %v3885_v3 = vld [vmem:[#allocation2_spill] sm:$0xff] }
  0xd0   : > { %v543_v33 = vadd.f32 %v542_v56, %v478_v59  ;;  %v2988_v15 = vsub.f32 %v2721_v24, %v2879_v6  ;;  %v486_v29 = vmul.f32 %v2958_v21, %v2958_v21  ;;  %v550_v53 = vadd.f32 %v484_v63, %v483_v62 }
  0xd1   : > { %3881 = vst [vmem:[#allocation32_spill] sm:$0xff] %v2978_v25  ;;  %3883 = vst [vmem:[#allocation14_spill] sm:$0xff] %v2984_v51  ;;  %v527_v17 = vadd.f32 %v526_v22, %v464_v13  ;;  %v2994_v46 = vsub.f32 %v3885_v3, %v2868_v31  ;;  %v2998_v27 = vsub.f32 %v3886_v60, %v2868_v31 }
  0xd2   : > { %3884 = vst [vmem:[#allocation33_spill] sm:$0xff] %v2988_v15  ;;  %v3002_v59 = vsub.f32 %v3887_v48, %v2868_v31  ;;  %v544_v56 = vadd.f32 %v543_v33, %v479_v61  ;;  %v3006_v24 = vsub.f32 %v2731_v35, %v2879_v6  ;;  %v487_v13 = vmul.f32 %v2970_v42, %v2970_v42  ;;  %v3889_v61 = vld [vmem:[#allocation6_spill] sm:$0xff]  ;;  %v3891_v48 = vld [vmem:[#allocation7_spill] sm:$0xff] }
  0xd3   : > { %v551_v62 = vadd.f32 %v550_v53, %v485_v52  ;;  %528 = vadd.xlane.f32.xlu0 %v527_v17  ;;  %v481_v63 = vmul.f32 %v2962_v32, %v2962_v32  ;;  %v482_v22 = vmul.f32 %v2978_v25, %v2978_v25  ;;  %v488_v34 = vmul.f32 %v2984_v51, %v2984_v51 }
  0xd4   : > { %3888 = vst [vmem:[#allocation2_spill] sm:$0xff] %v3006_v24  ;;  %v3018_v33 = vsub.f32 %v3889_v61, %v2868_v31  ;;  %v545_v35 = vadd.f32 %v544_v56, %v480_v23  ;;  %v492_v60 = vmul.f32 %v2994_v46, %v2994_v46  ;;  %v493_v52 = vmul.f32 %v2998_v27, %v2998_v27  ;;  %v3893_v61 = vld [vmem:[#allocation8_spill] sm:$0xff] }
  0xd5   : > { %v552_v3 = vadd.f32 %v551_v62, %v486_v29  ;;  %v3026_v53 = vsub.f32 %v2738_v49, %v2879_v6  ;;  %v489_v17 = vmul.f32 %v2988_v15, %v2988_v15  ;;  %v3032_v25 = vsub.f32 %v3891_v48, %v2868_v31  ;;  %v3897_v15 = vld [vmem:[#allocation12_spill] sm:$0xff] }
  0xd6   : > { %v494_v23 = vmul.f32 %v3002_v59, %v3002_v59  ;;  %v546_v29 = vadd.f32 %v545_v35, %v481_v63  ;;  %v490_v56 = vmul.f32 %v3006_v24, %v3006_v24  ;;  %v3040_v39 = vsub.f32 %v3893_v61, %v2868_v31  ;;  %v3900_v61 = vld [vmem:[#allocation15_spill] sm:$0xff] }
  0xd7   : > { %3890 = vst [vmem:[#allocation3_spill] sm:$0xff] %v3026_v53  ;;  %3892 = vst [vmem:[#allocation4_spill] sm:$0xff] %v3032_v25  ;;  %v553_v62 = vadd.f32 %v552_v3, %v487_v13  ;;  %v495_v49 = vmul.f32 %v3018_v33, %v3018_v33  ;;  %v560_v6 = vadd.f32 %v493_v52, %v492_v60  ;;  %v3898_v13 = vld [vmem:[#allocation13_spill] sm:$0xff] }
  0xd8   : > { %3894 = vst [vmem:[#allocation6_spill] sm:$0xff] %v3040_v39  ;;  %v3046_v48 = vsub.f32 %v3895_v1, %v2934_v4  ;;  %v3050_v42 = vsub.f32 %v3897_v15, %v2934_v4  ;;  %v547_v63 = vadd.f32 %v546_v29, %v482_v22  ;;  %v3054_v3 = vsub.f32 %v3898_v13, %v2934_v4  ;;  %v3901_v1 = vld [vmem:[#allocation10_spill] sm:$0xff]  ;;  %v3905_v13 = vld [vmem:[#allocation16_spill] sm:$0xff] }
  0xd9   : > { %v554_v35 = vadd.f32 %v553_v62, %v488_v34  ;;  %v3058_v24 = vsub.f32 %v3900_v61, %v2934_v4  ;;  %v491_v60 = vmul.f32 %v3026_v53, %v3026_v53  ;;  %v3064_v52 = vsub.f32 %v3901_v1, %v2868_v31  ;;  %v3903_v29 = vld [vmem:[#allocation18_spill] sm:$0xff] }
  0xda   : > { %3896 = vst [vmem:[#allocation7_spill] sm:$0xff] %v3046_v48  ;;  %3899 = vst [vmem:[#allocation8_spill] sm:$0xff] %v3054_v3  ;;  %v496_v15 = vmul.f32 %v3032_v25, %v3032_v25  ;;  %v561_v22 = vadd.f32 %v560_v6, %v494_v23  ;;  %548 = vadd.xlane.f32.xlu0 %v547_v63  ;;  %v3070_v62 = vsub.f32 %v3903_v29, %v2868_v31 }
  0xdb   : > { %3902 = vst [vmem:[#allocation11_spill] sm:$0xff] %v3064_v52  ;;  %v555_v34 = vadd.f32 %v554_v35, %v489_v17  ;;  %v3074_v61 = vsub.f32 %v3905_v13, %v2934_v4  ;;  %v501_v53 = vmul.f32 %v3046_v48, %v3046_v48  ;;  %v497_v1 = vmul.f32 %v3040_v39, %v3040_v39  ;;  %v3908_v35 = vld [vmem:[#allocation17_spill] sm:$0xff]  ;;  %v2341_v39 = vld [vmem:[%s3793_s3 + $0x50] sm:$0xff]  }
  0xdc   : > { %3904 = vst [vmem:[#allocation12_spill] sm:$0xff] %v3070_v62  ;;  %v562_v51 = vadd.f32 %v561_v22, %v495_v49  ;;  %v502_v23 = vmul.f32 %v3050_v42, %v3050_v42  ;;  %v503_v17 = vmul.f32 %v3054_v3, %v3054_v3  ;;  %v3086_v63 = vsub.f32 %v2714_v41, %v2868_v31  ;;  %v2338_v49 = vld [vmem:[%s3793_s3 + $0x8] sm:$0xff]  }
  0xdd   : > { %3906 = vst [vmem:[#allocation13_spill] sm:$0xff] %v3074_v61  ;;  %v556_v6 = vadd.f32 %v555_v34, %v490_v56  ;;  %v3090_v29 = vsub.f32 %v3908_v35, %v2934_v4  ;;  %v504_v13 = vmul.f32 %v3058_v24, %v3058_v24  ;;  %v2339_v22 = vld [vmem:[%s3793_s3 + $0xc8] sm:$0xff]   ;;  %v498_v31 = vmul.f32 %v3064_v52, %v3064_v52 }
  0xde   : > { %3907 = vst [vmem:[#allocation15_spill] sm:$0xff] %v3086_v63  ;;  %v2340_v41 = vld [vmem:[%s3793_s3 + $0x88] sm:$0xff]   ;;  %v563_v56 = vadd.f32 %v562_v51, %v496_v15  ;;  %v570_v25 = vsel %vm356_vm0, %v501_v53, 0.0  ;;  %v505_v37 = vmul.f32 %v3074_v61, %v3074_v61  ;;  %v571_v32 = vsel %vm356_vm0, %v502_v23, 0.0  ;;  %2114 = vmatpush3.bf16.msra.mxu0 %v2338_v49  ;;  %2153 = vmatprep.subr.bf16.mxu1 %v2339_v22  ;;  %v3912_v53 = vld [vmem:[#allocation20_spill] sm:$0xff] }
  0xdf   : > { %3909 = vst [vmem:[#allocation10_spill] sm:$0xff] %v3090_v29  ;;  %v3910_v34 = vld [vmem:[#allocation19_spill] sm:$0xff]  ;;  %v557_v16 = vadd.f32 %v556_v6, %v491_v60  ;;  %v573_v54 = vsel %vm356_vm0, %v503_v17, 0.0  ;;  %v499_v51 = vmul.f32 %v3070_v62, %v3070_v62  ;;  %2154 = vmatpush3.bf16.msra.mxu1 %v2340_v41  ;;  %2115 = vmatprep.subr.bf16.mxu0 %v2341_v39  ;;  %v575_v23 = vsel %vm356_vm0, %v504_v13, 0.0 }
  0xe0   : > { %v3107_v35 = vsub.f32 %v3910_v34, %v2934_v4  ;;  %v564_v15 = vadd.f32 %v563_v56, %v497_v1  ;;  %v572_v34 = vadd.f32 %v571_v32, %v570_v25  ;;  %v3121_v60 = vsub.f32 %v3912_v53, %v2934_v4 }
  0xe1   : > { %558 = vadd.xlane.f32.xlu1 %v557_v16  ;;  %v506_v6 = vmul.f32 %v3090_v29, %v3090_v29  ;;  %v3128_v22 = vsub.f32 %v2704_v12, %v2934_v4  ;;  %v577_v39 = vsel %vm356_vm0, %v505_v37, 0.0  ;;  %v500_v16 = vmul.f32 %v3086_v63, %v3086_v63  ;;  %v2342_v12 = vld [vmem:[%s3793_s3 + $0x10] sm:$0xff]  }
  0xe2   : > { %3911 = vst [vmem:[#allocation18_spill] sm:$0xff] %v3107_v35  ;;  %3913 = vst [vmem:[#allocation16_spill] sm:$0xff] %v3121_v60  ;;  %v565_v17 = vadd.f32 %v564_v15, %v498_v31  ;;  %v574_v49 = vadd.f32 %v573_v54, %v572_v34  ;;  %v507_v32 = vmul.f32 %v3107_v35, %v3107_v35  ;;  %v2343_v37 = vld [vmem:[%s3793_s3 + $0xd0] sm:$0xff]   ;;  %v2345_v15 = vld [vmem:[%s3793_s3 + $0x58] sm:$0xff]   ;;  %2116 = vmatpush3.bf16.msra.mxu0 %v2342_v12 }
  0xe3   : > { %3914 = vst [vmem:[#allocation17_spill] sm:$0xff] %v3128_v22  ;;  %v508_v41 = vmul.f32 %v3121_v60, %v3121_v60  ;;  %v579_v13 = vsel %vm356_vm0, %v506_v6, 0.0  ;;  %v2344_v4 = vld [vmem:[%s3793_s3 + $0x90] sm:$0xff]   ;;  %v509_v56 = vmul.f32 %v3128_v22, %v3128_v22  ;;  %2155 = vmatprep.subr.bf16.mxu1 %v2343_v37  ;;  %2117 = vmatprep.subr.bf16.mxu0 %v2345_v15  ;;  %v2354_v12 = vld [vmem:[%s3793_s3 + $0x28] sm:$0xff]  }
  0xe4   : > { %v566_v25 = vadd.f32 %v565_v17, %v499_v51  ;;  %v576_v1 = vadd.f32 %v575_v23, %v574_v49  ;;  %v581_v51 = vsel %vm356_vm0, %v507_v32, 0.0  ;;  %2156 = vmatpush3.bf16.msra.mxu1 %v2344_v4  ;;  %v2346_v32 = vld [vmem:[%s3793_s3 + $0x18] sm:$0xff]   ;;  %v2356_v37 = vld [vmem:[%s3793_s3 + $0xa8] sm:$0xff]   ;;  %v2357_v4 = vld [vmem:[%s3793_s3 + $0x70] sm:$0xff]  }
  0xe5   : > { %v583_v53 = vsel %vm356_vm0, %v508_v41, 0.0  ;;  %v585_v23 = vsel %vm356_vm0, %v509_v56, 0.0  ;;  %v2351_v41 = vld [vmem:[%s3793_s3 + $0xe0] sm:$0xff]   ;;  %v2358_v56 = vld [vmem:[%s3793_s3 + $0x30] sm:$0xff]  }
  0xe6   : > { %v567_v54 = vadd.f32 %v566_v25, %v500_v16  ;;  %v578_v31 = vadd.f32 %v577_v39, %v576_v1  ;;  %v2347_v39 = vld [vmem:[%s3793_s3 + $0xd8] sm:$0xff]   ;;  %v2349_v25 = vld [vmem:[%s3793_s3 + $0x60] sm:$0xff]   ;;  %2118 = vmatpush3.bf16.msra.mxu0 %v2346_v32  ;;  %v2360_v15 = vld [vmem:[%s3793_s3 + $0xb0] sm:$0xff]  }
  0xe7   : > { %v2348_v16 = vld [vmem:[%s3793_s3 + $0x98] sm:$0xff]   ;;  %2157 = vmatprep.subr.bf16.mxu1 %v2347_v39  ;;  %2119 = vmatprep.subr.bf16.mxu0 %v2349_v25  ;;  %v2350_v1 = vld [vmem:[%s3793_s3 + $0x20] sm:$0xff]  }
  0xe8   : > { %568 = vadd.xlane.f32.xlu0 %v567_v54  ;;  %v580_v34 = vadd.f32 %v579_v13, %v578_v31  ;;  %2158 = vmatpush3.bf16.msra.mxu1 %v2348_v16  ;;  %v2352_v13 = vld [vmem:[%s3793_s3 + $0xa0] sm:$0xff]   ;;  %v2353_v54 = vld [vmem:[%s3793_s3 + $0x68] sm:$0xff]  }
  0xe9   : > { %2159 = vmatprep.subr.bf16.mxu1 %v2351_v41  ;;  %v2355_v31 = vld [vmem:[%s3793_s3 + $0xe8] sm:$0xff]  }
  0xea   : > { %v582_v6 = vadd.f32 %v581_v51, %v580_v34  ;;  %2120 = vmatpush3.bf16.msra.mxu0 %v2350_v1  ;;  %v2359_v51 = vld [vmem:[%s3793_s3 + $0xf0] sm:$0xff]   ;;  %v2361_v34 = vld [vmem:[%s3793_s3 + $0x78] sm:$0xff]   ;;  %v675_v1 = vlaneseq }
  0xeb   : > { %2121 = vmatprep.subr.bf16.mxu0 %v2353_v54 }
  0xec   : > { %v584_v17 = vadd.f32 %v583_v53, %v582_v6  ;;  %2160 = vmatpush3.bf16.msra.mxu1 %v2352_v13  ;;  %v2363_v53 = vld [vmem:[%s3793_s3 + $0xf8] sm:$0xff]   ;;  %v676_v13 = vshrl.u32 %v675_v1, 7 }
  0xed   : > { %2161 = vmatprep.subr.bf16.mxu1 %v2355_v31  ;;  %v2362_v6 = vld [vmem:[%s3793_s3 + $0x38] sm:$0xff]  }
  0xee   : > { %v586_v49 = vadd.f32 %v585_v23, %v584_v17  ;;  %2122 = vmatpush3.bf16.msra.mxu0 %v2354_v12  ;;  %v2364_v23 = vld [vmem:[%s3793_s3 + $0xb8] sm:$0xff]   ;;  %v2365_v17 = vld [vmem:[%s3793_s3 + $0x140] sm:$0xff]   ;;  %v693_v22 = vsub.s32 4, %v676_v13 }
  0xef   : > { %2123 = vmatprep.subr.bf16.mxu0 %v2357_v4  ;;  %v681_v4 = vsub.s32 1, %v676_v13 }
  0xf0   : > { %587 = vadd.xlane.f32.xlu1 %v586_v49  ;;  %2162 = vmatpush3.bf16.msra.mxu1 %v2356_v37  ;;  %v2367_v49 = vld [vmem:[%s3793_s3 + $0x1c0] sm:$0xff]  }
  0xf1   : > { %2163 = vmatprep.subr.bf16.mxu1 %v2359_v51  ;;  %v3218_v51 = vsub.s32 0, %v676_v13 }
  0xf2   : > { %2124 = vmatpush3.bf16.msra.mxu0 %v2358_v56  ;;  %v689_v56 = vsub.s32 3, %v676_v13 }
  0xf3   : > { %2125 = vmatprep.subr.bf16.mxu0 %v2361_v34  ;;  %v685_v34 = vsub.s32 2, %v676_v13 }
  0xf4   : > { %2164 = vmatpush3.bf16.msra.mxu1 %v2360_v15  ;;  %v289_v15 = vld [vmem:[%s3792_s2] ss:$2 sm:$0xff] }
  0xf5   : > { %2165 = vmatprep.subr.bf16.mxu1 %v2363_v53  ;;  %v697_v53 = vsub.s32 5, %v676_v13  ;;  %v3267_v52 = vrot.slane %v289_v15, %v693_v22 }
  0xf6   : > { %2126 = vmatpush3.bf16.msra.mxu0 %v2362_v6  ;;  %v705_v6 = vsub.s32 7, %v676_v13 }
  0xf7   : > { %2191 = vmatprep.subr.bf16.mxu0 %v2365_v17  ;;  %v2032_v17 = vld [vmem:[%s3792_s2 + $0x1] ss:$2 sm:$0xff] }
  0xf8   : > { %2166 = vmatpush3.bf16.msra.mxu1 %v2364_v23 }
  0xf9   : > { %2231 = vmatprep.subr.bf16.mxu1 %v2367_v49 }
 0x157   : > { %v519_v32 = vpop.xlane.xlu1 %518 }
 0x158   : > { %v589_v39 = vmul.f32 0.00086805556, %v519_v32 }
 0x15a   : > { %v596_v16 = vadd.f32 1e-05, %v589_v39  ;;  %v3230_v39 = vrot.slane %v289_v15, %v681_v4 }
 0x15b   : > { %v539_v25 = vpop.xlane.xlu1 %538 }
 0x15c   : > { %2405 = vrsqrt.f32 %v596_v16  ;;  %v591_v41 = vmul.f32 0.00086805556, %v539_v25  ;;  %v3232_v16 = vrot.slane %v289_v15, %v689_v56  ;;  %v3235_v25 = vrot.slane %v289_v15, %v3218_v51 }
 0x15e   : > { %v598_v54 = vadd.f32 1e-05, %v591_v41  ;;  %v3237_v41 = vrot.slane %v289_v15, %v685_v34 }
 0x160   : > { %v529_v31 = vpop.xlane.xlu0 %528  ;;  %2407 = vrsqrt.f32 %v598_v54  ;;  %v3239_v54 = vrot.slane %v289_v15, %v697_v53 }
 0x161   : > { %v590_v12 = vmul.f32 0.00086805556, %v529_v31  ;;  %v3241_v31 = vrot.slane %v289_v15, %v705_v6 }
 0x163   : > { %v597_v37 = vadd.f32 1e-05, %v590_v12  ;;  %v3243_v12 = vrot.slane %v2032_v17, %v681_v4 }
 0x165   : > { %2409 = vrsqrt.f32 %v597_v37  ;;  %v3245_v37 = vrot.slane %v2032_v17, %v689_v56 }
 0x166   : > { %v3223_v23 = vpop.eup %2405 }
 0x167   : > { %v549_v49 = vpop.xlane.xlu0 %548  ;;  %v611_v32 = vmul.f32 %v3223_v23, %v2773_v36  ;;  %v701_v36 = vsub.s32 6, %v676_v13  ;;  %v613_v35 = vmul.f32 %v3223_v23, %v2785_v0  ;;  %v610_v61 = vmul.f32 %v3223_v23, %v2770_v10 }
 0x168   : > { %v592_v1 = vmul.f32 0.00086805556, %v549_v49  ;;  %v3252_v49 = vrot.slane %v2032_v17, %v3218_v51  ;;  %v612_v4 = vmul.f32 %v3223_v23, %v2782_v43  ;;  %v615_v56 = vmul.f32 %v3223_v23, %v2797_v2 }
 0x169   : > { %v721_v60 = vmul.f32 %v3230_v39, %v611_v32  ;;  %v617_v13 = vmul.f32 %v3223_v23, %v2817_v55  ;;  %v3263_v0 = vrot.slane %v2032_v17, %v697_v53  ;;  %v3265_v10 = vrot.slane %v2032_v17, %v705_v6 }
 0x16a   : > { %v599_v63 = vadd.f32 1e-05, %v592_v1  ;;  %v3261_v1 = vrot.slane %v2032_v17, %v685_v34  ;;  %v3269_v32 = vrot.slane %v2032_v17, %v693_v22  ;;  %v3271_v62 = vrot.slane %v289_v15, %v701_v36  ;;  %v3275_v2 = vpop.eup %2407 }
 0x16b   : > { %v3273_v43 = vrot.slane %v2032_v17, %v701_v36  ;;  %v723_v55 = vmul.f32 %v3232_v16, %v613_v35  ;;  %v614_v34 = vmul.f32 %v3223_v23, %v2794_v7  ;;  %v831_v6 = vadd.f32 %v3243_v12, %v721_v60 }
 0x16c   : > { %2411 = vrsqrt.f32 %v599_v63  ;;  %3915 = vst [vmem:[#allocation19_spill] sm:$0xff] %v3271_v62  ;;  %v720_v63 = vmul.f32 %v3235_v25, %v610_v61  ;;  %v722_v22 = vmul.f32 %v3237_v41, %v612_v4  ;;  %v3286_v15 = vmul.f32 %v3239_v54, %v615_v56 }
 0x16d   : > { %3916 = vst [vmem:[#allocation20_spill] sm:$0xff] %v3273_v43  ;;  %v3289_v17 = vmul.f32 %v3241_v31, %v617_v13  ;;  %v629_v36 = vmul.f32 %v3275_v2, %v2767_v26  ;;  %v631_v4 = vmul.f32 %v3275_v2, %v2779_v44 }
 0x16e   : > { %v559_v29 = vpop.xlane.xlu1 %558  ;;  %v832_v26 = vadd.f32 %v3261_v1, %v722_v22 }
 0x16f   : > { %v593_v3 = vmul.f32 0.00086805556, %v559_v29  ;;  %v3281_v53 = vpop.eup %2409 }
 0x170   : > { %v620_v35 = vmul.f32 %v3281_v53, %v2849_v8  ;;  %v622_v61 = vmul.f32 %v3281_v53, %v2871_v9  ;;  %v619_v7 = vmul.f32 %v3281_v53, %v2840_v58  ;;  %v621_v60 = vmul.f32 %v3281_v53, %v2860_v19 }
 0x171   : > { %v600_v29 = vadd.f32 1e-05, %v593_v3  ;;  %v628_v3 = vmul.f32 %v3275_v2, %v2764_v14  ;;  %v833_v58 = vadd.f32 %v3245_v37, %v723_v55  ;;  %v830_v19 = vadd.f32 %v3252_v49, %v720_v63 }
 0x172   : > { %v730_v8 = vmul.f32 %v3230_v39, %v620_v35  ;;  %v732_v9 = vmul.f32 %v3232_v16, %v622_v61  ;;  %v729_v56 = vmul.f32 %v3235_v25, %v619_v7  ;;  %v731_v13 = vmul.f32 %v3237_v41, %v621_v60 }
 0x173   : > { %2413 = vrsqrt.f32 %v600_v29  ;;  %v630_v35 = vmul.f32 %v3275_v2, %v2776_v45  ;;  %v739_v55 = vmul.f32 %v3230_v39, %v629_v36  ;;  %v741_v63 = vmul.f32 %v3232_v16, %v631_v4  ;;  %v2368_v45 = vld [vmem:[%s3793_s3 + $0x180] sm:$0xff]   ;;  %v2369_v4 = vld [vmem:[%s3793_s3 + $0x148] sm:$0xff]  }
 0x174   : > { %v840_v44 = vadd.f32 %v3243_v12, %v730_v8  ;;  %v842_v14 = vadd.f32 %v3245_v37, %v732_v9  ;;  %v839_v29 = vadd.f32 %v3252_v49, %v729_v56  ;;  %v841_v7 = vadd.f32 %v3261_v1, %v731_v13  ;;  %v2366_v8 = vld [vmem:[%s3793_s3 + $0x100] sm:$0xff]  }
 0x175   : > { %v569_v43 = vpop.xlane.xlu0 %568 }
 0x176   : > { %v594_v61 = vmul.f32 0.00086805556, %v569_v43  ;;  %v3320_v60 = vpop.eup %2411  ;;  %v894_v22 = vpack.c.bf16 %v840_v44, %v831_v6  ;;  %v896_v62 = vpack.c.bf16 %v842_v14, %v833_v58  ;;  %v893_v48 = vpack.c.bf16 %v839_v29, %v830_v19  ;;  %v2371_v58 = vld [vmem:[%s3793_s3 + $0x1c8] sm:$0xff]  }
 0x177   : > { %v738_v43 = vmul.f32 %v3235_v25, %v628_v3  ;;  %v895_v56 = vpack.c.bf16 %v841_v7, %v832_v26  ;;  %v638_v36 = vmul.f32 %v3320_v60, %v2892_v50  ;;  %v640_v6 = vmul.f32 %v3320_v60, %v2912_v28 }
 0x178   : > { %v601_v9 = vadd.f32 1e-05, %v594_v61  ;;  %1542 = vmatprep.mubr.bf16.mxu0 %v894_v22  ;;  %1606 = vmatprep.mubr.bf16.mxu1 %v896_v62  ;;  %v637_v3 = vmul.f32 %v3320_v60, %v2888_v40  ;;  %v639_v19 = vmul.f32 %v3320_v60, %v2899_v5  ;;  %v740_v50 = vmul.f32 %v3237_v41, %v630_v35  ;;  %v2370_v40 = vld [vmem:[%s3793_s3 + $0x108] sm:$0xff]   ;;  %v2031_v35 = vld [vmem:[%s3792_s2 + $0x10] ss:$2 sm:$0x1] }
 0x179   : > { %1543 = vmatmul.mubr.bf16.vlgmr.msra.gmra.mrb[0].mxu0 %v893_v48  ;;  %1607 = vmatmul.mubr.bf16.vlgmr.msra.gmra.mrb[0].mxu1 %v895_v56  ;;  %v748_v28 = vmul.f32 %v3230_v39, %v638_v36  ;;  %v750_v13 = vmul.f32 %v3232_v16, %v640_v6  ;;  %v724_v26 = vmul.f32 %v3267_v52, %v614_v34  ;;  %v2372_v5 = vld [vmem:[%s3793_s3 + $0x188] sm:$0xff]  }
 0x17a   : > { %2415 = vrsqrt.f32 %v601_v9  ;;  %2192 = vmatpush3.bf16.msra.mxu0 %v2366_v8  ;;  %2232 = vmatpush3.bf16.msra.mxu1 %v2368_v45  ;;  %v849_v62 = vadd.f32 %v3243_v12, %v739_v55  ;;  %v747_v48 = vmul.f32 %v3235_v25, %v637_v3  ;;  %v749_v44 = vmul.f32 %v3237_v41, %v639_v19  ;;  %v2373_v55 = vld [vmem:[%s3793_s3 + $0x150] sm:$0xff]  }
 0x17b   : > { %v858_v14 = vadd.f32 %v3243_v12, %v748_v28  ;;  %v851_v34 = vadd.f32 %v3245_v37, %v741_v63  ;;  %v860_v29 = vadd.f32 %v3245_v37, %v750_v13  ;;  %2193 = vmatprep.subr.bf16.mxu0 %v2369_v4  ;;  %2233 = vmatprep.subr.bf16.mxu1 %v2371_v58  ;;  %v2375_v9 = vld [vmem:[%s3793_s3 + $0x1d0] sm:$0xff]  }
 0x17c   : > { %v848_v22 = vadd.f32 %v3252_v49, %v738_v43  ;;  %v857_v8 = vadd.f32 %v3252_v49, %v747_v48  ;;  %v850_v63 = vadd.f32 %v3261_v1, %v740_v50  ;;  %v859_v45 = vadd.f32 %v3261_v1, %v749_v44  ;;  %v2374_v43 = vld [vmem:[%s3793_s3 + $0x110] sm:$0xff]  }
 0x17d   : > { %v3362_v61 = vpop.eup %2413  ;;  %v588_v7 = vpop.xlane.xlu1 %587  ;;  %v903_v36 = vpack.c.bf16 %v858_v14, %v849_v62  ;;  %v905_v6 = vpack.c.bf16 %v860_v29, %v851_v34  ;;  %v624_v4 = vmul.f32 %v3281_v53, %v2877_v30  ;;  %v2376_v3 = vld [vmem:[%s3793_s3 + $0x190] sm:$0xff]   ;;  %v3386_v19 = vadd.f32 %v3263_v0, %v3286_v15  ;;  %v2379_v15 = vld [vmem:[%s3793_s3 + $0x1d8] sm:$0xff]  }
 0x17e   : > { %v595_v56 = vmul.f32 0.00086805556, %v588_v7  ;;  %2194 = vmatpush3.bf16.msra.mxu0 %v2370_v40  ;;  %2234 = vmatpush3.bf16.msra.mxu1 %v2372_v5  ;;  %v647_v58 = vmul.f32 %v3362_v61, %v2948_v38  ;;  %v3389_v50 = vrot.slane %v2031_v35, %v3218_v51  ;;  %v902_v28 = vpack.c.bf16 %v857_v8, %v848_v22  ;;  %v2377_v38 = vld [vmem:[%s3793_s3 + $0x158] sm:$0xff]   ;;  %v2381_v8 = vld [vmem:[%s3793_s3 + $0x160] sm:$0xff]  }
 0x17f   : > { %1550 = vmatprep.mubr.bf16.mxu0 %v903_v36  ;;  %1614 = vmatprep.mubr.bf16.mxu1 %v905_v6  ;;  %v904_v13 = vpack.c.bf16 %v859_v45, %v850_v63  ;;  %v649_v62 = vmul.f32 %v3362_v61, %v2958_v21  ;;  %v626_v40 = vmul.f32 %v3281_v53, %v2895_v47  ;;  %v2378_v47 = vld [vmem:[%s3793_s3 + $0x118] sm:$0xff]   ;;  %v2383_v63 = vld [vmem:[%s3793_s3 + $0x1e0] sm:$0xff]  }
 0x180   : > { %v602_v30 = vadd.f32 1e-05, %v595_v56  ;;  %2195 = vmatprep.subr.bf16.mxu0 %v2373_v55  ;;  %2235 = vmatprep.subr.bf16.mxu1 %v2375_v9  ;;  %v3403_v5 = vadd.f32 %v3265_v10, %v3289_v17  ;;  %v3406_v48 = vadd.f32 %v3269_v32, %v724_v26  ;;  %v646_v21 = vmul.f32 %v3362_v61, %v2940_v18  ;;  %v2380_v17 = vld [vmem:[%s3793_s3 + $0x198] sm:$0xff]   ;;  %v3918_v18 = vld [vmem:[#allocation22_spill] sm:$0xff] }
 0x181   : > { %1551 = vmatmul.mubr.bf16.gmra.mrb[4].mxu0 %v902_v28  ;;  %1615 = vmatmul.mubr.bf16.gmra.mrb[4].mxu1 %v904_v13  ;;  %v648_v44 = vmul.f32 %v3362_v61, %v2952_v20  ;;  %v734_v14 = vmul.f32 %v3239_v54, %v624_v4  ;;  %v3917_v26 = vld [vmem:[#allocation25_spill] sm:$0xff]  ;;  %v3425_v29 = vmul.f32 %v3275_v2, %v3918_v18  ;;  %v3919_v20 = vld [vmem:[#allocation24_spill] sm:$0xff]  ;;  %v2385_v13 = vld [vmem:[%s3793_s3 + $0x168] sm:$0xff]  }
 0x182   : > { %2417 = vrsqrt.f32 %v602_v30  ;;  %2196 = vmatpush3.bf16.msra.mxu0 %v2374_v43  ;;  %2236 = vmatpush3.bf16.msra.mxu1 %v2376_v3  ;;  %v3421_v34 = vmul.f32 %v3223_v23, %v3917_v26  ;;  %v3429_v35 = vmul.f32 %v3275_v2, %v3919_v20  ;;  %v757_v55 = vmul.f32 %v3230_v39, %v647_v58 }
 0x183   : > { %v759_v22 = vmul.f32 %v3232_v16, %v649_v62  ;;  %2197 = vmatprep.subr.bf16.mxu0 %v2377_v38  ;;  %2237 = vmatprep.subr.bf16.mxu1 %v2379_v15  ;;  %v623_v45 = vmul.f32 %v3281_v53, %v2874_v11  ;;  %v756_v4 = vmul.f32 %v3235_v25, %v646_v21  ;;  %v2387_v62 = vld [vmem:[%s3793_s3 + $0x1e8] sm:$0xff]  }
 0x184   : > { %v3431_v7 = vpop.eup %2415  ;;  %v758_v43 = vmul.f32 %v3237_v41, %v648_v44  ;;  %v3454_v58 = vadd.f32 %v3263_v0, %v734_v14  ;;  %v736_v11 = vmul.f32 %v3241_v31, %v626_v40  ;;  %v867_v30 = vadd.f32 %v3243_v12, %v757_v55  ;;  %v2386_v55 = vld [vmem:[%s3793_s3 + $0x128] sm:$0xff]  }
 0x185   : > { %v656_v9 = vmul.f32 %v3431_v7, %v2998_v27  ;;  %v658_v56 = vmul.f32 %v3431_v7, %v3018_v33  ;;  %v655_v36 = vmul.f32 %v3431_v7, %v2994_v46  ;;  %v657_v6 = vmul.f32 %v3431_v7, %v3002_v59  ;;  %v2382_v59 = vld [vmem:[%s3793_s3 + $0x120] sm:$0xff]  }
 0x186   : > { %2198 = vmatpush3.bf16.msra.mxu0 %v2378_v47  ;;  %2238 = vmatpush3.bf16.msra.mxu1 %v2380_v17  ;;  %v2384_v33 = vld [vmem:[%s3793_s3 + $0x1a0] sm:$0xff]   ;;  %v733_v38 = vmul.f32 %v3267_v52, %v623_v45  ;;  %v869_v40 = vadd.f32 %v3245_v37, %v759_v22  ;;  %v866_v14 = vadd.f32 %v3252_v49, %v756_v4  ;;  %v2388_v22 = vld [vmem:[%s3793_s3 + $0x1a8] sm:$0xff]  }
 0x187   : > { %v766_v27 = vmul.f32 %v3230_v39, %v656_v9  ;;  %v768_v3 = vmul.f32 %v3232_v16, %v658_v56  ;;  %v765_v46 = vmul.f32 %v3235_v25, %v655_v36  ;;  %2199 = vmatprep.subr.bf16.mxu0 %v2381_v8  ;;  %v767_v28 = vmul.f32 %v3237_v41, %v657_v6  ;;  %v2389_v56 = vld [vmem:[%s3793_s3 + $0x170] sm:$0xff]  }
 0x188   : > { %2239 = vmatprep.subr.bf16.mxu1 %v2383_v63  ;;  %v868_v47 = vadd.f32 %v3261_v1, %v758_v43  ;;  %v3483_v26 = vadd.f32 %v3265_v10, %v736_v11  ;;  %v898_v8 = vpack.c.bf16 %v3454_v58, %v3386_v19  ;;  %v2391_v36 = vld [vmem:[%s3793_s3 + $0x1f0] sm:$0xff]   ;;  %v625_v6 = vmul.f32 %v3281_v53, %v2882_v57  ;;  %v3920_v11 = vld [vmem:[#allocation7_spill] sm:$0xff]  ;;  %v3923_v57 = vld [vmem:[#allocation9_spill] sm:$0xff] }
 0x189   : > { %v876_v15 = vadd.f32 %v3243_v12, %v766_v27  ;;  %v878_v21 = vadd.f32 %v3245_v37, %v768_v3  ;;  %v875_v44 = vadd.f32 %v3252_v49, %v765_v46  ;;  %v877_v17 = vadd.f32 %v3261_v1, %v767_v28  ;;  %v3921_v3 = vld [vmem:[#allocation8_spill] sm:$0xff] }
 0x18a   : > { %2200 = vmatpush3.bf16.msra.mxu0 %v2382_v59  ;;  %2240 = vmatpush3.bf16.msra.mxu1 %v2384_v33  ;;  %v3922_v59 = vld [vmem:[#allocation30_spill] sm:$0xff]  ;;  %v2033_v19 = vld [vmem:[%s3792_s2 + $0x11] ss:$2 sm:$0x1] }
 0x18b   : > { %v912_v18 = vpack.c.bf16 %v876_v15, %v867_v30  ;;  %v914_v20 = vpack.c.bf16 %v878_v21, %v869_v40  ;;  %v911_v45 = vpack.c.bf16 %v875_v44, %v866_v14  ;;  %v913_v9 = vpack.c.bf16 %v877_v17, %v868_v47  ;;  %2201 = vmatprep.subr.bf16.mxu0 %v2385_v13  ;;  %v2390_v13 = vld [vmem:[%s3793_s3 + $0x130] sm:$0xff]   ;;  %v3924_v40 = vld [vmem:[#allocation19_spill] sm:$0xff]  ;;  %v3925_v47 = vld [vmem:[#allocation29_spill] sm:$0xff] }
 0x18c   : > { %v3493_v63 = vpop.eup %2417  ;;  %2241 = vmatprep.subr.bf16.mxu1 %v2387_v62  ;;  %v642_v33 = vmul.f32 %v3320_v60, %v3922_v59  ;;  %v644_v30 = vmul.f32 %v3320_v60, %v3923_v57  ;;  %v2392_v62 = vld [vmem:[%s3793_s3 + $0x1b0] sm:$0xff]   ;;  %v735_v21 = vmul.f32 %v3924_v40, %v625_v6  ;;  %v641_v17 = vmul.f32 %v3320_v60, %v3925_v47  ;;  %v3930_v59 = vld [vmem:[#allocation6_spill] sm:$0xff] }
 0x18d   : > { %1558 = vmatprep.mubr.bf16.mxu0 %v912_v18  ;;  %1622 = vmatprep.mubr.bf16.mxu1 %v914_v20  ;;  %v665_v4 = vmul.f32 %v3493_v63, %v3050_v42  ;;  %v667_v43 = vmul.f32 %v3493_v63, %v3058_v24  ;;  %v664_v27 = vmul.f32 %v3493_v63, %v3920_v11 }
 0x18e   : > { %1559 = vmatmul.mubr.bf16.gmra.mrb[8].mxu0 %v911_v45  ;;  %1623 = vmatmul.mubr.bf16.gmra.mrb[8].mxu1 %v913_v9  ;;  %v666_v46 = vmul.f32 %v3493_v63, %v3921_v3  ;;  %v752_v18 = vmul.f32 %v3239_v54, %v642_v33  ;;  %v754_v20 = vmul.f32 %v3241_v31, %v644_v30  ;;  %v3927_v9 = vld [vmem:[#allocation31_spill] sm:$0xff] }
 0x18f   : > { %v775_v28 = vmul.f32 %v3230_v39, %v665_v4  ;;  %v777_v42 = vmul.f32 %v3232_v16, %v667_v43  ;;  %2202 = vmatpush3.bf16.msra.mxu0 %v2386_v55  ;;  %2242 = vmatpush3.bf16.msra.mxu1 %v2388_v22  ;;  %v774_v24 = vmul.f32 %v3235_v25, %v664_v27  ;;  %v2393_v16 = vld [vmem:[%s3793_s3 + $0x178] sm:$0xff]   ;;  %v3928_v4 = vld [vmem:[#allocation20_spill] sm:$0xff]  ;;  %v3929_v3 = vld [vmem:[#allocation23_spill] sm:$0xff] }
 0x190   : > { %2203 = vmatprep.subr.bf16.mxu0 %v2389_v56  ;;  %v776_v15 = vmul.f32 %v3237_v41, %v666_v46  ;;  %2243 = vmatprep.subr.bf16.mxu1 %v2391_v36  ;;  %v900_v39 = vpack.c.bf16 %v3483_v26, %v3403_v5  ;;  %v2395_v25 = vld [vmem:[%s3793_s3 + $0x1f8] sm:$0xff]   ;;  %v843_v26 = vadd.f32 %v3269_v32, %v733_v38  ;;  %v2397_v36 = vld [vmem:[%s3793_s3 + $0x200] sm:$0xff]  }
 0x191   : > { %v885_v44 = vadd.f32 %v3243_v12, %v775_v28  ;;  %v887_v14 = vadd.f32 %v3245_v37, %v777_v42  ;;  %v884_v41 = vadd.f32 %v3252_v49, %v774_v24  ;;  %v3926_v12 = vld [vmem:[#allocation21_spill] sm:$0xff]  ;;  %v643_v56 = vmul.f32 %v3320_v60, %v3927_v9  ;;  %v3931_v42 = vld [vmem:[#allocation14_spill] sm:$0xff] }
 0x192   : > { %v886_v5 = vadd.f32 %v3261_v1, %v776_v15  ;;  %v632_v37 = vmul.f32 %v3275_v2, %v3926_v12  ;;  %v2394_v1 = vld [vmem:[%s3793_s3 + $0x138] sm:$0xff]   ;;  %v726_v6 = vmul.f32 %v3924_v40, %v3421_v34  ;;  %v845_v43 = vadd.f32 %v3928_v4, %v735_v21 }
 0x193   : > { %v921_v55 = vpack.c.bf16 %v885_v44, %v885_v44  ;;  %v923_v22 = vpack.c.bf16 %v887_v14, %v887_v14  ;;  %2204 = vmatpush3.bf16.msra.mxu0 %v2390_v13  ;;  %2244 = vmatpush3.bf16.msra.mxu1 %v2392_v62  ;;  %v920_v45 = vpack.c.bf16 %v884_v41, %v884_v41  ;;  %v2396_v38 = vld [vmem:[%s3793_s3 + $0x1b8] sm:$0xff]   ;;  %v3933_v13 = vld [vmem:[#allocation12_spill] sm:$0xff] }
 0x194   : > { %v922_v49 = vpack.c.bf16 %v886_v5, %v886_v5  ;;  %2205 = vmatprep.subr.bf16.mxu0 %v2393_v16  ;;  %2245 = vmatprep.subr.bf16.mxu1 %v2395_v25  ;;  %v751_v11 = vmul.f32 %v3267_v52, %v641_v17  ;;  %v743_v27 = vmul.f32 %v3239_v54, %v3425_v29 }
 0x195   : > { %1566 = vmatprep.mubr.bf16.mxu0 %v921_v55  ;;  %1630 = vmatprep.mubr.bf16.mxu1 %v923_v22  ;;  %v634_v46 = vmul.f32 %v3275_v2, %v3929_v3  ;;  %v660_v33 = vmul.f32 %v3431_v7, %v3930_v59  ;;  %v862_v34 = vadd.f32 %v3263_v0, %v752_v18  ;;  %v2398_v55 = vld [vmem:[%s3793_s3 + $0x208] sm:$0xff]   ;;  %v3938_v3 = vld [vmem:[#allocation10_spill] sm:$0xff] }
 0x196   : > { %1567 = vmatmul.mubr.bf16.gmra.mrb[12].mxu0 %v920_v45  ;;  %1631 = vmatmul.mubr.bf16.gmra.mrb[12].mxu1 %v922_v49  ;;  %v745_v57 = vmul.f32 %v3241_v31, %v3429_v35  ;;  %v742_v30 = vmul.f32 %v3267_v52, %v632_v37  ;;  %v864_v29 = vadd.f32 %v3265_v10, %v754_v20  ;;  %v3932_v35 = vld [vmem:[#allocation2_spill] sm:$0xff]  ;;  %v3934_v37 = vld [vmem:[#allocation5_spill] sm:$0xff]  ;;  %v3935_v49 = vld [vmem:[#allocation4_spill] sm:$0xff] }
 0x197   : > { %1670 = vmatprep.mubr.bf16.mxu0 %v898_v8  ;;  %1734 = vmatprep.mubr.bf16.mxu1 %v900_v39  ;;  %v753_v28 = vmul.f32 %v3924_v40, %v643_v56  ;;  %v651_v24 = vmul.f32 %v3362_v61, %v3931_v42  ;;  %v861_v58 = vadd.f32 %v3269_v32, %v751_v11  ;;  %v3937_v56 = vld [vmem:[#allocation11_spill] sm:$0xff]  ;;  %v3941_v42 = vld [vmem:[#allocation28_spill] sm:$0xff] }
 0x198   : > { %2206 = vmatpush3.bf16.msra.mxu0 %v2394_v1  ;;  %2246 = vmatpush3.bf16.msra.mxu1 %v2396_v38  ;;  %v653_v8 = vmul.f32 %v3362_v61, %v3932_v35  ;;  %v662_v62 = vmul.f32 %v3431_v7, %v3933_v13  ;;  %v836_v15 = vadd.f32 %v3928_v4, %v726_v6  ;;  %v3936_v38 = vld [vmem:[#allocation33_spill] sm:$0xff] }
 0x199   : > { %2283 = vmatprep.subr.bf16.mxu0 %v2397_v36  ;;  %2307 = vmatprep.subr.bf16.mxu1 %v2397_v36  ;;  %v853_v39 = vadd.f32 %v3263_v0, %v743_v27  ;;  %v744_v16 = vmul.f32 %v3924_v40, %v634_v46  ;;  %v770_v25 = vmul.f32 %v3239_v54, %v660_v33 }
 0x19a   : > { %v897_v21 = vpack.c.bf16 %v843_v26, %v3406_v48  ;;  %v855_v44 = vadd.f32 %v3265_v10, %v745_v57  ;;  %v852_v14 = vadd.f32 %v3269_v32, %v742_v30  ;;  %v3593_v41 = vrot.slane %v2033_v19, %v3218_v51 }
 0x19b   : > { %v899_v47 = vpack.c.bf16 %v845_v43, %v836_v15  ;;  %v907_v17 = vpack.c.bf16 %v862_v34, %v853_v39  ;;  %v863_v5 = vadd.f32 %v3928_v4, %v753_v28  ;;  %v761_v18 = vmul.f32 %v3239_v54, %v651_v24  ;;  %v2399_v43 = vld [vmem:[%s3793_s3 + $0x210] sm:$0xff]   ;;  %v2400_v39 = vld [vmem:[%s3793_s3 + $0x218] sm:$0xff]  }
 0x19c   : > { %v909_v20 = vpack.c.bf16 %v864_v29, %v855_v44  ;;  %v906_v22 = vpack.c.bf16 %v861_v58, %v852_v14  ;;  %v763_v48 = vmul.f32 %v3241_v31, %v653_v8  ;;  %v772_v26 = vmul.f32 %v3241_v31, %v662_v62  ;;  %v3939_v34 = vld [vmem:[#allocation16_spill] sm:$0xff]  ;;  %v3940_v29 = vld [vmem:[#allocation26_spill] sm:$0xff]  ;;  %v3942_v8 = vld [vmem:[#allocation27_spill] sm:$0xff] }
 0x19d   : > { %v854_v51 = vadd.f32 %v3928_v4, %v744_v16  ;;  %v880_v12 = vadd.f32 %v3263_v0, %v770_v25  ;;  %v650_v45 = vmul.f32 %v3362_v61, %v3934_v37  ;;  %v659_v1 = vmul.f32 %v3431_v7, %v3935_v49  ;;  %v3943_v25 = vld [vmem:[#allocation13_spill] sm:$0xff]  ;;  %v3946_v37 = vld [vmem:[#allocation15_spill] sm:$0xff] }
 0x19e   : > { %1671 = vmatmul.mubr.bf16.vlgmr.msra.gmra.mrb[16].mxu0 %v897_v21  ;;  %1735 = vmatmul.mubr.bf16.vlgmr.msra.gmra.mrb[16].mxu1 %v899_v47  ;;  %v652_v9 = vmul.f32 %v3362_v61, %v3936_v38  ;;  %v661_v6 = vmul.f32 %v3431_v7, %v3937_v56  ;;  %v871_v27 = vadd.f32 %v3263_v0, %v761_v18 }
 0x19f   : > { %2284 = vmatpush3.bf16.msra.mxu0 %v2397_v36  ;;  %1678 = vmatprep.mubr.bf16.mxu0 %v907_v17  ;;  %v908_v11 = vpack.c.bf16 %v863_v5, %v854_v51  ;;  %v669_v46 = vmul.f32 %v3493_v63, %v3938_v3  ;;  %v873_v59 = vadd.f32 %v3265_v10, %v763_v48  ;;  %v3945_v5 = vld [vmem:[#allocation18_spill] sm:$0xff] }
 0x1a0   : > { %1742 = vmatprep.mubr.bf16.mxu1 %v909_v20  ;;  %2315 = vmatpush3.bf16.msra.mxu1 %v2397_v36  ;;  %v882_v33 = vadd.f32 %v3265_v10, %v772_v26  ;;  %v671_v57 = vmul.f32 %v3493_v63, %v3939_v34  ;;  %v916_v36 = vpack.c.bf16 %v880_v12, %v871_v27 }
 0x1a1   : > { %2285 = vmatprep.subr.bf16.mxu0 %v2398_v55  ;;  %2308 = vmatprep.subr.bf16.mxu1 %v2398_v55  ;;  %v760_v30 = vmul.f32 %v3267_v52, %v650_v45  ;;  %v618_v28 = vmul.f32 %v3223_v23, %v3940_v29  ;;  %v627_v24 = vmul.f32 %v3281_v53, %v3941_v42 }
 0x1a2   : > { %v769_v19 = vmul.f32 %v3267_v52, %v659_v1  ;;  %v762_v58 = vmul.f32 %v3924_v40, %v652_v9  ;;  %v771_v35 = vmul.f32 %v3924_v40, %v661_v6  ;;  %v636_v13 = vmul.f32 %v3275_v2, %v3942_v8  ;;  %v3944_v2 = vld [vmem:[#allocation32_spill] sm:$0xff]  ;;  %v3947_v6 = vld [vmem:[#allocation3_spill] sm:$0xff] }
 0x1a3   : > { %2286 = vmatpush3.bf16.msra.mxu0 %v2398_v55  ;;  %v779_v62 = vmul.f32 %v3239_v54, %v669_v46  ;;  %v728_v15 = vmul.f32 %v3389_v50, %v618_v28  ;;  %v737_v23 = vmul.f32 %v3389_v50, %v627_v24  ;;  %v918_v53 = vpack.c.bf16 %v882_v33, %v873_v59  ;;  %v3948_v46 = vld [vmem:[#allocation17_spill] sm:$0xff] }
 0x1a4   : > { %2316 = vmatpush3.bf16.msra.mxu1 %v2398_v55  ;;  %2287 = vmatprep.subr.bf16.mxu0 %v2399_v43  ;;  %v781_v16 = vmul.f32 %v3241_v31, %v671_v57  ;;  %v668_v21 = vmul.f32 %v3493_v63, %v3943_v25  ;;  %v645_v44 = vmul.f32 %v3320_v60, %v3944_v2  ;;  %v2401_v60 = vld [vmem:[%s3793_s3 + $0x220] sm:$0xff]  }
 0x1a5   : > { %2309 = vmatprep.subr.bf16.mxu1 %v2399_v43  ;;  %v3644_v54 = vadd.f32 %v3593_v41, %v728_v15  ;;  %v847_v14 = vadd.f32 %v3593_v41, %v737_v23  ;;  %v746_v47 = vmul.f32 %v3389_v50, %v636_v13  ;;  %v879_v17 = vadd.f32 %v3269_v32, %v769_v19 }
 0x1a6   : > { %1679 = vmatmul.mubr.bf16.gmra.mrb[20].mxu0 %v906_v22  ;;  %1743 = vmatmul.mubr.bf16.gmra.mrb[20].mxu1 %v908_v11  ;;  %v881_v31 = vadd.f32 %v3928_v4, %v771_v35  ;;  %v670_v18 = vmul.f32 %v3493_v63, %v3945_v5  ;;  %v755_v55 = vmul.f32 %v3389_v50, %v645_v44 }
 0x1a7   : > { %2288 = vmatpush3.bf16.msra.mxu0 %v2399_v43  ;;  %1686 = vmatprep.mubr.bf16.mxu0 %v916_v36  ;;  %v901_v20 = vpack.c.bf16 %v847_v14, %v3644_v54  ;;  %v856_v22 = vadd.f32 %v3593_v41, %v746_v47  ;;  %v870_v48 = vadd.f32 %v3269_v32, %v760_v30 }
 0x1a8   : > { %1750 = vmatprep.mubr.bf16.mxu1 %v918_v53  ;;  %2317 = vmatpush3.bf16.msra.mxu1 %v2399_v43  ;;  %v872_v26 = vadd.f32 %v3928_v4, %v762_v58  ;;  %v889_v51 = vadd.f32 %v3263_v0, %v779_v62  ;;  %v891_v12 = vadd.f32 %v3265_v10, %v781_v16 }
 0x1a9   : > { %2289 = vmatprep.subr.bf16.mxu0 %v2400_v39  ;;  %2310 = vmatprep.subr.bf16.mxu1 %v2400_v39  ;;  %v663_v45 = vmul.f32 %v3431_v7, %v3946_v37  ;;  %v865_v49 = vadd.f32 %v3593_v41, %v755_v55  ;;  %v915_v1 = vpack.c.bf16 %v879_v17, %v870_v48  ;;  %v2402_v7 = vld [vmem:[%s3793_s3 + $0x228] sm:$0xff]  }
 0x1aa   : > { %v917_v38 = vpack.c.bf16 %v881_v31, %v872_v26  ;;  %v778_v9 = vmul.f32 %v3267_v52, %v668_v21  ;;  %v780_v56 = vmul.f32 %v3924_v40, %v670_v18  ;;  %v654_v43 = vmul.f32 %v3362_v61, %v3947_v6  ;;  %v2403_v52 = vld [vmem:[%s3793_s3 + $0x230] sm:$0xff]  }
 0x1ab   : > { %2290 = vmatpush3.bf16.msra.mxu0 %v2400_v39  ;;  %v910_v0 = vpack.c.bf16 %v865_v49, %v856_v22  ;;  %v925_v10 = vpack.c.bf16 %v889_v51, %v889_v51  ;;  %v927_v11 = vpack.c.bf16 %v891_v12, %v891_v12  ;;  %v773_v27 = vmul.f32 %v3389_v50, %v663_v45 }
 0x1ac   : > { %2318 = vmatpush3.bf16.msra.mxu1 %v2400_v39  ;;  %2291 = vmatprep.subr.bf16.mxu0 %v2401_v60  ;;  %v888_v61 = vadd.f32 %v3269_v32, %v778_v9  ;;  %v890_v40 = vadd.f32 %v3928_v4, %v780_v56  ;;  %v764_v3 = vmul.f32 %v3389_v50, %v654_v43  ;;  %v2404_v32 = vld [vmem:[%s3793_s3 + $0x238] sm:$0xff]  }
 0x1ad   : > { %2311 = vmatprep.subr.bf16.mxu1 %v2401_v60  ;;  %v672_v59 = vmul.f32 %v3493_v63, %v3948_v46  ;;  %v883_v33 = vadd.f32 %v3593_v41, %v773_v27 }
 0x1ae   : > { %1687 = vmatmul.mubr.bf16.gmra.mrb[24].mxu0 %v915_v1  ;;  %1751 = vmatmul.mubr.bf16.gmra.mrb[24].mxu1 %v917_v38  ;;  %v924_v34 = vpack.c.bf16 %v888_v61, %v888_v61  ;;  %v926_v57 = vpack.c.bf16 %v890_v40, %v890_v40  ;;  %v874_v36 = vadd.f32 %v3593_v41, %v764_v3 }
 0x1af   : > { %2292 = vmatpush3.bf16.msra.mxu0 %v2401_v60  ;;  %1694 = vmatprep.mubr.bf16.mxu0 %v925_v10  ;;  %v782_v4 = vmul.f32 %v3389_v50, %v672_v59  ;;  %v2034_v50 = vld [vmem:[%s3794_s4] ss:$0 sm:$0xff] }
 0x1b0   : > { %1758 = vmatprep.mubr.bf16.mxu1 %v927_v11  ;;  %2319 = vmatpush3.bf16.msra.mxu1 %v2401_v60  ;;  %v919_v30 = vpack.c.bf16 %v883_v33, %v874_v36 }
 0x1b1   : > { %2293 = vmatprep.subr.bf16.mxu0 %v2402_v7  ;;  %2312 = vmatprep.subr.bf16.mxu1 %v2402_v7  ;;  %v892_v63 = vadd.f32 %v3593_v41, %v782_v4 }
 0x1b3   : > { %2294 = vmatpush3.bf16.msra.mxu0 %v2402_v7  ;;  %v928_v29 = vpack.c.bf16 %v892_v63, %v892_v63 }
 0x1b4   : > { %2320 = vmatpush3.bf16.msra.mxu1 %v2402_v7  ;;  %2295 = vmatprep.subr.bf16.mxu0 %v2403_v52 }
 0x1b5   : > { %2313 = vmatprep.subr.bf16.mxu1 %v2403_v52 }
 0x1b6   : > { %1695 = vmatmul.mubr.bf16.gmra.mrb[28].mxu0 %v924_v34  ;;  %1759 = vmatmul.mubr.bf16.gmra.mrb[28].mxu1 %v926_v57 }
 0x1b7   : > { %2296 = vmatpush3.bf16.msra.mxu0 %v2403_v52  ;;  %2299 = vmatprep.mubr.bf16.mxu0 %v901_v20 }
 0x1b8   : > { %2321 = vmatpush3.bf16.msra.mxu1 %v2403_v52  ;;  %2303 = vmatprep.mubr.bf16.mxu1 %v919_v30 }
 0x1b9   : > { %2297 = vmatprep.subr.bf16.mxu0 %v2404_v32  ;;  %2314 = vmatprep.subr.bf16.mxu1 %v2404_v32 }
 0x1bb   : > { %2298 = vmatpush3.bf16.msra.mxu0 %v2404_v32 }
 0x1bc   : > { %2322 = vmatpush3.bf16.msra.mxu1 %v2404_v32 }
 0x1be   : > { %2300 = vmatmul.mubr.bf16.vlgmr.msra.gmra.mrb[32].mxu0 %v910_v0 }
 0x1bf   : > { %2304 = vmatmul.mubr.bf16.vlgmr.msra.gmra.mrb[32].mxu1 %v928_v29 }
 0x24c   : > { %v2127_v28 = vpop.f32.mrb[0].mxu0  ;;  %v2167_v42 = vpop.f32.mrb[0].mxu1 }
 0x24d   : > { %v2128_v24 = vpop.f32.mrb[1].mxu0  ;;  %v2168_v19 = vpop.f32.mrb[1].mxu1 }
 0x24e   : > { %v2129_v58 = vadd.f32 %v2128_v24, %v2127_v28  ;;  %v2169_v35 = vadd.f32 %v2168_v19, %v2167_v42  ;;  %v2130_v8 = vpop.f32.mrb[2].mxu0  ;;  %v2170_v13 = vpop.f32.mrb[2].mxu1 }
 0x24f   : > { %v2131_v62 = vpop.f32.mrb[3].mxu0  ;;  %v2171_v15 = vpop.f32.mrb[3].mxu1 }
 0x250   : > { %v1545_v41 = vadd.f32 %v2129_v58, %v2034_v50  ;;  %v2132_v23 = vadd.f32 %v2131_v62, %v2130_v8  ;;  %v2172_v53 = vadd.f32 %v2171_v15, %v2170_v13 }
 0x252   : > { %v1609_v39 = vadd.f32 %v2169_v35, %v1545_v41  ;;  %v1548_v16 = vadd.f32 %v2132_v23, %v2034_v50 }
 0x254   : > { %v1612_v25 = vadd.f32 %v2172_v53, %v1548_v16  ;;  %v2133_v21 = vpop.f32.mrb[4].mxu0  ;;  %v2173_v2 = vpop.f32.mrb[4].mxu1 }
 0x255   : > { %v2134_v44 = vpop.f32.mrb[5].mxu0  ;;  %v2174_v54 = vpop.f32.mrb[5].mxu1 }
 0x256   : > { %v2135_v14 = vadd.f32 %v2134_v44, %v2133_v21  ;;  %v2175_v47 = vadd.f32 %v2174_v54, %v2173_v2  ;;  %v2136_v17 = vpop.f32.mrb[6].mxu0  ;;  %v2176_v31 = vpop.f32.mrb[6].mxu1 }
 0x257   : > { %v2137_v5 = vpop.f32.mrb[7].mxu0  ;;  %v2177_v18 = vpop.f32.mrb[7].mxu1 }
 0x258   : > { %v1553_v60 = vadd.f32 %v2135_v14, %v2034_v50  ;;  %v2138_v20 = vadd.f32 %v2137_v5, %v2136_v17  ;;  %v2178_v55 = vadd.f32 %v2177_v18, %v2176_v31 }
 0x25a   : > { %v1617_v22 = vadd.f32 %v2175_v47, %v1553_v60  ;;  %v1556_v48 = vadd.f32 %v2138_v20, %v2034_v50 }
 0x25c   : > { %v1620_v26 = vadd.f32 %v2178_v55, %v1556_v48 }
 0x261   : > { %v2139_v51 = vpop.f32.mrb[8].mxu0  ;;  %v2179_v12 = vpop.f32.mrb[8].mxu1 }
 0x262   : > { %v2140_v37 = vpop.f32.mrb[9].mxu0  ;;  %v2180_v45 = vpop.f32.mrb[9].mxu1 }
 0x263   : > { %v2141_v49 = vadd.f32 %v2140_v37, %v2139_v51  ;;  %v2181_v1 = vadd.f32 %v2180_v45, %v2179_v12  ;;  %v2142_v38 = vpop.f32.mrb[10].mxu0  ;;  %v2182_v9 = vpop.f32.mrb[10].mxu1 }
 0x264   : > { %v2143_v56 = vpop.f32.mrb[11].mxu0  ;;  %v2183_v6 = vpop.f32.mrb[11].mxu1 }
 0x265   : > { %v1561_v43 = vadd.f32 %v2141_v49, %v2034_v50  ;;  %v2144_v0 = vadd.f32 %v2143_v56, %v2142_v38  ;;  %v2184_v10 = vadd.f32 %v2183_v6, %v2182_v9 }
 0x267   : > { %v1625_v7 = vadd.f32 %v2181_v1, %v1561_v43  ;;  %v1564_v11 = vadd.f32 %v2144_v0, %v2034_v50 }
 0x269   : > { %v1628_v27 = vadd.f32 %v2184_v10, %v1564_v11  ;;  %v2145_v52 = vpop.f32.mrb[12].mxu0  ;;  %v2185_v61 = vpop.f32.mrb[12].mxu1 }
 0x26a   : > { %v2146_v40 = vpop.f32.mrb[13].mxu0  ;;  %v2186_v3 = vpop.f32.mrb[13].mxu1 }
 0x26b   : > { %v2147_v46 = vadd.f32 %v2146_v40, %v2145_v52  ;;  %v2187_v59 = vadd.f32 %v2186_v3, %v2185_v61  ;;  %v2148_v33 = vpop.f32.mrb[14].mxu0  ;;  %v2188_v34 = vpop.f32.mrb[14].mxu1 }
 0x26c   : > { %v2149_v57 = vpop.f32.mrb[15].mxu0  ;;  %v2189_v36 = vpop.f32.mrb[15].mxu1 }
 0x26d   : > { %v1569_v32 = vadd.f32 %v2147_v46, %v2034_v50 }
 0x26f   : > { %v1633_v4 = vadd.f32 %v2187_v59, %v1569_v32 }
 0x271   : > { %v2207_v30 = vpop.f32.mrb[16].mxu0  ;;  %v2247_v63 = vpop.f32.mrb[16].mxu1 }
 0x272   : > { %v2208_v29 = vpop.f32.mrb[17].mxu0  ;;  %v2248_v28 = vpop.f32.mrb[17].mxu1 }
 0x273   : > { %v2209_v42 = vadd.f32 %v2208_v29, %v2207_v30  ;;  %v2249_v24 = vadd.f32 %v2248_v28, %v2247_v63  ;;  %v2210_v19 = vpop.f32.mrb[18].mxu0  ;;  %v2250_v58 = vpop.f32.mrb[18].mxu1 }
 0x274   : > { %v2211_v35 = vpop.f32.mrb[19].mxu0  ;;  %v2251_v8 = vpop.f32.mrb[19].mxu1 }
 0x275   : > { %v1673_v13 = vadd.f32 %v2209_v42, %v1609_v39  ;;  %v2212_v62 = vadd.f32 %v2211_v35, %v2210_v19  ;;  %v2252_v15 = vadd.f32 %v2251_v8, %v2250_v58 }
 0x277   : > { %v1676_v41 = vadd.f32 %v2212_v62, %v1612_v25  ;;  %v1737_v23 = vadd.f32 %v2249_v24, %v1673_v13 }
 0x279   : > { %v2213_v53 = vpop.f32.mrb[20].mxu0  ;;  %v2253_v16 = vpop.f32.mrb[20].mxu1  ;;  %v1740_v21 = vadd.f32 %v2252_v15, %v1676_v41 }
 0x27a   : > { %v2214_v50 = vpop.f32.mrb[21].mxu0  ;;  %v2254_v2 = vpop.f32.mrb[21].mxu1 }
 0x27b   : > { %v2215_v44 = vadd.f32 %v2214_v50, %v2213_v53  ;;  %v2255_v54 = vadd.f32 %v2254_v2, %v2253_v16  ;;  %v2216_v14 = vpop.f32.mrb[22].mxu0  ;;  %v2256_v47 = vpop.f32.mrb[22].mxu1 }
 0x27c   : > { %v2217_v17 = vpop.f32.mrb[23].mxu0  ;;  %v2257_v31 = vpop.f32.mrb[23].mxu1 }
 0x27d   : > { %v1681_v5 = vadd.f32 %v2215_v44, %v1617_v22  ;;  %v2218_v18 = vadd.f32 %v2217_v17, %v2216_v14  ;;  %v2258_v60 = vadd.f32 %v2257_v31, %v2256_v47 }
 0x27f   : > { %v1684_v20 = vadd.f32 %v2218_v18, %v1620_v26  ;;  %v1745_v39 = vadd.f32 %v2255_v54, %v1681_v5 }
 0x281   : > { %v2219_v55 = vpop.f32.mrb[24].mxu0  ;;  %v2259_v48 = vpop.f32.mrb[24].mxu1  ;;  %v1748_v25 = vadd.f32 %v2258_v60, %v1684_v20 }
 0x282   : > { %v2220_v51 = vpop.f32.mrb[25].mxu0  ;;  %v2260_v12 = vpop.f32.mrb[25].mxu1 }
 0x283   : > { %v2221_v37 = vadd.f32 %v2220_v51, %v2219_v55  ;;  %v2261_v45 = vadd.f32 %v2260_v12, %v2259_v48  ;;  %v2222_v49 = vpop.f32.mrb[26].mxu0  ;;  %v2262_v1 = vpop.f32.mrb[26].mxu1 }
 0x284   : > { %v2223_v38 = vpop.f32.mrb[27].mxu0  ;;  %v2263_v9 = vpop.f32.mrb[27].mxu1 }
 0x285   : > { %v1689_v56 = vadd.f32 %v2221_v37, %v1625_v7  ;;  %v2224_v6 = vadd.f32 %v2223_v38, %v2222_v49  ;;  %v2264_v43 = vadd.f32 %v2263_v9, %v2262_v1 }
 0x287   : > { %v1692_v0 = vadd.f32 %v2224_v6, %v1628_v27  ;;  %v1753_v22 = vadd.f32 %v2261_v45, %v1689_v56 }
 0x289   : > { %v2225_v10 = vpop.f32.mrb[28].mxu0  ;;  %v2265_v11 = vpop.f32.mrb[28].mxu1  ;;  %v1756_v26 = vadd.f32 %v2264_v43, %v1692_v0 }
 0x28a   : > { %v2226_v52 = vpop.f32.mrb[29].mxu0  ;;  %v2266_v61 = vpop.f32.mrb[29].mxu1 }
 0x28b   : > { %v2227_v40 = vadd.f32 %v2226_v52, %v2225_v10  ;;  %v2267_v3 = vadd.f32 %v2266_v61, %v2265_v11  ;;  %v2228_v46 = vpop.f32.mrb[30].mxu0  ;;  %v2268_v59 = vpop.f32.mrb[30].mxu1 }
 0x28c   : > { %v2229_v33 = vpop.f32.mrb[31].mxu0  ;;  %v2269_v34 = vpop.f32.mrb[31].mxu1 }
 0x28d   : > { %v1697_v57 = vadd.f32 %v2227_v40, %v1633_v4 }
 0x28f   : > { %v1761_v36 = vadd.f32 %v2267_v3, %v1697_v57 }
 0x291   : > { %v2301_v32 = vpop.f32.mrb[32].mxu0 }
 0x292   : > { %v1809_v7 = vadd.f32 %v2301_v32, %v1745_v39  ;;  %v2305_v30 = vpop.f32.mrb[32].mxu1  ;;  %v1800_v63 = vpop.f32.mrb[33].mxu0 }
 0x293   : > { %v1825_v27 = vadd.f32 %v2305_v30, %v1761_v36  ;;  %v1801_v29 = vadd.f32 %v1800_v63, %v1737_v23  ;;  %v1816_v28 = vpop.f32.mrb[33].mxu1  ;;  %v2302_v42 = vpop.f32.mrb[34].mxu0 }
 0x294   : > { %v1817_v24 = vadd.f32 %v1816_v28, %v1753_v22  ;;  %v1812_v19 = vadd.f32 %v2302_v42, %v1748_v25  ;;  %v2306_v58 = vpop.f32.mrb[34].mxu1  ;;  %v1803_v35 = vpop.f32.mrb[35].mxu0  ;;  %v1839_v8 = vsel %vm1832_vm1, %v1809_v7, 0.0 }
 0x295   : > { %v1804_v13 = vadd.f32 %v1803_v35, %v1740_v21  ;;  %v1819_v62 = vpop.f32.mrb[35].mxu1  ;;  %1840 = vadd.xlane.f32.xlu0 %v1839_v8  ;;  %v1833_v41 = vsel %vm1832_vm1, %v1801_v29, 0.0  ;;  %v1852_v21 = vsel %vm1851_vm2, %v1825_v27, 0.0 }
 0x296   : > { %v1820_v4 = vadd.f32 %v1819_v62, %v1756_v26  ;;  %v1842_v15 = vsel %vm1832_vm1, %v1812_v19, 0.0  ;;  %v1845_v53 = vsel %vm1832_vm1, %v1817_v24, 0.0  ;;  %v2107_v62 = vld [vmem:[%s3794_s4 + $0x1] ss:$0 sm:$0xff] }
 0x297   : > { %1843 = vadd.xlane.f32.xlu1 %v1842_v15  ;;  %v1836_v23 = vsel %vm1832_vm1, %v1804_v13, 0.0 }
 0x298   : > { %v1848_v16 = vsel %vm1832_vm1, %v1820_v4, 0.0 }
 0x299   : > { %1834 = vadd.xlane.f32.xlu0 %v1833_v41 }
 0x29b   : > { %1837 = vadd.xlane.f32.xlu1 %v1836_v23  ;;  %v2108_v23 = vld [vmem:[%s3794_s4 + $0x2] ss:$0 sm:$0xff] }
 0x29d   : > { %1846 = vadd.xlane.f32.xlu0 %v1845_v53 }
 0x29f   : > { %1849 = vadd.xlane.f32.xlu1 %v1848_v16 }
 0x2a1   : > { %1853 = vadd.xlane.f32.xlu0 %v1852_v21 }
 0x322   : > { %v1841_v50 = vpop.xlane.xlu0 %1840 }
 0x323   : > { %v1858_v2 = vmul.f32 0.015625, %v1841_v50  ;;  %v1950_v50 = vld [vmem:[%s3791_s1 + $0x10] sm:$0xff] }
 0x324   : > { %v1844_v44 = vpop.xlane.xlu1 %1843 }
 0x325   : > { %v3698_v54 = vsub.f32 %v1809_v7, %v1858_v2  ;;  %v1859_v14 = vmul.f32 0.015625, %v1844_v44 }
 0x326   : > { %v1835_v47 = vpop.xlane.xlu0 %1834 }
 0x327   : > { %v3700_v17 = vsub.f32 %v1812_v19, %v1859_v14  ;;  %v1856_v31 = vmul.f32 0.015625, %v1835_v47  ;;  %v1872_v5 = vmul.f32 %v3698_v54, %v3698_v54  ;;  %v1951_v47 = vld [vmem:[%s3791_s1 + $0x18] sm:$0xff] }
 0x328   : > { %v1838_v18 = vpop.xlane.xlu1 %1837 }
 0x329   : > { %v3704_v60 = vsub.f32 %v1801_v29, %v1856_v31  ;;  %v1857_v20 = vmul.f32 0.015625, %v1838_v18  ;;  %v1883_v39 = vsel %vm1832_vm1, %v1872_v5, 0.0  ;;  %v1873_v55 = vmul.f32 %v3700_v17, %v3700_v17 }
 0x32a   : > { %1884 = vadd.xlane.f32.xlu1 %v1883_v39  ;;  %v1847_v48 = vpop.xlane.xlu0 %1846 }
 0x32b   : > { %v3709_v25 = vsub.f32 %v1804_v13, %v1857_v20  ;;  %v1860_v51 = vmul.f32 0.015625, %v1847_v48  ;;  %v1886_v12 = vsel %vm1832_vm1, %v1873_v55, 0.0  ;;  %v1870_v37 = vmul.f32 %v3704_v60, %v3704_v60 }
 0x32c   : > { %v1850_v45 = vpop.xlane.xlu1 %1849  ;;  %1887 = vadd.xlane.f32.xlu0 %v1886_v12 }
 0x32d   : > { %v3714_v49 = vsub.f32 %v1817_v24, %v1860_v51  ;;  %v1861_v1 = vmul.f32 0.015625, %v1850_v45  ;;  %v1877_v38 = vsel %vm1832_vm1, %v1870_v37, 0.0  ;;  %v1871_v9 = vmul.f32 %v3709_v25, %v3709_v25  ;;  %v1949_v37 = vld [vmem:[%s3791_s1 + $0x8] sm:$0xff] }
 0x32e   : > { %1878 = vadd.xlane.f32.xlu1 %v1877_v38  ;;  %v1854_v56 = vpop.xlane.xlu0 %1853 }
 0x32f   : > { %v3719_v6 = vsub.f32 %v1820_v4, %v1861_v1  ;;  %v1862_v43 = vmul.f32 0.015625, %v1854_v56  ;;  %v1880_v0 = vsel %vm1832_vm1, %v1871_v9, 0.0  ;;  %v1874_v22 = vmul.f32 %v3714_v49, %v3714_v49 }
 0x330   : > { %1881 = vadd.xlane.f32.xlu0 %v1880_v0 }
 0x331   : > { %v3724_v10 = vsub.f32 %v1825_v27, %v1862_v43  ;;  %v1889_v11 = vsel %vm1832_vm1, %v1874_v22, 0.0  ;;  %v1875_v26 = vmul.f32 %v3719_v6, %v3719_v6 }
 0x332   : > { %1890 = vadd.xlane.f32.xlu1 %v1889_v11  ;;  %v1953_v11 = vld [vmem:[%s3791_s1 + $0x28] sm:$0xff] }
 0x333   : > { %v1892_v52 = vsel %vm1832_vm1, %v1875_v26, 0.0  ;;  %v1876_v61 = vmul.f32 %v3724_v10, %v3724_v10 }
 0x334   : > { %1893 = vadd.xlane.f32.xlu0 %v1892_v52 }
 0x335   : > { %v1895_v40 = vsel %vm1851_vm2, %v1876_v61, 0.0  ;;  %v1954_v61 = vld [vmem:[%s3791_s1 + $0x30] sm:$0x3] }
 0x336   : > { %1896 = vadd.xlane.f32.xlu1 %v1895_v40 }
 0x3b7   : > { %v1885_v3 = vpop.xlane.xlu1 %1884 }
 0x3b8   : > { %v1900_v46 = vmul.f32 0.015625, %v1885_v3 }
 0x3b9   : > { %v1888_v59 = vpop.xlane.xlu0 %1887 }
 0x3ba   : > { %v1907_v33 = vadd.f32 1e-05, %v1900_v46  ;;  %v1901_v34 = vmul.f32 0.015625, %v1888_v59 }
 0x3bb   : > { %v1879_v57 = vpop.xlane.xlu1 %1878 }
 0x3bc   : > { %2419 = vrsqrt.f32 %v1907_v33  ;;  %v1908_v36 = vadd.f32 1e-05, %v1901_v34  ;;  %v1898_v32 = vmul.f32 0.015625, %v1879_v57 }
 0x3bd   : > { %v1882_v7 = vpop.xlane.xlu0 %1881 }
 0x3be   : > { %2421 = vrsqrt.f32 %v1908_v36  ;;  %v1905_v30 = vadd.f32 1e-05, %v1898_v32  ;;  %v1899_v63 = vmul.f32 0.015625, %v1882_v7 }
 0x3bf   : > { %v1891_v27 = vpop.xlane.xlu1 %1890 }
 0x3c0   : > { %2423 = vrsqrt.f32 %v1905_v30  ;;  %v1906_v29 = vadd.f32 1e-05, %v1899_v63  ;;  %v1902_v28 = vmul.f32 0.015625, %v1891_v27 }
 0x3c1   : > { %v1894_v42 = vpop.xlane.xlu0 %1893 }
 0x3c2   : > { %2425 = vrsqrt.f32 %v1906_v29  ;;  %v1909_v24 = vadd.f32 1e-05, %v1902_v28  ;;  %v1903_v19 = vmul.f32 0.015625, %v1894_v42 }
 0x3c3   : > { %v1897_v58 = vpop.xlane.xlu1 %1896 }
 0x3c4   : > { %2427 = vrsqrt.f32 %v1909_v24  ;;  %v1910_v35 = vadd.f32 1e-05, %v1903_v19  ;;  %v1904_v8 = vmul.f32 0.015625, %v1897_v58 }
 0x3c6   : > { %v2420_v13 = vpop.eup %2419  ;;  %2429 = vrsqrt.f32 %v1910_v35  ;;  %v1911_v4 = vadd.f32 1e-05, %v1904_v8 }
 0x3c7   : > { %v1921_v15 = vmul.f32 %v2420_v13, %v3698_v54 }
 0x3c8   : > { %v2422_v41 = vpop.eup %2421  ;;  %2431 = vrsqrt.f32 %v1911_v4 }
 0x3c9   : > { %v1932_v53 = vmul.f32 %v2107_v62, %v1921_v15  ;;  %v1922_v16 = vmul.f32 %v2422_v41, %v3700_v17 }
 0x3ca   : > { %v2424_v21 = vpop.eup %2423 }
 0x3cb   : > { %v1943_v2 = vadd.f32 %v2108_v23, %v1932_v53  ;;  %v1933_v44 = vmul.f32 %v2107_v62, %v1922_v16  ;;  %v1919_v14 = vmul.f32 %v2424_v21, %v3704_v60  ;;  %v1948_v60 = vld [vmem:[%s3791_s1] sm:$0xff] }
 0x3cc   : > { %v2426_v54 = vpop.eup %2425 }
 0x3cd   : > { %v1957_v17 = vadd.f32 %v1950_v50, %v1943_v2  ;;  %v1944_v31 = vadd.f32 %v2108_v23, %v1933_v44  ;;  %v1930_v5 = vmul.f32 %v2107_v62, %v1919_v14  ;;  %v1920_v18 = vmul.f32 %v2426_v54, %v3709_v25 }
 0x3ce   : > { %v2428_v20 = vpop.eup %2427 }
 0x3cf   : > { %1964 = vst.msk [vmem:[%s3749_s25 + $0x10] sm:$0xff] %vm1832_vm1, %v1957_v17  ;;  %v1958_v39 = vadd.f32 %v1951_v47, %v1944_v31  ;;  %v1941_v55 = vadd.f32 %v2108_v23, %v1930_v5  ;;  %v1931_v48 = vmul.f32 %v2107_v62, %v1920_v18  ;;  %v1923_v51 = vmul.f32 %v2428_v20, %v3714_v49  ;;  %v1952_v49 = vld [vmem:[%s3791_s1 + $0x20] sm:$0xff] }
 0x3d0   : > { %v2430_v12 = vpop.eup %2429 }
 0x3d1   : > { %1965 = vst.msk [vmem:[%s3749_s25 + $0x18] sm:$0xff] %vm1832_vm1, %v1958_v39  ;;  %v1955_v25 = vadd.f32 %v1948_v60, %v1941_v55  ;;  %v1942_v45 = vadd.f32 %v2108_v23, %v1931_v48  ;;  %v1934_v1 = vmul.f32 %v2107_v62, %v1923_v51  ;;  %v1924_v38 = vmul.f32 %v2430_v12, %v3719_v6 }
 0x3d2   : > { %v2432_v9 = vpop.eup %2431 }
 0x3d3   : > { %1962 = vst.msk [vmem:[%s3749_s25] sm:$0xff] %vm1832_vm1, %v1955_v25  ;;  %v1956_v56 = vadd.f32 %v1949_v37, %v1942_v45  ;;  %v1945_v43 = vadd.f32 %v2108_v23, %v1934_v1  ;;  %v1935_v0 = vmul.f32 %v2107_v62, %v1924_v38  ;;  %v1925_v22 = vmul.f32 %v2432_v9, %v3724_v10 }
 0x3d5   : > { %1963 = vst.msk [vmem:[%s3749_s25 + $0x8] sm:$0xff] %vm1832_vm1, %v1956_v56  ;;  %v1959_v6 = vadd.f32 %v1952_v49, %v1945_v43  ;;  %v1946_v26 = vadd.f32 %v2108_v23, %v1935_v0  ;;  %v1936_v52 = vmul.f32 %v2107_v62, %v1925_v22 }
 0x3d7   : > { %1966 = vst.msk [vmem:[%s3749_s25 + $0x20] sm:$0xff] %vm1832_vm1, %v1959_v6  ;;  %v1960_v40 = vadd.f32 %v1953_v11, %v1946_v26  ;;  %v1947_v3 = vadd.f32 %v2108_v23, %v1936_v52 }
 0x3d9   : > { %1967 = vst.msk [vmem:[%s3749_s25 + $0x28] sm:$0xff] %vm1832_vm1, %v1960_v40  ;;  %v1961_v10 = vadd.f32 %v1954_v61, %v1947_v3 }
 0x3db   : > { %1968 = vst.msk [vmem:[%s3749_s25 + $0x30] sm:$0x3] %vm1851_vm2, %v1961_v10 }
 0x3dc PF: > { %s15_s18 = sadd.s32 1, %s2439_s18  }
 0x3dd   : > { %p12_p4 = scmp.ge.s32.totalorder %s15_s18, 4  }
 0x3df   :  { %14 = sbr.rel (!%p12_p4) target bundleno = 1 (0x1), region = 73 }

// kernel: vitpose_forward.3
= control target key start
LH: loop header
LB: loop body
LE: loop exit
PB: predicated region body
PF: predicated region fallthrough
CT: control target
= control target key end

     0   :  { %s10254_s21 = smov 0   ;;  %s12649_s0 = inlined_call_operand.vmem [shape: f32[2,42,50], index: 0, kind: input, shape index: {}]   ;;  %s12650_s1 = inlined_call_operand.vmem [shape: f32[2,50,64], index: 1, kind: input, shape index: {}]   ;;  %s12651_s2 = inlined_call_operand.vmem [shape: f32[1,50,64], index: 2, kind: input, shape index: {}]   ;;  %s12652_s3 = inlined_call_operand.vmem [shape: f32[17,64], index: 3, kind: input, shape index: {}]   ;;  %s12653_s4 = inlined_call_operand.vmem [shape: bf16[12,64,32], index: 4, kind: input, shape index: {}]   ;;  %s12654_s5 = inlined_call_operand.vmem [shape: bf16[4,32,64], index: 5, kind: input, shape index: {}]   ;;  %s12655_s6 = inlined_call_operand.vmem [shape: bf16[4,64,64], index: 6, kind: input, shape index: {}]   ;;  %s12656_s7 = inlined_call_operand.vmem [shape: bf16[64,1024], index: 7, kind: input, shape index: {}]   ;;  %s12657_s8 = inlined_call_operand.vmem [shape: bf16[1024,512], index: 8, kind: input, shape index: {}]   ;;  %s12658_s9 = inlined_call_operand.vmem [shape: bf16[512,64], index: 9, kind: input, shape index: {}]   ;;  %s12659_s10 = inlined_call_operand.vmem [shape: bf16[64,2048], index: 10, kind: input, shape index: {}]   ;;  %s12660_s11 = inlined_call_operand.vmem [shape: f32[1,3584], index: 11, kind: input, shape index: {}]   ;;  %s12661_s12 = inlined_call_operand.vmem [shape: f32[2,1,2048], index: 12, kind: output, shape index: {}]  }
   0x1 LB: > { %s7752_s22 = sadd.s32 4294967295, %s10182_s21   ;;  %p7756_p0 = scmp.ge.s32.totalorder %s10182_s21, 1  ;;  %s10182_s21 = sphi %s10254_s21, %s22_s21  }
   0x2   : > { %p372_p1 = scmp.lt.s32.totalorder %s10182_s21, 3 }
   0x4   : > { %p373_p2 = pnand %p7756_p0, %p372_p1 }
   0x5   : > { %p418_p3 = scmp.lt.s32.totalorder (!%p373_p2), %s7752_s22, 1  ;;  %v446_v0 = vld [vmem:[%s12651_s2] sm:$0xff] (!%p373_p2)  ;;  %v447_v1 = vld [vmem:[%s12651_s2 + $0x8] sm:$0xff] (!%p373_p2)  ;;  %v448_v2 = vld [vmem:[%s12651_s2 + $0x10] sm:$0xff] (!%p373_p2)  ;;  %vm460_vm0 = vcmask (!%p373_p2), 408576   ;;  %vm479_vm1 = vcmask (!%p373_p2), 1041408  }
   0x6   : > { %376 = sbr.rel (%p373_p2) target bundleno = 7397 (0x1ce5), region = 68  ;;  %v449_v3 = vld [vmem:[%s12651_s2 + $0x18] sm:$0xff] (!%p373_p2)  ;;  %v450_v4 = vld [vmem:[%s12651_s2 + $0x20] sm:$0xff] (!%p373_p2)  ;;  %v451_v5 = vld [vmem:[%s12651_s2 + $0x28] sm:$0xff] (!%p373_p2)  ;;  %vm580_vm2 = vcmask (!%p373_p2), 523264   ;;  %vm596_vm3 = vcmask (!%p373_p2), 517120  }
   0x7   : > { %v452_v22 = vld [vmem:[%s12651_s2 + $0x30] sm:$0x3] (!%p373_p2)  ;;  %vm10185_vm4 = vmmov (!%p373_p2), 0   ;;  %vm962_vm5 = vcmask (!%p373_p2), 261120   ;;  %vm1100_vm7 = vcmask (!%p373_p2), 343040   ;;  %vm1116_vm8 = vcmask (!%p373_p2), 336896  }
   0x8   : > { %vm10485_vm6 = vmpackc.low (!%p373_p2), %vm962_vm5, %vm962_vm5  ;;  %vm10186_vm9 = vmmov (!%p373_p2), 1   ;;  %vm3908_vm11 = vcmask (!%p373_p2), 516096  }
   0x9   : > { %vm10565_vm10 = vmpackc.low (!%p373_p2), %vm479_vm1, %vm10186_vm9 }
   0xd   : > { %s12667_s22 = smov (!%p418_p3, %s7752_s22), 1 }
   0xe   : > { %s9524_s29 = smul.u32 56, %s12667_s22  ;;  %s7759_s19 = sshll.u32 %s12667_s22, 4 }
   0xf   : > { %s9523_s18 = smul.u32 48, %s12667_s22 }
  0x10   : > { %s427_s23 = scalar_lea.vmem %s12650_s1, %s9524_s29 }
  0x11   : > { %v439_v6 = vld [vmem:[%s427_s23] sm:$0xff]  ;;  %v440_v7 = vld [vmem:[%s427_s23 + $0x8] sm:$0xff]  ;;  %v441_v8 = vld [vmem:[%s427_s23 + $0x10] sm:$0xff]  ;;  %s10290_s26 = scalar_lea.vmem %s12649_s0, %s9523_s18 }
  0x12   : > { %v453_v9 = vadd.f32 %v446_v0, %v439_v6  ;;  %v454_v10 = vadd.f32 %v447_v1, %v440_v7  ;;  %v442_v11 = vld [vmem:[%s427_s23 + $0x18] sm:$0xff]  ;;  %v455_v12 = vadd.f32 %v448_v2, %v441_v8  ;;  %v443_v13 = vld [vmem:[%s427_s23 + $0x20] sm:$0xff]  ;;  %v444_v14 = vld [vmem:[%s427_s23 + $0x28] sm:$0xff] }
  0x13   : > { %v456_v15 = vadd.f32 %v449_v3, %v442_v11  ;;  %v433_v16 = vld [vmem:[%s10290_s26] sm:$0xff]  ;;  %v457_v18 = vadd.f32 %v450_v4, %v443_v13  ;;  %v458_v19 = vadd.f32 %v451_v5, %v444_v14  ;;  %v445_v21 = vld [vmem:[%s427_s23 + $0x30] sm:$0x3]  ;;  %v434_v25 = vld [vmem:[%s10290_s26 + $0x8] sm:$0xff] }
  0x14   : > { %v9343_v17 = vpack.c.bf16 %v454_v10, %v453_v9  ;;  %8798 = vmatprep.mubr.msk.f32.mxu0 %vm460_vm0, %v433_v16  ;;  %v459_v24 = vadd.f32 %v452_v22, %v445_v21  ;;  %v435_v26 = vld [vmem:[%s10290_s26 + $0x10] sm:$0xff]  ;;  %v436_v27 = vld [vmem:[%s10290_s26 + $0x18] sm:$0xff]  ;;  %v437_v28 = vld [vmem:[%s10290_s26 + $0x20] sm:$0xff]  ;;  %v10184_v10 = vmov 0.0  }
  0x15   : > { %v9347_v20 = vpack.c.bf16 %v456_v15, %v455_v12  ;;  %v9351_v23 = vpack.c.bf16 %v458_v19, %v457_v18  ;;  %v438_v29 = vld [vmem:[%s10290_s26 + $0x28] sm:$0x3]  ;;  %v9538_v8 = vld [vmem:[%s12653_s4] sm:$0xff]   ;;  %8807 = vmatprep.subr.bf16.mxu1 %v10184_v10  ;;  %v9542_v13 = vld [vmem:[%s12653_s4 + $0x10] sm:$0xff]   ;;  %8815 = vmatprep.mubr.msk.bf16.mxu1 %vm10185_vm4, %v10184_v10  ;;  %s12628_s26 = scalar_lea.vmem %s12661_s12, %s7759_s19 }
  0x16   : > { %9344 = vmatprep.subr.bf16.mxu0 %v9343_v17  ;;  %v9539_v9 = vld [vmem:[%s12653_s4 + $0x40] sm:$0xff]   ;;  %8808 = vmatpush3.bf16.msra.mxu1 %v9538_v8  ;;  %v9540_v11 = vld [vmem:[%s12653_s4 + $0x8] sm:$0xff]   ;;  %v9543_v14 = vld [vmem:[%s12653_s4 + $0x50] sm:$0xff]  }
  0x17   : > { %9346 = vmatpush3.bf16.msra.mxu0 %v9343_v17  ;;  %8809 = vmatprep.subr.bf16.mxu1 %v10184_v10  ;;  %v9541_v12 = vld [vmem:[%s12653_s4 + $0x48] sm:$0xff]   ;;  %v9544_v15 = vld [vmem:[%s12653_s4 + $0x18] sm:$0xff]  }
  0x18   : > { %9348 = vmatprep.subr.bf16.mxu0 %v9347_v20  ;;  %v9545_v16 = vld [vmem:[%s12653_s4 + $0x58] sm:$0xff]  }
  0x1a   : > { %8810 = vmatpush3.bf16.msra.mxu1 %v9540_v11  ;;  %v9550_v11 = vld [vmem:[%s12654_s5] sm:$0xff]  }
  0x1b   : > { %9350 = vmatpush3.bf16.msra.mxu0 %v9347_v20  ;;  %8811 = vmatprep.subr.bf16.mxu1 %v10184_v10 }
  0x1c   : > { %9352 = vmatprep.subr.bf16.mxu0 %v9351_v23 }
  0x1e   : > { %8812 = vmatpush3.bf16.msra.mxu1 %v9542_v13 }
  0x1f   : > { %9354 = vmatpush3.bf16.msra.mxu0 %v9351_v23  ;;  %8813 = vmatprep.subr.bf16.mxu1 %v10184_v10 }
  0x20   : > { %8796 = vmatprep.subr.msk.mxu0 %vm479_vm1, %v459_v24 }
  0x22   : > { %8814 = vmatpush3.bf16.msra.mxu1 %v9544_v15 }
  0x23   : > { %8797 = vmatpush3.msk.msra.mxu0 %vm479_vm1, %v459_v24  ;;  %8847 = vmatprep.subr.bf16.mxu1 %v10184_v10 }
  0x24   : > { %8799 = vmatmul.mubr.msk.f32.vlgmr.msra.gmra.mrb[0].mxu0 %vm460_vm0, %v434_v25  ;;  %8827 = vmatprep.subr.bf16.mxu0 %v10184_v10 }
  0x25   : > { %8801 = vmatprep.mubr.msk.f32.mxu0 %vm460_vm0, %v435_v26  ;;  %8828 = vmatpush3.bf16.msra.mxu0 %v9539_v9 }
  0x26   : > { %8829 = vmatprep.subr.bf16.mxu0 %v10184_v10 }
  0x28   : > { %8802 = vmatmul.mubr.msk.f32.gmra.mrb[2].mxu0 %vm460_vm0, %v436_v27 }
  0x29   : > { %8804 = vmatprep.mubr.msk.f32.mxu0 %vm460_vm0, %v437_v28  ;;  %8830 = vmatpush3.bf16.msra.mxu0 %v9541_v12  ;;  %v9551_v12 = vld [vmem:[%s12654_s5 + $0x8] sm:$0xff]  }
  0x2a   : > { %8831 = vmatprep.subr.bf16.mxu0 %v10184_v10 }
  0x2c   : > { %8805 = vmatmul.mubr.msk.f32.gmra.mrb[4].mxu0 %vm460_vm0, %v438_v29 }
  0x2d   : > { %8832 = vmatpush3.bf16.msra.mxu0 %v9543_v14  ;;  %8835 = vmatprep.mubr.msk.bf16.mxu0 %vm10185_vm4, %v10184_v10 }
  0x2e   : > { %8833 = vmatprep.subr.bf16.mxu0 %v10184_v10 }
  0x31   : > { %8834 = vmatpush3.bf16.msra.mxu0 %v9545_v16 }
  0xf7   : > { %v10309_v30 = vpop.f32.mrb[0].mxu0 }
  0xf8   : > { %v10311_v31 = vpop.f32.mrb[1].mxu0  ;;  %v584_v35 = vsel %vm580_vm2, %v10309_v30, 0.0 }
  0xf9   : > { %v581_v32 = vsel %vm580_vm2, %v10311_v31, 0.0 }
  0xfa   : > { %582 = vadd.xlane.f32.xlu0 %v581_v32 }
  0xfb   : > { %v10315_v33 = vpop.f32.mrb[2].mxu0 }
  0xfc   : > { %v10317_v34 = vpop.f32.mrb[3].mxu0  ;;  %v590_v38 = vsel %vm580_vm2, %v10315_v33, 0.0 }
  0xfd   : > { %v587_v36 = vsel %vm580_vm2, %v10317_v34, 0.0 }
  0xfe   : > { %585 = vadd.xlane.f32.xlu0 %v584_v35  ;;  %588 = vadd.xlane.f32.xlu1 %v587_v36 }
  0xff   : > { %v10323_v37 = vpop.f32.mrb[4].mxu0 }
 0x100   : > { %v10327_v39 = vpop.f32.mrb[5].mxu0  ;;  %v597_v41 = vsel %vm596_vm3, %v10323_v37, 0.0 }
 0x101   : > { %v593_v40 = vsel %vm580_vm2, %v10327_v39, 0.0 }
 0x102   : > { %591 = vadd.xlane.f32.xlu1 %v590_v38  ;;  %594 = vadd.xlane.f32.xlu0 %v593_v40 }
 0x106   : > { %598 = vadd.xlane.f32.xlu1 %v597_v41 }
 0x187   : > { %v583_v42 = vpop.xlane.xlu0 %582 }
 0x188   : > { %v601_v43 = vmul.f32 0.015625, %v583_v42 }
 0x18a   : > { %v10334_v44 = vsub.f32 %v10311_v31, %v601_v43  ;;  %v7767_v43 = vld [vmem:[%s12652_s3] ss:$0 sm:$0xff] }
 0x18b   : > { %v586_v45 = vpop.xlane.xlu0 %585  ;;  %v589_v46 = vpop.xlane.xlu1 %588 }
 0x18c   : > { %v602_v47 = vmul.f32 0.015625, %v586_v45  ;;  %v603_v48 = vmul.f32 0.015625, %v589_v46  ;;  %v613_v49 = vmul.f32 %v10334_v44, %v10334_v44 }
 0x18e   : > { %v10339_v50 = vsub.f32 %v10309_v30, %v602_v47  ;;  %v10342_v51 = vsub.f32 %v10317_v34, %v603_v48  ;;  %v619_v52 = vsel %vm580_vm2, %v613_v49, 0.0  ;;  %v7768_v49 = vld [vmem:[%s12652_s3 + $0x1] ss:$0 sm:$0xff] }
 0x18f   : > { %v592_v53 = vpop.xlane.xlu1 %591  ;;  %620 = vadd.xlane.f32.xlu0 %v619_v52  ;;  %v595_v54 = vpop.xlane.xlu0 %594 }
 0x190   : > { %v604_v55 = vmul.f32 0.015625, %v592_v53  ;;  %v605_v56 = vmul.f32 0.015625, %v595_v54  ;;  %v614_v57 = vmul.f32 %v10339_v50, %v10339_v50  ;;  %v615_v58 = vmul.f32 %v10342_v51, %v10342_v51 }
 0x192   : > { %v10350_v59 = vsub.f32 %v10315_v33, %v604_v55  ;;  %v10353_v60 = vsub.f32 %v10327_v39, %v605_v56  ;;  %v622_v61 = vsel %vm580_vm2, %v614_v57, 0.0  ;;  %v625_v62 = vsel %vm580_vm2, %v615_v58, 0.0 }
 0x193   : > { %623 = vadd.xlane.f32.xlu1 %v622_v61  ;;  %v599_v63 = vpop.xlane.xlu1 %598  ;;  %626 = vadd.xlane.f32.xlu0 %v625_v62 }
 0x194   : > { %v606_v0 = vmul.f32 0.015625, %v599_v63  ;;  %v616_v1 = vmul.f32 %v10350_v59, %v10350_v59  ;;  %v617_v2 = vmul.f32 %v10353_v60, %v10353_v60 }
 0x196   : > { %v10362_v3 = vsub.f32 %v10323_v37, %v606_v0  ;;  %v628_v4 = vsel %vm580_vm2, %v616_v1, 0.0  ;;  %v631_v5 = vsel %vm580_vm2, %v617_v2, 0.0  ;;  %v9547_v0 = vld [vmem:[%s12653_s4 + $0x88] sm:$0xff]  }
 0x197   : > { %629 = vadd.xlane.f32.xlu1 %v628_v4  ;;  %632 = vadd.xlane.f32.xlu0 %v631_v5 }
 0x198   : > { %v618_v6 = vmul.f32 %v10362_v3, %v10362_v3 }
 0x19a   : > { %v634_v7 = vsel %vm596_vm3, %v618_v6, 0.0  ;;  %v9548_v6 = vld [vmem:[%s12653_s4 + $0x90] sm:$0xff]  }
 0x19b   : > { %635 = vadd.xlane.f32.xlu1 %v634_v7  ;;  %v9549_v7 = vld [vmem:[%s12653_s4 + $0x98] sm:$0xff]  }
 0x21c   : > { %v621_v17 = vpop.xlane.xlu0 %620 }
 0x21d   : > { %v637_v18 = vmul.f32 0.015625, %v621_v17 }
 0x21f   : > { %v643_v19 = vadd.f32 1e-05, %v637_v18 }
 0x220   : > { %v624_v20 = vpop.xlane.xlu1 %623  ;;  %v627_v21 = vpop.xlane.xlu0 %626 }
 0x221   : > { %10026 = vrsqrt.f32 %v643_v19  ;;  %v638_v22 = vmul.f32 0.015625, %v624_v20  ;;  %v639_v23 = vmul.f32 0.015625, %v627_v21 }
 0x223   : > { %v644_v24 = vadd.f32 1e-05, %v638_v22  ;;  %v645_v25 = vadd.f32 1e-05, %v639_v23 }
 0x224   : > { %v630_v26 = vpop.xlane.xlu1 %629  ;;  %v633_v27 = vpop.xlane.xlu0 %632 }
 0x225   : > { %10028 = vrsqrt.f32 %v644_v24  ;;  %v640_v28 = vmul.f32 0.015625, %v630_v26  ;;  %v641_v32 = vmul.f32 0.015625, %v633_v27 }
 0x226   : > { %10030 = vrsqrt.f32 %v645_v25 }
 0x227   : > { %v646_v29 = vadd.f32 1e-05, %v640_v28  ;;  %v647_v40 = vadd.f32 1e-05, %v641_v32 }
 0x228   : > { %v636_v35 = vpop.xlane.xlu1 %635 }
 0x229   : > { %10032 = vrsqrt.f32 %v646_v29  ;;  %v642_v36 = vmul.f32 0.015625, %v636_v35 }
 0x22b   : > { %v10027_v38 = vpop.eup %10026  ;;  %v648_v41 = vadd.f32 1e-05, %v642_v36 }
 0x22c   : > { %v655_v42 = vmul.f32 %v10027_v38, %v10334_v44 }
 0x22d   : > { %10034 = vrsqrt.f32 %v648_v41 }
 0x22e   : > { %10036 = vrsqrt.f32 %v647_v40  ;;  %v665_v46 = vmul.f32 %v7767_v43, %v655_v42 }
 0x22f   : > { %v10029_v45 = vpop.eup %10028 }
 0x230   : > { %v656_v47 = vmul.f32 %v10029_v45, %v10339_v50  ;;  %v10031_v48 = vpop.eup %10030  ;;  %v675_v54 = vadd.f32 %v7768_v49, %v665_v46  ;;  %v9546_v50 = vld [vmem:[%s12653_s4 + $0x80] sm:$0xff]  }
 0x231   : > { %v657_v44 = vmul.f32 %v10031_v48, %v10342_v51 }
 0x232   : > { %v666_v52 = vmul.f32 %v7767_v43, %v656_v47 }
 0x233   : > { %v10033_v53 = vpop.eup %10032  ;;  %v667_v62 = vmul.f32 %v7767_v43, %v657_v44  ;;  %v9553_v44 = vld [vmem:[%s12653_s4 + $0x68] sm:$0xff]  }
 0x234   : > { %v676_v55 = vadd.f32 %v7768_v49, %v666_v52  ;;  %v658_v56 = vmul.f32 %v10033_v53, %v10350_v59 }
 0x235   : > { %v677_v1 = vadd.f32 %v7768_v49, %v667_v62 }
 0x236   : > { %v668_v57 = vmul.f32 %v7767_v43, %v658_v56  ;;  %v10416_v58 = vpack.c.bf16 %v676_v55, %v675_v54  ;;  %v9552_v55 = vld [vmem:[%s12653_s4 + $0x60] sm:$0xff]  }
 0x237   : > { %v10035_v61 = vpop.eup %10034 }
 0x238   : > { %8816 = vmatmul.mubr.msk.bf16.vlgmr.msra.gmra.mrb[0].mxu1 %vm580_vm2, %v10416_v58  ;;  %8836 = vmatmul.mubr.msk.bf16.vlgmr.msra.gmra.mrb[8].mxu0 %vm580_vm2, %v10416_v58  ;;  %v10037_v63 = vpop.eup %10036  ;;  %v678_v51 = vadd.f32 %v7768_v49, %v668_v57  ;;  %v660_v59 = vmul.f32 %v10035_v61, %v10362_v3 }
 0x239   : > { %8819 = vmatprep.mubr.msk.bf16.mxu1 %vm10185_vm4, %v10184_v10  ;;  %8839 = vmatprep.mubr.msk.bf16.mxu0 %vm10185_vm4, %v10184_v10  ;;  %v659_v2 = vmul.f32 %v10037_v63, %v10353_v60  ;;  %v9554_v63 = vld [vmem:[%s12653_s4 + $0x70] sm:$0xff]  }
 0x23a   : > { %8848 = vmatpush3.bf16.msra.mxu1 %v9546_v50  ;;  %v670_v4 = vmul.f32 %v7767_v43, %v660_v59  ;;  %v10435_v5 = vpack.c.bf16 %v678_v51, %v677_v1  ;;  %v9555_v51 = vld [vmem:[%s12653_s4 + $0x78] sm:$0xff]  }
 0x23b   : > { %8849 = vmatprep.subr.bf16.mxu1 %v10184_v10  ;;  %v669_v3 = vmul.f32 %v7767_v43, %v659_v2 }
 0x23c   : > { %v680_v60 = vadd.f32 %v7768_v49, %v670_v4 }
 0x23d   : > { %v679_v8 = vadd.f32 %v7768_v49, %v669_v3 }
 0x23e   : > { %8850 = vmatpush3.bf16.msra.mxu1 %v9547_v0 }
 0x23f   : > { %8851 = vmatprep.subr.bf16.mxu1 %v10184_v10  ;;  %v10453_v9 = vpack.c.bf16 %v680_v60, %v679_v8 }
 0x240   : > { %8820 = vmatmul.mubr.msk.bf16.gmra.mrb[4].mxu1 %vm580_vm2, %v10435_v5  ;;  %8840 = vmatmul.mubr.msk.bf16.gmra.mrb[12].mxu0 %vm580_vm2, %v10435_v5 }
 0x241   : > { %8823 = vmatprep.mubr.msk.bf16.mxu1 %vm10185_vm4, %v10184_v10  ;;  %8843 = vmatprep.mubr.msk.bf16.mxu0 %vm10185_vm4, %v10184_v10 }
 0x242   : > { %8852 = vmatpush3.bf16.msra.mxu1 %v9548_v6 }
 0x243   : > { %8853 = vmatprep.subr.bf16.mxu1 %v10184_v10 }
 0x246   : > { %8854 = vmatpush3.bf16.msra.mxu1 %v9549_v7 }
 0x247   : > { %8888 = vmatprep.subr.bf16.mxu1 %v10184_v10 }
 0x248   : > { %8824 = vmatmul.mubr.msk.bf16.gmra.mrb[8].mxu1 %vm580_vm2, %v10453_v9  ;;  %8844 = vmatmul.mubr.msk.bf16.gmra.mrb[16].mxu0 %vm580_vm2, %v10453_v9 }
 0x249   : > { %8855 = vmatprep.mubr.msk.bf16.mxu1 %vm10185_vm4, %v10184_v10 }
 0x250   : > { %8856 = vmatmul.mubr.msk.bf16.vlgmr.msra.gmra.mrb[12].mxu1 %vm580_vm2, %v10416_v58 }
 0x251   : > { %8859 = vmatprep.mubr.msk.bf16.mxu1 %vm10185_vm4, %v10184_v10  ;;  %8889 = vmatpush3.bf16.msra.mxu1 %v9550_v11 }
 0x252   : > { %8890 = vmatprep.subr.bf16.mxu1 %v10184_v10 }
 0x255   : > { %8891 = vmatpush3.bf16.msra.mxu1 %v9551_v12 }
 0x256   : > { %8945 = vmatprep.subr.bf16.mxu1 %v10184_v10 }
 0x258   : > { %8860 = vmatmul.mubr.msk.bf16.gmra.mrb[16].mxu1 %vm580_vm2, %v10435_v5 }
 0x259   : > { %8863 = vmatprep.mubr.msk.bf16.mxu1 %vm10185_vm4, %v10184_v10 }
 0x260   : > { %8864 = vmatmul.mubr.msk.bf16.gmra.mrb[20].mxu1 %vm580_vm2, %v10453_v9 }
 0x261   : > { %8892 = vmatprep.mubr.msk.bf16.mxu1 %vm10185_vm4, %v10184_v10 }
 0x30b   : > { %v759_v13 = vpop.f32.mrb[0].mxu1  ;;  %v849_v14 = vpop.f32.mrb[8].mxu0 }
 0x30c   : > { %v8817_v15 = vpop.f32.mrb[1].mxu1  ;;  %v8837_v16 = vpop.f32.mrb[9].mxu0  ;;  %8879 = vmatprep.mubr.msk.f32.mxu0 %vm962_vm5, %v759_v13 }
 0x30d   : > { %v762_v17 = vpop.f32.mrb[2].mxu1  ;;  %v852_v18 = vpop.f32.mrb[10].mxu0 }
 0x30e   : > { %v9355_v20 = vpack.c.bf16 %v852_v18, %v849_v14  ;;  %v8818_v21 = vpop.f32.mrb[3].mxu1  ;;  %v8838_v22 = vpop.f32.mrb[11].mxu0 }
 0x310   : > { %9357 = vmatprep.subr.msk.bf16.mxu0 %vm10485_vm6, %v9355_v20 }
 0x311   : > { %9360 = vmatpush3.bf16.xpose.msk.msra.mxu0 %vm10485_vm6, %v9355_v20 }
 0x313   : > { %v767_v23 = vpop.f32.mrb[4].mxu1  ;;  %v857_v24 = vpop.f32.mrb[12].mxu0 }
 0x314   : > { %v8821_v25 = vpop.f32.mrb[5].mxu1  ;;  %v8841_v26 = vpop.f32.mrb[13].mxu0 }
 0x315   : > { %v770_v27 = vpop.f32.mrb[6].mxu1  ;;  %v860_v28 = vpop.f32.mrb[14].mxu0 }
 0x316   : > { %v9361_v29 = vpack.c.bf16 %v860_v28, %v857_v24  ;;  %v8822_v32 = vpop.f32.mrb[7].mxu1  ;;  %v8842_v35 = vpop.f32.mrb[15].mxu0 }
 0x318   : > { %9363 = vmatprep.subr.msk.bf16.mxu0 %vm10485_vm6, %v9361_v29 }
 0x319   : > { %9366 = vmatpush3.bf16.xpose.msk.msra.mxu0 %vm10485_vm6, %v9361_v29 }
 0x31b   : > { %v775_v36 = vpop.f32.mrb[8].mxu1  ;;  %v865_v38 = vpop.f32.mrb[16].mxu0 }
 0x31c   : > { %v8825_v40 = vpop.f32.mrb[9].mxu1  ;;  %v8845_v41 = vpop.f32.mrb[17].mxu0 }
 0x31d   : > { %v778_v42 = vpop.f32.mrb[10].mxu1  ;;  %v868_v43 = vpop.f32.mrb[18].mxu0 }
 0x31e   : > { %v9367_v45 = vpack.c.bf16 %v868_v43, %v865_v38  ;;  %v8826_v46 = vpop.f32.mrb[11].mxu1  ;;  %v8846_v47 = vpop.f32.mrb[19].mxu0 }
 0x320   : > { %9369 = vmatprep.subr.msk.bf16.mxu0 %vm10485_vm6, %v9367_v45 }
 0x321   : > { %9372 = vmatpush3.bf16.xpose.msk.msra.mxu0 %vm10485_vm6, %v9367_v45 }
 0x323   : > { %v939_v48 = vpop.f32.mrb[12].mxu1 }
 0x324   : > { %v8857_v49 = vpop.f32.mrb[13].mxu1 }
 0x325   : > { %v942_v52 = vpop.f32.mrb[14].mxu1 }
 0x326   : > { %v1168_v53 = vpack.c.bf16 %v942_v52, %v939_v48  ;;  %v8858_v54 = vpop.f32.mrb[15].mxu1 }
 0x328   : > { %8880 = vmatmul.mubr.msk.f32.vlgmr.msra.gmra.mrb[6].mxu0 %vm962_vm5, %v762_v17  ;;  %8893 = vmatmul.mubr.msk.bf16.vlgmr.msra.gmra.mrb[24].mxu1 %vm962_vm5, %v1168_v53 }
 0x329   : > { %8882 = vmatprep.mubr.msk.f32.mxu0 %vm962_vm5, %v767_v23  ;;  %8896 = vmatprep.mubr.msk.bf16.mxu1 %vm10185_vm4, %v10184_v10 }
 0x32a   : > { %8946 = vmatpush3.bf16.msra.mxu1 %v9552_v55 }
 0x32b   : > { %v947_v56 = vpop.f32.mrb[16].mxu1  ;;  %8947 = vmatprep.subr.bf16.mxu1 %v10184_v10 }
 0x32c   : > { %v8861_v57 = vpop.f32.mrb[17].mxu1  ;;  %8883 = vmatmul.mubr.msk.f32.gmra.mrb[20].mxu0 %vm962_vm5, %v770_v27 }
 0x32d   : > { %v950_v50 = vpop.f32.mrb[18].mxu1  ;;  %8885 = vmatprep.mubr.msk.f32.mxu0 %vm962_vm5, %v775_v36 }
 0x32e   : > { %v1169_v61 = vpack.c.bf16 %v950_v50, %v947_v56  ;;  %v8862_v62 = vpop.f32.mrb[19].mxu1  ;;  %8948 = vmatpush3.bf16.msra.mxu1 %v9553_v44 }
 0x32f   : > { %8949 = vmatprep.subr.bf16.mxu1 %v10184_v10 }
 0x330   : > { %8886 = vmatmul.mubr.msk.f32.gmra.mrb[22].mxu0 %vm962_vm5, %v778_v42  ;;  %8897 = vmatmul.mubr.msk.bf16.gmra.mrb[28].mxu1 %vm962_vm5, %v1169_v61 }
 0x331   : > { %8900 = vmatprep.mubr.msk.bf16.mxu1 %vm10185_vm4, %v10184_v10 }
 0x332   : > { %8950 = vmatpush3.bf16.msra.mxu1 %v9554_v63 }
 0x333   : > { %v955_v59 = vpop.f32.mrb[20].mxu1  ;;  %8951 = vmatprep.subr.bf16.mxu1 %v10184_v10 }
 0x334   : > { %v8865_v0 = vpop.f32.mrb[21].mxu1 }
 0x335   : > { %v958_v1 = vpop.f32.mrb[22].mxu1 }
 0x336   : > { %v1170_v2 = vpack.c.bf16 %v958_v1, %v955_v59  ;;  %v8866_v4 = vpop.f32.mrb[23].mxu1  ;;  %8952 = vmatpush3.bf16.msra.mxu1 %v9555_v51 }
 0x338   : > { %8901 = vmatmul.mubr.msk.bf16.gmra.mrb[32].mxu1 %vm962_vm5, %v1170_v2 }
 0x339   : > { %8953 = vmatprep.mubr.msk.bf16.mxu1 %vm10185_vm4, %v10184_v10 }
 0x340   : > { %8954 = vmatmul.mubr.msk.bf16.vlgmr.msra.gmra.mrb[36].mxu1 %vm580_vm2, %v10416_v58 }
 0x341   : > { %8957 = vmatprep.mubr.msk.bf16.mxu1 %vm10185_vm4, %v10184_v10 }
 0x348   : > { %8958 = vmatmul.mubr.msk.bf16.gmra.mrb[40].mxu1 %vm580_vm2, %v10435_v5 }
 0x349   : > { %8961 = vmatprep.mubr.msk.bf16.mxu1 %vm10185_vm4, %v10184_v10 }
 0x350   : > { %8962 = vmatmul.mubr.msk.bf16.gmra.mrb[44].mxu1 %vm580_vm2, %v10453_v9 }
 0x3fb   : > { %v8881_v6 = vpop.f32.mrb[6].mxu0  ;;  %v1230_v3 = vpop.f32.mrb[24].mxu1 }
 0x3fc   : > { %v10540_v60 = vmul.f32 0.17677669, %v8881_v6  ;;  %v1065_v7 = vpop.f32.mrb[7].mxu0  ;;  %v8894_v8 = vpop.f32.mrb[25].mxu1 }
 0x3fd   : > { %v10542_v11 = vmul.f32 0.17677669, %v1065_v7  ;;  %v1233_v12 = vpop.f32.mrb[26].mxu1 }
 0x3fe   : > { %v9373_v13 = vpack.c.bf16 %v1233_v12, %v1230_v3  ;;  %v8895_v14 = vpop.f32.mrb[27].mxu1  ;;  %v1104_v15 = vsel %vm1100_vm7, %v10540_v60, -inf }
 0x3ff   : > { %1105 = vmax.xlane.f32.xlu1 %v1104_v15  ;;  %v8884_v16 = vpop.f32.mrb[20].mxu0  ;;  %v1101_v17 = vsel %vm1100_vm7, %v10542_v11, -inf }
 0x400   : > { %v10548_v18 = vmul.f32 0.17677669, %v8884_v16  ;;  %1102 = vmax.xlane.f32.xlu0 %v1101_v17  ;;  %v1075_v20 = vpop.f32.mrb[21].mxu0  ;;  %9374 = vmatprep.subr.bf16.mxu0 %v9373_v13 }
 0x401   : > { %v10550_v21 = vmul.f32 0.17677669, %v1075_v20  ;;  %9376 = vmatpush3.bf16.msra.mxu0 %v9373_v13 }
 0x402   : > { %v1110_v22 = vsel %vm1100_vm7, %v10548_v18, -inf }
 0x403   : > { %1111 = vmax.xlane.f32.xlu1 %v1110_v22  ;;  %v8887_v23 = vpop.f32.mrb[22].mxu0  ;;  %v1238_v24 = vpop.f32.mrb[28].mxu1  ;;  %v1107_v25 = vsel %vm1100_vm7, %v10550_v21, -inf }
 0x404   : > { %v10556_v26 = vmul.f32 0.17677669, %v8887_v23  ;;  %1108 = vmax.xlane.f32.xlu0 %v1107_v25  ;;  %v1085_v27 = vpop.f32.mrb[23].mxu0  ;;  %v8898_v28 = vpop.f32.mrb[29].mxu1 }
 0x405   : > { %v10558_v29 = vmul.f32 0.17677669, %v1085_v27  ;;  %v1241_v32 = vpop.f32.mrb[30].mxu1 }
 0x406   : > { %v9377_v35 = vpack.c.bf16 %v1241_v32, %v1238_v24  ;;  %v8899_v36 = vpop.f32.mrb[31].mxu1  ;;  %v1117_v38 = vsel %vm1116_vm8, %v10556_v26, -inf }
 0x407   : > { %1118 = vmax.xlane.f32.xlu1 %v1117_v38  ;;  %v1113_v40 = vsel %vm1100_vm7, %v10558_v29, -inf }
 0x408   : > { %1114 = vmax.xlane.f32.xlu0 %v1113_v40  ;;  %9378 = vmatprep.subr.bf16.mxu0 %v9377_v35 }
 0x409   : > { %9380 = vmatpush3.bf16.msra.mxu0 %v9377_v35 }
 0x40b   : > { %v1246_v41 = vpop.f32.mrb[32].mxu1 }
 0x40c   : > { %v8902_v42 = vpop.f32.mrb[33].mxu1 }
 0x40d   : > { %v1249_v45 = vpop.f32.mrb[34].mxu1 }
 0x40e   : > { %v9381_v46 = vpack.c.bf16 %v1249_v45, %v1246_v41  ;;  %v8903_v47 = vpop.f32.mrb[35].mxu1 }
 0x410   : > { %9383 = vmatprep.subr.msk.bf16.mxu0 %vm10565_vm10, %v9381_v46 }
 0x411   : > { %9386 = vmatpush3.bf16.msk.msra.mxu0 %vm10565_vm10, %v9381_v46 }
 0x412   : > { %8925 = vmatprep.subr.bf16.mxu0 %v10184_v10 }
 0x413   : > { %v1532_v48 = vpop.f32.mrb[36].mxu1 }
 0x414   : > { %v8955_v49 = vpop.f32.mrb[37].mxu1 }
 0x415   : > { %v1535_v52 = vpop.f32.mrb[38].mxu1 }
 0x416   : > { %v9387_v53 = vpack.c.bf16 %v1535_v52, %v1532_v48  ;;  %v8956_v54 = vpop.f32.mrb[39].mxu1  ;;  %v9556_v52 = vld [vmem:[%s12653_s4 + $0x20] sm:$0xff]  }
 0x418   : > { %9389 = vmatprep.subr.msk.bf16.mxu1 %vm10485_vm6, %v9387_v53 }
 0x419   : > { %9392 = vmatpush3.bf16.xpose.msk.msra.mxu1 %vm10485_vm6, %v9387_v53 }
 0x41b   : > { %v1540_v55 = vpop.f32.mrb[40].mxu1 }
 0x41c   : > { %v8959_v44 = vpop.f32.mrb[41].mxu1 }
 0x41d   : > { %v1543_v56 = vpop.f32.mrb[42].mxu1 }
 0x41e   : > { %v9393_v57 = vpack.c.bf16 %v1543_v56, %v1540_v55  ;;  %v8960_v50 = vpop.f32.mrb[43].mxu1  ;;  %v9557_v56 = vld [vmem:[%s12653_s4 + $0x28] sm:$0xff]  }
 0x420   : > { %9395 = vmatprep.subr.msk.bf16.mxu1 %vm10485_vm6, %v9393_v57 }
 0x421   : > { %9398 = vmatpush3.bf16.xpose.msk.msra.mxu1 %vm10485_vm6, %v9393_v57 }
 0x423   : > { %v1548_v61 = vpop.f32.mrb[44].mxu1 }
 0x424   : > { %v8963_v62 = vpop.f32.mrb[45].mxu1 }
 0x425   : > { %v1551_v63 = vpop.f32.mrb[46].mxu1 }
 0x426   : > { %v9399_v51 = vpack.c.bf16 %v1551_v63, %v1548_v61  ;;  %v8964_v59 = vpop.f32.mrb[47].mxu1  ;;  %v9558_v63 = vld [vmem:[%s12653_s4 + $0x30] sm:$0xff]  }
 0x427   : > { %v9559_v59 = vld [vmem:[%s12653_s4 + $0x38] sm:$0xff]  }
 0x428   : > { %9401 = vmatprep.subr.msk.bf16.mxu1 %vm10485_vm6, %v9399_v51 }
 0x429   : > { %9404 = vmatpush3.bf16.xpose.msk.msra.mxu1 %vm10485_vm6, %v9399_v51 }
 0x42a   : > { %9006 = vmatprep.subr.bf16.mxu1 %v10184_v10 }
 0x48c   : > { %v1106_v0 = vpop.xlane.xlu1 %1105 }
 0x48d   : > { %v1121_v1 = vsub.f32 %v10540_v60, %v1106_v0  ;;  %v1103_v2 = vpop.xlane.xlu0 %1102  ;;  %v9560_v0 = vld [vmem:[%s12653_s4 + $0xa0] sm:$0xff]  }
 0x48e   : > { %v1120_v4 = vsub.f32 %v10542_v11, %v1103_v2  ;;  %v9562_v2 = vld [vmem:[%s12653_s4 + $0xb0] sm:$0xff]  }
 0x48f   : > { %v1128_v6 = vmul.f32 1.442695, %v1121_v1  ;;  %v9561_v1 = vld [vmem:[%s12653_s4 + $0xa8] sm:$0xff]  }
 0x490   : > { %v1126_v3 = vmul.f32 1.442695, %v1120_v4  ;;  %v1112_v7 = vpop.xlane.xlu1 %1111  ;;  %v9563_v4 = vld [vmem:[%s12653_s4 + $0xb8] sm:$0xff]  }
 0x491   : > { %10038 = vpow2.f32 %v1128_v6  ;;  %v1123_v8 = vsub.f32 %v10548_v18, %v1112_v7  ;;  %v1109_v12 = vpop.xlane.xlu0 %1108 }
 0x492   : > { %10040 = vpow2.f32 %v1126_v3  ;;  %v1122_v13 = vsub.f32 %v10550_v21, %v1109_v12  ;;  %v9564_v3 = vld [vmem:[%s12654_s5 + $0x10] sm:$0xff]  }
 0x493   : > { %v1132_v14 = vmul.f32 1.442695, %v1123_v8 }
 0x494   : > { %v1130_v15 = vmul.f32 1.442695, %v1122_v13  ;;  %v1119_v16 = vpop.xlane.xlu1 %1118 }
 0x495   : > { %10042 = vpow2.f32 %v1132_v14  ;;  %v1125_v17 = vsub.f32 %v10556_v26, %v1119_v16  ;;  %v1115_v60 = vpop.xlane.xlu0 %1114 }
 0x496   : > { %10044 = vpow2.f32 %v1130_v15  ;;  %v1124_v11 = vsub.f32 %v10558_v29, %v1115_v60 }
 0x497   : > { %v1136_v20 = vmul.f32 1.442695, %v1125_v17 }
 0x498   : > { %v1134_v22 = vmul.f32 1.442695, %v1124_v11 }
 0x499   : > { %10046 = vpow2.f32 %v1136_v20 }
 0x49a   : > { %10048 = vpow2.f32 %v1134_v22 }
 0x49b   : > { %v10039_v23 = vpop.eup %10038 }
 0x49c   : > { %v10041_v18 = vpop.eup %10040  ;;  %v1141_v24 = vsel %vm1100_vm7, %v10039_v23, 0.0 }
 0x49d   : > { %1142 = vadd.xlane.f32.xlu1 %v1141_v24  ;;  %v1138_v21 = vsel %vm1100_vm7, %v10041_v18, 0.0 }
 0x49e   : > { %1139 = vadd.xlane.f32.xlu0 %v1138_v21 }
 0x49f   : > { %v10043_v25 = vpop.eup %10042 }
 0x4a0   : > { %v10045_v27 = vpop.eup %10044  ;;  %v1147_v26 = vsel %vm1100_vm7, %v10043_v25, 0.0 }
 0x4a1   : > { %1148 = vadd.xlane.f32.xlu1 %v1147_v26  ;;  %v1144_v28 = vsel %vm1100_vm7, %v10045_v27, 0.0 }
 0x4a2   : > { %1145 = vadd.xlane.f32.xlu0 %v1144_v28 }
 0x4a3   : > { %v10047_v29 = vpop.eup %10046 }
 0x4a4   : > { %v10049_v32 = vpop.eup %10048  ;;  %v1153_v35 = vsel %vm1116_vm8, %v10047_v29, 0.0 }
 0x4a5   : > { %1154 = vadd.xlane.f32.xlu1 %v1153_v35  ;;  %v1150_v36 = vsel %vm1100_vm7, %v10049_v32, 0.0 }
 0x4a6   : > { %1151 = vadd.xlane.f32.xlu0 %v1150_v36 }
 0x52a   : > { %v1143_v38 = vpop.xlane.xlu1 %1142 }
 0x52b   : > { %10050 = vrcp.f32 %v1143_v38  ;;  %v1140_v40 = vpop.xlane.xlu0 %1139 }
 0x52c   : > { %10052 = vrcp.f32 %v1140_v40 }
 0x52e   : > { %v1149_v41 = vpop.xlane.xlu1 %1148 }
 0x52f   : > { %10054 = vrcp.f32 %v1149_v41  ;;  %v1146_v42 = vpop.xlane.xlu0 %1145 }
 0x530   : > { %10056 = vrcp.f32 %v1146_v42 }
 0x532   : > { %v1155_v45 = vpop.xlane.xlu1 %1154 }
 0x533   : > { %10058 = vrcp.f32 %v1155_v45  ;;  %v1152_v46 = vpop.xlane.xlu0 %1151 }
 0x534   : > { %10060 = vrcp.f32 %v1152_v46 }
 0x535   : > { %v10051_v47 = vpop.eup %10050 }
 0x536   : > { %v10053_v48 = vpop.eup %10052  ;;  %v1163_v53 = vmul.f32 %v10051_v47, %v10039_v23 }
 0x537   : > { %v1162_v49 = vmul.f32 %v10053_v48, %v10041_v18 }
 0x539   : > { %v10055_v54 = vpop.eup %10054  ;;  %8916 = vmatprep.mubr.msk.f32.mxu0 %vm1100_vm7, %v1162_v49 }
 0x53a   : > { %v10057_v55 = vpop.eup %10056  ;;  %8917 = vmatmul.mubr.msk.f32.vlgmr.msra.gmra.mrb[24].mxu0 %vm1100_vm7, %v1163_v53  ;;  %v1165_v57 = vmul.f32 %v10055_v54, %v10043_v25 }
 0x53b   : > { %8926 = vmatpush3.bf16.msra.mxu0 %v9556_v52  ;;  %v1164_v44 = vmul.f32 %v10057_v55, %v10045_v27 }
 0x53c   : > { %8927 = vmatprep.subr.bf16.mxu0 %v10184_v10 }
 0x53d   : > { %v10059_v50 = vpop.eup %10058  ;;  %8919 = vmatprep.mubr.msk.f32.mxu0 %vm1100_vm7, %v1164_v44 }
 0x53e   : > { %v10061_v61 = vpop.eup %10060  ;;  %8920 = vmatmul.mubr.msk.f32.gmra.mrb[26].mxu0 %vm1100_vm7, %v1165_v57  ;;  %v1167_v51 = vmul.f32 %v10059_v50, %v10047_v29 }
 0x53f   : > { %8928 = vmatpush3.bf16.msra.mxu0 %v9557_v56  ;;  %v1166_v62 = vmul.f32 %v10061_v61, %v10049_v32 }
 0x540   : > { %8929 = vmatprep.subr.bf16.mxu0 %v10184_v10 }
 0x541   : > { %8922 = vmatprep.mubr.msk.f32.mxu0 %vm1100_vm7, %v1166_v62 }
 0x542   : > { %8923 = vmatmul.mubr.msk.f32.gmra.mrb[28].mxu0 %vm1100_vm7, %v1167_v51 }
 0x543   : > { %8930 = vmatpush3.bf16.msra.mxu0 %v9558_v63  ;;  %8933 = vmatprep.mubr.msk.bf16.mxu0 %vm10185_vm4, %v10184_v10 }
 0x544   : > { %8931 = vmatprep.subr.bf16.mxu0 %v10184_v10 }
 0x547   : > { %8932 = vmatpush3.bf16.msra.mxu0 %v9559_v59 }
 0x548   : > { %8965 = vmatprep.subr.bf16.mxu0 %v10184_v10 }
 0x54a   : > { %8934 = vmatmul.mubr.msk.bf16.vlgmr.msra.gmra.mrb[32].mxu0 %vm580_vm2, %v10416_v58 }
 0x54b   : > { %8937 = vmatprep.mubr.msk.bf16.mxu0 %vm10185_vm4, %v10184_v10  ;;  %8966 = vmatpush3.bf16.msra.mxu0 %v9560_v0 }
 0x54c   : > { %8967 = vmatprep.subr.bf16.mxu0 %v10184_v10 }
 0x54f   : > { %8968 = vmatpush3.bf16.msra.mxu0 %v9561_v1 }
 0x550   : > { %8969 = vmatprep.subr.bf16.mxu0 %v10184_v10 }
 0x552   : > { %8938 = vmatmul.mubr.msk.bf16.gmra.mrb[36].mxu0 %vm580_vm2, %v10435_v5 }
 0x553   : > { %8941 = vmatprep.mubr.msk.bf16.mxu0 %vm10185_vm4, %v10184_v10  ;;  %8970 = vmatpush3.bf16.msra.mxu0 %v9562_v2 }
 0x554   : > { %8971 = vmatprep.subr.bf16.mxu0 %v10184_v10 }
 0x557   : > { %8972 = vmatpush3.bf16.msra.mxu0 %v9563_v4 }
 0x55a   : > { %8942 = vmatmul.mubr.msk.bf16.gmra.mrb[40].mxu0 %vm580_vm2, %v10453_v9 }
 0x55b   : > { %8973 = vmatprep.mubr.msk.bf16.mxu0 %vm10185_vm4, %v10184_v10 }
 0x562   : > { %8974 = vmatmul.mubr.msk.bf16.vlgmr.msra.gmra.mrb[44].mxu0 %vm580_vm2, %v10416_v58 }
 0x563   : > { %8977 = vmatprep.mubr.msk.bf16.mxu0 %vm10185_vm4, %v10184_v10 }
 0x56a   : > { %8978 = vmatmul.mubr.msk.bf16.gmra.mrb[48].mxu0 %vm580_vm2, %v10435_v5  ;;  %v9565_v5 = vld [vmem:[%s12654_s5 + $0x18] sm:$0xff]  }
 0x56b   : > { %8981 = vmatprep.mubr.msk.bf16.mxu0 %vm10185_vm4, %v10184_v10 }
 0x572   : > { %8982 = vmatmul.mubr.msk.bf16.gmra.mrb[52].mxu0 %vm580_vm2, %v10453_v9 }
 0x61d   : > { %v1442_v6 = vpop.f32.mrb[32].mxu0 }
 0x61e   : > { %v8935_v7 = vpop.f32.mrb[33].mxu0  ;;  %8997 = vmatprep.mubr.msk.f32.mxu1 %vm962_vm5, %v1442_v6 }
 0x61f   : > { %v1445_v58 = vpop.f32.mrb[34].mxu0 }
 0x620   : > { %v8936_v8 = vpop.f32.mrb[35].mxu0  ;;  %8998 = vmatmul.mubr.msk.f32.vlgmr.msra.gmra.mrb[48].mxu1 %vm962_vm5, %v1445_v58 }
 0x621   : > { %9007 = vmatpush3.bf16.msra.mxu1 %v9564_v3 }
 0x622   : > { %9008 = vmatprep.subr.bf16.mxu1 %v10184_v10 }
 0x625   : > { %v1450_v9 = vpop.f32.mrb[36].mxu0  ;;  %9009 = vmatpush3.bf16.msra.mxu1 %v9565_v5 }
 0x626   : > { %v8939_v12 = vpop.f32.mrb[37].mxu0  ;;  %9000 = vmatprep.mubr.msk.f32.mxu1 %vm962_vm5, %v1450_v9  ;;  %9063 = vmatprep.subr.bf16.mxu1 %v10184_v10 }
 0x627   : > { %v1453_v13 = vpop.f32.mrb[38].mxu0 }
 0x628   : > { %v8940_v14 = vpop.f32.mrb[39].mxu0  ;;  %9001 = vmatmul.mubr.msk.f32.gmra.mrb[50].mxu1 %vm962_vm5, %v1453_v13 }
 0x62d   : > { %v1458_v15 = vpop.f32.mrb[40].mxu0 }
 0x62e   : > { %v8943_v16 = vpop.f32.mrb[41].mxu0  ;;  %9003 = vmatprep.mubr.msk.f32.mxu1 %vm962_vm5, %v1458_v15 }
 0x62f   : > { %v1461_v17 = vpop.f32.mrb[42].mxu0 }
 0x630   : > { %v8944_v60 = vpop.f32.mrb[43].mxu0  ;;  %9004 = vmatmul.mubr.msk.f32.gmra.mrb[52].mxu1 %vm962_vm5, %v1461_v17 }
 0x631   : > { %9010 = vmatprep.mubr.msk.bf16.mxu1 %vm10185_vm4, %v10184_v10 }
 0x635   : > { %v1622_v11 = vpop.f32.mrb[44].mxu0 }
 0x636   : > { %v8975_v20 = vpop.f32.mrb[45].mxu0 }
 0x637   : > { %v1625_v22 = vpop.f32.mrb[46].mxu0 }
 0x638   : > { %v1848_v23 = vpack.c.bf16 %v1625_v22, %v1622_v11  ;;  %v8976_v18 = vpop.f32.mrb[47].mxu0 }
 0x63a   : > { %9011 = vmatmul.mubr.msk.bf16.vlgmr.msra.gmra.mrb[56].mxu1 %vm962_vm5, %v1848_v23 }
 0x63b   : > { %9014 = vmatprep.mubr.msk.bf16.mxu1 %vm10185_vm4, %v10184_v10 }
 0x63d   : > { %v1630_v24 = vpop.f32.mrb[48].mxu0 }
 0x63e   : > { %v8979_v21 = vpop.f32.mrb[49].mxu0 }
 0x63f   : > { %v1633_v25 = vpop.f32.mrb[50].mxu0 }
 0x640   : > { %v1849_v27 = vpack.c.bf16 %v1633_v25, %v1630_v24  ;;  %v8980_v26 = vpop.f32.mrb[51].mxu0 }
 0x642   : > { %9015 = vmatmul.mubr.msk.bf16.gmra.mrb[60].mxu1 %vm962_vm5, %v1849_v27 }
 0x643   : > { %9018 = vmatprep.mubr.msk.bf16.mxu1 %vm10185_vm4, %v10184_v10 }
 0x645   : > { %v1638_v28 = vpop.f32.mrb[52].mxu0 }
 0x646   : > { %v8983_v29 = vpop.f32.mrb[53].mxu0 }
 0x647   : > { %v1641_v32 = vpop.f32.mrb[54].mxu0 }
 0x648   : > { %v1850_v35 = vpack.c.bf16 %v1641_v32, %v1638_v28  ;;  %v8984_v36 = vpop.f32.mrb[55].mxu0 }
 0x64a   : > { %9019 = vmatmul.mubr.msk.bf16.gmra.mrb[64].mxu1 %vm962_vm5, %v1850_v35 }
 0x64b   : > { %9071 = vmatprep.mubr.msk.bf16.mxu1 %vm10185_vm4, %v10184_v10 }
 0x6f3   : > { %v8999_v38 = vpop.f32.mrb[48].mxu1 }
 0x6f4   : > { %v1777_v40 = vmul.f32 0.17677669, %v8999_v38  ;;  %v1747_v41 = vpop.f32.mrb[49].mxu1 }
 0x6f5   : > { %v1776_v42 = vmul.f32 0.17677669, %v1747_v41 }
 0x6f6   : > { %v1785_v45 = vsel %vm1100_vm7, %v1777_v40, -inf }
 0x6f7   : > { %1786 = vmax.xlane.f32.xlu1 %v1785_v45  ;;  %v1782_v46 = vsel %vm1100_vm7, %v1776_v42, -inf }
 0x6f8   : > { %1783 = vmax.xlane.f32.xlu0 %v1782_v46 }
 0x6fb   : > { %v9002_v47 = vpop.f32.mrb[50].mxu1 }
 0x6fc   : > { %v1779_v48 = vmul.f32 0.17677669, %v9002_v47  ;;  %v1757_v49 = vpop.f32.mrb[51].mxu1 }
 0x6fd   : > { %v1778_v52 = vmul.f32 0.17677669, %v1757_v49 }
 0x6fe   : > { %v1791_v53 = vsel %vm1100_vm7, %v1779_v48, -inf }
 0x6ff   : > { %1792 = vmax.xlane.f32.xlu1 %v1791_v53  ;;  %v1788_v54 = vsel %vm1100_vm7, %v1778_v52, -inf }
 0x700   : > { %1789 = vmax.xlane.f32.xlu0 %v1788_v54 }
 0x703   : > { %v9005_v55 = vpop.f32.mrb[52].mxu1 }
 0x704   : > { %v1781_v44 = vmul.f32 0.17677669, %v9005_v55  ;;  %v1767_v56 = vpop.f32.mrb[53].mxu1 }
 0x705   : > { %v1780_v57 = vmul.f32 0.17677669, %v1767_v56 }
 0x706   : > { %v1797_v50 = vsel %vm1116_vm8, %v1781_v44, -inf }
 0x707   : > { %1798 = vmax.xlane.f32.xlu1 %v1797_v50  ;;  %v1794_v61 = vsel %vm1100_vm7, %v1780_v57, -inf }
 0x708   : > { %1795 = vmax.xlane.f32.xlu0 %v1794_v61 }
 0x70d   : > { %v1911_v62 = vpop.f32.mrb[56].mxu1 }
 0x70e   : > { %v9012_v63 = vpop.f32.mrb[57].mxu1 }
 0x70f   : > { %v1914_v51 = vpop.f32.mrb[58].mxu1 }
 0x710   : > { %v9405_v59 = vpack.c.bf16 %v1914_v51, %v1911_v62  ;;  %v9013_v0 = vpop.f32.mrb[59].mxu1 }
 0x712   : > { %9406 = vmatprep.subr.bf16.mxu0 %v9405_v59 }
 0x713   : > { %9408 = vmatpush3.bf16.msra.mxu0 %v9405_v59 }
 0x715   : > { %v1919_v1 = vpop.f32.mrb[60].mxu1 }
 0x716   : > { %v9016_v2 = vpop.f32.mrb[61].mxu1 }
 0x717   : > { %v1922_v4 = vpop.f32.mrb[62].mxu1 }
 0x718   : > { %v9409_v6 = vpack.c.bf16 %v1922_v4, %v1919_v1  ;;  %v9017_v3 = vpop.f32.mrb[63].mxu1 }
 0x719   : > { %v7903_v3 = vld [vmem:[%s12652_s3 + $0x2] ss:$0 sm:$0xff] }
 0x71a   : > { %9410 = vmatprep.subr.bf16.mxu0 %v9409_v6 }
 0x71b   : > { %9412 = vmatpush3.bf16.msra.mxu0 %v9409_v6 }
 0x71d   : > { %v1927_v7 = vpop.f32.mrb[64].mxu1 }
 0x71e   : > { %v9020_v58 = vpop.f32.mrb[65].mxu1 }
 0x71f   : > { %v1930_v8 = vpop.f32.mrb[66].mxu1 }
 0x720   : > { %v9413_v5 = vpack.c.bf16 %v1930_v8, %v1927_v7  ;;  %v9021_v9 = vpop.f32.mrb[67].mxu1 }
 0x722   : > { %9415 = vmatprep.subr.msk.bf16.mxu0 %vm10565_vm10, %v9413_v5 }
 0x723   : > { %9418 = vmatpush3.bf16.msk.msra.mxu0 %vm10565_vm10, %v9413_v5 }
 0x724   : > { %9043 = vmatprep.subr.bf16.mxu0 %v10184_v10 }
 0x784   : > { %v1787_v12 = vpop.xlane.xlu1 %1786 }
 0x785   : > { %v1801_v13 = vsub.f32 %v1777_v40, %v1787_v12  ;;  %v1784_v14 = vpop.xlane.xlu0 %1783 }
 0x786   : > { %v1800_v15 = vsub.f32 %v1776_v42, %v1784_v14 }
 0x787   : > { %v1808_v16 = vmul.f32 1.442695, %v1801_v13 }
 0x788   : > { %v1806_v17 = vmul.f32 1.442695, %v1800_v15 }
 0x789   : > { %10062 = vpow2.f32 %v1808_v16 }
 0x78a   : > { %10064 = vpow2.f32 %v1806_v17 }
 0x78c   : > { %v1793_v60 = vpop.xlane.xlu1 %1792 }
 0x78d   : > { %v1803_v11 = vsub.f32 %v1779_v48, %v1793_v60  ;;  %v1790_v20 = vpop.xlane.xlu0 %1789 }
 0x78e   : > { %v1802_v22 = vsub.f32 %v1778_v52, %v1790_v20 }
 0x78f   : > { %v1812_v23 = vmul.f32 1.442695, %v1803_v11 }
 0x790   : > { %v1810_v18 = vmul.f32 1.442695, %v1802_v22 }
 0x791   : > { %10066 = vpow2.f32 %v1812_v23 }
 0x792   : > { %10068 = vpow2.f32 %v1810_v18 }
 0x793   : > { %v10063_v24 = vpop.eup %10062 }
 0x794   : > { %v10065_v21 = vpop.eup %10064  ;;  %v1799_v25 = vpop.xlane.xlu1 %1798  ;;  %v1821_v27 = vsel %vm1100_vm7, %v10063_v24, 0.0 }
 0x795   : > { %v1805_v26 = vsub.f32 %v1781_v44, %v1799_v25  ;;  %1822 = vadd.xlane.f32.xlu1 %v1821_v27  ;;  %v1796_v28 = vpop.xlane.xlu0 %1795  ;;  %v1818_v29 = vsel %vm1100_vm7, %v10065_v21, 0.0 }
 0x796   : > { %v1804_v32 = vsub.f32 %v1780_v57, %v1796_v28  ;;  %1819 = vadd.xlane.f32.xlu0 %v1818_v29 }
 0x797   : > { %v1816_v35 = vmul.f32 1.442695, %v1805_v26 }
 0x798   : > { %v1814_v36 = vmul.f32 1.442695, %v1804_v32 }
 0x799   : > { %10070 = vpow2.f32 %v1816_v35 }
 0x79a   : > { %10072 = vpow2.f32 %v1814_v36 }
 0x79b   : > { %v10067_v38 = vpop.eup %10066 }
 0x79c   : > { %v10069_v40 = vpop.eup %10068  ;;  %v1827_v41 = vsel %vm1100_vm7, %v10067_v38, 0.0 }
 0x79d   : > { %1828 = vadd.xlane.f32.xlu1 %v1827_v41  ;;  %v1824_v42 = vsel %vm1100_vm7, %v10069_v40, 0.0 }
 0x79e   : > { %1825 = vadd.xlane.f32.xlu0 %v1824_v42 }
 0x7a3   : > { %v10071_v45 = vpop.eup %10070 }
 0x7a4   : > { %v10073_v46 = vpop.eup %10072  ;;  %v1833_v47 = vsel %vm1116_vm8, %v10071_v45, 0.0 }
 0x7a5   : > { %1834 = vadd.xlane.f32.xlu1 %v1833_v47  ;;  %v1830_v48 = vsel %vm1100_vm7, %v10073_v46, 0.0 }
 0x7a6   : > { %1831 = vadd.xlane.f32.xlu0 %v1830_v48 }
 0x822   : > { %v1823_v49 = vpop.xlane.xlu1 %1822 }
 0x823   : > { %10074 = vrcp.f32 %v1823_v49  ;;  %v1820_v52 = vpop.xlane.xlu0 %1819 }
 0x824   : > { %10076 = vrcp.f32 %v1820_v52 }
 0x82a   : > { %v1829_v53 = vpop.xlane.xlu1 %1828 }
 0x82b   : > { %10078 = vrcp.f32 %v1829_v53  ;;  %v1826_v54 = vpop.xlane.xlu0 %1825 }
 0x82c   : > { %10080 = vrcp.f32 %v1826_v54 }
 0x82d   : > { %v10075_v55 = vpop.eup %10074 }
 0x82e   : > { %v10077_v44 = vpop.eup %10076  ;;  %v1843_v57 = vmul.f32 %v10075_v55, %v10063_v24 }
 0x82f   : > { %v1842_v56 = vmul.f32 %v10077_v44, %v10065_v21 }
 0x831   : > { %9034 = vmatprep.mubr.msk.f32.mxu0 %vm1100_vm7, %v1842_v56 }
 0x832   : > { %v1835_v50 = vpop.xlane.xlu1 %1834  ;;  %9035 = vmatmul.mubr.msk.f32.vlgmr.msra.gmra.mrb[24].mxu0 %vm1100_vm7, %v1843_v57 }
 0x833   : > { %10082 = vrcp.f32 %v1835_v50  ;;  %v1832_v61 = vpop.xlane.xlu0 %1831 }
 0x834   : > { %10084 = vrcp.f32 %v1832_v61 }
 0x835   : > { %v10079_v62 = vpop.eup %10078 }
 0x836   : > { %v10081_v63 = vpop.eup %10080  ;;  %v1845_v59 = vmul.f32 %v10079_v62, %v10067_v38 }
 0x837   : > { %v1844_v51 = vmul.f32 %v10081_v63, %v10069_v40 }
 0x839   : > { %9037 = vmatprep.mubr.msk.f32.mxu0 %vm1100_vm7, %v1844_v51  ;;  %v9566_v51 = vld [vmem:[%s12655_s6] sm:$0xff]  }
 0x83a   : > { %9038 = vmatmul.mubr.msk.f32.gmra.mrb[26].mxu0 %vm1100_vm7, %v1845_v59  ;;  %v9567_v59 = vld [vmem:[%s12655_s6 + $0x8] sm:$0xff]  }
 0x83b   : > { %9044 = vmatpush3.bf16.msra.mxu0 %v9566_v51  ;;  %v7906_v51 = vld [vmem:[%s12652_s3 + $0x5] ss:$0 sm:$0xff] }
 0x83c   : > { %9045 = vmatprep.subr.bf16.mxu0 %v10184_v10 }
 0x83d   : > { %v10083_v0 = vpop.eup %10082 }
 0x83e   : > { %v10085_v1 = vpop.eup %10084  ;;  %v1847_v4 = vmul.f32 %v10083_v0, %v10071_v45  ;;  %v9568_v0 = vld [vmem:[%s12655_s6 + $0x10] sm:$0xff]  }
 0x83f   : > { %v1846_v2 = vmul.f32 %v10085_v1, %v10073_v46  ;;  %9046 = vmatpush3.bf16.msra.mxu0 %v9567_v59  ;;  %v9569_v1 = vld [vmem:[%s12655_s6 + $0x18] sm:$0xff]  }
 0x840   : > { %9047 = vmatprep.subr.bf16.mxu0 %v10184_v10 }
 0x841   : > { %9040 = vmatprep.mubr.msk.f32.mxu0 %vm1100_vm7, %v1846_v2 }
 0x842   : > { %9041 = vmatmul.mubr.msk.f32.gmra.mrb[28].mxu0 %vm1100_vm7, %v1847_v4 }
 0x843   : > { %9051 = vmatprep.mubr.msk.bf16.mxu0 %vm10185_vm4, %v10184_v10  ;;  %9048 = vmatpush3.bf16.msra.mxu0 %v9568_v0 }
 0x844   : > { %9049 = vmatprep.subr.bf16.mxu0 %v10184_v10 }
 0x847   : > { %9050 = vmatpush3.bf16.msra.mxu0 %v9569_v1 }
 0x848   : > { %9083 = vmatprep.subr.bf16.mxu0 %v10184_v10 }
 0x905   : > { %v9036_v6 = vpop.f32.mrb[24].mxu0 }
 0x906   : > { %v9483_v7 = vadd.f32 %v9036_v6, %v10309_v30  ;;  %v2021_v58 = vpop.f32.mrb[25].mxu0 }
 0x907   : > { %v9484_v8 = vadd.f32 %v2021_v58, %v10311_v31 }
 0x908   : > { %v10715_v5 = vadd.f32 %v9483_v7, %v7903_v3 }
 0x909   : > { %v10717_v9 = vadd.f32 %v9484_v8, %v7903_v3 }
 0x90a   : > { %v2072_v12 = vsel %vm580_vm2, %v10715_v5, 0.0 }
 0x90b   : > { %2073 = vadd.xlane.f32.xlu1 %v2072_v12  ;;  %v2069_v13 = vsel %vm580_vm2, %v10717_v9, 0.0 }
 0x90c   : > { %2070 = vadd.xlane.f32.xlu0 %v2069_v13 }
 0x90d   : > { %v9039_v14 = vpop.f32.mrb[26].mxu0 }
 0x90e   : > { %v9485_v15 = vadd.f32 %v9039_v14, %v10315_v33  ;;  %v2031_v16 = vpop.f32.mrb[27].mxu0 }
 0x90f   : > { %v9486_v30 = vadd.f32 %v2031_v16, %v10317_v34 }
 0x910   : > { %v10725_v17 = vadd.f32 %v9485_v15, %v7903_v3 }
 0x911   : > { %v10727_v31 = vadd.f32 %v9486_v30, %v7903_v3 }
 0x912   : > { %v2078_v60 = vsel %vm580_vm2, %v10725_v17, 0.0 }
 0x913   : > { %2079 = vadd.xlane.f32.xlu1 %v2078_v60  ;;  %v2075_v11 = vsel %vm580_vm2, %v10727_v31, 0.0  ;;  %v7904_v60 = vld [vmem:[%s12652_s3 + $0x3] ss:$0 sm:$0xff] }
 0x914   : > { %2076 = vadd.xlane.f32.xlu0 %v2075_v11 }
 0x915   : > { %v9042_v20 = vpop.f32.mrb[28].mxu0 }
 0x916   : > { %v9487_v22 = vadd.f32 %v9042_v20, %v10323_v37  ;;  %v2041_v23 = vpop.f32.mrb[29].mxu0 }
 0x917   : > { %v9488_v33 = vadd.f32 %v2041_v23, %v10327_v39  ;;  %v7905_v23 = vld [vmem:[%s12652_s3 + $0x4] ss:$0 sm:$0xff] }
 0x918   : > { %v10735_v18 = vadd.f32 %v9487_v22, %v7903_v3 }
 0x919   : > { %v10737_v34 = vadd.f32 %v9488_v33, %v7903_v3 }
 0x91a   : > { %v2084_v24 = vsel %vm596_vm3, %v10735_v18, 0.0 }
 0x91b   : > { %2085 = vadd.xlane.f32.xlu1 %v2084_v24  ;;  %v2081_v21 = vsel %vm580_vm2, %v10737_v34, 0.0 }
 0x91c   : > { %2082 = vadd.xlane.f32.xlu0 %v2081_v21 }
 0x998   : > { %v2074_v25 = vpop.xlane.xlu1 %2073 }
 0x999   : > { %v2088_v27 = vmul.f32 0.015625, %v2074_v25  ;;  %v2071_v26 = vpop.xlane.xlu0 %2070 }
 0x99a   : > { %v2087_v28 = vmul.f32 0.015625, %v2071_v26 }
 0x99b   : > { %v10744_v37 = vsub.f32 %v10715_v5, %v2088_v27 }
 0x99c   : > { %v10747_v39 = vsub.f32 %v10717_v9, %v2087_v28 }
 0x99d   : > { %v2100_v29 = vmul.f32 %v10744_v37, %v10744_v37 }
 0x99e   : > { %v2099_v32 = vmul.f32 %v10747_v39, %v10747_v39 }
 0x99f   : > { %v2108_v35 = vsel %vm580_vm2, %v2100_v29, 0.0 }
 0x9a0   : > { %v2080_v36 = vpop.xlane.xlu1 %2079  ;;  %2109 = vadd.xlane.f32.xlu1 %v2108_v35  ;;  %v2105_v38 = vsel %vm580_vm2, %v2099_v32, 0.0 }
 0x9a1   : > { %v2090_v40 = vmul.f32 0.015625, %v2080_v36  ;;  %2106 = vadd.xlane.f32.xlu0 %v2105_v38  ;;  %v2077_v41 = vpop.xlane.xlu0 %2076 }
 0x9a2   : > { %v2089_v42 = vmul.f32 0.015625, %v2077_v41 }
 0x9a3   : > { %v10756_v45 = vsub.f32 %v10725_v17, %v2090_v40 }
 0x9a4   : > { %v10759_v46 = vsub.f32 %v10727_v31, %v2089_v42 }
 0x9a5   : > { %v2102_v47 = vmul.f32 %v10756_v45, %v10756_v45 }
 0x9a6   : > { %v2101_v48 = vmul.f32 %v10759_v46, %v10759_v46 }
 0x9a7   : > { %v2114_v49 = vsel %vm580_vm2, %v2102_v47, 0.0 }
 0x9a8   : > { %2115 = vadd.xlane.f32.xlu1 %v2114_v49  ;;  %v2086_v52 = vpop.xlane.xlu1 %2085  ;;  %v2111_v53 = vsel %vm580_vm2, %v2101_v48, 0.0 }
 0x9a9   : > { %v2092_v54 = vmul.f32 0.015625, %v2086_v52  ;;  %2112 = vadd.xlane.f32.xlu0 %v2111_v53  ;;  %v2083_v55 = vpop.xlane.xlu0 %2082 }
 0x9aa   : > { %v2091_v44 = vmul.f32 0.015625, %v2083_v55 }
 0x9ab   : > { %v10768_v56 = vsub.f32 %v10735_v18, %v2092_v54 }
 0x9ac   : > { %v10771_v57 = vsub.f32 %v10737_v34, %v2091_v44 }
 0x9ad   : > { %v2104_v50 = vmul.f32 %v10768_v56, %v10768_v56 }
 0x9ae   : > { %v2103_v61 = vmul.f32 %v10771_v57, %v10771_v57 }
 0x9af   : > { %v2120_v62 = vsel %vm596_vm3, %v2104_v50, 0.0 }
 0x9b0   : > { %2121 = vadd.xlane.f32.xlu1 %v2120_v62  ;;  %v2117_v63 = vsel %vm580_vm2, %v2103_v61, 0.0  ;;  %v9572_v62 = vld [vmem:[%s12655_s6 + $0x30] sm:$0xff]  }
 0x9b1   : > { %2118 = vadd.xlane.f32.xlu0 %v2117_v63  ;;  %v9573_v63 = vld [vmem:[%s12655_s6 + $0x38] sm:$0xff]  }
 0xa2d   : > { %v2110_v2 = vpop.xlane.xlu1 %2109 }
 0xa2e   : > { %v2124_v4 = vmul.f32 0.015625, %v2110_v2  ;;  %v2107_v6 = vpop.xlane.xlu0 %2106 }
 0xa2f   : > { %v2123_v3 = vmul.f32 0.015625, %v2107_v6 }
 0xa30   : > { %v2130_v7 = vadd.f32 1e-05, %v2124_v4 }
 0xa31   : > { %v2129_v58 = vadd.f32 1e-05, %v2123_v3 }
 0xa32   : > { %10086 = vrsqrt.f32 %v2130_v7 }
 0xa33   : > { %10088 = vrsqrt.f32 %v2129_v58 }
 0xa35   : > { %v2116_v8 = vpop.xlane.xlu1 %2115 }
 0xa36   : > { %v2126_v12 = vmul.f32 0.015625, %v2116_v8  ;;  %v2113_v13 = vpop.xlane.xlu0 %2112 }
 0xa37   : > { %v2125_v14 = vmul.f32 0.015625, %v2113_v13 }
 0xa38   : > { %v2132_v15 = vadd.f32 1e-05, %v2126_v12 }
 0xa39   : > { %v2131_v16 = vadd.f32 1e-05, %v2125_v14 }
 0xa3a   : > { %10090 = vrsqrt.f32 %v2132_v15 }
 0xa3b   : > { %10092 = vrsqrt.f32 %v2131_v16 }
 0xa3c   : > { %v10087_v30 = vpop.eup %10086 }
 0xa3d   : > { %v10089_v11 = vpop.eup %10088  ;;  %v2142_v20 = vmul.f32 %v10087_v30, %v10744_v37  ;;  %v2122_v22 = vpop.xlane.xlu1 %2121 }
 0xa3e   : > { %v2141_v33 = vmul.f32 %v10089_v11, %v10747_v39  ;;  %v2128_v24 = vmul.f32 0.015625, %v2122_v22  ;;  %v2119_v21 = vpop.xlane.xlu0 %2118 }
 0xa3f   : > { %v2152_v25 = vmul.f32 %v7904_v60, %v2142_v20  ;;  %v2127_v27 = vmul.f32 0.015625, %v2119_v21 }
 0xa40   : > { %v2151_v26 = vmul.f32 %v7904_v60, %v2141_v33  ;;  %v2134_v28 = vadd.f32 1e-05, %v2128_v24 }
 0xa41   : > { %v2162_v29 = vadd.f32 %v7905_v23, %v2152_v25  ;;  %v2133_v32 = vadd.f32 1e-05, %v2127_v27 }
 0xa42   : > { %v2161_v35 = vadd.f32 %v7905_v23, %v2151_v26  ;;  %10094 = vrsqrt.f32 %v2134_v28 }
 0xa43   : > { %10096 = vrsqrt.f32 %v2133_v32 }
 0xa44   : > { %v10091_v36 = vpop.eup %10090  ;;  %v2167_v37 = vpack.c.bf16 %v2162_v29, %v2161_v35 }
 0xa45   : > { %v10093_v38 = vpop.eup %10092  ;;  %v2144_v40 = vmul.f32 %v10091_v36, %v10756_v45 }
 0xa46   : > { %v2143_v41 = vmul.f32 %v10093_v38, %v10759_v46  ;;  %9052 = vmatmul.mubr.msk.bf16.vlgmr.msra.gmra.mrb[56].mxu0 %vm580_vm2, %v2167_v37 }
 0xa47   : > { %9055 = vmatprep.mubr.msk.bf16.mxu0 %vm10185_vm4, %v10184_v10  ;;  %v2154_v39 = vmul.f32 %v7904_v60, %v2144_v40 }
 0xa48   : > { %v2153_v42 = vmul.f32 %v7904_v60, %v2143_v41 }
 0xa49   : > { %v2164_v47 = vadd.f32 %v7905_v23, %v2154_v39 }
 0xa4a   : > { %v2163_v48 = vadd.f32 %v7905_v23, %v2153_v42 }
 0xa4c   : > { %v10095_v49 = vpop.eup %10094  ;;  %v2168_v52 = vpack.c.bf16 %v2164_v47, %v2163_v48 }
 0xa4d   : > { %v10097_v53 = vpop.eup %10096  ;;  %v2146_v54 = vmul.f32 %v10095_v49, %v10768_v56  ;;  %v9570_v56 = vld [vmem:[%s12655_s6 + $0x20] sm:$0xff]  }
 0xa4e   : > { %v2145_v55 = vmul.f32 %v10097_v53, %v10771_v57  ;;  %9056 = vmatmul.mubr.msk.bf16.gmra.mrb[60].mxu0 %vm580_vm2, %v2168_v52  ;;  %9064 = vmatpush3.bf16.msra.mxu1 %v9570_v56  ;;  %v9571_v57 = vld [vmem:[%s12655_s6 + $0x28] sm:$0xff]  }
 0xa4f   : > { %9059 = vmatprep.mubr.msk.bf16.mxu0 %vm10185_vm4, %v10184_v10  ;;  %v2156_v45 = vmul.f32 %v7904_v60, %v2146_v54  ;;  %9065 = vmatprep.subr.bf16.mxu1 %v10184_v10 }
 0xa50   : > { %v2155_v46 = vmul.f32 %v7904_v60, %v2145_v55 }
 0xa51   : > { %v2166_v44 = vadd.f32 %v7905_v23, %v2156_v45 }
 0xa52   : > { %v2165_v50 = vadd.f32 %v7905_v23, %v2155_v46  ;;  %9066 = vmatpush3.bf16.msra.mxu1 %v9571_v57 }
 0xa53   : > { %9067 = vmatprep.subr.bf16.mxu1 %v10184_v10 }
 0xa54   : > { %v2169_v61 = vpack.c.bf16 %v2166_v44, %v2165_v50 }
 0xa56   : > { %9060 = vmatmul.mubr.msk.bf16.gmra.mrb[64].mxu0 %vm580_vm2, %v2169_v61  ;;  %9068 = vmatpush3.bf16.msra.mxu1 %v9572_v62 }
 0xa57   : > { %9091 = vmatprep.mubr.msk.bf16.mxu0 %vm10185_vm4, %v10184_v10  ;;  %9069 = vmatprep.subr.bf16.mxu1 %v10184_v10 }
 0xa5a   : > { %9070 = vmatpush3.bf16.msra.mxu1 %v9573_v63 }
 0xa5b   : > { %9103 = vmatprep.subr.bf16.mxu1 %v10184_v10 }
 0xb19   : > { %v2250_v59 = vpop.f32.mrb[56].mxu0 }
 0xb1a   : > { %v2251_v0 = vadd.f32 %v7906_v51, %v2250_v59  ;;  %v9053_v1 = vpop.f32.mrb[57].mxu0 }
 0xb1b   : > { %v2253_v2 = vpop.f32.mrb[58].mxu0 }
 0xb1c   : > { %v2279_v4 = vmul.f32 0.044715, %v2251_v0  ;;  %v2254_v6 = vadd.f32 %v7906_v51, %v2253_v2  ;;  %v9054_v3 = vpop.f32.mrb[59].mxu0  ;;  %v2273_v50 = vmul.f32 0.5, %v2251_v0 }
 0xb1e   : > { %v2285_v7 = vmul.f32 %v2279_v4, %v2251_v0  ;;  %v2280_v58 = vmul.f32 0.044715, %v2254_v6  ;;  %v2274_v61 = vmul.f32 0.5, %v2254_v6 }
 0xb20   : > { %v2291_v8 = vmul.f32 %v2285_v7, %v2251_v0  ;;  %v2286_v12 = vmul.f32 %v2280_v58, %v2254_v6 }
 0xb21   : > { %v2258_v13 = vpop.f32.mrb[60].mxu0 }
 0xb22   : > { %v2297_v14 = vadd.f32 %v2291_v8, %v2251_v0  ;;  %v2292_v15 = vmul.f32 %v2286_v12, %v2254_v6  ;;  %v2259_v16 = vadd.f32 %v7906_v51, %v2258_v13  ;;  %v9057_v30 = vpop.f32.mrb[61].mxu0 }
 0xb23   : > { %v2261_v60 = vpop.f32.mrb[62].mxu0 }
 0xb24   : > { %v2303_v11 = vmul.f32 0.7978846, %v2297_v14  ;;  %v2298_v20 = vadd.f32 %v2292_v15, %v2254_v6  ;;  %v2281_v22 = vmul.f32 0.044715, %v2259_v16  ;;  %v2262_v23 = vadd.f32 %v7906_v51, %v2261_v60  ;;  %v9058_v33 = vpop.f32.mrb[63].mxu0 }
 0xb25   : > { %v2275_v7 = vmul.f32 0.5, %v2259_v16 }
 0xb26   : > { %10098 = vtanh.f32 %v2303_v11  ;;  %v2304_v24 = vmul.f32 0.7978846, %v2298_v20  ;;  %v2287_v21 = vmul.f32 %v2281_v22, %v2259_v16  ;;  %v2282_v25 = vmul.f32 0.044715, %v2262_v23 }
 0xb27   : > { %v2276_v0 = vmul.f32 0.5, %v2262_v23 }
 0xb28   : > { %10100 = vtanh.f32 %v2304_v24  ;;  %v2293_v27 = vmul.f32 %v2287_v21, %v2259_v16  ;;  %v2288_v26 = vmul.f32 %v2282_v25, %v2262_v23 }
 0xb29   : > { %v2266_v28 = vpop.f32.mrb[64].mxu0 }
 0xb2a   : > { %v2299_v29 = vadd.f32 %v2293_v27, %v2259_v16  ;;  %v2294_v32 = vmul.f32 %v2288_v26, %v2262_v23  ;;  %v2267_v35 = vadd.f32 %v7906_v51, %v2266_v28  ;;  %v9061_v36 = vpop.f32.mrb[65].mxu0 }
 0xb2b   : > { %v2269_v37 = vpop.f32.mrb[66].mxu0 }
 0xb2c   : > { %v2305_v38 = vmul.f32 0.7978846, %v2299_v29  ;;  %v2300_v40 = vadd.f32 %v2294_v32, %v2262_v23  ;;  %v2283_v41 = vmul.f32 0.044715, %v2267_v35  ;;  %v2270_v39 = vadd.f32 %v7906_v51, %v2269_v37  ;;  %v9062_v42 = vpop.f32.mrb[67].mxu0 }
 0xb2d   : > { %v2277_v30 = vmul.f32 0.5, %v2267_v35  ;;  %v7929_v23 = vld [vmem:[%s12652_s3 + $0x6] ss:$0 sm:$0xff] }
 0xb2e   : > { %10102 = vtanh.f32 %v2305_v38  ;;  %v2306_v47 = vmul.f32 0.7978846, %v2300_v40  ;;  %v2289_v48 = vmul.f32 %v2283_v41, %v2267_v35  ;;  %v2284_v49 = vmul.f32 0.044715, %v2270_v39 }
 0xb2f   : > { %v2278_v60 = vmul.f32 0.5, %v2270_v39 }
 0xb30   : > { %v10099_v52 = vpop.eup %10098  ;;  %10104 = vtanh.f32 %v2306_v47  ;;  %v2295_v53 = vmul.f32 %v2289_v48, %v2267_v35  ;;  %v2290_v54 = vmul.f32 %v2284_v49, %v2270_v39 }
 0xb31   : > { %v2315_v55 = vadd.f32 1.0, %v10099_v52 }
 0xb32   : > { %v10101_v45 = vpop.eup %10100  ;;  %v2301_v46 = vadd.f32 %v2295_v53, %v2267_v35  ;;  %v2296_v44 = vmul.f32 %v2290_v54, %v2270_v39 }
 0xb33   : > { %v2316_v56 = vadd.f32 1.0, %v10101_v45  ;;  %v2321_v63 = vmul.f32 %v2315_v55, %v2273_v50 }
 0xb34   : > { %v2307_v57 = vmul.f32 0.7978846, %v2301_v46  ;;  %v2302_v62 = vadd.f32 %v2296_v44, %v2270_v39 }
 0xb35   : > { %v2322_v51 = vmul.f32 %v2316_v56, %v2274_v61 }
 0xb36   : > { %10106 = vtanh.f32 %v2307_v57  ;;  %v2308_v59 = vmul.f32 0.7978846, %v2302_v62 }
 0xb37   : > { %v2327_v1 = vpack.c.bf16 %v2322_v51, %v2321_v63 }
 0xb38   : > { %v10103_v2 = vpop.eup %10102  ;;  %10108 = vtanh.f32 %v2308_v59 }
 0xb39   : > { %9072 = vmatmul.mubr.msk.bf16.vlgmr.msra.gmra.mrb[68].mxu1 %vm580_vm2, %v2327_v1  ;;  %v2317_v4 = vadd.f32 1.0, %v10103_v2 }
 0xb3a   : > { %v10105_v3 = vpop.eup %10104  ;;  %9075 = vmatprep.mubr.msk.bf16.mxu1 %vm10185_vm4, %v10184_v10 }
 0xb3b   : > { %v2318_v6 = vadd.f32 1.0, %v10105_v3  ;;  %v2323_v58 = vmul.f32 %v2317_v4, %v2275_v7 }
 0xb3d   : > { %v2324_v8 = vmul.f32 %v2318_v6, %v2276_v0 }
 0xb3f   : > { %v2328_v12 = vpack.c.bf16 %v2324_v8, %v2323_v58 }
 0xb40   : > { %v10107_v13 = vpop.eup %10106 }
 0xb41   : > { %9076 = vmatmul.mubr.msk.bf16.gmra.mrb[72].mxu1 %vm580_vm2, %v2328_v12  ;;  %v2319_v14 = vadd.f32 1.0, %v10107_v13 }
 0xb42   : > { %v10109_v15 = vpop.eup %10108  ;;  %9079 = vmatprep.mubr.msk.bf16.mxu1 %vm10185_vm4, %v10184_v10 }
 0xb43   : > { %v2320_v11 = vadd.f32 1.0, %v10109_v15  ;;  %v2325_v20 = vmul.f32 %v2319_v14, %v2277_v30 }
 0xb45   : > { %v2326_v22 = vmul.f32 %v2320_v11, %v2278_v60 }
 0xb47   : > { %v2329_v33 = vpack.c.bf16 %v2326_v22, %v2325_v20 }
 0xb49   : > { %9080 = vmatmul.mubr.msk.bf16.gmra.mrb[76].mxu1 %vm580_vm2, %v2329_v33 }
 0xb4a   : > { %9111 = vmatprep.mubr.msk.bf16.mxu1 %vm10185_vm4, %v10184_v10 }
 0xc0c   : > { %v2406_v16 = vpop.f32.mrb[68].mxu1 }
 0xc0d   : > { %v2429_v24 = vadd.f32 %v2406_v16, %v10717_v9  ;;  %v9073_v21 = vpop.f32.mrb[69].mxu1  ;;  %v9574_v16 = vld [vmem:[%s12653_s4 + $0x100] sm:$0xff]  }
 0xc0e   : > { %v2409_v25 = vpop.f32.mrb[70].mxu1  ;;  %9104 = vmatpush3.bf16.msra.mxu1 %v9574_v16  ;;  %v9577_v21 = vld [vmem:[%s12653_s4 + $0xc8] sm:$0xff]  }
 0xc0f   : > { %v10848_v27 = vadd.f32 %v7929_v23, %v2429_v24  ;;  %v2430_v26 = vadd.f32 %v2409_v25, %v10715_v5  ;;  %v9074_v28 = vpop.f32.mrb[71].mxu1  ;;  %9105 = vmatprep.subr.bf16.mxu1 %v10184_v10  ;;  %v9575_v24 = vld [vmem:[%s12653_s4 + $0x108] sm:$0xff]   ;;  %v9578_v25 = vld [vmem:[%s12653_s4 + $0x110] sm:$0xff]  }
 0xc10   : > { %v9580_v28 = vld [vmem:[%s12653_s4 + $0x118] sm:$0xff]  }
 0xc11   : > { %v2448_v29 = vsel %vm580_vm2, %v10848_v27, 0.0  ;;  %v2441_v32 = vadd.f32 %v7929_v23, %v2430_v26  ;;  %v9579_v26 = vld [vmem:[%s12653_s4 + $0xd0] sm:$0xff]  }
 0xc12   : > { %2449 = vadd.xlane.f32.xlu0 %v2448_v29  ;;  %9106 = vmatpush3.bf16.msra.mxu1 %v9575_v24  ;;  %v9581_v29 = vld [vmem:[%s12653_s4 + $0xd8] sm:$0xff]  }
 0xc13   : > { %v2451_v35 = vsel %vm580_vm2, %v2441_v32, 0.0  ;;  %9107 = vmatprep.subr.bf16.mxu1 %v10184_v10 }
 0xc14   : > { %2452 = vadd.xlane.f32.xlu1 %v2451_v35  ;;  %v2414_v36 = vpop.f32.mrb[72].mxu1 }
 0xc15   : > { %v2431_v37 = vadd.f32 %v2414_v36, %v10727_v31  ;;  %v9077_v38 = vpop.f32.mrb[73].mxu1 }
 0xc16   : > { %v2417_v9 = vpop.f32.mrb[74].mxu1  ;;  %9108 = vmatpush3.bf16.msra.mxu1 %v9578_v25 }
 0xc17   : > { %v2432_v40 = vadd.f32 %v2417_v9, %v10725_v17  ;;  %v9078_v41 = vpop.f32.mrb[75].mxu1  ;;  %v2442_v39 = vadd.f32 %v7929_v23, %v2431_v37  ;;  %9109 = vmatprep.subr.bf16.mxu1 %v10184_v10 }
 0xc19   : > { %v2454_v5 = vsel %vm580_vm2, %v2442_v39, 0.0  ;;  %v2443_v42 = vadd.f32 %v7929_v23, %v2432_v40 }
 0xc1a   : > { %2455 = vadd.xlane.f32.xlu0 %v2454_v5  ;;  %9110 = vmatpush3.bf16.msra.mxu1 %v9580_v28 }
 0xc1b   : > { %v2457_v47 = vsel %vm580_vm2, %v2443_v42, 0.0 }
 0xc1c   : > { %2458 = vadd.xlane.f32.xlu1 %v2457_v47  ;;  %v2422_v48 = vpop.f32.mrb[76].mxu1 }
 0xc1d   : > { %v2433_v49 = vadd.f32 %v2422_v48, %v10737_v34  ;;  %v9081_v52 = vpop.f32.mrb[77].mxu1 }
 0xc1e   : > { %v2425_v53 = vpop.f32.mrb[78].mxu1 }
 0xc1f   : > { %v2434_v31 = vadd.f32 %v2425_v53, %v10735_v18  ;;  %v9082_v54 = vpop.f32.mrb[79].mxu1  ;;  %v2444_v55 = vadd.f32 %v7929_v23, %v2433_v49  ;;  %v7930_v49 = vld [vmem:[%s12652_s3 + $0x7] ss:$0 sm:$0xff] }
 0xc21   : > { %v2460_v17 = vsel %vm580_vm2, %v2444_v55, 0.0  ;;  %v2445_v45 = vadd.f32 %v7929_v23, %v2434_v31  ;;  %v9576_v23 = vld [vmem:[%s12653_s4 + $0xc0] sm:$0xff]  }
 0xc22   : > { %2461 = vadd.xlane.f32.xlu0 %v2460_v17  ;;  %9084 = vmatpush3.bf16.msra.mxu0 %v9576_v23 }
 0xc23   : > { %v2463_v46 = vsel %vm596_vm3, %v2445_v45, 0.0  ;;  %9085 = vmatprep.subr.bf16.mxu0 %v10184_v10 }
 0xc24   : > { %2464 = vadd.xlane.f32.xlu1 %v2463_v46  ;;  %v7931_v46 = vld [vmem:[%s12652_s3 + $0x8] ss:$0 sm:$0xff] }
 0xc26   : > { %9086 = vmatpush3.bf16.msra.mxu0 %v9577_v21 }
 0xc27   : > { %9087 = vmatprep.subr.bf16.mxu0 %v10184_v10 }
 0xc2a   : > { %9088 = vmatpush3.bf16.msra.mxu0 %v9579_v26 }
 0xc2b   : > { %9089 = vmatprep.subr.bf16.mxu0 %v10184_v10 }
 0xc2e   : > { %9090 = vmatpush3.bf16.msra.mxu0 %v9581_v29 }
 0xc2f   : > { %9123 = vmatprep.subr.bf16.mxu0 %v10184_v10 }
 0xc9f   : > { %v2450_v44 = vpop.xlane.xlu0 %2449 }
 0xca0   : > { %v2466_v50 = vmul.f32 0.015625, %v2450_v44 }
 0xca1   : > { %v2453_v61 = vpop.xlane.xlu1 %2452 }
 0xca2   : > { %v10863_v56 = vsub.f32 %v10848_v27, %v2466_v50  ;;  %v2467_v34 = vmul.f32 0.015625, %v2453_v61 }
 0xca4   : > { %v10865_v57 = vsub.f32 %v2441_v32, %v2467_v34  ;;  %v2478_v18 = vmul.f32 %v10863_v56, %v10863_v56 }
 0xca6   : > { %v2484_v62 = vsel %vm580_vm2, %v2478_v18, 0.0  ;;  %v2479_v63 = vmul.f32 %v10865_v57, %v10865_v57 }
 0xca7   : > { %2485 = vadd.xlane.f32.xlu0 %v2484_v62  ;;  %v2456_v51 = vpop.xlane.xlu0 %2455 }
 0xca8   : > { %v2468_v59 = vmul.f32 0.015625, %v2456_v51  ;;  %v2487_v1 = vsel %vm580_vm2, %v2479_v63, 0.0 }
 0xca9   : > { %v2459_v2 = vpop.xlane.xlu1 %2458  ;;  %2488 = vadd.xlane.f32.xlu1 %v2487_v1 }
 0xcaa   : > { %v10873_v4 = vsub.f32 %v2442_v39, %v2468_v59  ;;  %v2469_v3 = vmul.f32 0.015625, %v2459_v2 }
 0xcac   : > { %v10875_v7 = vsub.f32 %v2443_v42, %v2469_v3  ;;  %v2480_v0 = vmul.f32 %v10873_v4, %v10873_v4  ;;  %v9583_v3 = vld [vmem:[%s12653_s4 + $0x148] sm:$0xff]  }
 0xcae   : > { %v2490_v6 = vsel %vm580_vm2, %v2480_v0, 0.0  ;;  %v2481_v58 = vmul.f32 %v10875_v7, %v10875_v7 }
 0xcaf   : > { %2491 = vadd.xlane.f32.xlu0 %v2490_v6  ;;  %v2462_v8 = vpop.xlane.xlu0 %2461 }
 0xcb0   : > { %v2470_v12 = vmul.f32 0.015625, %v2462_v8  ;;  %v2493_v13 = vsel %vm580_vm2, %v2481_v58, 0.0 }
 0xcb1   : > { %2494 = vadd.xlane.f32.xlu1 %v2493_v13  ;;  %v2465_v14 = vpop.xlane.xlu1 %2464 }
 0xcb2   : > { %v10883_v15 = vsub.f32 %v2444_v55, %v2470_v12  ;;  %v2471_v30 = vmul.f32 0.015625, %v2465_v14  ;;  %v9584_v12 = vld [vmem:[%s12653_s4 + $0x150] sm:$0xff]  }
 0xcb4   : > { %v10885_v60 = vsub.f32 %v2445_v45, %v2471_v30  ;;  %v2482_v11 = vmul.f32 %v10883_v15, %v10883_v15 }
 0xcb6   : > { %v2496_v20 = vsel %vm580_vm2, %v2482_v11, 0.0  ;;  %v2483_v22 = vmul.f32 %v10885_v60, %v10885_v60  ;;  %v9585_v11 = vld [vmem:[%s12653_s4 + $0x158] sm:$0xff]  }
 0xcb7   : > { %2497 = vadd.xlane.f32.xlu0 %v2496_v20 }
 0xcb8   : > { %v2499_v33 = vsel %vm596_vm3, %v2483_v22, 0.0 }
 0xcb9   : > { %2500 = vadd.xlane.f32.xlu1 %v2499_v33 }
 0xd34   : > { %v2486_v32 = vpop.xlane.xlu0 %2485 }
 0xd35   : > { %v2502_v35 = vmul.f32 0.015625, %v2486_v32 }
 0xd36   : > { %v2489_v36 = vpop.xlane.xlu1 %2488 }
 0xd37   : > { %v2508_v37 = vadd.f32 1e-05, %v2502_v35  ;;  %v2503_v38 = vmul.f32 0.015625, %v2489_v36 }
 0xd39   : > { %10110 = vrsqrt.f32 %v2508_v37  ;;  %v2509_v9 = vadd.f32 1e-05, %v2503_v38 }
 0xd3b   : > { %10112 = vrsqrt.f32 %v2509_v9 }
 0xd3c   : > { %v2492_v40 = vpop.xlane.xlu0 %2491 }
 0xd3d   : > { %v2504_v41 = vmul.f32 0.015625, %v2492_v40 }
 0xd3e   : > { %v2495_v39 = vpop.xlane.xlu1 %2494 }
 0xd3f   : > { %v2510_v5 = vadd.f32 1e-05, %v2504_v41  ;;  %v2505_v42 = vmul.f32 0.015625, %v2495_v39 }
 0xd41   : > { %10114 = vrsqrt.f32 %v2510_v5  ;;  %v2511_v47 = vadd.f32 1e-05, %v2505_v42 }
 0xd43   : > { %v10111_v48 = vpop.eup %10110  ;;  %10116 = vrsqrt.f32 %v2511_v47 }
 0xd44   : > { %v2520_v52 = vmul.f32 %v10111_v48, %v10863_v56  ;;  %v2498_v53 = vpop.xlane.xlu0 %2497 }
 0xd45   : > { %v10113_v31 = vpop.eup %10112  ;;  %v2506_v54 = vmul.f32 0.015625, %v2498_v53 }
 0xd46   : > { %v2530_v55 = vmul.f32 %v7930_v49, %v2520_v52  ;;  %v2521_v17 = vmul.f32 %v10113_v31, %v10865_v57  ;;  %v2501_v45 = vpop.xlane.xlu1 %2500  ;;  %v9582_v57 = vld [vmem:[%s12653_s4 + $0x140] sm:$0xff]  }
 0xd47   : > { %v2512_v44 = vadd.f32 1e-05, %v2506_v54  ;;  %v2507_v50 = vmul.f32 0.015625, %v2501_v45 }
 0xd48   : > { %v2531_v61 = vmul.f32 %v7930_v49, %v2521_v17  ;;  %v2540_v18 = vadd.f32 %v7931_v46, %v2530_v55 }
 0xd49   : > { %10118 = vrsqrt.f32 %v2512_v44  ;;  %v2513_v34 = vadd.f32 1e-05, %v2507_v50 }
 0xd4a   : > { %v2541_v62 = vadd.f32 %v7931_v46, %v2531_v61  ;;  %v9587_v61 = vld [vmem:[%s12654_s5 + $0x28] sm:$0xff]  }
 0xd4b   : > { %v10115_v63 = vpop.eup %10114  ;;  %10120 = vrsqrt.f32 %v2513_v34 }
 0xd4c   : > { %v2522_v56 = vmul.f32 %v10115_v63, %v10873_v4  ;;  %v10933_v51 = vpack.c.bf16 %v2541_v62, %v2540_v18 }
 0xd4d   : > { %v10117_v59 = vpop.eup %10116 }
 0xd4e   : > { %v2532_v1 = vmul.f32 %v7930_v49, %v2522_v56  ;;  %v2523_v2 = vmul.f32 %v10117_v59, %v10875_v7  ;;  %9092 = vmatmul.mubr.msk.bf16.vlgmr.msra.gmra.mrb[68].mxu0 %vm580_vm2, %v10933_v51  ;;  %9112 = vmatmul.mubr.msk.bf16.vlgmr.msra.gmra.mrb[80].mxu1 %vm580_vm2, %v10933_v51 }
 0xd4f   : > { %9095 = vmatprep.mubr.msk.bf16.mxu0 %vm10185_vm4, %v10184_v10  ;;  %9115 = vmatprep.mubr.msk.bf16.mxu1 %vm10185_vm4, %v10184_v10 }
 0xd50   : > { %v2533_v4 = vmul.f32 %v7930_v49, %v2523_v2  ;;  %9124 = vmatpush3.bf16.msra.mxu0 %v9582_v57  ;;  %v2542_v7 = vadd.f32 %v7931_v46, %v2532_v1  ;;  %v9588_v57 = vld [vmem:[%s12653_s4 + $0xe0] sm:$0xff]  }
 0xd51   : > { %9125 = vmatprep.subr.bf16.mxu0 %v10184_v10 }
 0xd52   : > { %v2543_v0 = vadd.f32 %v7931_v46, %v2533_v4  ;;  %v9589_v4 = vld [vmem:[%s12653_s4 + $0xe8] sm:$0xff]  }
 0xd53   : > { %v10119_v6 = vpop.eup %10118 }
 0xd54   : > { %v2524_v58 = vmul.f32 %v10119_v6, %v10883_v15  ;;  %v10952_v8 = vpack.c.bf16 %v2543_v0, %v2542_v7  ;;  %9126 = vmatpush3.bf16.msra.mxu0 %v9583_v3  ;;  %v9590_v0 = vld [vmem:[%s12653_s4 + $0xf0] sm:$0xff]   ;;  %v9591_v6 = vld [vmem:[%s12653_s4 + $0xf8] sm:$0xff]  }
 0xd55   : > { %v10121_v13 = vpop.eup %10120  ;;  %9127 = vmatprep.subr.bf16.mxu0 %v10184_v10 }
 0xd56   : > { %v2534_v14 = vmul.f32 %v7930_v49, %v2524_v58  ;;  %v2525_v30 = vmul.f32 %v10121_v13, %v10885_v60  ;;  %9096 = vmatmul.mubr.msk.bf16.gmra.mrb[72].mxu0 %vm580_vm2, %v10952_v8  ;;  %9116 = vmatmul.mubr.msk.bf16.gmra.mrb[84].mxu1 %vm580_vm2, %v10952_v8  ;;  %v9592_v58 = vld [vmem:[%s12653_s4 + $0x160] sm:$0xff]   ;;  %v9594_v13 = vld [vmem:[%s12653_s4 + $0x170] sm:$0xff]  }
 0xd57   : > { %9099 = vmatprep.mubr.msk.bf16.mxu0 %vm10185_vm4, %v10184_v10  ;;  %9119 = vmatprep.mubr.msk.bf16.mxu1 %vm10185_vm4, %v10184_v10 }
 0xd58   : > { %v2535_v15 = vmul.f32 %v7930_v49, %v2525_v30  ;;  %9128 = vmatpush3.bf16.msra.mxu0 %v9584_v12  ;;  %v2544_v60 = vadd.f32 %v7931_v46, %v2534_v14  ;;  %v9593_v12 = vld [vmem:[%s12653_s4 + $0x168] sm:$0xff]   ;;  %v9595_v14 = vld [vmem:[%s12653_s4 + $0x178] sm:$0xff]  }
 0xd59   : > { %9129 = vmatprep.subr.bf16.mxu0 %v10184_v10 }
 0xd5a   : > { %v2545_v20 = vadd.f32 %v7931_v46, %v2535_v15  ;;  %v9586_v46 = vld [vmem:[%s12654_s5 + $0x20] sm:$0xff]  }
 0xd5c   : > { %v10971_v22 = vpack.c.bf16 %v2545_v20, %v2544_v60  ;;  %9130 = vmatpush3.bf16.msra.mxu0 %v9585_v11 }
 0xd5e   : > { %9100 = vmatmul.mubr.msk.bf16.gmra.mrb[76].mxu0 %vm580_vm2, %v10971_v22  ;;  %9120 = vmatmul.mubr.msk.bf16.gmra.mrb[88].mxu1 %vm580_vm2, %v10971_v22 }
 0xd5f   : > { %9131 = vmatprep.mubr.msk.bf16.mxu0 %vm10185_vm4, %v10184_v10 }
 0xd66   : > { %9132 = vmatmul.mubr.msk.bf16.vlgmr.msra.gmra.mrb[80].mxu0 %vm580_vm2, %v10933_v51 }
 0xd67   : > { %9135 = vmatprep.mubr.msk.bf16.mxu0 %vm10185_vm4, %v10184_v10 }
 0xd6e   : > { %9136 = vmatmul.mubr.msk.bf16.gmra.mrb[84].mxu0 %vm580_vm2, %v10952_v8 }
 0xd6f   : > { %9139 = vmatprep.mubr.msk.bf16.mxu0 %vm10185_vm4, %v10184_v10 }
 0xd76   : > { %9140 = vmatmul.mubr.msk.bf16.gmra.mrb[88].mxu0 %vm580_vm2, %v10971_v22 }
 0xe21   : > { %v2625_v33 = vpop.f32.mrb[68].mxu0  ;;  %v2715_v16 = vpop.f32.mrb[80].mxu1 }
 0xe22   : > { %v9093_v23 = vpop.f32.mrb[69].mxu0  ;;  %v9113_v24 = vpop.f32.mrb[81].mxu1  ;;  %9155 = vmatprep.mubr.msk.f32.mxu1 %vm962_vm5, %v2625_v33 }
 0xe23   : > { %v2628_v21 = vpop.f32.mrb[70].mxu0  ;;  %v2718_v25 = vpop.f32.mrb[82].mxu1 }
 0xe24   : > { %v9419_v26 = vpack.c.bf16 %v2718_v25, %v2715_v16  ;;  %v9094_v28 = vpop.f32.mrb[71].mxu0  ;;  %v9114_v29 = vpop.f32.mrb[83].mxu1 }
 0xe26   : > { %9421 = vmatprep.subr.msk.bf16.mxu1 %vm10485_vm6, %v9419_v26 }
 0xe27   : > { %9424 = vmatpush3.bf16.xpose.msk.msra.mxu1 %vm10485_vm6, %v9419_v26 }
 0xe29   : > { %v2633_v32 = vpop.f32.mrb[72].mxu0  ;;  %v2723_v35 = vpop.f32.mrb[84].mxu1 }
 0xe2a   : > { %v9097_v36 = vpop.f32.mrb[73].mxu0  ;;  %v9117_v37 = vpop.f32.mrb[85].mxu1 }
 0xe2b   : > { %v2636_v38 = vpop.f32.mrb[74].mxu0  ;;  %v2726_v9 = vpop.f32.mrb[86].mxu1 }
 0xe2c   : > { %v9425_v40 = vpack.c.bf16 %v2726_v9, %v2723_v35  ;;  %v9098_v41 = vpop.f32.mrb[75].mxu0  ;;  %v9118_v39 = vpop.f32.mrb[87].mxu1 }
 0xe2e   : > { %9427 = vmatprep.subr.msk.bf16.mxu1 %vm10485_vm6, %v9425_v40 }
 0xe2f   : > { %9430 = vmatpush3.bf16.xpose.msk.msra.mxu1 %vm10485_vm6, %v9425_v40 }
 0xe31   : > { %v2641_v5 = vpop.f32.mrb[76].mxu0  ;;  %v2731_v42 = vpop.f32.mrb[88].mxu1 }
 0xe32   : > { %v9101_v47 = vpop.f32.mrb[77].mxu0  ;;  %v9121_v48 = vpop.f32.mrb[89].mxu1 }
 0xe33   : > { %v2644_v49 = vpop.f32.mrb[78].mxu0  ;;  %v2734_v52 = vpop.f32.mrb[90].mxu1 }
 0xe34   : > { %v9431_v53 = vpack.c.bf16 %v2734_v52, %v2731_v42  ;;  %v9102_v31 = vpop.f32.mrb[79].mxu0  ;;  %v9122_v54 = vpop.f32.mrb[91].mxu1 }
 0xe36   : > { %9433 = vmatprep.subr.msk.bf16.mxu1 %vm10485_vm6, %v9431_v53 }
 0xe37   : > { %9436 = vmatpush3.bf16.xpose.msk.msra.mxu1 %vm10485_vm6, %v9431_v53 }
 0xe38   : > { %9164 = vmatprep.subr.bf16.mxu1 %v10184_v10 }
 0xe39   : > { %v2805_v55 = vpop.f32.mrb[80].mxu0 }
 0xe3a   : > { %v9133_v17 = vpop.f32.mrb[81].mxu0 }
 0xe3b   : > { %v2808_v45 = vpop.f32.mrb[82].mxu0 }
 0xe3c   : > { %v3031_v44 = vpack.c.bf16 %v2808_v45, %v2805_v55  ;;  %v9134_v50 = vpop.f32.mrb[83].mxu0 }
 0xe3e   : > { %9156 = vmatmul.mubr.msk.f32.vlgmr.msra.gmra.mrb[54].mxu1 %vm962_vm5, %v2628_v21 }
 0xe3f   : > { %9158 = vmatprep.mubr.msk.f32.mxu1 %vm962_vm5, %v2633_v32  ;;  %9165 = vmatpush3.bf16.msra.mxu1 %v9586_v46 }
 0xe40   : > { %9166 = vmatprep.subr.bf16.mxu1 %v10184_v10 }
 0xe41   : > { %v2813_v34 = vpop.f32.mrb[84].mxu0 }
 0xe42   : > { %v9137_v18 = vpop.f32.mrb[85].mxu0  ;;  %9159 = vmatmul.mubr.msk.f32.gmra.mrb[92].mxu1 %vm962_vm5, %v2636_v38 }
 0xe43   : > { %v2816_v62 = vpop.f32.mrb[86].mxu0  ;;  %9161 = vmatprep.mubr.msk.f32.mxu1 %vm962_vm5, %v2641_v5  ;;  %9167 = vmatpush3.bf16.msra.mxu1 %v9587_v61 }
 0xe44   : > { %v3032_v63 = vpack.c.bf16 %v2816_v62, %v2813_v34  ;;  %v9138_v56 = vpop.f32.mrb[87].mxu0  ;;  %9201 = vmatprep.subr.bf16.mxu1 %v10184_v10 }
 0xe46   : > { %9162 = vmatmul.mubr.msk.f32.gmra.mrb[94].mxu1 %vm962_vm5, %v2644_v49 }
 0xe47   : > { %9168 = vmatprep.mubr.msk.bf16.mxu1 %vm10185_vm4, %v10184_v10 }
 0xe49   : > { %v2821_v59 = vpop.f32.mrb[88].mxu0 }
 0xe4a   : > { %v9141_v1 = vpop.f32.mrb[89].mxu0  ;;  %9169 = vmatmul.mubr.msk.bf16.vlgmr.msra.gmra.mrb[96].mxu1 %vm962_vm5, %v3031_v44 }
 0xe4b   : > { %v2824_v2 = vpop.f32.mrb[90].mxu0  ;;  %9172 = vmatprep.mubr.msk.bf16.mxu1 %vm10185_vm4, %v10184_v10  ;;  %9202 = vmatpush3.bf16.msra.mxu1 %v9588_v57 }
 0xe4c   : > { %v3033_v3 = vpack.c.bf16 %v2824_v2, %v2821_v59  ;;  %v9142_v7 = vpop.f32.mrb[91].mxu0  ;;  %9203 = vmatprep.subr.bf16.mxu1 %v10184_v10 }
 0xe4f   : > { %9204 = vmatpush3.bf16.msra.mxu1 %v9589_v4 }
 0xe50   : > { %9205 = vmatprep.subr.bf16.mxu1 %v10184_v10 }
 0xe52   : > { %9173 = vmatmul.mubr.msk.bf16.gmra.mrb[100].mxu1 %vm962_vm5, %v3032_v63 }
 0xe53   : > { %9176 = vmatprep.mubr.msk.bf16.mxu1 %vm10185_vm4, %v10184_v10  ;;  %9206 = vmatpush3.bf16.msra.mxu1 %v9590_v0 }
 0xe54   : > { %9207 = vmatprep.subr.bf16.mxu1 %v10184_v10 }
 0xe57   : > { %9208 = vmatpush3.bf16.msra.mxu1 %v9591_v6 }
 0xe58   : > { %9241 = vmatprep.subr.bf16.mxu1 %v10184_v10 }
 0xe5a   : > { %9177 = vmatmul.mubr.msk.bf16.gmra.mrb[104].mxu1 %vm962_vm5, %v3033_v3 }
 0xe5b   : > { %9209 = vmatprep.mubr.msk.bf16.mxu1 %vm10185_vm4, %v10184_v10 }
 0xe62   : > { %9210 = vmatmul.mubr.msk.bf16.vlgmr.msra.gmra.mrb[108].mxu1 %vm580_vm2, %v10933_v51 }
 0xe63   : > { %9213 = vmatprep.mubr.msk.bf16.mxu1 %vm10185_vm4, %v10184_v10  ;;  %9242 = vmatpush3.bf16.msra.mxu1 %v9592_v58 }
 0xe64   : > { %9243 = vmatprep.subr.bf16.mxu1 %v10184_v10 }
 0xe67   : > { %9244 = vmatpush3.bf16.msra.mxu1 %v9593_v12 }
 0xe68   : > { %9245 = vmatprep.subr.bf16.mxu1 %v10184_v10 }
 0xe6a   : > { %9214 = vmatmul.mubr.msk.bf16.gmra.mrb[112].mxu1 %vm580_vm2, %v10952_v8 }
 0xe6b   : > { %9217 = vmatprep.mubr.msk.bf16.mxu1 %vm10185_vm4, %v10184_v10  ;;  %9246 = vmatpush3.bf16.msra.mxu1 %v9594_v13 }
 0xe6c   : > { %9247 = vmatprep.subr.bf16.mxu1 %v10184_v10 }
 0xe6f   : > { %9248 = vmatpush3.bf16.msra.mxu1 %v9595_v14 }
 0xe72   : > { %9218 = vmatmul.mubr.msk.bf16.gmra.mrb[116].mxu1 %vm580_vm2, %v10971_v22 }
 0xe73   : > { %9249 = vmatprep.mubr.msk.bf16.mxu1 %vm10185_vm4, %v10184_v10 }
 0xe7a   : > { %9250 = vmatmul.mubr.msk.bf16.vlgmr.msra.gmra.mrb[120].mxu1 %vm580_vm2, %v10933_v51 }
 0xe7b   : > { %9253 = vmatprep.mubr.msk.bf16.mxu1 %vm10185_vm4, %v10184_v10 }
 0xe82   : > { %9254 = vmatmul.mubr.msk.bf16.gmra.mrb[124].mxu1 %vm580_vm2, %v10952_v8 }
 0xe83   : > { %9257 = vmatprep.mubr.msk.bf16.mxu1 %vm10185_vm4, %v10184_v10 }
 0xe8a   : > { %9258 = vmatmul.mubr.msk.bf16.gmra.mrb[128].mxu1 %vm580_vm2, %v10971_v22 }
 0xf11   : > { %v9157_v30 = vpop.f32.mrb[54].mxu1 }
 0xf12   : > { %v11080_v15 = vmul.f32 0.17677669, %v9157_v30  ;;  %v2930_v11 = vpop.f32.mrb[55].mxu1 }
 0xf13   : > { %v11082_v60 = vmul.f32 0.17677669, %v2930_v11 }
 0xf14   : > { %v2968_v20 = vsel %vm1100_vm7, %v11080_v15, -inf }
 0xf15   : > { %2969 = vmax.xlane.f32.xlu1 %v2968_v20  ;;  %v9160_v33 = vpop.f32.mrb[92].mxu1  ;;  %v2965_v16 = vsel %vm1100_vm7, %v11082_v60, -inf }
 0xf16   : > { %v11088_v23 = vmul.f32 0.17677669, %v9160_v33  ;;  %2966 = vmax.xlane.f32.xlu0 %v2965_v16  ;;  %v2940_v24 = vpop.f32.mrb[93].mxu1 }
 0xf17   : > { %v11090_v21 = vmul.f32 0.17677669, %v2940_v24 }
 0xf18   : > { %v2974_v25 = vsel %vm1100_vm7, %v11088_v23, -inf }
 0xf19   : > { %2975 = vmax.xlane.f32.xlu1 %v2974_v25  ;;  %v9163_v26 = vpop.f32.mrb[94].mxu1  ;;  %v2971_v28 = vsel %vm1100_vm7, %v11090_v21, -inf }
 0xf1a   : > { %v11096_v29 = vmul.f32 0.17677669, %v9163_v26  ;;  %2972 = vmax.xlane.f32.xlu0 %v2971_v28  ;;  %v2950_v32 = vpop.f32.mrb[95].mxu1 }
 0xf1b   : > { %v11098_v35 = vmul.f32 0.17677669, %v2950_v32 }
 0xf1c   : > { %v2980_v36 = vsel %vm1116_vm8, %v11096_v29, -inf }
 0xf1d   : > { %2981 = vmax.xlane.f32.xlu1 %v2980_v36  ;;  %v3094_v37 = vpop.f32.mrb[96].mxu1  ;;  %v2977_v38 = vsel %vm1100_vm7, %v11098_v35, -inf }
 0xf1e   : > { %2978 = vmax.xlane.f32.xlu0 %v2977_v38  ;;  %v9170_v9 = vpop.f32.mrb[97].mxu1 }
 0xf1f   : > { %v3097_v40 = vpop.f32.mrb[98].mxu1 }
 0xf20   : > { %v9437_v41 = vpack.c.bf16 %v3097_v40, %v3094_v37  ;;  %v9171_v39 = vpop.f32.mrb[99].mxu1 }
 0xf22   : > { %9438 = vmatprep.subr.bf16.mxu0 %v9437_v41 }
 0xf23   : > { %9440 = vmatpush3.bf16.msra.mxu0 %v9437_v41 }
 0xf25   : > { %v3102_v5 = vpop.f32.mrb[100].mxu1 }
 0xf26   : > { %v9174_v42 = vpop.f32.mrb[101].mxu1 }
 0xf27   : > { %v3105_v47 = vpop.f32.mrb[102].mxu1 }
 0xf28   : > { %v9441_v48 = vpack.c.bf16 %v3105_v47, %v3102_v5  ;;  %v9175_v49 = vpop.f32.mrb[103].mxu1 }
 0xf2a   : > { %9442 = vmatprep.subr.bf16.mxu0 %v9441_v48 }
 0xf2b   : > { %9444 = vmatpush3.bf16.msra.mxu0 %v9441_v48 }
 0xf2d   : > { %v3110_v52 = vpop.f32.mrb[104].mxu1 }
 0xf2e   : > { %v9178_v53 = vpop.f32.mrb[105].mxu1 }
 0xf2f   : > { %v3113_v31 = vpop.f32.mrb[106].mxu1 }
 0xf30   : > { %v9445_v54 = vpack.c.bf16 %v3113_v31, %v3110_v52  ;;  %v9179_v55 = vpop.f32.mrb[107].mxu1 }
 0xf32   : > { %9447 = vmatprep.subr.msk.bf16.mxu0 %vm10565_vm10, %v9445_v54 }
 0xf33   : > { %9450 = vmatpush3.bf16.msk.msra.mxu0 %vm10565_vm10, %v9445_v54 }
 0xf34   : > { %9221 = vmatprep.subr.bf16.mxu0 %v10184_v10 }
 0xf35   : > { %v11109_v17 = vpop.f32.mrb[108].mxu1 }
 0xf36   : > { %v9211_v45 = vpop.f32.mrb[109].mxu1 }
 0xf37   : > { %v11111_v46 = vpop.f32.mrb[110].mxu1 }
 0xf38   : > { %v9212_v44 = vpop.f32.mrb[111].mxu1 }
 0xf3d   : > { %v11113_v50 = vpop.f32.mrb[112].mxu1 }
 0xf3e   : > { %v9215_v61 = vpop.f32.mrb[113].mxu1 }
 0xf3f   : > { %v11115_v34 = vpop.f32.mrb[114].mxu1 }
 0xf40   : > { %v9216_v18 = vpop.f32.mrb[115].mxu1 }
 0xf45   : > { %v11117_v62 = vpop.f32.mrb[116].mxu1 }
 0xf46   : > { %v9219_v63 = vpop.f32.mrb[117].mxu1 }
 0xf47   : > { %v11119_v56 = vpop.f32.mrb[118].mxu1 }
 0xf48   : > { %v9220_v57 = vpop.f32.mrb[119].mxu1 }
 0xf4d   : > { %v11121_v59 = vpop.f32.mrb[120].mxu1 }
 0xf4e   : > { %v9251_v1 = vpop.f32.mrb[121].mxu1 }
 0xf4f   : > { %v11123_v2 = vpop.f32.mrb[122].mxu1 }
 0xf50   : > { %v3702_v4 = vpack.c.bf16 %v11123_v2, %v11121_v59  ;;  %v9252_v3 = vpop.f32.mrb[123].mxu1 }
 0xf55   : > { %v11127_v7 = vpop.f32.mrb[124].mxu1 }
 0xf56   : > { %v9255_v0 = vpop.f32.mrb[125].mxu1 }
 0xf57   : > { %v11129_v6 = vpop.f32.mrb[126].mxu1 }
 0xf58   : > { %v3703_v58 = vpack.c.bf16 %v11129_v6, %v11127_v7  ;;  %v9256_v12 = vpop.f32.mrb[127].mxu1 }
 0xf59   : > { %v9596_v12 = vld [vmem:[%s12653_s4 + $0x120] sm:$0xff]  }
 0xf5d   : > { %v11133_v13 = vpop.f32.mrb[128].mxu1 }
 0xf5e   : > { %v9259_v14 = vpop.f32.mrb[129].mxu1 }
 0xf5f   : > { %v11135_v30 = vpop.f32.mrb[130].mxu1 }
 0xf60   : > { %v3704_v11 = vpack.c.bf16 %v11135_v30, %v11133_v13  ;;  %v9260_v20 = vpop.f32.mrb[131].mxu1 }
 0xfa2   : > { %v2970_v33 = vpop.xlane.xlu1 %2969 }
 0xfa3   : > { %v2984_v16 = vsub.f32 %v11080_v15, %v2970_v33  ;;  %v2967_v24 = vpop.xlane.xlu0 %2966 }
 0xfa4   : > { %v2983_v25 = vsub.f32 %v11082_v60, %v2967_v24  ;;  %v9597_v24 = vld [vmem:[%s12653_s4 + $0x128] sm:$0xff]  }
 0xfa5   : > { %v2991_v26 = vmul.f32 1.442695, %v2984_v16 }
 0xfa6   : > { %v2989_v28 = vmul.f32 1.442695, %v2983_v25  ;;  %v2976_v32 = vpop.xlane.xlu1 %2975 }
 0xfa7   : > { %10122 = vpow2.f32 %v2991_v26  ;;  %v2986_v36 = vsub.f32 %v11088_v23, %v2976_v32  ;;  %v2973_v37 = vpop.xlane.xlu0 %2972 }
 0xfa8   : > { %10124 = vpow2.f32 %v2989_v28  ;;  %v2985_v38 = vsub.f32 %v11090_v21, %v2973_v37 }
 0xfa9   : > { %v2995_v9 = vmul.f32 1.442695, %v2986_v36  ;;  %v9598_v36 = vld [vmem:[%s12653_s4 + $0x130] sm:$0xff]  }
 0xfaa   : > { %v2993_v40 = vmul.f32 1.442695, %v2985_v38  ;;  %v2982_v41 = vpop.xlane.xlu1 %2981  ;;  %v9599_v38 = vld [vmem:[%s12653_s4 + $0x138] sm:$0xff]  }
 0xfab   : > { %10126 = vpow2.f32 %v2995_v9  ;;  %v2988_v39 = vsub.f32 %v11096_v29, %v2982_v41  ;;  %v2979_v15 = vpop.xlane.xlu0 %2978 }
 0xfac   : > { %10128 = vpow2.f32 %v2993_v40  ;;  %v2987_v60 = vsub.f32 %v11098_v35, %v2979_v15 }
 0xfad   : > { %v2999_v5 = vmul.f32 1.442695, %v2988_v39 }
 0xfae   : > { %v2997_v42 = vmul.f32 1.442695, %v2987_v60 }
 0xfaf   : > { %10130 = vpow2.f32 %v2999_v5 }
 0xfb0   : > { %10132 = vpow2.f32 %v2997_v42 }
 0xfb1   : > { %v10123_v47 = vpop.eup %10122 }
 0xfb2   : > { %v10125_v23 = vpop.eup %10124  ;;  %v3004_v48 = vsel %vm1100_vm7, %v10123_v47, 0.0 }
 0xfb3   : > { %3005 = vadd.xlane.f32.xlu1 %v3004_v48  ;;  %v3001_v21 = vsel %vm1100_vm7, %v10125_v23, 0.0 }
 0xfb4   : > { %3002 = vadd.xlane.f32.xlu0 %v3001_v21 }
 0xfb5   : > { %v10127_v49 = vpop.eup %10126 }
 0xfb6   : > { %v10129_v52 = vpop.eup %10128  ;;  %v3010_v29 = vsel %vm1100_vm7, %v10127_v49, 0.0 }
 0xfb7   : > { %3011 = vadd.xlane.f32.xlu1 %v3010_v29  ;;  %v3007_v53 = vsel %vm1100_vm7, %v10129_v52, 0.0 }
 0xfb8   : > { %3008 = vadd.xlane.f32.xlu0 %v3007_v53 }
 0xfb9   : > { %v10131_v35 = vpop.eup %10130 }
 0xfba   : > { %v10133_v31 = vpop.eup %10132  ;;  %v3016_v54 = vsel %vm1116_vm8, %v10131_v35, 0.0 }
 0xfbb   : > { %3017 = vadd.xlane.f32.xlu1 %v3016_v54  ;;  %v3013_v55 = vsel %vm1100_vm7, %v10133_v31, 0.0  ;;  %v9601_v54 = vld [vmem:[%s12654_s5 + $0x38] sm:$0xff]  }
 0xfbc   : > { %3014 = vadd.xlane.f32.xlu0 %v3013_v55 }
0x1040   : > { %v3006_v45 = vpop.xlane.xlu1 %3005 }
0x1041   : > { %10134 = vrcp.f32 %v3006_v45  ;;  %v3003_v44 = vpop.xlane.xlu0 %3002 }
0x1042   : > { %10136 = vrcp.f32 %v3003_v44 }
0x1044   : > { %v3012_v61 = vpop.xlane.xlu1 %3011 }
0x1045   : > { %10138 = vrcp.f32 %v3012_v61  ;;  %v3009_v18 = vpop.xlane.xlu0 %3008 }
0x1046   : > { %10140 = vrcp.f32 %v3009_v18 }
0x1048   : > { %v3018_v63 = vpop.xlane.xlu1 %3017 }
0x1049   : > { %10142 = vrcp.f32 %v3018_v63  ;;  %v3015_v57 = vpop.xlane.xlu0 %3014 }
0x104a   : > { %10144 = vrcp.f32 %v3015_v57 }
0x104b   : > { %v10135_v1 = vpop.eup %10134 }
0x104c   : > { %v10137_v3 = vpop.eup %10136  ;;  %v3026_v14 = vmul.f32 %v10135_v1, %v10123_v47 }
0x104d   : > { %v3025_v0 = vmul.f32 %v10137_v3, %v10125_v23 }
0x104f   : > { %v10139_v20 = vpop.eup %10138  ;;  %9192 = vmatprep.mubr.msk.f32.mxu0 %vm1100_vm7, %v3025_v0 }
0x1050   : > { %v10141_v33 = vpop.eup %10140  ;;  %9193 = vmatmul.mubr.msk.f32.vlgmr.msra.gmra.mrb[30].mxu0 %vm1100_vm7, %v3026_v14  ;;  %v3028_v25 = vmul.f32 %v10139_v20, %v10127_v49 }
0x1051   : > { %9222 = vmatpush3.bf16.msra.mxu0 %v9596_v12  ;;  %v3027_v16 = vmul.f32 %v10141_v33, %v10129_v52 }
0x1052   : > { %9223 = vmatprep.subr.bf16.mxu0 %v10184_v10 }
0x1053   : > { %v10143_v26 = vpop.eup %10142  ;;  %9195 = vmatprep.mubr.msk.f32.mxu0 %vm1100_vm7, %v3027_v16 }
0x1054   : > { %v10145_v28 = vpop.eup %10144  ;;  %9196 = vmatmul.mubr.msk.f32.gmra.mrb[92].mxu0 %vm1100_vm7, %v3028_v25  ;;  %v3030_v37 = vmul.f32 %v10143_v26, %v10131_v35 }
0x1055   : > { %9224 = vmatpush3.bf16.msra.mxu0 %v9597_v24  ;;  %v3029_v32 = vmul.f32 %v10145_v28, %v10133_v31  ;;  %v9600_v31 = vld [vmem:[%s12654_s5 + $0x30] sm:$0xff]  }
0x1056   : > { %9225 = vmatprep.subr.bf16.mxu0 %v10184_v10 }
0x1057   : > { %9198 = vmatprep.mubr.msk.f32.mxu0 %vm1100_vm7, %v3029_v32 }
0x1058   : > { %9199 = vmatmul.mubr.msk.f32.gmra.mrb[94].mxu0 %vm1100_vm7, %v3030_v37 }
0x1059   : > { %9226 = vmatpush3.bf16.msra.mxu0 %v9598_v36  ;;  %9229 = vmatprep.mubr.msk.bf16.mxu0 %vm10185_vm4, %v10184_v10 }
0x105a   : > { %9227 = vmatprep.subr.bf16.mxu0 %v10184_v10 }
0x105d   : > { %9228 = vmatpush3.bf16.msra.mxu0 %v9599_v38 }
0x1060   : > { %9230 = vmatmul.mubr.msk.bf16.vlgmr.msra.gmra.mrb[96].mxu0 %vm580_vm2, %v10933_v51 }
0x1061   : > { %9233 = vmatprep.mubr.msk.bf16.mxu0 %vm10185_vm4, %v10184_v10 }
0x1068   : > { %9234 = vmatmul.mubr.msk.bf16.gmra.mrb[100].mxu0 %vm580_vm2, %v10952_v8 }
0x1069   : > { %9237 = vmatprep.mubr.msk.bf16.mxu0 %vm10185_vm4, %v10184_v10 }
0x1070   : > { %9238 = vmatmul.mubr.msk.bf16.gmra.mrb[104].mxu0 %vm580_vm2, %v10971_v22 }
0x1071   : > { %9273 = vmatprep.mubr.msk.f32.mxu0 %vm962_vm5, %v11109_v17 }
0x1123   : > { %v9194_v9 = vpop.f32.mrb[30].mxu0 }
0x1124   : > { %v11186_v40 = vpop.f32.mrb[31].mxu0 }
0x1127   : > { %v9197_v41 = vpop.f32.mrb[92].mxu0 }
0x1128   : > { %v3213_v51 = vpop.f32.mrb[93].mxu0 }
0x1129   : > { %v3228_v51 = vadd.f32 %v11186_v40, %v10848_v27 }
0x112b   : > { %v9200_v39 = vpop.f32.mrb[94].mxu0 }
0x112c   : > { %v3221_v15 = vpop.f32.mrb[95].mxu0 }
0x1133   : > { %v3386_v60 = vpop.f32.mrb[96].mxu0 }
0x1134   : > { %v9231_v5 = vpop.f32.mrb[97].mxu0 }
0x1135   : > { %v3389_v42 = vpop.f32.mrb[98].mxu0 }
0x1136   : > { %v9451_v8 = vpack.c.bf16 %v3389_v42, %v3386_v60  ;;  %v9232_v47 = vpop.f32.mrb[99].mxu0  ;;  %v8078_v60 = vld [vmem:[%s12652_s3 + $0x9] ss:$0 sm:$0xff] }
0x1138   : > { %9453 = vmatprep.subr.msk.bf16.mxu0 %vm10485_vm6, %v9451_v8 }
0x1139   : > { %9456 = vmatpush3.bf16.xpose.msk.msra.mxu0 %vm10485_vm6, %v9451_v8 }
0x113b   : > { %v3394_v22 = vpop.f32.mrb[100].mxu0 }
0x113c   : > { %v9235_v17 = vpop.f32.mrb[101].mxu0 }
0x113d   : > { %v3397_v23 = vpop.f32.mrb[102].mxu0 }
0x113e   : > { %v9457_v48 = vpack.c.bf16 %v3397_v23, %v3394_v22  ;;  %v9236_v21 = vpop.f32.mrb[103].mxu0 }
0x1140   : > { %9459 = vmatprep.subr.msk.bf16.mxu0 %vm10485_vm6, %v9457_v48 }
0x1141   : > { %9462 = vmatpush3.bf16.xpose.msk.msra.mxu0 %vm10485_vm6, %v9457_v48 }
0x1143   : > { %v3402_v49 = vpop.f32.mrb[104].mxu0 }
0x1144   : > { %v9239_v52 = vpop.f32.mrb[105].mxu0 }
0x1145   : > { %v3405_v29 = vpop.f32.mrb[106].mxu0 }
0x1146   : > { %v9463_v53 = vpack.c.bf16 %v3405_v29, %v3402_v49  ;;  %v9240_v35 = vpop.f32.mrb[107].mxu0 }
0x1148   : > { %9465 = vmatprep.subr.msk.bf16.mxu0 %vm10485_vm6, %v9463_v53 }
0x1149   : > { %9468 = vmatpush3.bf16.xpose.msk.msra.mxu0 %vm10485_vm6, %v9463_v53 }
0x114a   : > { %9282 = vmatprep.subr.bf16.mxu0 %v10184_v10 }
0x1150   : > { %9274 = vmatmul.mubr.msk.f32.vlgmr.msra.gmra.mrb[108].mxu0 %vm962_vm5, %v11111_v46 }
0x1151   : > { %9276 = vmatprep.mubr.msk.f32.mxu0 %vm962_vm5, %v11113_v50  ;;  %9283 = vmatpush3.bf16.msra.mxu0 %v9600_v31 }
0x1152   : > { %9284 = vmatprep.subr.bf16.mxu0 %v10184_v10 }
0x1154   : > { %9277 = vmatmul.mubr.msk.f32.gmra.mrb[110].mxu0 %vm962_vm5, %v11115_v34 }
0x1155   : > { %9279 = vmatprep.mubr.msk.f32.mxu0 %vm962_vm5, %v11117_v62  ;;  %9285 = vmatpush3.bf16.msra.mxu0 %v9601_v54 }
0x1156   : > { %9319 = vmatprep.subr.bf16.mxu0 %v10184_v10 }
0x1158   : > { %9280 = vmatmul.mubr.msk.f32.gmra.mrb[112].mxu0 %vm962_vm5, %v11119_v56 }
0x1159   : > { %9286 = vmatprep.mubr.msk.bf16.mxu0 %vm10185_vm4, %v10184_v10 }
0x115c   : > { %9287 = vmatmul.mubr.msk.bf16.vlgmr.msra.gmra.mrb[116].mxu0 %vm962_vm5, %v3702_v4 }
0x115d   : > { %9290 = vmatprep.mubr.msk.bf16.mxu0 %vm10185_vm4, %v10184_v10 }
0x1164   : > { %9291 = vmatmul.mubr.msk.bf16.gmra.mrb[120].mxu0 %vm962_vm5, %v3703_v58 }
0x1165   : > { %9294 = vmatprep.mubr.msk.bf16.mxu0 %vm10185_vm4, %v10184_v10 }
0x116c   : > { %9295 = vmatmul.mubr.msk.bf16.gmra.mrb[124].mxu0 %vm962_vm5, %v3704_v11 }
0x116d   : > { %9327 = vmatprep.mubr.msk.bf16.mxu0 %vm10185_vm4, %v10184_v10 }
0x1223   : > { %v9275_v19 = vpop.f32.mrb[108].mxu0 }
0x1224   : > { %v3631_v46 = vmul.f32 0.17677669, %v9275_v19  ;;  %v3601_v50 = vpop.f32.mrb[109].mxu0 }
0x1225   : > { %v3630_v34 = vmul.f32 0.17677669, %v3601_v50 }
0x1226   : > { %v3639_v62 = vsel %vm1100_vm7, %v3631_v46, -inf }
0x1227   : > { %3640 = vmax.xlane.f32.xlu1 %v3639_v62  ;;  %v11240_v56 = vpop.f32.mrb[110].mxu0  ;;  %v3636_v59 = vsel %vm1100_vm7, %v3630_v34, -inf }
0x1228   : > { %3637 = vmax.xlane.f32.xlu0 %v3636_v59  ;;  %v3611_v2 = vpop.f32.mrb[111].mxu0  ;;  %v3633_v29 = vmul.f32 0.17677669, %v11240_v56 }
0x1229   : > { %v3632_v8 = vmul.f32 0.17677669, %v3611_v2 }
0x122a   : > { %v3645_v50 = vsel %vm1100_vm7, %v3633_v29, -inf }
0x122b   : > { %v11243_v4 = vpop.f32.mrb[112].mxu0  ;;  %v3642_v17 = vsel %vm1100_vm7, %v3632_v8, -inf }
0x122c   : > { %v3621_v7 = vpop.f32.mrb[113].mxu0  ;;  %v3635_v19 = vmul.f32 0.17677669, %v11243_v4  ;;  %v9602_v4 = vld [vmem:[%s12655_s6 + $0x40] sm:$0xff]  }
0x122d   : > { %v3634_v22 = vmul.f32 0.17677669, %v3621_v7  ;;  %9320 = vmatpush3.bf16.msra.mxu0 %v9602_v4  ;;  %v9603_v7 = vld [vmem:[%s12655_s6 + $0x48] sm:$0xff]  }
0x122e   : > { %9321 = vmatprep.subr.bf16.mxu0 %v10184_v10 }
0x122f   : > { %v3765_v6 = vpop.f32.mrb[116].mxu0  ;;  %v3648_v27 = vsel %vm1100_vm7, %v3634_v22, -inf }
0x1230   : > { %v9288_v58 = vpop.f32.mrb[117].mxu0 }
0x1231   : > { %v3768_v13 = vpop.f32.mrb[118].mxu0  ;;  %9322 = vmatpush3.bf16.msra.mxu0 %v9603_v7  ;;  %v9605_v58 = vld [vmem:[%s12655_s6 + $0x58] sm:$0xff]  }
0x1232   : > { %v9469_v30 = vpack.c.bf16 %v3768_v13, %v3765_v6  ;;  %v9289_v11 = vpop.f32.mrb[119].mxu0  ;;  %9323 = vmatprep.subr.bf16.mxu0 %v10184_v10  ;;  %v9604_v6 = vld [vmem:[%s12655_s6 + $0x50] sm:$0xff]  }
0x1234   : > { %9470 = vmatprep.subr.bf16.mxu1 %v9469_v30 }
0x1235   : > { %9472 = vmatpush3.bf16.msra.mxu1 %v9469_v30  ;;  %9324 = vmatpush3.bf16.msra.mxu0 %v9604_v6 }
0x1236   : > { %9325 = vmatprep.subr.bf16.mxu0 %v10184_v10 }
0x1237   : > { %v3773_v55 = vpop.f32.mrb[120].mxu0 }
0x1238   : > { %v9292_v45 = vpop.f32.mrb[121].mxu0 }
0x1239   : > { %v3776_v44 = vpop.f32.mrb[122].mxu0  ;;  %9326 = vmatpush3.bf16.msra.mxu0 %v9605_v58 }
0x123a   : > { %v9473_v61 = vpack.c.bf16 %v3776_v44, %v3773_v55  ;;  %v9293_v18 = vpop.f32.mrb[123].mxu0 }
0x123c   : > { %9474 = vmatprep.subr.bf16.mxu1 %v9473_v61 }
0x123d   : > { %9476 = vmatpush3.bf16.msra.mxu1 %v9473_v61 }
0x123f   : > { %v3781_v63 = vpop.f32.mrb[124].mxu0 }
0x1240   : > { %v9296_v57 = vpop.f32.mrb[125].mxu0 }
0x1241   : > { %v3784_v1 = vpop.f32.mrb[126].mxu0 }
0x1242   : > { %v9477_v3 = vpack.c.bf16 %v3784_v1, %v3781_v63  ;;  %v9297_v0 = vpop.f32.mrb[127].mxu0 }
0x1244   : > { %9479 = vmatprep.subr.msk.bf16.mxu1 %vm10565_vm10, %v9477_v3 }
0x1245   : > { %9482 = vmatpush3.bf16.msk.msra.mxu1 %vm10565_vm10, %v9477_v3  ;;  %v3906_v3 = vld [vmem:[%s12652_s3 + $0xa] sm:$0x1] }
0x1246   : > { %9331 = vmatprep.subr.bf16.mxu1 %v10184_v10 }
0x12b4   : > { %v3641_v12 = vpop.xlane.xlu1 %3640 }
0x12b5   : > { %v3655_v14 = vsub.f32 %v3631_v46, %v3641_v12  ;;  %v3638_v20 = vpop.xlane.xlu0 %3637  ;;  %v3907_v12 = vld [vmem:[%s12652_s3 + $0xb] sm:$0x1] }
0x12b6   : > { %v3654_v33 = vsub.f32 %v3630_v34, %v3638_v20  ;;  %v3651_v34 = vsel %vm1116_vm8, %v3635_v19, -inf }
0x12b7   : > { %v3662_v16 = vmul.f32 1.442695, %v3655_v14 }
0x12b8   : > { %v3660_v24 = vmul.f32 1.442695, %v3654_v33 }
0x12b9   : > { %10146 = vpow2.f32 %v3662_v16 }
0x12ba   : > { %10148 = vpow2.f32 %v3660_v24 }
0x12c3   : > { %v10147_v25 = vpop.eup %10146 }
0x12c4   : > { %v10149_v26 = vpop.eup %10148  ;;  %v3675_v28 = vsel %vm1100_vm7, %v10147_v25, 0.0 }
0x12c5   : > { %3676 = vadd.xlane.f32.xlu1 %v3675_v28  ;;  %v3672_v32 = vsel %vm1100_vm7, %v10149_v26, 0.0 }
0x12c6   : > { %3673 = vadd.xlane.f32.xlu0 %v3672_v32 }
0x1352   : > { %v3677_v43 = vpop.xlane.xlu1 %3676 }
0x1353   : > { %10150 = vrcp.f32 %v3677_v43  ;;  %v3674_v36 = vpop.xlane.xlu0 %3673  ;;  %v9606_v43 = vld [vmem:[%s12655_s6 + $0x60] sm:$0xff]  }
0x1354   : > { %10152 = vrcp.f32 %v3674_v36  ;;  %v9607_v36 = vld [vmem:[%s12655_s6 + $0x68] sm:$0xff]  }
0x135d   : > { %v10151_v37 = vpop.eup %10150 }
0x135e   : > { %v10153_v38 = vpop.eup %10152  ;;  %v3697_v41 = vmul.f32 %v10151_v37, %v10147_v25  ;;  %v9608_v37 = vld [vmem:[%s12655_s6 + $0x70] sm:$0xff]  }
0x135f   : > { %v3696_v9 = vmul.f32 %v10153_v38, %v10149_v26  ;;  %v9609_v38 = vld [vmem:[%s12655_s6 + $0x78] sm:$0xff]  }
0x1361   : > { %9310 = vmatprep.mubr.msk.f32.mxu1 %vm1100_vm7, %v3696_v9 }
0x1362   : > { %9311 = vmatmul.mubr.msk.f32.vlgmr.msra.gmra.mrb[132].mxu1 %vm1100_vm7, %v3697_v41 }
0x1363   : > { %9332 = vmatpush3.bf16.msra.mxu1 %v9606_v43  ;;  %v4126_v43 = vld [vmem:[%s12656_s7 + $0x88] sm:$0xff] }
0x1364   : > { %9333 = vmatprep.subr.bf16.mxu1 %v10184_v10 }
0x1367   : > { %9334 = vmatpush3.bf16.msra.mxu1 %v9607_v36 }
0x1368   : > { %9335 = vmatprep.subr.bf16.mxu1 %v10184_v10 }
0x136b   : > { %9336 = vmatpush3.bf16.msra.mxu1 %v9608_v37  ;;  %v4130_v37 = vld [vmem:[%s12656_s7 + $0xa8] sm:$0xff] }
0x136c   : > { %9337 = vmatprep.subr.bf16.mxu1 %v10184_v10 }
0x136f   : > { %9338 = vmatpush3.bf16.msra.mxu1 %v9609_v38 }
0x1435   : > { %v9312_v39 = vpop.f32.mrb[132].mxu1 }
0x1436   : > { %v3875_v15 = vpop.f32.mrb[133].mxu1 }
0x1437   : > { %v3899_v5 = vadd.f32 %v3875_v15, %v3228_v51 }
0x1439   : > { %v11259_v42 = vadd.f32 %v8078_v60, %v3899_v5 }
0x143b   : > { %v3909_v47 = vsel %vm3908_vm11, %v11259_v42, 0.0 }
0x143c   : > { %3910 = vadd.xlane.f32.xlu0 %v3909_v47 }
0x1440   : > { %3643 = vmax.xlane.f32.xlu0 %v3642_v17 }
0x1444   : > { %3649 = vmax.xlane.f32.xlu0 %v3648_v27 }
0x14c9   : > { %v3911_v40 = vpop.xlane.xlu0 %3910 }
0x14ca   : > { %v3912_v23 = vmul.f32 0.015625, %v3911_v40 }
0x14cc   : > { %v3913_v48 = vsub.f32 %v11259_v42, %v3912_v23 }
0x14cd   : > { %v3644_v21 = vpop.xlane.xlu0 %3643 }
0x14ce   : > { %v3656_v49 = vsub.f32 %v3632_v8, %v3644_v21  ;;  %v3914_v52 = vmul.f32 %v3913_v48, %v3913_v48 }
0x14d0   : > { %v3664_v53 = vmul.f32 1.442695, %v3656_v49  ;;  %v3915_v35 = vsel %vm3908_vm11, %v3914_v52, 0.0 }
0x14d1   : > { %3916 = vadd.xlane.f32.xlu1 %v3915_v35  ;;  %v3650_v31 = vpop.xlane.xlu0 %3649 }
0x14d2   : > { %10154 = vpow2.f32 %v3664_v53  ;;  %v3658_v54 = vsub.f32 %v3634_v22, %v3650_v31  ;;  %v3934_v22 = vld [vmem:[%s12652_s3 + $0xc] sm:$0x1] }
0x14d4   : > { %v3668_v46 = vmul.f32 1.442695, %v3658_v54 }
0x14d5   : > { %3646 = vmax.xlane.f32.xlu1 %v3645_v50 }
0x14d6   : > { %10156 = vpow2.f32 %v3668_v46 }
0x14d9   : > { %3652 = vmax.xlane.f32.xlu1 %v3651_v34 }
0x14dc   : > { %v10155_v62 = vpop.eup %10154 }
0x14dd   : > { %v3678_v56 = vsel %vm1100_vm7, %v10155_v62, 0.0 }
0x14de   : > { %3679 = vadd.xlane.f32.xlu0 %v3678_v56 }
0x14e0   : > { %v11272_v59 = vpop.eup %10156 }
0x14e1   : > { %v3684_v2 = vsel %vm1100_vm7, %v11272_v59, 0.0 }
0x14e2   : > { %3685 = vadd.xlane.f32.xlu0 %v3684_v2 }
0x155e   : > { %v3917_v13 = vpop.xlane.xlu1 %3916 }
0x155f   : > { %v3918_v30 = vmul.f32 0.015625, %v3917_v13 }
0x1561   : > { %v3919_v11 = vadd.f32 1e-05, %v3918_v30 }
0x1562   : > { %v3647_v55 = vpop.xlane.xlu1 %3646 }
0x1563   : > { %10158 = vrsqrt.f32 %v3919_v11  ;;  %v3657_v45 = vsub.f32 %v3633_v29, %v3647_v55 }
0x1565   : > { %v3666_v44 = vmul.f32 1.442695, %v3657_v45 }
0x1566   : > { %v3653_v61 = vpop.xlane.xlu1 %3652 }
0x1567   : > { %10160 = vpow2.f32 %v3666_v44  ;;  %v3659_v18 = vsub.f32 %v3635_v19, %v3653_v61  ;;  %v4113_v61 = vld [vmem:[%s12656_s7 + $0x20] sm:$0xff] }
0x1569   : > { %v3670_v63 = vmul.f32 1.442695, %v3659_v18  ;;  %v4110_v18 = vld [vmem:[%s12656_s7 + $0x8] sm:$0xff] }
0x156b   : > { %10162 = vpow2.f32 %v3670_v63  ;;  %v3680_v57 = vpop.xlane.xlu0 %3679 }
0x156c   : > { %10164 = vrcp.f32 %v3680_v57  ;;  %v4114_v57 = vld [vmem:[%s12656_s7 + $0x28] sm:$0xff] }
0x156d   : > { %v10159_v1 = vpop.eup %10158 }
0x156e   : > { %v3921_v0 = vmul.f32 %v10159_v1, %v3913_v48 }
0x156f   : > { %v3686_v9 = vpop.xlane.xlu0 %3685 }
0x1570   : > { %v3922_v14 = vmul.f32 %v3921_v0, %v3906_v3  ;;  %10166 = vrcp.f32 %v3686_v9  ;;  %v8107_v3 = vcombine.low %v4110_v18, %v4114_v57  ;;  %v8108_v0 = vcombine.high %v4110_v18, %v4114_v57  ;;  %v4139_v18 = vld [vmem:[%s12656_s7 + $0xf0] sm:$0xff]  ;;  %v4140_v57 = vld [vmem:[%s12656_s7 + $0xf8] sm:$0xff] }
0x1571   : > { %v10161_v20 = vpop.eup %10160  ;;  %v8123_v9 = vcombine.low %v4126_v43, %v4130_v37 }
0x1572   : > { %v3923_v33 = vadd.f32 %v3922_v14, %v3907_v12  ;;  %v3681_v16 = vsel %vm1100_vm7, %v10161_v20, 0.0  ;;  %4387 = vmatprep.subr.bf16.mxu1 %v8108_v0  ;;  %v4117_v12 = vld [vmem:[%s12656_s7 + $0x40] sm:$0xff] }
0x1573   : > { %3682 = vadd.xlane.f32.xlu1 %v3681_v16  ;;  %v4121_v14 = vld [vmem:[%s12656_s7 + $0x60] sm:$0xff]  ;;  %v4122_v16 = vld [vmem:[%s12656_s7 + $0x68] sm:$0xff] }
0x1574   : > { %v3924_v24 = vpack.c.bf16 %v3923_v33, %v3923_v33  ;;  %v8114_v33 = vcombine.high %v4117_v12, %v4121_v14 }
0x1575   : > { %v10163_v25 = vpop.eup %10162 }
0x1576   : > { %v10165_v26 = vpop.eup %10164  ;;  %9328 = vmatmul.mubr.msk.bf16.vlgmr.msra.gmra.mrb[128].mxu0 %vm580_vm2, %v3924_v24  ;;  %v3687_v28 = vsel %vm1116_vm8, %v10163_v25, 0.0  ;;  %v8113_v24 = vcombine.low %v4117_v12, %v4121_v14 }
0x1577   : > { %3688 = vadd.xlane.f32.xlu1 %v3687_v28  ;;  %v3698_v32 = vmul.f32 %v10165_v26, %v10155_v62  ;;  %v4125_v28 = vld [vmem:[%s12656_s7 + $0x80] sm:$0xff] }
0x1579   : > { %9313 = vmatprep.mubr.msk.f32.mxu1 %vm1100_vm7, %v3698_v32  ;;  %v4129_v32 = vld [vmem:[%s12656_s7 + $0xa0] sm:$0xff] }
0x157a   : > { %v10167_v39 = vpop.eup %10166  ;;  %v8122_v36 = vcombine.high %v4125_v28, %v4129_v32  ;;  %v8121_v38 = vcombine.low %v4125_v28, %v4129_v32  ;;  %v9621_v28 = vld [vmem:[%s12657_s8 + $0x2c] ss:$16 sps:$4 sm:$0xff]   ;;  %v9616_v32 = vld [vmem:[%s12657_s8 + $0x20] ss:$16 sps:$4 sm:$0xff]  }
0x157b   : > { %v3700_v5 = vmul.f32 %v10167_v39, %v11272_v59  ;;  %v4089_v59 = vld [vmem:[%s12652_s3 + $0xd] sm:$0x1]  ;;  %v4137_v39 = vld [vmem:[%s12656_s7 + $0xe0] sm:$0xff] }
0x1600   : > { %v3683_v41 = vpop.xlane.xlu1 %3682 }
0x1601   : > { %10168 = vrcp.f32 %v3683_v41  ;;  %v8124_v41 = vcombine.high %v4126_v43, %v4130_v37  ;;  %v9619_v43 = vld [vmem:[%s12657_s8 + $0x28] ss:$16 sps:$4 sm:$0xff]   ;;  %v9627_v37 = vld [vmem:[%s12657_s8 + $0x4c] ss:$16 sps:$4 sm:$0xff]  }
0x1604   : > { %v3689_v51 = vpop.xlane.xlu1 %3688 }
0x1605   : > { %10170 = vrcp.f32 %v3689_v51  ;;  %v4133_v51 = vld [vmem:[%s12656_s7 + $0xc0] sm:$0xff] }
0x160b   : > { %v10169_v15 = vpop.eup %10168 }
0x160c   : > { %v3699_v60 = vmul.f32 %v10169_v15, %v10161_v20  ;;  %v4118_v20 = vld [vmem:[%s12656_s7 + $0x48] sm:$0xff] }
0x160d   : > { %v8116_v26 = vcombine.high %v4118_v20, %v4122_v16  ;;  %v4134_v15 = vld [vmem:[%s12656_s7 + $0xc8] sm:$0xff] }
0x160e   : > { %9314 = vmatmul.mubr.msk.f32.gmra.mrb[134].mxu1 %vm1100_vm7, %v3699_v60  ;;  %v8130_v60 = vcombine.high %v4133_v51, %v4137_v39 }
0x160f   : > { %v10171_v8 = vpop.eup %10170  ;;  %9316 = vmatprep.mubr.msk.f32.mxu1 %vm1100_vm7, %v3700_v5  ;;  %v4138_v5 = vld [vmem:[%s12656_s7 + $0xe8] sm:$0xff] }
0x1610   : > { %v3701_v47 = vmul.f32 %v10171_v8, %v10163_v25  ;;  %v8115_v25 = vcombine.low %v4118_v20, %v4122_v16  ;;  %v8129_v8 = vcombine.low %v4133_v51, %v4137_v39  ;;  %v9615_v16 = vld [vmem:[%s12657_s8 + $0xc] ss:$16 sps:$4 sm:$0xff]   ;;  %v9628_v39 = vld [vmem:[%s12657_s8 + $0x60] ss:$16 sps:$4 sm:$0xff]  }
0x1611   : > { %v9633_v51 = vld [vmem:[%s12657_s8 + $0x6c] ss:$16 sps:$4 sm:$0xff]  }
0x1612   : > { %9317 = vmatmul.mubr.msk.f32.gmra.mrb[136].mxu1 %vm1100_vm7, %v3701_v47  ;;  %v8131_v47 = vcombine.low %v4134_v15, %v4138_v5 }
0x1613   : > { %9339 = vmatprep.mubr.msk.bf16.mxu1 %vm10185_vm4, %v10184_v10 }
0x1649   : > { %v3996_v17 = vpop.f32.mrb[128].mxu0 }
0x164a   : > { %v3997_v27 = vadd.f32 %v3996_v17, %v3934_v22  ;;  %v9329_v40 = vpop.f32.mrb[129].mxu0  ;;  %v8132_v22 = vcombine.high %v4134_v15, %v4138_v5  ;;  %v4111_v17 = vld [vmem:[%s12656_s7 + $0x10] sm:$0xff]  ;;  %v9631_v15 = vld [vmem:[%s12657_s8 + $0x68] ss:$16 sps:$4 sm:$0xff]   ;;  %v9639_v5 = vld [vmem:[%s12657_s8 + $0x8c] ss:$16 sps:$4 sm:$0xff]  }
0x164b   : > { %v3999_v23 = vpop.f32.mrb[130].mxu0  ;;  %v4112_v40 = vld [vmem:[%s12656_s7 + $0x18] sm:$0xff] }
0x164c   : > { %v4003_v48 = vmul.f32 0.044715, %v3997_v27  ;;  %v9330_v21 = vpop.f32.mrb[131].mxu0  ;;  %v4002_v31 = vmul.f32 0.5, %v3997_v27  ;;  %v10187_v23 = vmov 0  }
0x164d   : > { %4378 = vmatprep.mubr.bf16.mxu0 %v10187_v23 }
0x164e   : > { %v4004_v49 = vmul.f32 %v4003_v48, %v3997_v27 }
0x1650   : > { %v4005_v52 = vmul.f32 %v4004_v49, %v3997_v27  ;;  %v4116_v49 = vld [vmem:[%s12656_s7 + $0x38] sm:$0xff] }
0x1652   : > { %v4006_v29 = vadd.f32 %v4005_v52, %v3997_v27  ;;  %v4115_v27 = vld [vmem:[%s12656_s7 + $0x30] sm:$0xff]  ;;  %v8111_v52 = vcombine.low %v4112_v40, %v4116_v49 }
0x1653   : > { %v8109_v48 = vcombine.low %v4111_v17, %v4115_v27  ;;  %v8110_v21 = vcombine.high %v4111_v17, %v4115_v27  ;;  %v9645_v17 = vld [vmem:[%s12657_s8 + $0xac] ss:$16 sps:$4 sm:$0xff]   ;;  %v9640_v27 = vld [vmem:[%s12657_s8 + $0xa0] ss:$16 sps:$4 sm:$0xff]  }
0x1654   : > { %v4007_v53 = vmul.f32 0.7978846, %v4006_v29  ;;  %v8112_v29 = vcombine.high %v4112_v40, %v4116_v49  ;;  %v9643_v40 = vld [vmem:[%s12657_s8 + $0xa8] ss:$16 sps:$4 sm:$0xff]   ;;  %v9646_v49 = vld [vmem:[%s12657_s8 + $0xc0] ss:$16 sps:$4 sm:$0xff]  }
0x1656   : > { %10172 = vtanh.f32 %v4007_v53 }
0x1660   : > { %v10173_v35 = vpop.eup %10172 }
0x1661   : > { %v4009_v54 = vadd.f32 1.0, %v10173_v35 }
0x1663   : > { %v4010_v19 = vmul.f32 %v4009_v54, %v4002_v31 }
0x1665   : > { %v4011_v10 = vpack.c.bf16 %v4010_v19, %v4010_v19  ;;  %v4091_v19 = vld [vmem:[%s12652_s3 + $0xe] sm:$0x1] }
0x1667   : > { %9340 = vmatmul.mubr.msk.bf16.vlgmr.msra.gmra.mrb[140].mxu1 %vm580_vm2, %v4011_v10 }
0x1668   : > { %4388 = vmatpush1.bf16.msra.mxu1 %v8107_v3  ;;  %4419 = vmatprep.mubr.bf16.mxu1 %v10187_v23 }
0x1669   : > { %4389 = vmatprep.subr.bf16.mxu1 %v8116_v26  ;;  %v9618_v26 = vld [vmem:[%s12657_s8 + $0x24] ss:$16 sps:$4 sm:$0xff]  }
0x166c   : > { %4390 = vmatpush1.bf16.msra.mxu1 %v8115_v25  ;;  %v9613_v25 = vld [vmem:[%s12657_s8 + $0x8] ss:$16 sps:$4 sm:$0xff]  }
0x166d   : > { %4391 = vmatprep.subr.bf16.mxu1 %v8124_v41  ;;  %v9630_v41 = vld [vmem:[%s12657_s8 + $0x64] ss:$16 sps:$4 sm:$0xff]  }
0x1670   : > { %4392 = vmatpush1.bf16.msra.mxu1 %v8123_v9  ;;  %v9625_v9 = vld [vmem:[%s12657_s8 + $0x48] ss:$16 sps:$4 sm:$0xff]  }
0x1671   : > { %4393 = vmatprep.subr.bf16.mxu1 %v8132_v22  ;;  %v9642_v22 = vld [vmem:[%s12657_s8 + $0xa4] ss:$16 sps:$4 sm:$0xff]  }
0x1674   : > { %4394 = vmatpush1.bf16.msra.mxu1 %v8131_v47  ;;  %v9637_v47 = vld [vmem:[%s12657_s8 + $0x88] ss:$16 sps:$4 sm:$0xff]  }
0x1675   : > { %4469 = vmatprep.subr.bf16.mxu1 %v8112_v29  ;;  %v9654_v29 = vld [vmem:[%s12657_s8 + $0xe4] ss:$16 sps:$4 sm:$0xff]  }
0x16e1   : > { %v9315_v46 = vpop.f32.mrb[134].mxu1 }
0x16e2   : > { %v3884_v50 = vpop.f32.mrb[135].mxu1  ;;  %v4092_v46 = vld [vmem:[%s12652_s3 + $0xf] sm:$0x1] }
0x16e5   : > { %v9318_v34 = vpop.f32.mrb[136].mxu1 }
0x16e6   : > { %v3892_v62 = vpop.f32.mrb[137].mxu1  ;;  %v4119_v34 = vld [vmem:[%s12656_s7 + $0x50] sm:$0xff] }
0x16e7   : > { %v4123_v62 = vld [vmem:[%s12656_s7 + $0x70] sm:$0xff] }
0x173a   : > { %v4082_v56 = vpop.f32.mrb[140].mxu1 }
0x173b   : > { %v4088_v2 = vadd.f32 %v4082_v56, %v11259_v42  ;;  %v9341_v4 = vpop.f32.mrb[141].mxu1  ;;  %v4109_v42 = vld [vmem:[%s12656_s7] sm:$0xff]  ;;  %v4120_v56 = vld [vmem:[%s12656_s7 + $0x58] sm:$0xff] }
0x173c   : > { %v4085_v7 = vpop.f32.mrb[142].mxu1  ;;  %v8106_v63 = vcombine.high %v4109_v42, %v4113_v61  ;;  %v8105_v1 = vcombine.low %v4109_v42, %v4113_v61  ;;  %v4135_v61 = vld [vmem:[%s12656_s7 + $0xd0] sm:$0xff] }
0x173d   : > { %v9342_v6 = vpop.f32.mrb[143].mxu1  ;;  %v4090_v58 = vadd.f32 %v4089_v59, %v4088_v2  ;;  %v4124_v59 = vld [vmem:[%s12656_s7 + $0x78] sm:$0xff]  ;;  %v8118_v7 = vcombine.high %v4119_v34, %v4123_v62  ;;  %v8134_v0 = vcombine.high %v4135_v61, %v4139_v18  ;;  %v8133_v14 = vcombine.low %v4135_v61, %v4139_v18  ;;  %v9688_v18 = vld [vmem:[%s12657_s8 + $0x1a0] ss:$16 sps:$4 sm:$0xff]  }
0x173e   : > { %4346 = vmatprep.subr.bf16.mxu0 %v8106_v63  ;;  %v8120_v6 = vcombine.high %v4120_v56, %v4124_v59  ;;  %v4136_v63 = vld [vmem:[%s12656_s7 + $0xd8] sm:$0xff] }
0x173f   : > { %v4093_v13 = vsel %vm3908_vm11, %v4090_v58, 0.0  ;;  %4347 = vmatpush1.bf16.msra.mxu0 %v8105_v1  ;;  %v8136_v12 = vcombine.high %v4136_v63, %v4140_v57  ;;  %v8135_v20 = vcombine.low %v4136_v63, %v4140_v57  ;;  %v9693_v61 = vld [vmem:[%s12657_s8 + $0x1ac] ss:$16 sps:$4 sm:$0xff]   ;;  %v9691_v63 = vld [vmem:[%s12657_s8 + $0x1a8] ss:$16 sps:$4 sm:$0xff]  }
0x1740   : > { %4094 = vadd.xlane.f32.xlu0 %v4093_v13  ;;  %4348 = vmatprep.subr.bf16.mxu0 %v8114_v33  ;;  %v4131_v13 = vld [vmem:[%s12656_s7 + $0xb0] sm:$0xff] }
0x1741   : > { %v9612_v33 = vld [vmem:[%s12657_s8 + $0x4] ss:$16 sps:$4 sm:$0xff]  }
0x1742   : > { %v9696_v57 = vld [vmem:[%s12657_s8 + $0x1c4] ss:$16 sps:$4 sm:$0xff]  }
0x1743   : > { %4349 = vmatpush1.bf16.msra.mxu0 %v8113_v24  ;;  %v9610_v24 = vld [vmem:[%s12657_s8] ss:$16 sps:$4 sm:$0xff]  }
0x1744   : > { %4350 = vmatprep.subr.bf16.mxu0 %v8122_v36  ;;  %v9624_v36 = vld [vmem:[%s12657_s8 + $0x44] ss:$16 sps:$4 sm:$0xff]  }
0x1747   : > { %4351 = vmatpush1.bf16.msra.mxu0 %v8121_v38  ;;  %v9622_v38 = vld [vmem:[%s12657_s8 + $0x40] ss:$16 sps:$4 sm:$0xff]  }
0x1748   : > { %4352 = vmatprep.subr.bf16.mxu0 %v8130_v60  ;;  %v9636_v60 = vld [vmem:[%s12657_s8 + $0x84] ss:$16 sps:$4 sm:$0xff]  }
0x174b   : > { %4353 = vmatpush1.bf16.msra.mxu0 %v8129_v8  ;;  %v9634_v8 = vld [vmem:[%s12657_s8 + $0x80] ss:$16 sps:$4 sm:$0xff]  }
0x174c   : > { %4428 = vmatprep.subr.bf16.mxu0 %v8110_v21  ;;  %v9651_v21 = vld [vmem:[%s12657_s8 + $0xcc] ss:$16 sps:$4 sm:$0xff]  }
0x17cd   : > { %v4095_v30 = vpop.xlane.xlu0 %4094 }
0x17ce   : > { %v4096_v11 = vmul.f32 0.015625, %v4095_v30  ;;  %v4128_v30 = vld [vmem:[%s12656_s7 + $0x98] sm:$0xff] }
0x17d0   : > { %v11331_v55 = vsub.f32 %v4090_v58, %v4096_v11  ;;  %v4127_v58 = vld [vmem:[%s12656_s7 + $0x90] sm:$0xff]  ;;  %v4132_v11 = vld [vmem:[%s12656_s7 + $0xb8] sm:$0xff] }
0x17d1   : > { %v8128_v42 = vcombine.high %v4128_v30, %v4132_v11  ;;  %v8125_v1 = vcombine.low %v4127_v58, %v4131_v13  ;;  %v8127_v3 = vcombine.low %v4128_v30, %v4132_v11  ;;  %v9679_v30 = vld [vmem:[%s12657_s8 + $0x168] ss:$16 sps:$4 sm:$0xff]   ;;  %v9684_v11 = vld [vmem:[%s12657_s8 + $0x184] ss:$16 sps:$4 sm:$0xff]  }
0x17d2   : > { %v4098_v45 = vmul.f32 %v11331_v55, %v11331_v55 }
0x17d4   : > { %v4099_v44 = vsel %vm3908_vm11, %v4098_v45, 0.0  ;;  %v8119_v45 = vcombine.low %v4120_v56, %v4124_v59  ;;  %v9667_v56 = vld [vmem:[%s12657_s8 + $0x128] ss:$16 sps:$4 sm:$0xff]   ;;  %v9672_v59 = vld [vmem:[%s12657_s8 + $0x144] ss:$16 sps:$4 sm:$0xff]  }
0x17d5   : > { %4100 = vadd.xlane.f32.xlu1 %v4099_v44  ;;  %v8126_v44 = vcombine.high %v4127_v58, %v4131_v13  ;;  %v9681_v58 = vld [vmem:[%s12657_s8 + $0x16c] ss:$16 sps:$4 sm:$0xff]   ;;  %v9676_v13 = vld [vmem:[%s12657_s8 + $0x160] ss:$16 sps:$4 sm:$0xff]  }
0x1862   : > { %v4101_v53 = vpop.xlane.xlu1 %4100 }
0x1863   : > { %v4102_v35 = vmul.f32 0.015625, %v4101_v53  ;;  %v9657_v53 = vld [vmem:[%s12657_s8 + $0xec] ss:$16 sps:$4 sm:$0xff]  }
0x1865   : > { %v4103_v31 = vadd.f32 1e-05, %v4102_v35  ;;  %v9652_v35 = vld [vmem:[%s12657_s8 + $0xe0] ss:$16 sps:$4 sm:$0xff]  }
0x1867   : > { %10174 = vrsqrt.f32 %v4103_v31  ;;  %v9655_v31 = vld [vmem:[%s12657_s8 + $0xe8] ss:$16 sps:$4 sm:$0xff]  }
0x1871   : > { %v10175_v54 = vpop.eup %10174 }
0x1872   : > { %v4105_v10 = vmul.f32 %v10175_v54, %v11331_v55  ;;  %v8117_v55 = vcombine.low %v4119_v34, %v4123_v62  ;;  %v9660_v54 = vld [vmem:[%s12657_s8 + $0x104] ss:$16 sps:$4 sm:$0xff]   ;;  %v9669_v34 = vld [vmem:[%s12657_s8 + $0x12c] ss:$16 sps:$4 sm:$0xff]   ;;  %v9664_v62 = vld [vmem:[%s12657_s8 + $0x120] ss:$16 sps:$4 sm:$0xff]  }
0x1874   : > { %v4106_v50 = vmul.f32 %v4105_v10, %v4091_v19  ;;  %v9663_v19 = vld [vmem:[%s12657_s8 + $0x10c] ss:$16 sps:$4 sm:$0xff]   ;;  %v9658_v10 = vld [vmem:[%s12657_s8 + $0x100] ss:$16 sps:$4 sm:$0xff]  }
0x1876   : > { %v4107_v2 = vadd.f32 %v4106_v50, %v4092_v46  ;;  %v9661_v46 = vld [vmem:[%s12657_s8 + $0x108] ss:$16 sps:$4 sm:$0xff]   ;;  %v9666_v50 = vld [vmem:[%s12657_s8 + $0x124] ss:$16 sps:$4 sm:$0xff]  }
0x1878   : > { %v4108_v4 = vpack.c.bf16 %v4107_v2, %v4107_v2  ;;  %v9675_v2 = vld [vmem:[%s12657_s8 + $0x14c] ss:$16 sps:$4 sm:$0xff]  }
0x187a   : > { %8137 = vmatmul.mubr.msk.bf16.vlgmr.msra.gmra.mrb[132].mxu0 %vm580_vm2, %v4108_v4  ;;  %8138 = vmatmul.mubr.msk.bf16.vlgmr.msra.gmra.mrb[144].mxu1 %vm580_vm2, %v4108_v4 }
0x187b   : > { %4429 = vmatpush1.bf16.msra.mxu0 %v8109_v48  ;;  %4470 = vmatpush1.bf16.msra.mxu1 %v8111_v52  ;;  %v9648_v48 = vld [vmem:[%s12657_s8 + $0xc4] ss:$16 sps:$4 sm:$0xff]   ;;  %v9649_v52 = vld [vmem:[%s12657_s8 + $0xc8] ss:$16 sps:$4 sm:$0xff]  }
0x187c   : > { %4430 = vmatprep.subr.bf16.mxu0 %v8118_v7  ;;  %4471 = vmatprep.subr.bf16.mxu1 %v8120_v6  ;;  %v9673_v7 = vld [vmem:[%s12657_s8 + $0x148] ss:$16 sps:$4 sm:$0xff]   ;;  %v9678_v6 = vld [vmem:[%s12657_s8 + $0x164] ss:$16 sps:$4 sm:$0xff]  }
0x187d   : > { %4460 = vmatprep.mubr.bf16.mxu0 %v10187_v23  ;;  %4501 = vmatprep.mubr.bf16.mxu1 %v10187_v23 }
0x187f   : > { %4431 = vmatpush1.bf16.msra.mxu0 %v8117_v55  ;;  %4472 = vmatpush1.bf16.msra.mxu1 %v8119_v45  ;;  %v9687_v55 = vld [vmem:[%s12657_s8 + $0x18c] ss:$16 sps:$4 sm:$0xff]   ;;  %v9682_v45 = vld [vmem:[%s12657_s8 + $0x180] ss:$16 sps:$4 sm:$0xff]  }
0x1880   : > { %4432 = vmatprep.subr.bf16.mxu0 %v8126_v44  ;;  %4473 = vmatprep.subr.bf16.mxu1 %v8128_v42  ;;  %v9685_v44 = vld [vmem:[%s12657_s8 + $0x188] ss:$16 sps:$4 sm:$0xff]   ;;  %v9690_v42 = vld [vmem:[%s12657_s8 + $0x1a4] ss:$16 sps:$4 sm:$0xff]  }
0x1883   : > { %4433 = vmatpush1.bf16.msra.mxu0 %v8125_v1  ;;  %4474 = vmatpush1.bf16.msra.mxu1 %v8127_v3  ;;  %v9699_v1 = vld [vmem:[%s12657_s8 + $0x1cc] ss:$16 sps:$4 sm:$0xff]   ;;  %v9694_v3 = vld [vmem:[%s12657_s8 + $0x1c0] ss:$16 sps:$4 sm:$0xff]  }
0x1884   : > { %4434 = vmatprep.subr.bf16.mxu0 %v8134_v0  ;;  %4475 = vmatprep.subr.bf16.mxu1 %v8136_v12  ;;  %v9697_v0 = vld [vmem:[%s12657_s8 + $0x1c8] ss:$16 sps:$4 sm:$0xff]   ;;  %v9702_v12 = vld [vmem:[%s12657_s8 + $0x1e4] ss:$16 sps:$4 sm:$0xff]  }
0x1887   : > { %4435 = vmatpush1.bf16.msra.mxu0 %v8133_v14  ;;  %4476 = vmatpush1.bf16.msra.mxu1 %v8135_v20  ;;  %v9705_v14 = vld [vmem:[%s12657_s8 + $0x1ec] ss:$16 sps:$4 sm:$0xff]   ;;  %v9700_v20 = vld [vmem:[%s12657_s8 + $0x1e0] ss:$16 sps:$4 sm:$0xff]  }
0x1888   : > { %6092 = vmatprep.subr.bf16.mxu0 %v9612_v33  ;;  %6256 = vmatprep.subr.bf16.mxu1 %v9615_v16  ;;  %v9703_v33 = vld [vmem:[%s12657_s8 + $0x1e8] ss:$16 sps:$4 sm:$0xff]   ;;  %v9708_v16 = vld [vmem:[%s12657_s8 + $0x204] ss:$16 sps:$4 sm:$0xff]  }
0x188a   : > { %8139 = vmatmul.mubr.msk.bf16.vlgmr.msra.gmra.mrb[136].mxu0 %vm580_vm2, %v4108_v4  ;;  %8140 = vmatmul.mubr.msk.bf16.vlgmr.msra.gmra.mrb[148].mxu1 %vm580_vm2, %v4108_v4  ;;  %v9670_v4 = vld [vmem:[%s12657_s8 + $0x140] ss:$16 sps:$4 sm:$0xff]  }
0x188b   : > { %6093 = vmatpush1.bf16.msra.mxu0 %v9610_v24  ;;  %6257 = vmatpush1.bf16.msra.mxu1 %v9613_v25  ;;  %v9711_v24 = vld [vmem:[%s12657_s8 + $0x20c] ss:$16 sps:$4 sm:$0xff]   ;;  %v4303_v25 = vlaneseq }
0x188c   : > { %6094 = vmatprep.subr.bf16.mxu0 %v9618_v26  ;;  %6258 = vmatprep.subr.bf16.mxu1 %v9621_v28 }
0x188d   : > { %v11645_v26 = vshrl.u32 %v4303_v25, 7  ;;  %v9750_v25 = vld [vmem:[%s12657_s8 + $0x2e4] ss:$16 sps:$4 sm:$0xff]  }
0x188f   : > { %6095 = vmatpush1.bf16.msra.mxu0 %v9616_v32  ;;  %6259 = vmatpush1.bf16.msra.mxu1 %v9619_v43  ;;  %v11648_v28 = vsub.s32 0, %v11645_v26  ;;  %v11653_v32 = vld [vmem:[%s12660_s11] sm:$0xff]  ;;  %v11656_v43 = vsub.s32 1, %v11645_v26 }
0x1890   : > { %6096 = vmatprep.subr.bf16.mxu0 %v9624_v36  ;;  %6260 = vmatprep.subr.bf16.mxu1 %v9627_v37  ;;  %v11659_v36 = vsub.s32 3, %v11645_v26 }
0x1891   : > { %v4306_v37 = vrot.slane %v11653_v32, %v11648_v28 }
0x1893   : > { %6097 = vmatpush1.bf16.msra.mxu0 %v9622_v38  ;;  %6261 = vmatpush1.bf16.msra.mxu1 %v9625_v9  ;;  %v4310_v38 = vrot.slane %v11653_v32, %v11656_v43  ;;  %v4318_v9 = vrot.slane %v11653_v32, %v11659_v36 }
0x1894   : > { %6098 = vmatprep.subr.bf16.mxu0 %v9630_v41  ;;  %6262 = vmatprep.subr.bf16.mxu1 %v9633_v51 }
0x1897   : > { %6099 = vmatpush1.bf16.msra.mxu0 %v9628_v39  ;;  %6263 = vmatpush1.bf16.msra.mxu1 %v9631_v15 }
0x1898   : > { %6100 = vmatprep.subr.bf16.mxu0 %v9636_v60  ;;  %6264 = vmatprep.subr.bf16.mxu1 %v9639_v5 }
0x189b   : > { %6101 = vmatpush1.bf16.msra.mxu0 %v9634_v8  ;;  %6265 = vmatpush1.bf16.msra.mxu1 %v9637_v47 }
0x189c   : > { %6102 = vmatprep.subr.bf16.mxu0 %v9642_v22  ;;  %6266 = vmatprep.subr.bf16.mxu1 %v9645_v17 }
0x189f   : > { %6103 = vmatpush1.bf16.msra.mxu0 %v9640_v27  ;;  %6267 = vmatpush1.bf16.msra.mxu1 %v9643_v40 }
0x18a0   : > { %6104 = vmatprep.subr.bf16.mxu0 %v9648_v48  ;;  %6268 = vmatprep.subr.bf16.mxu1 %v9651_v21 }
0x18a3   : > { %6105 = vmatpush1.bf16.msra.mxu0 %v9646_v49  ;;  %6269 = vmatpush1.bf16.msra.mxu1 %v9649_v52 }
0x18a4   : > { %6106 = vmatprep.subr.bf16.mxu0 %v9654_v29  ;;  %6270 = vmatprep.subr.bf16.mxu1 %v9657_v53 }
0x18a7   : > { %6107 = vmatpush1.bf16.msra.mxu0 %v9652_v35  ;;  %6271 = vmatpush1.bf16.msra.mxu1 %v9655_v31  ;;  %v9706_v35 = vld [vmem:[%s12657_s8 + $0x200] ss:$16 sps:$4 sm:$0xff]   ;;  %v9709_v31 = vld [vmem:[%s12657_s8 + $0x208] ss:$16 sps:$4 sm:$0xff]  }
0x18a8   : > { %6108 = vmatprep.subr.bf16.mxu0 %v9660_v54  ;;  %6272 = vmatprep.subr.bf16.mxu1 %v9663_v19  ;;  %v9714_v19 = vld [vmem:[%s12657_s8 + $0x224] ss:$16 sps:$4 sm:$0xff]  }
0x18ab   : > { %6109 = vmatpush1.bf16.msra.mxu0 %v9658_v10  ;;  %6273 = vmatpush1.bf16.msra.mxu1 %v9661_v46  ;;  %v9717_v10 = vld [vmem:[%s12657_s8 + $0x22c] ss:$16 sps:$4 sm:$0xff]  }
0x18ac   : > { %6110 = vmatprep.subr.bf16.mxu0 %v9666_v50  ;;  %6274 = vmatprep.subr.bf16.mxu1 %v9669_v34  ;;  %v9712_v50 = vld [vmem:[%s12657_s8 + $0x220] ss:$16 sps:$4 sm:$0xff]   ;;  %v9715_v34 = vld [vmem:[%s12657_s8 + $0x228] ss:$16 sps:$4 sm:$0xff]  }
0x18af   : > { %6111 = vmatpush1.bf16.msra.mxu0 %v9664_v62  ;;  %6275 = vmatpush1.bf16.msra.mxu1 %v9667_v56  ;;  %v9720_v62 = vld [vmem:[%s12657_s8 + $0x244] ss:$16 sps:$4 sm:$0xff]   ;;  %v9723_v56 = vld [vmem:[%s12657_s8 + $0x24c] ss:$16 sps:$4 sm:$0xff]  }
0x18b0   : > { %6112 = vmatprep.subr.bf16.mxu0 %v9672_v59  ;;  %6276 = vmatprep.subr.bf16.mxu1 %v9675_v2 }
0x18b3   : > { %6113 = vmatpush1.bf16.msra.mxu0 %v9670_v4  ;;  %6277 = vmatpush1.bf16.msra.mxu1 %v9673_v7  ;;  %v9718_v4 = vld [vmem:[%s12657_s8 + $0x240] ss:$16 sps:$4 sm:$0xff]   ;;  %v9721_v7 = vld [vmem:[%s12657_s8 + $0x248] ss:$16 sps:$4 sm:$0xff]  }
0x18b4   : > { %6114 = vmatprep.subr.bf16.mxu0 %v9678_v6  ;;  %6278 = vmatprep.subr.bf16.mxu1 %v9681_v58 }
0x18b7   : > { %6115 = vmatpush1.bf16.msra.mxu0 %v9676_v13  ;;  %6279 = vmatpush1.bf16.msra.mxu1 %v9679_v30  ;;  %v9726_v13 = vld [vmem:[%s12657_s8 + $0x264] ss:$16 sps:$4 sm:$0xff]   ;;  %v9729_v30 = vld [vmem:[%s12657_s8 + $0x26c] ss:$16 sps:$4 sm:$0xff]  }
0x18b8   : > { %6116 = vmatprep.subr.bf16.mxu0 %v9684_v11  ;;  %6280 = vmatprep.subr.bf16.mxu1 %v9687_v55 }
0x18bb   : > { %6117 = vmatpush1.bf16.msra.mxu0 %v9682_v45  ;;  %6281 = vmatpush1.bf16.msra.mxu1 %v9685_v44 }
0x18bc   : > { %6118 = vmatprep.subr.bf16.mxu0 %v9690_v42  ;;  %6282 = vmatprep.subr.bf16.mxu1 %v9693_v61  ;;  %v9724_v42 = vld [vmem:[%s12657_s8 + $0x260] ss:$16 sps:$4 sm:$0xff]   ;;  %v9727_v61 = vld [vmem:[%s12657_s8 + $0x268] ss:$16 sps:$4 sm:$0xff]  }
0x18bf   : > { %6119 = vmatpush1.bf16.msra.mxu0 %v9688_v18  ;;  %6283 = vmatpush1.bf16.msra.mxu1 %v9691_v63  ;;  %v9732_v18 = vld [vmem:[%s12657_s8 + $0x284] ss:$16 sps:$4 sm:$0xff]   ;;  %v9735_v63 = vld [vmem:[%s12657_s8 + $0x28c] ss:$16 sps:$4 sm:$0xff]  }
0x18c0   : > { %6120 = vmatprep.subr.bf16.mxu0 %v9696_v57  ;;  %6284 = vmatprep.subr.bf16.mxu1 %v9699_v1  ;;  %v9730_v57 = vld [vmem:[%s12657_s8 + $0x280] ss:$16 sps:$4 sm:$0xff]   ;;  %v9733_v1 = vld [vmem:[%s12657_s8 + $0x288] ss:$16 sps:$4 sm:$0xff]  }
0x18c3   : > { %6121 = vmatpush1.bf16.msra.mxu0 %v9694_v3  ;;  %6285 = vmatpush1.bf16.msra.mxu1 %v9697_v0  ;;  %v9738_v3 = vld [vmem:[%s12657_s8 + $0x2a4] ss:$16 sps:$4 sm:$0xff]   ;;  %v9741_v0 = vld [vmem:[%s12657_s8 + $0x2ac] ss:$16 sps:$4 sm:$0xff]  }
0x18c4   : > { %6122 = vmatprep.subr.bf16.mxu0 %v9702_v12  ;;  %6286 = vmatprep.subr.bf16.mxu1 %v9705_v14  ;;  %v9736_v12 = vld [vmem:[%s12657_s8 + $0x2a0] ss:$16 sps:$4 sm:$0xff]   ;;  %v9739_v14 = vld [vmem:[%s12657_s8 + $0x2a8] ss:$16 sps:$4 sm:$0xff]  }
0x18c7   : > { %6123 = vmatpush1.bf16.msra.mxu0 %v9700_v20  ;;  %6287 = vmatpush1.bf16.msra.mxu1 %v9703_v33  ;;  %v9744_v20 = vld [vmem:[%s12657_s8 + $0x2c4] ss:$16 sps:$4 sm:$0xff]   ;;  %v9747_v33 = vld [vmem:[%s12657_s8 + $0x2cc] ss:$16 sps:$4 sm:$0xff]  }
0x18c8   : > { %6133 = vmatprep.subr.bf16.mxu0 %v9708_v16  ;;  %6297 = vmatprep.subr.bf16.mxu1 %v9711_v24  ;;  %v9742_v16 = vld [vmem:[%s12657_s8 + $0x2c0] ss:$16 sps:$4 sm:$0xff]   ;;  %v9745_v24 = vld [vmem:[%s12657_s8 + $0x2c8] ss:$16 sps:$4 sm:$0xff]  }
0x194d   : > { %v4380_v41 = vpop.f32.mrb[132].mxu0  ;;  %v11667_v51 = vpop.f32.mrb[144].mxu1 }
0x194e   : > { %v4381_v39 = vadd.f32 %v4380_v41, %v4306_v37  ;;  %v4382_v15 = vpop.f32.mrb[133].mxu0  ;;  %v4423_v60 = vpop.f32.mrb[145].mxu1  ;;  %v9753_v37 = vld [vmem:[%s12657_s8 + $0x2ec] ss:$16 sps:$4 sm:$0xff]   ;;  %v9756_v41 = vld [vmem:[%s12657_s8 + $0x304] ss:$16 sps:$4 sm:$0xff]  }
0x194f   : > { %v4383_v5 = vadd.f32 %v4382_v15, %v4310_v38  ;;  %v4424_v8 = vadd.f32 %v4423_v60, %v4318_v9  ;;  %v4384_v47 = vpop.f32.mrb[134].mxu0  ;;  %v4425_v22 = vpop.f32.mrb[146].mxu1  ;;  %v9748_v38 = vld [vmem:[%s12657_s8 + $0x2e0] ss:$16 sps:$4 sm:$0xff]   ;;  %v9751_v9 = vld [vmem:[%s12657_s8 + $0x2e8] ss:$16 sps:$4 sm:$0xff]  }
0x1950   : > { %v4510_v17 = vmul.f32 0.2, %v4381_v39  ;;  %v4385_v27 = vpop.f32.mrb[135].mxu0  ;;  %v4426_v40 = vpop.f32.mrb[147].mxu1  ;;  %v9754_v15 = vld [vmem:[%s12657_s8 + $0x300] ss:$16 sps:$4 sm:$0xff]  }
0x1951   : > { %v4511_v48 = vmul.f32 0.2, %v4383_v5  ;;  %v4513_v21 = vmul.f32 0.2, %v4424_v8  ;;  %v9757_v60 = vld [vmem:[%s12657_s8 + $0x308] ss:$16 sps:$4 sm:$0xff]  }
0x1952   : > { %v4518_v49 = vmax.f32 %v4381_v39, %v4510_v17  ;;  %v9759_v39 = vld [vmem:[%s12657_s8 + $0x30c] ss:$16 sps:$4 sm:$0xff]   ;;  %v9760_v47 = vld [vmem:[%s12657_s8 + $0x320] ss:$16 sps:$4 sm:$0xff]   ;;  %v9763_v22 = vld [vmem:[%s12657_s8 + $0x328] ss:$16 sps:$4 sm:$0xff]  }
0x1953   : > { %v4519_v52 = vmax.f32 %v4383_v5, %v4511_v48  ;;  %v4521_v29 = vmax.f32 %v4424_v8, %v4513_v21  ;;  %v9762_v5 = vld [vmem:[%s12657_s8 + $0x324] ss:$16 sps:$4 sm:$0xff]   ;;  %v9765_v8 = vld [vmem:[%s12657_s8 + $0x32c] ss:$16 sps:$4 sm:$0xff]   ;;  %v9766_v40 = vld [vmem:[%s12657_s8 + $0x340] ss:$16 sps:$4 sm:$0xff]  }
0x1954   : > { %v4526_v54 = vpack.c.bf16 %v4518_v49, %v4518_v49  ;;  %v9768_v17 = vld [vmem:[%s12657_s8 + $0x344] ss:$16 sps:$4 sm:$0xff]   ;;  %v9771_v27 = vld [vmem:[%s12657_s8 + $0x34c] ss:$16 sps:$4 sm:$0xff]   ;;  %v9769_v48 = vld [vmem:[%s12657_s8 + $0x348] ss:$16 sps:$4 sm:$0xff]  }
0x1955   : > { %v4527_v53 = vpack.c.bf16 %v4519_v52, %v4519_v52  ;;  %v4529_v46 = vpack.c.bf16 %v4521_v29, %v4521_v29  ;;  %v9774_v21 = vld [vmem:[%s12657_s8 + $0x364] ss:$16 sps:$4 sm:$0xff]   ;;  %v9777_v49 = vld [vmem:[%s12657_s8 + $0x36c] ss:$16 sps:$4 sm:$0xff]   ;;  %v9772_v52 = vld [vmem:[%s12657_s8 + $0x360] ss:$16 sps:$4 sm:$0xff]  }
0x1956   : > { %v9775_v29 = vld [vmem:[%s12657_s8 + $0x368] ss:$16 sps:$4 sm:$0xff]  }
0x1957   : > { %6124 = vmatprep.mubr.bf16.mxu0 %v4527_v53  ;;  %6288 = vmatprep.mubr.bf16.mxu1 %v4527_v53  ;;  %v11816_v53 = vsub.s32 2, %v11645_v26 }
0x1958   : > { %6125 = vmatmul.mubr.bf16.vlgmr.msra.gmra.mrb[140].mxu0 %v4526_v54  ;;  %6289 = vmatmul.mubr.bf16.vlgmr.msra.gmra.mrb[152].mxu1 %v4526_v54  ;;  %v11825_v54 = vsub.s32 5, %v11645_v26 }
0x1959   : > { %6134 = vmatpush1.bf16.msra.mxu0 %v9706_v35  ;;  %6298 = vmatpush1.bf16.msra.mxu1 %v9709_v31  ;;  %v9780_v35 = vld [vmem:[%s12657_s8 + $0x384] ss:$16 sps:$4 sm:$0xff]   ;;  %v9783_v31 = vld [vmem:[%s12657_s8 + $0x38c] ss:$16 sps:$4 sm:$0xff]  }
0x195a   : > { %6165 = vmatprep.mubr.bf16.mxu0 %v4529_v46  ;;  %6329 = vmatprep.mubr.bf16.mxu1 %v4529_v46  ;;  %v4314_v46 = vrot.slane %v11653_v32, %v11816_v53 }
0x195b   : > { %6135 = vmatprep.subr.bf16.mxu0 %v9714_v19  ;;  %6299 = vmatprep.subr.bf16.mxu1 %v9717_v10  ;;  %v9778_v19 = vld [vmem:[%s12657_s8 + $0x380] ss:$16 sps:$4 sm:$0xff]   ;;  %v9781_v10 = vld [vmem:[%s12657_s8 + $0x388] ss:$16 sps:$4 sm:$0xff]  }
0x195d   : > { %v11693_v59 = vpop.f32.mrb[136].mxu0  ;;  %v11695_v2 = vpop.f32.mrb[148].mxu1  ;;  %6136 = vmatpush1.bf16.msra.mxu0 %v9712_v50  ;;  %6300 = vmatpush1.bf16.msra.mxu1 %v9715_v34  ;;  %v9786_v50 = vld [vmem:[%s12657_s8 + $0x3a4] ss:$16 sps:$4 sm:$0xff]   ;;  %v9789_v34 = vld [vmem:[%s12657_s8 + $0x3ac] ss:$16 sps:$4 sm:$0xff]  }
0x195e   : > { %v11703_v6 = vpop.f32.mrb[137].mxu0  ;;  %v11705_v58 = vpop.f32.mrb[149].mxu1  ;;  %6137 = vmatprep.subr.bf16.mxu0 %v9720_v62  ;;  %6301 = vmatprep.subr.bf16.mxu1 %v9723_v56  ;;  %v4326_v62 = vrot.slane %v11653_v32, %v11825_v54  ;;  %v9784_v56 = vld [vmem:[%s12657_s8 + $0x3a0] ss:$16 sps:$4 sm:$0xff]  }
0x195f   : > { %v4466_v11 = vpop.f32.mrb[138].mxu0  ;;  %v4507_v55 = vpop.f32.mrb[150].mxu1 }
0x1960   : > { %v4467_v45 = vpop.f32.mrb[139].mxu0  ;;  %v4508_v44 = vpop.f32.mrb[151].mxu1  ;;  %v4465_v11 = vadd.f32 %v11703_v6, %v4326_v62  ;;  %v9790_v55 = vld [vmem:[%s12657_s8 + $0x3c0] ss:$16 sps:$4 sm:$0xff]   ;;  %v9801_v6 = vld [vmem:[%s12657_s8 + $0x3ec] ss:$16 sps:$4 sm:$0xff]  }
0x1961   : > { %6138 = vmatpush1.bf16.msra.mxu0 %v9718_v4  ;;  %6302 = vmatpush1.bf16.msra.mxu1 %v9721_v7  ;;  %v9787_v4 = vld [vmem:[%s12657_s8 + $0x3a8] ss:$16 sps:$4 sm:$0xff]   ;;  %v4422_v7 = vadd.f32 %v11667_v51, %v4314_v46  ;;  %v9798_v44 = vld [vmem:[%s12657_s8 + $0x3e4] ss:$16 sps:$4 sm:$0xff]   ;;  %v9850_v62 = vld [vmem:[%s12657_s8 + $0x500] ss:$16 sps:$4 sm:$0xff]  }
0x1962   : > { %6139 = vmatprep.subr.bf16.mxu0 %v9726_v13  ;;  %6303 = vmatprep.subr.bf16.mxu1 %v9729_v30  ;;  %v9792_v13 = vld [vmem:[%s12657_s8 + $0x3c4] ss:$16 sps:$4 sm:$0xff]   ;;  %v9795_v30 = vld [vmem:[%s12657_s8 + $0x3cc] ss:$16 sps:$4 sm:$0xff]   ;;  %v9793_v51 = vld [vmem:[%s12657_s8 + $0x3c8] ss:$16 sps:$4 sm:$0xff]  }
0x1963   : > { %v4512_v45 = vmul.f32 0.2, %v4422_v7  ;;  %v9847_v46 = vld [vmem:[%s12657_s8 + $0x4e8] ss:$16 sps:$4 sm:$0xff]  }
0x1965   : > { %6140 = vmatpush1.bf16.msra.mxu0 %v9724_v42  ;;  %6304 = vmatpush1.bf16.msra.mxu1 %v9727_v61  ;;  %v4515_v42 = vmul.f32 0.2, %v4465_v11  ;;  %v9796_v61 = vld [vmem:[%s12657_s8 + $0x3e0] ss:$16 sps:$4 sm:$0xff]  }
0x1966   : > { %6141 = vmatprep.subr.bf16.mxu0 %v9732_v18  ;;  %6305 = vmatprep.subr.bf16.mxu1 %v9735_v63  ;;  %v9799_v18 = vld [vmem:[%s12657_s8 + $0x3e8] ss:$16 sps:$4 sm:$0xff]   ;;  %v4520_v63 = vmax.f32 %v4422_v7, %v4512_v45  ;;  %v9861_v7 = vld [vmem:[%s12657_s8 + $0x52c] ss:$16 sps:$4 sm:$0xff]  }
0x1967   : > { %v9865_v45 = vld [vmem:[%s12657_s8 + $0x548] ss:$16 sps:$4 sm:$0xff]  }
0x1969   : > { %6142 = vmatpush1.bf16.msra.mxu0 %v9730_v57  ;;  %6306 = vmatpush1.bf16.msra.mxu1 %v9733_v1  ;;  %v9804_v57 = vld [vmem:[%s12657_s8 + $0x404] ss:$16 sps:$4 sm:$0xff]   ;;  %v9807_v1 = vld [vmem:[%s12657_s8 + $0x40c] ss:$16 sps:$4 sm:$0xff]  }
0x196a   : > { %6143 = vmatprep.subr.bf16.mxu0 %v9738_v3  ;;  %6307 = vmatprep.subr.bf16.mxu1 %v9741_v0  ;;  %v4523_v3 = vmax.f32 %v4465_v11, %v4515_v42  ;;  %v9802_v0 = vld [vmem:[%s12657_s8 + $0x400] ss:$16 sps:$4 sm:$0xff]   ;;  %v9864_v11 = vld [vmem:[%s12657_s8 + $0x544] ss:$16 sps:$4 sm:$0xff]  }
0x196b   : > { %v9868_v42 = vld [vmem:[%s12657_s8 + $0x560] ss:$16 sps:$4 sm:$0xff]  }
0x196d   : > { %6144 = vmatpush1.bf16.msra.mxu0 %v9736_v12  ;;  %6308 = vmatpush1.bf16.msra.mxu1 %v9739_v14  ;;  %v4528_v12 = vpack.c.bf16 %v4520_v63, %v4520_v63  ;;  %v9805_v14 = vld [vmem:[%s12657_s8 + $0x408] ss:$16 sps:$4 sm:$0xff]   ;;  %v9876_v63 = vld [vmem:[%s12657_s8 + $0x584] ss:$16 sps:$4 sm:$0xff]  }
0x196e   : > { %6145 = vmatprep.subr.bf16.mxu0 %v9744_v20  ;;  %6309 = vmatprep.subr.bf16.mxu1 %v9747_v33  ;;  %v4531_v20 = vpack.c.bf16 %v4523_v3, %v4523_v3  ;;  %v9810_v33 = vld [vmem:[%s12657_s8 + $0x424] ss:$16 sps:$4 sm:$0xff]   ;;  %v9874_v3 = vld [vmem:[%s12657_s8 + $0x580] ss:$16 sps:$4 sm:$0xff]  }
0x1971   : > { %6146 = vmatpush1.bf16.msra.mxu0 %v9742_v16  ;;  %6310 = vmatpush1.bf16.msra.mxu1 %v9745_v24  ;;  %v9813_v16 = vld [vmem:[%s12657_s8 + $0x42c] ss:$16 sps:$4 sm:$0xff]   ;;  %v9808_v24 = vld [vmem:[%s12657_s8 + $0x420] ss:$16 sps:$4 sm:$0xff]  }
0x1972   : > { %6147 = vmatprep.subr.bf16.mxu0 %v9750_v25  ;;  %6311 = vmatprep.subr.bf16.mxu1 %v9753_v37  ;;  %v9811_v25 = vld [vmem:[%s12657_s8 + $0x428] ss:$16 sps:$4 sm:$0xff]   ;;  %v9816_v37 = vld [vmem:[%s12657_s8 + $0x444] ss:$16 sps:$4 sm:$0xff]  }
0x1975   : > { %6148 = vmatpush1.bf16.msra.mxu0 %v9748_v38  ;;  %6312 = vmatpush1.bf16.msra.mxu1 %v9751_v9  ;;  %v9819_v38 = vld [vmem:[%s12657_s8 + $0x44c] ss:$16 sps:$4 sm:$0xff]   ;;  %v9814_v9 = vld [vmem:[%s12657_s8 + $0x440] ss:$16 sps:$4 sm:$0xff]  }
0x1976   : > { %6149 = vmatprep.subr.bf16.mxu0 %v9756_v41  ;;  %6313 = vmatprep.subr.bf16.mxu1 %v9759_v39  ;;  %v9817_v41 = vld [vmem:[%s12657_s8 + $0x448] ss:$16 sps:$4 sm:$0xff]   ;;  %v9822_v39 = vld [vmem:[%s12657_s8 + $0x464] ss:$16 sps:$4 sm:$0xff]  }
0x1979   : > { %6150 = vmatpush1.bf16.msra.mxu0 %v9754_v15  ;;  %6314 = vmatpush1.bf16.msra.mxu1 %v9757_v60  ;;  %v9825_v15 = vld [vmem:[%s12657_s8 + $0x46c] ss:$16 sps:$4 sm:$0xff]   ;;  %v9820_v60 = vld [vmem:[%s12657_s8 + $0x460] ss:$16 sps:$4 sm:$0xff]  }
0x197a   : > { %6151 = vmatprep.subr.bf16.mxu0 %v9762_v5  ;;  %6315 = vmatprep.subr.bf16.mxu1 %v9765_v8  ;;  %v9823_v5 = vld [vmem:[%s12657_s8 + $0x468] ss:$16 sps:$4 sm:$0xff]   ;;  %v9828_v8 = vld [vmem:[%s12657_s8 + $0x484] ss:$16 sps:$4 sm:$0xff]  }
0x197d   : > { %6152 = vmatpush1.bf16.msra.mxu0 %v9760_v47  ;;  %6316 = vmatpush1.bf16.msra.mxu1 %v9763_v22  ;;  %v9831_v47 = vld [vmem:[%s12657_s8 + $0x48c] ss:$16 sps:$4 sm:$0xff]   ;;  %v9826_v22 = vld [vmem:[%s12657_s8 + $0x480] ss:$16 sps:$4 sm:$0xff]  }
0x197e   : > { %6153 = vmatprep.subr.bf16.mxu0 %v9768_v17  ;;  %6317 = vmatprep.subr.bf16.mxu1 %v9771_v27  ;;  %v9829_v17 = vld [vmem:[%s12657_s8 + $0x488] ss:$16 sps:$4 sm:$0xff]   ;;  %v9834_v27 = vld [vmem:[%s12657_s8 + $0x4a4] ss:$16 sps:$4 sm:$0xff]  }
0x1981   : > { %6154 = vmatpush1.bf16.msra.mxu0 %v9766_v40  ;;  %6318 = vmatpush1.bf16.msra.mxu1 %v9769_v48  ;;  %v9837_v40 = vld [vmem:[%s12657_s8 + $0x4ac] ss:$16 sps:$4 sm:$0xff]   ;;  %v9832_v48 = vld [vmem:[%s12657_s8 + $0x4a0] ss:$16 sps:$4 sm:$0xff]  }
0x1982   : > { %6155 = vmatprep.subr.bf16.mxu0 %v9774_v21  ;;  %6319 = vmatprep.subr.bf16.mxu1 %v9777_v49  ;;  %v9835_v21 = vld [vmem:[%s12657_s8 + $0x4a8] ss:$16 sps:$4 sm:$0xff]   ;;  %v9840_v49 = vld [vmem:[%s12657_s8 + $0x4c4] ss:$16 sps:$4 sm:$0xff]  }
0x1985   : > { %6156 = vmatpush1.bf16.msra.mxu0 %v9772_v52  ;;  %6320 = vmatpush1.bf16.msra.mxu1 %v9775_v29  ;;  %v9843_v52 = vld [vmem:[%s12657_s8 + $0x4cc] ss:$16 sps:$4 sm:$0xff]   ;;  %v9838_v29 = vld [vmem:[%s12657_s8 + $0x4c0] ss:$16 sps:$4 sm:$0xff]  }
0x1986   : > { %6157 = vmatprep.subr.bf16.mxu0 %v9780_v35  ;;  %6321 = vmatprep.subr.bf16.mxu1 %v9783_v31  ;;  %v9841_v35 = vld [vmem:[%s12657_s8 + $0x4c8] ss:$16 sps:$4 sm:$0xff]   ;;  %v9846_v31 = vld [vmem:[%s12657_s8 + $0x4e4] ss:$16 sps:$4 sm:$0xff]  }
0x1989   : > { %6158 = vmatpush1.bf16.msra.mxu0 %v9778_v19  ;;  %6322 = vmatpush1.bf16.msra.mxu1 %v9781_v10  ;;  %v9849_v19 = vld [vmem:[%s12657_s8 + $0x4ec] ss:$16 sps:$4 sm:$0xff]   ;;  %v9844_v10 = vld [vmem:[%s12657_s8 + $0x4e0] ss:$16 sps:$4 sm:$0xff]  }
0x198a   : > { %6159 = vmatprep.subr.bf16.mxu0 %v9786_v50  ;;  %6323 = vmatprep.subr.bf16.mxu1 %v9789_v34  ;;  %v9852_v50 = vld [vmem:[%s12657_s8 + $0x504] ss:$16 sps:$4 sm:$0xff]   ;;  %v9855_v34 = vld [vmem:[%s12657_s8 + $0x50c] ss:$16 sps:$4 sm:$0xff]  }
0x198d   : > { %6160 = vmatpush1.bf16.msra.mxu0 %v9784_v56  ;;  %6324 = vmatpush1.bf16.msra.mxu1 %v9787_v4  ;;  %v9853_v56 = vld [vmem:[%s12657_s8 + $0x508] ss:$16 sps:$4 sm:$0xff]   ;;  %v9858_v4 = vld [vmem:[%s12657_s8 + $0x524] ss:$16 sps:$4 sm:$0xff]  }
0x198e   : > { %6161 = vmatprep.subr.bf16.mxu0 %v9792_v13  ;;  %6325 = vmatprep.subr.bf16.mxu1 %v9795_v30  ;;  %v9856_v13 = vld [vmem:[%s12657_s8 + $0x520] ss:$16 sps:$4 sm:$0xff]   ;;  %v9859_v30 = vld [vmem:[%s12657_s8 + $0x528] ss:$16 sps:$4 sm:$0xff]  }
0x1991   : > { %6162 = vmatpush1.bf16.msra.mxu0 %v9790_v55  ;;  %6326 = vmatpush1.bf16.msra.mxu1 %v9793_v51  ;;  %v9867_v55 = vld [vmem:[%s12657_s8 + $0x54c] ss:$16 sps:$4 sm:$0xff]   ;;  %v9862_v51 = vld [vmem:[%s12657_s8 + $0x540] ss:$16 sps:$4 sm:$0xff]  }
0x1992   : > { %6163 = vmatprep.subr.bf16.mxu0 %v9798_v44  ;;  %6327 = vmatprep.subr.bf16.mxu1 %v9801_v6  ;;  %v9870_v44 = vld [vmem:[%s12657_s8 + $0x564] ss:$16 sps:$4 sm:$0xff]   ;;  %v9873_v6 = vld [vmem:[%s12657_s8 + $0x56c] ss:$16 sps:$4 sm:$0xff]  }
0x1995   : > { %6164 = vmatpush1.bf16.msra.mxu0 %v9796_v61  ;;  %6328 = vmatpush1.bf16.msra.mxu1 %v9799_v18  ;;  %v12017_v61 = vsub.s32 4, %v11645_v26  ;;  %v9871_v18 = vld [vmem:[%s12657_s8 + $0x568] ss:$16 sps:$4 sm:$0xff]  }
0x1996   : > { %6174 = vmatprep.subr.bf16.mxu0 %v9804_v57  ;;  %6338 = vmatprep.subr.bf16.mxu1 %v9807_v1  ;;  %v9879_v57 = vld [vmem:[%s12657_s8 + $0x58c] ss:$16 sps:$4 sm:$0xff]   ;;  %v12029_v1 = vsub.s32 7, %v11645_v26 }
0x1998   : > { %6166 = vmatmul.mubr.bf16.vlgmr.msra.gmra.mrb[140].mxu0 %v4528_v12  ;;  %6330 = vmatmul.mubr.bf16.vlgmr.msra.gmra.mrb[152].mxu1 %v4528_v12  ;;  %v9877_v12 = vld [vmem:[%s12657_s8 + $0x588] ss:$16 sps:$4 sm:$0xff]  }
0x1999   : > { %6175 = vmatpush1.bf16.msra.mxu0 %v9802_v0  ;;  %6206 = vmatprep.mubr.bf16.mxu0 %v4531_v20  ;;  %v4322_v0 = vrot.slane %v11653_v32, %v12017_v61 }
0x199a   : > { %6339 = vmatpush1.bf16.msra.mxu1 %v9805_v14  ;;  %6370 = vmatprep.mubr.bf16.mxu1 %v4531_v20  ;;  %v9882_v14 = vld [vmem:[%s12657_s8 + $0x5a4] ss:$16 sps:$4 sm:$0xff]   ;;  %v9885_v20 = vld [vmem:[%s12657_s8 + $0x5ac] ss:$16 sps:$4 sm:$0xff]  }
0x199b   : > { %6176 = vmatprep.subr.bf16.mxu0 %v9810_v33  ;;  %6340 = vmatprep.subr.bf16.mxu1 %v9813_v16  ;;  %v4334_v33 = vrot.slane %v11653_v32, %v12029_v1  ;;  %v9880_v16 = vld [vmem:[%s12657_s8 + $0x5a0] ss:$16 sps:$4 sm:$0xff]  }
0x199d   : > { %6177 = vmatpush1.bf16.msra.mxu0 %v9808_v24  ;;  %v4463_v24 = vadd.f32 %v11693_v59, %v4322_v0  ;;  %v9886_v59 = vld [vmem:[%s12657_s8 + $0x5c0] ss:$16 sps:$4 sm:$0xff]  }
0x199e   : > { %6341 = vmatpush1.bf16.msra.mxu1 %v9811_v25  ;;  %6178 = vmatprep.subr.bf16.mxu0 %v9816_v37  ;;  %v9883_v25 = vld [vmem:[%s12657_s8 + $0x5a8] ss:$16 sps:$4 sm:$0xff]   ;;  %v9888_v37 = vld [vmem:[%s12657_s8 + $0x5c4] ss:$16 sps:$4 sm:$0xff]   ;;  %v9940_v0 = vld [vmem:[%s12657_s8 + $0x6e0] ss:$16 sps:$4 sm:$0xff]  }
0x199f   : > { %6342 = vmatprep.subr.bf16.mxu1 %v9819_v38  ;;  %v9891_v38 = vld [vmem:[%s12657_s8 + $0x5cc] ss:$16 sps:$4 sm:$0xff]  }
0x19a1   : > { %6179 = vmatpush1.bf16.msra.mxu0 %v9814_v9  ;;  %v4506_v9 = vadd.f32 %v11705_v58, %v4334_v33  ;;  %v9897_v58 = vld [vmem:[%s12657_s8 + $0x5ec] ss:$16 sps:$4 sm:$0xff]   ;;  %v9946_v33 = vld [vmem:[%s12657_s8 + $0x700] ss:$16 sps:$4 sm:$0xff]  }
0x19a2   : > { %6343 = vmatpush1.bf16.msra.mxu1 %v9817_v41  ;;  %6180 = vmatprep.subr.bf16.mxu0 %v9822_v39  ;;  %v4514_v41 = vmul.f32 0.2, %v4463_v24  ;;  %v9889_v39 = vld [vmem:[%s12657_s8 + $0x5c8] ss:$16 sps:$4 sm:$0xff]  }
0x19a3   : > { %6344 = vmatprep.subr.bf16.mxu1 %v9825_v15  ;;  %v9894_v15 = vld [vmem:[%s12657_s8 + $0x5e4] ss:$16 sps:$4 sm:$0xff]  }
0x19a5   : > { %6181 = vmatpush1.bf16.msra.mxu0 %v9820_v60  ;;  %v4517_v60 = vmul.f32 0.2, %v4506_v9 }
0x19a6   : > { %6345 = vmatpush1.bf16.msra.mxu1 %v9823_v5  ;;  %6182 = vmatprep.subr.bf16.mxu0 %v9828_v8  ;;  %v9892_v5 = vld [vmem:[%s12657_s8 + $0x5e0] ss:$16 sps:$4 sm:$0xff]   ;;  %v4522_v8 = vmax.f32 %v4463_v24, %v4514_v41  ;;  %v9954_v24 = vld [vmem:[%s12657_s8 + $0x724] ss:$16 sps:$4 sm:$0xff]  }
0x19a7   : > { %6346 = vmatprep.subr.bf16.mxu1 %v9831_v47  ;;  %v9895_v47 = vld [vmem:[%s12657_s8 + $0x5e8] ss:$16 sps:$4 sm:$0xff]   ;;  %v9958_v41 = vld [vmem:[%s12657_s8 + $0x740] ss:$16 sps:$4 sm:$0xff]  }
0x19a9   : > { %6183 = vmatpush1.bf16.msra.mxu0 %v9826_v22  ;;  %v9900_v22 = vld [vmem:[%s12657_s8 + $0x604] ss:$16 sps:$4 sm:$0xff]  }
0x19aa   : > { %6347 = vmatpush1.bf16.msra.mxu1 %v9829_v17  ;;  %6184 = vmatprep.subr.bf16.mxu0 %v9834_v27  ;;  %v9903_v17 = vld [vmem:[%s12657_s8 + $0x60c] ss:$16 sps:$4 sm:$0xff]   ;;  %v4525_v27 = vmax.f32 %v4506_v9, %v4517_v60  ;;  %v9960_v9 = vld [vmem:[%s12657_s8 + $0x744] ss:$16 sps:$4 sm:$0xff]   ;;  %v9964_v60 = vld [vmem:[%s12657_s8 + $0x760] ss:$16 sps:$4 sm:$0xff]  }
0x19ab   : > { %6348 = vmatprep.subr.bf16.mxu1 %v9837_v40  ;;  %v9898_v40 = vld [vmem:[%s12657_s8 + $0x600] ss:$16 sps:$4 sm:$0xff]  }
0x19ad   : > { %6185 = vmatpush1.bf16.msra.mxu0 %v9832_v48  ;;  %v4530_v48 = vpack.c.bf16 %v4522_v8, %v4522_v8  ;;  %v9967_v8 = vld [vmem:[%s12657_s8 + $0x768] ss:$16 sps:$4 sm:$0xff]  }
0x19ae   : > { %6349 = vmatpush1.bf16.msra.mxu1 %v9835_v21  ;;  %6186 = vmatprep.subr.bf16.mxu0 %v9840_v49  ;;  %v9901_v21 = vld [vmem:[%s12657_s8 + $0x608] ss:$16 sps:$4 sm:$0xff]   ;;  %v9906_v49 = vld [vmem:[%s12657_s8 + $0x624] ss:$16 sps:$4 sm:$0xff]  }
0x19af   : > { %6350 = vmatprep.subr.bf16.mxu1 %v9843_v52  ;;  %v4533_v52 = vpack.c.bf16 %v4525_v27, %v4525_v27 }
0x19b1   : > { %6187 = vmatpush1.bf16.msra.mxu0 %v9838_v29  ;;  %v9909_v29 = vld [vmem:[%s12657_s8 + $0x62c] ss:$16 sps:$4 sm:$0xff]  }
0x19b2   : > { %6351 = vmatpush1.bf16.msra.mxu1 %v9841_v35  ;;  %6188 = vmatprep.subr.bf16.mxu0 %v9846_v31  ;;  %v9904_v35 = vld [vmem:[%s12657_s8 + $0x620] ss:$16 sps:$4 sm:$0xff]   ;;  %v9907_v31 = vld [vmem:[%s12657_s8 + $0x628] ss:$16 sps:$4 sm:$0xff]  }
0x19b3   : > { %6352 = vmatprep.subr.bf16.mxu1 %v9849_v19  ;;  %v9912_v19 = vld [vmem:[%s12657_s8 + $0x644] ss:$16 sps:$4 sm:$0xff]  }
0x19b5   : > { %6189 = vmatpush1.bf16.msra.mxu0 %v9844_v10  ;;  %v9915_v10 = vld [vmem:[%s12657_s8 + $0x64c] ss:$16 sps:$4 sm:$0xff]  }
0x19b6   : > { %6353 = vmatpush1.bf16.msra.mxu1 %v9847_v46  ;;  %6190 = vmatprep.subr.bf16.mxu0 %v9852_v50  ;;  %v9910_v46 = vld [vmem:[%s12657_s8 + $0x640] ss:$16 sps:$4 sm:$0xff]   ;;  %v9913_v50 = vld [vmem:[%s12657_s8 + $0x648] ss:$16 sps:$4 sm:$0xff]  }
0x19b7   : > { %6354 = vmatprep.subr.bf16.mxu1 %v9855_v34  ;;  %v9918_v34 = vld [vmem:[%s12657_s8 + $0x664] ss:$16 sps:$4 sm:$0xff]  }
0x19b9   : > { %6191 = vmatpush1.bf16.msra.mxu0 %v9850_v62  ;;  %v9921_v62 = vld [vmem:[%s12657_s8 + $0x66c] ss:$16 sps:$4 sm:$0xff]  }
0x19ba   : > { %6355 = vmatpush1.bf16.msra.mxu1 %v9853_v56  ;;  %6192 = vmatprep.subr.bf16.mxu0 %v9858_v4  ;;  %v9916_v56 = vld [vmem:[%s12657_s8 + $0x660] ss:$16 sps:$4 sm:$0xff]   ;;  %v9919_v4 = vld [vmem:[%s12657_s8 + $0x668] ss:$16 sps:$4 sm:$0xff]  }
0x19bb   : > { %6356 = vmatprep.subr.bf16.mxu1 %v9861_v7  ;;  %v9924_v7 = vld [vmem:[%s12657_s8 + $0x684] ss:$16 sps:$4 sm:$0xff]  }
0x19bd   : > { %6193 = vmatpush1.bf16.msra.mxu0 %v9856_v13  ;;  %v9927_v13 = vld [vmem:[%s12657_s8 + $0x68c] ss:$16 sps:$4 sm:$0xff]  }
0x19be   : > { %6357 = vmatpush1.bf16.msra.mxu1 %v9859_v30  ;;  %6194 = vmatprep.subr.bf16.mxu0 %v9864_v11  ;;  %v9922_v30 = vld [vmem:[%s12657_s8 + $0x680] ss:$16 sps:$4 sm:$0xff]   ;;  %v9925_v11 = vld [vmem:[%s12657_s8 + $0x688] ss:$16 sps:$4 sm:$0xff]  }
0x19bf   : > { %6358 = vmatprep.subr.bf16.mxu1 %v9867_v55  ;;  %v9930_v55 = vld [vmem:[%s12657_s8 + $0x6a4] ss:$16 sps:$4 sm:$0xff]  }
0x19c1   : > { %6195 = vmatpush1.bf16.msra.mxu0 %v9862_v51  ;;  %v9933_v51 = vld [vmem:[%s12657_s8 + $0x6ac] ss:$16 sps:$4 sm:$0xff]  }
0x19c2   : > { %6359 = vmatpush1.bf16.msra.mxu1 %v9865_v45  ;;  %6196 = vmatprep.subr.bf16.mxu0 %v9870_v44  ;;  %v9928_v45 = vld [vmem:[%s12657_s8 + $0x6a0] ss:$16 sps:$4 sm:$0xff]   ;;  %v9931_v44 = vld [vmem:[%s12657_s8 + $0x6a8] ss:$16 sps:$4 sm:$0xff]  }
0x19c3   : > { %6360 = vmatprep.subr.bf16.mxu1 %v9873_v6  ;;  %v9936_v6 = vld [vmem:[%s12657_s8 + $0x6c4] ss:$16 sps:$4 sm:$0xff]  }
0x19c5   : > { %6197 = vmatpush1.bf16.msra.mxu0 %v9868_v42  ;;  %v9939_v42 = vld [vmem:[%s12657_s8 + $0x6cc] ss:$16 sps:$4 sm:$0xff]  }
0x19c6   : > { %6361 = vmatpush1.bf16.msra.mxu1 %v9871_v18  ;;  %6198 = vmatprep.subr.bf16.mxu0 %v9876_v63  ;;  %v9934_v18 = vld [vmem:[%s12657_s8 + $0x6c0] ss:$16 sps:$4 sm:$0xff]   ;;  %v9937_v63 = vld [vmem:[%s12657_s8 + $0x6c8] ss:$16 sps:$4 sm:$0xff]  }
0x19c7   : > { %6362 = vmatprep.subr.bf16.mxu1 %v9879_v57  ;;  %v9942_v57 = vld [vmem:[%s12657_s8 + $0x6e4] ss:$16 sps:$4 sm:$0xff]  }
0x19c9   : > { %6199 = vmatpush1.bf16.msra.mxu0 %v9874_v3  ;;  %v9945_v3 = vld [vmem:[%s12657_s8 + $0x6ec] ss:$16 sps:$4 sm:$0xff]  }
0x19ca   : > { %6363 = vmatpush1.bf16.msra.mxu1 %v9877_v12  ;;  %6200 = vmatprep.subr.bf16.mxu0 %v9882_v14  ;;  %v9943_v12 = vld [vmem:[%s12657_s8 + $0x6e8] ss:$16 sps:$4 sm:$0xff]   ;;  %v9948_v14 = vld [vmem:[%s12657_s8 + $0x704] ss:$16 sps:$4 sm:$0xff]  }
0x19cb   : > { %6364 = vmatprep.subr.bf16.mxu1 %v9885_v20  ;;  %v9951_v20 = vld [vmem:[%s12657_s8 + $0x70c] ss:$16 sps:$4 sm:$0xff]  }
0x19cd   : > { %6201 = vmatpush1.bf16.msra.mxu0 %v9880_v16  ;;  %v9949_v16 = vld [vmem:[%s12657_s8 + $0x708] ss:$16 sps:$4 sm:$0xff]  }
0x19ce   : > { %6365 = vmatpush1.bf16.msra.mxu1 %v9883_v25  ;;  %6202 = vmatprep.subr.bf16.mxu0 %v9888_v37  ;;  %v9957_v25 = vld [vmem:[%s12657_s8 + $0x72c] ss:$16 sps:$4 sm:$0xff]   ;;  %v9952_v37 = vld [vmem:[%s12657_s8 + $0x720] ss:$16 sps:$4 sm:$0xff]  }
0x19cf   : > { %6366 = vmatprep.subr.bf16.mxu1 %v9891_v38  ;;  %v9955_v38 = vld [vmem:[%s12657_s8 + $0x728] ss:$16 sps:$4 sm:$0xff]  }
0x19d1   : > { %6203 = vmatpush1.bf16.msra.mxu0 %v9886_v59  ;;  %v9963_v59 = vld [vmem:[%s12657_s8 + $0x74c] ss:$16 sps:$4 sm:$0xff]  }
0x19d2   : > { %6367 = vmatpush1.bf16.msra.mxu1 %v9889_v39  ;;  %6204 = vmatprep.subr.bf16.mxu0 %v9894_v15  ;;  %v9961_v39 = vld [vmem:[%s12657_s8 + $0x748] ss:$16 sps:$4 sm:$0xff]   ;;  %v9966_v15 = vld [vmem:[%s12657_s8 + $0x764] ss:$16 sps:$4 sm:$0xff]  }
0x19d3   : > { %6368 = vmatprep.subr.bf16.mxu1 %v9897_v58  ;;  %v9969_v58 = vld [vmem:[%s12657_s8 + $0x76c] ss:$16 sps:$4 sm:$0xff]  }
0x19d5   : > { %6205 = vmatpush1.bf16.msra.mxu0 %v9892_v5  ;;  %v12221_v5 = vsub.s32 6, %v11645_v26 }
0x19d6   : > { %6369 = vmatpush1.bf16.msra.mxu1 %v9895_v47  ;;  %6215 = vmatprep.subr.bf16.mxu0 %v9900_v22  ;;  %v9972_v47 = vld [vmem:[%s12657_s8 + $0x784] ss:$16 sps:$4 sm:$0xff]   ;;  %v9975_v22 = vld [vmem:[%s12657_s8 + $0x78c] ss:$16 sps:$4 sm:$0xff]  }
0x19d7   : > { %6379 = vmatprep.subr.bf16.mxu1 %v9903_v17  ;;  %v9970_v17 = vld [vmem:[%s12657_s8 + $0x780] ss:$16 sps:$4 sm:$0xff]   ;;  %v4330_v27 = vrot.slane %v11653_v32, %v12221_v5 }
0x19d8   : > { %6207 = vmatmul.mubr.bf16.vlgmr.msra.gmra.mrb[140].mxu0 %v4530_v48  ;;  %v9976_v32 = vld [vmem:[%s12657_s8 + $0x7a0] ss:$16 sps:$4 sm:$0xff]  }
0x19d9   : > { %6371 = vmatmul.mubr.bf16.vlgmr.msra.gmra.mrb[152].mxu1 %v4530_v48  ;;  %6216 = vmatpush1.bf16.msra.mxu0 %v9898_v40  ;;  %v9973_v40 = vld [vmem:[%s12657_s8 + $0x788] ss:$16 sps:$4 sm:$0xff]   ;;  %v9978_v48 = vld [vmem:[%s12657_s8 + $0x7a4] ss:$16 sps:$4 sm:$0xff]  }
0x19da   : > { %6247 = vmatprep.mubr.bf16.mxu0 %v4533_v52  ;;  %6380 = vmatpush1.bf16.msra.mxu1 %v9901_v21  ;;  %v9981_v21 = vld [vmem:[%s12657_s8 + $0x7ac] ss:$16 sps:$4 sm:$0xff]  }
0x19db   : > { %6411 = vmatprep.mubr.bf16.mxu1 %v4533_v52  ;;  %6217 = vmatprep.subr.bf16.mxu0 %v9906_v49  ;;  %v4504_v49 = vadd.f32 %v11695_v2, %v4330_v27  ;;  %v9979_v52 = vld [vmem:[%s12657_s8 + $0x7a8] ss:$16 sps:$4 sm:$0xff]   ;;  %v9982_v2 = vld [vmem:[%s12657_s8 + $0x7c0] ss:$16 sps:$4 sm:$0xff]  }
0x19dc   : > { %6381 = vmatprep.subr.bf16.mxu1 %v9909_v29  ;;  %v9984_v29 = vld [vmem:[%s12657_s8 + $0x7c4] ss:$16 sps:$4 sm:$0xff]  }
0x19dd   : > { %6218 = vmatpush1.bf16.msra.mxu0 %v9904_v35  ;;  %v9987_v35 = vld [vmem:[%s12657_s8 + $0x7cc] ss:$16 sps:$4 sm:$0xff]  }
0x19de   : > { %6382 = vmatpush1.bf16.msra.mxu1 %v9907_v31  ;;  %6219 = vmatprep.subr.bf16.mxu0 %v9912_v19  ;;  %v4516_v31 = vmul.f32 0.2, %v4504_v49  ;;  %v9985_v19 = vld [vmem:[%s12657_s8 + $0x7c8] ss:$16 sps:$4 sm:$0xff]  }
0x19df   : > { %6383 = vmatprep.subr.bf16.mxu1 %v9915_v10  ;;  %v9990_v10 = vld [vmem:[%s12657_s8 + $0x7e4] ss:$16 sps:$4 sm:$0xff]  }
0x19e1   : > { %6220 = vmatpush1.bf16.msra.mxu0 %v9910_v46  ;;  %v9993_v46 = vld [vmem:[%s12657_s8 + $0x7ec] ss:$16 sps:$4 sm:$0xff]  }
0x19e2   : > { %6384 = vmatpush1.bf16.msra.mxu1 %v9913_v50  ;;  %6221 = vmatprep.subr.bf16.mxu0 %v9918_v34  ;;  %v9988_v50 = vld [vmem:[%s12657_s8 + $0x7e0] ss:$16 sps:$4 sm:$0xff]   ;;  %v4524_v34 = vmax.f32 %v4504_v49, %v4516_v31 }
0x19e3   : > { %6385 = vmatprep.subr.bf16.mxu1 %v9921_v62  ;;  %v9991_v62 = vld [vmem:[%s12657_s8 + $0x7e8] ss:$16 sps:$4 sm:$0xff]  }
0x19e5   : > { %6222 = vmatpush1.bf16.msra.mxu0 %v9916_v56  ;;  %v9994_v56 = vld [vmem:[%s12658_s9 + $0x40] sm:$0xff]  }
0x19e6   : > { %6386 = vmatpush1.bf16.msra.mxu1 %v9919_v4  ;;  %6223 = vmatprep.subr.bf16.mxu0 %v9924_v7  ;;  %v9995_v4 = vld [vmem:[%s12658_s9 + $0xc0] sm:$0xff]  }
0x19e7   : > { %6387 = vmatprep.subr.bf16.mxu1 %v9927_v13  ;;  %v9996_v7 = vld [vmem:[%s12658_s9] sm:$0xff]   ;;  %v4532_v13 = vpack.c.bf16 %v4524_v34, %v4524_v34 }
0x19e9   : > { %6224 = vmatpush1.bf16.msra.mxu0 %v9922_v30  ;;  %v9997_v30 = vld [vmem:[%s12658_s9 + $0x80] sm:$0xff]  }
0x19ea   : > { %6388 = vmatpush1.bf16.msra.mxu1 %v9925_v11  ;;  %6225 = vmatprep.subr.bf16.mxu0 %v9930_v55  ;;  %v9998_v11 = vld [vmem:[%s12658_s9 + $0x48] sm:$0xff]  }
0x19eb   : > { %6389 = vmatprep.subr.bf16.mxu1 %v9933_v51  ;;  %v9999_v55 = vld [vmem:[%s12658_s9 + $0xc8] sm:$0xff]  }
0x19ec   : > { %v10000_v51 = vld [vmem:[%s12658_s9 + $0x8] sm:$0xff]  }
0x19ed   : > { %6226 = vmatpush1.bf16.msra.mxu0 %v9928_v45  ;;  %v10001_v45 = vld [vmem:[%s12658_s9 + $0x88] sm:$0xff]  }
0x19ee   : > { %6390 = vmatpush1.bf16.msra.mxu1 %v9931_v44  ;;  %6227 = vmatprep.subr.bf16.mxu0 %v9936_v6  ;;  %v10002_v44 = vld [vmem:[%s12658_s9 + $0x50] sm:$0xff]  }
0x19ef   : > { %6391 = vmatprep.subr.bf16.mxu1 %v9939_v42  ;;  %v10003_v6 = vld [vmem:[%s12658_s9 + $0xd0] sm:$0xff]  }
0x19f0   : > { %v10004_v42 = vld [vmem:[%s12658_s9 + $0x10] sm:$0xff]  }
0x19f1   : > { %6228 = vmatpush1.bf16.msra.mxu0 %v9934_v18  ;;  %v10005_v18 = vld [vmem:[%s12658_s9 + $0x90] sm:$0xff]  }
0x19f2   : > { %6392 = vmatpush1.bf16.msra.mxu1 %v9937_v63  ;;  %6229 = vmatprep.subr.bf16.mxu0 %v9942_v57  ;;  %v10006_v63 = vld [vmem:[%s12658_s9 + $0x58] sm:$0xff]  }
0x19f3   : > { %6393 = vmatprep.subr.bf16.mxu1 %v9945_v3  ;;  %v10007_v57 = vld [vmem:[%s12658_s9 + $0xd8] sm:$0xff]  }
0x19f4   : > { %v10008_v3 = vld [vmem:[%s12658_s9 + $0x18] sm:$0xff]  }
0x19f5   : > { %6230 = vmatpush1.bf16.msra.mxu0 %v9940_v0  ;;  %v10009_v0 = vld [vmem:[%s12658_s9 + $0x98] sm:$0xff]  }
0x19f6   : > { %6394 = vmatpush1.bf16.msra.mxu1 %v9943_v12  ;;  %6231 = vmatprep.subr.bf16.mxu0 %v9948_v14  ;;  %v10010_v12 = vld [vmem:[%s12658_s9 + $0x60] sm:$0xff]  }
0x19f7   : > { %6395 = vmatprep.subr.bf16.mxu1 %v9951_v20  ;;  %v10011_v14 = vld [vmem:[%s12658_s9 + $0xe0] sm:$0xff]  }
0x19f8   : > { %v10012_v20 = vld [vmem:[%s12658_s9 + $0x20] sm:$0xff]  }
0x19f9   : > { %6232 = vmatpush1.bf16.msra.mxu0 %v9946_v33  ;;  %v10013_v33 = vld [vmem:[%s12658_s9 + $0xa0] sm:$0xff]  }
0x19fa   : > { %6396 = vmatpush1.bf16.msra.mxu1 %v9949_v16  ;;  %6233 = vmatprep.subr.bf16.mxu0 %v9954_v24  ;;  %v10014_v16 = vld [vmem:[%s12658_s9 + $0x68] sm:$0xff]  }
0x19fb   : > { %6397 = vmatprep.subr.bf16.mxu1 %v9957_v25  ;;  %v10015_v24 = vld [vmem:[%s12658_s9 + $0xe8] sm:$0xff]  }
0x19fc   : > { %v10016_v25 = vld [vmem:[%s12658_s9 + $0x28] sm:$0xff]  }
0x19fd   : > { %6234 = vmatpush1.bf16.msra.mxu0 %v9952_v37  ;;  %v10017_v37 = vld [vmem:[%s12658_s9 + $0xa8] sm:$0xff]  }
0x19fe   : > { %6398 = vmatpush1.bf16.msra.mxu1 %v9955_v38  ;;  %6235 = vmatprep.subr.bf16.mxu0 %v9960_v9  ;;  %v10018_v38 = vld [vmem:[%s12658_s9 + $0x70] sm:$0xff]  }
0x19ff   : > { %6399 = vmatprep.subr.bf16.mxu1 %v9963_v59  ;;  %v10019_v9 = vld [vmem:[%s12658_s9 + $0xf0] sm:$0xff]  }
0x1a00   : > { %v10020_v59 = vld [vmem:[%s12658_s9 + $0x30] sm:$0xff]  }
0x1a01   : > { %6236 = vmatpush1.bf16.msra.mxu0 %v9958_v41  ;;  %v10021_v41 = vld [vmem:[%s12658_s9 + $0xb0] sm:$0xff]  }
0x1a02   : > { %6400 = vmatpush1.bf16.msra.mxu1 %v9961_v39  ;;  %6237 = vmatprep.subr.bf16.mxu0 %v9966_v15  ;;  %v10022_v39 = vld [vmem:[%s12658_s9 + $0x78] sm:$0xff]  }
0x1a03   : > { %6401 = vmatprep.subr.bf16.mxu1 %v9969_v58  ;;  %v10023_v15 = vld [vmem:[%s12658_s9 + $0xf8] sm:$0xff]  }
0x1a04   : > { %v10024_v58 = vld [vmem:[%s12658_s9 + $0x38] sm:$0xff]  }
0x1a05   : > { %6238 = vmatpush1.bf16.msra.mxu0 %v9964_v60  ;;  %v10025_v60 = vld [vmem:[%s12658_s9 + $0xb8] sm:$0xff]  }
0x1a06   : > { %6402 = vmatpush1.bf16.msra.mxu1 %v9967_v8  ;;  %6239 = vmatprep.subr.bf16.mxu0 %v9972_v47  ;;  %v6770_v8 = vld [vmem:[%s12659_s10] sm:$0xff] }
0x1a07   : > { %6403 = vmatprep.subr.bf16.mxu1 %v9975_v22  ;;  %v6778_v47 = vld [vmem:[%s12659_s10 + $0x40] sm:$0xff]  ;;  %v6771_v22 = vld [vmem:[%s12659_s10 + $0x8] sm:$0xff] }
0x1a08   : > { %v8430_v27 = vcombine.high %v6770_v8, %v6778_v47 }
0x1a09   : > { %6240 = vmatpush1.bf16.msra.mxu0 %v9970_v17  ;;  %v8429_v17 = vcombine.low %v6770_v8, %v6778_v47  ;;  %v6826_v8 = vld [vmem:[%s12659_s10 + $0x1c0] sm:$0xff]  ;;  %v6819_v47 = vld [vmem:[%s12659_s10 + $0x188] sm:$0xff] }
0x1a0a   : > { %6404 = vmatpush1.bf16.msra.mxu1 %v9973_v40  ;;  %6241 = vmatprep.subr.bf16.mxu0 %v9978_v48  ;;  %v6779_v40 = vld [vmem:[%s12659_s10 + $0x48] sm:$0xff] }
0x1a0b   : > { %6405 = vmatprep.subr.bf16.mxu1 %v9981_v21  ;;  %v8431_v48 = vcombine.low %v6771_v22, %v6779_v40  ;;  %v8432_v21 = vcombine.high %v6771_v22, %v6779_v40 }
0x1a0d   : > { %6242 = vmatpush1.bf16.msra.mxu0 %v9976_v32  ;;  %v4790_v32 = vld [vmem:[%s12660_s11 + $0x8] sm:$0xf] }
0x1a0e   : > { %6406 = vmatpush1.bf16.msra.mxu1 %v9979_v52  ;;  %6243 = vmatprep.subr.bf16.mxu0 %v9984_v29  ;;  %v6075_v49 = vrot.slane %v4790_v32, %v11648_v28  ;;  %v6083_v52 = vrot.slane %v4790_v32, %v11816_v53  ;;  %v6079_v29 = vrot.slane %v4790_v32, %v11656_v43 }
0x1a0f   : > { %6407 = vmatprep.subr.bf16.mxu1 %v9987_v35  ;;  %v6087_v35 = vrot.slane %v4790_v32, %v11659_v36  ;;  %v6780_v32 = vld [vmem:[%s12659_s10 + $0x50] sm:$0xff] }
0x1a11   : > { %6244 = vmatpush1.bf16.msra.mxu0 %v9982_v2 }
0x1a12   : > { %6408 = vmatpush1.bf16.msra.mxu1 %v9985_v19  ;;  %6245 = vmatprep.subr.bf16.mxu0 %v9990_v10 }
0x1a13   : > { %6409 = vmatprep.subr.bf16.mxu1 %v9993_v46 }
0x1a15   : > { %6246 = vmatpush1.bf16.msra.mxu0 %v9988_v50 }
0x1a16   : > { %6410 = vmatpush1.bf16.msra.mxu1 %v9991_v62  ;;  %8740 = vmatprep.subr.bf16.mxu0 %v9994_v56 }
0x1a17   : > { %8762 = vmatprep.subr.bf16.mxu1 %v9995_v4 }
0x1a18   : > { %6248 = vmatmul.mubr.bf16.vlgmr.msra.gmra.mrb[140].mxu0 %v4532_v13 }
0x1a19   : > { %6412 = vmatmul.mubr.bf16.vlgmr.msra.gmra.mrb[152].mxu1 %v4532_v13  ;;  %8741 = vmatpush3.bf16.msra.mxu0 %v9996_v7 }
0x1a1a   : > { %8763 = vmatpush3.bf16.msra.mxu1 %v9997_v30  ;;  %8742 = vmatprep.subr.bf16.mxu0 %v9998_v11 }
0x1a1b   : > { %8764 = vmatprep.subr.bf16.mxu1 %v9999_v55 }
0x1a1d   : > { %8743 = vmatpush3.bf16.msra.mxu0 %v10000_v51 }
0x1a1e   : > { %8765 = vmatpush3.bf16.msra.mxu1 %v10001_v45  ;;  %8744 = vmatprep.subr.bf16.mxu0 %v10002_v44 }
0x1a1f   : > { %8766 = vmatprep.subr.bf16.mxu1 %v10003_v6 }
0x1a21   : > { %8745 = vmatpush3.bf16.msra.mxu0 %v10004_v42  ;;  %v6786_v42 = vld [vmem:[%s12659_s10 + $0x80] sm:$0xff] }
0x1a22   : > { %8767 = vmatpush3.bf16.msra.mxu1 %v10005_v18  ;;  %8746 = vmatprep.subr.bf16.mxu0 %v10006_v63  ;;  %v6794_v18 = vld [vmem:[%s12659_s10 + $0xc0] sm:$0xff] }
0x1a23   : > { %8768 = vmatprep.subr.bf16.mxu1 %v10007_v57  ;;  %v6787_v57 = vld [vmem:[%s12659_s10 + $0x88] sm:$0xff] }
0x1a25   : > { %8747 = vmatpush3.bf16.msra.mxu0 %v10008_v3  ;;  %v6795_v3 = vld [vmem:[%s12659_s10 + $0xc8] sm:$0xff] }
0x1a26   : > { %8769 = vmatpush3.bf16.msra.mxu1 %v10009_v0  ;;  %8748 = vmatprep.subr.bf16.mxu0 %v10010_v12 }
0x1a27   : > { %8770 = vmatprep.subr.bf16.mxu1 %v10011_v14 }
0x1a29   : > { %8749 = vmatpush3.bf16.msra.mxu0 %v10012_v20  ;;  %v8446_v20 = vcombine.high %v6786_v42, %v6794_v18 }
0x1a2a   : > { %8771 = vmatpush3.bf16.msra.mxu1 %v10013_v33  ;;  %8750 = vmatprep.subr.bf16.mxu0 %v10014_v16  ;;  %v8448_v16 = vcombine.high %v6787_v57, %v6795_v3 }
0x1a2b   : > { %8772 = vmatprep.subr.bf16.mxu1 %v10015_v24  ;;  %v8445_v24 = vcombine.low %v6786_v42, %v6794_v18 }
0x1a2d   : > { %8751 = vmatpush3.bf16.msra.mxu0 %v10016_v25  ;;  %v8447_v25 = vcombine.low %v6787_v57, %v6795_v3  ;;  %v6804_v57 = vld [vmem:[%s12659_s10 + $0x110] sm:$0xff] }
0x1a2e   : > { %8773 = vmatpush3.bf16.msra.mxu1 %v10017_v37  ;;  %8752 = vmatprep.subr.bf16.mxu0 %v10018_v38  ;;  %v6802_v37 = vld [vmem:[%s12659_s10 + $0x100] sm:$0xff]  ;;  %v6812_v3 = vld [vmem:[%s12659_s10 + $0x150] sm:$0xff] }
0x1a2f   : > { %8774 = vmatprep.subr.bf16.mxu1 %v10019_v9  ;;  %v6810_v38 = vld [vmem:[%s12659_s10 + $0x140] sm:$0xff]  ;;  %v6803_v9 = vld [vmem:[%s12659_s10 + $0x108] sm:$0xff] }
0x1a31   : > { %8753 = vmatpush3.bf16.msra.mxu0 %v10020_v59  ;;  %v8462_v59 = vcombine.high %v6802_v37, %v6810_v38 }
0x1a32   : > { %8775 = vmatpush3.bf16.msra.mxu1 %v10021_v41  ;;  %8754 = vmatprep.subr.bf16.mxu0 %v10022_v39  ;;  %v6811_v41 = vld [vmem:[%s12659_s10 + $0x148] sm:$0xff]  ;;  %v8461_v39 = vcombine.low %v6802_v37, %v6810_v38  ;;  %v6821_v37 = vld [vmem:[%s12659_s10 + $0x198] sm:$0xff] }
0x1a33   : > { %8776 = vmatprep.subr.bf16.mxu1 %v10023_v15  ;;  %v8463_v15 = vcombine.low %v6803_v9, %v6811_v41  ;;  %v6829_v38 = vld [vmem:[%s12659_s10 + $0x1d8] sm:$0xff] }
0x1a35   : > { %8755 = vmatpush3.bf16.msra.mxu0 %v10024_v58  ;;  %v8464_v58 = vcombine.high %v6803_v9, %v6811_v41  ;;  %v8465_v9 = vcombine.low %v6804_v57, %v6812_v3 }
0x1a36   : > { %8777 = vmatpush3.bf16.msra.mxu1 %v10025_v60  ;;  %7241 = vmatprep.subr.bf16.mxu0 %v8430_v27  ;;  %v6818_v60 = vld [vmem:[%s12659_s10 + $0x180] sm:$0xff] }
0x1a37   : > { %7282 = vmatprep.subr.bf16.mxu1 %v8432_v21  ;;  %v8478_v22 = vcombine.high %v6818_v60, %v6826_v8  ;;  %v8477_v27 = vcombine.low %v6818_v60, %v6826_v8  ;;  %v6772_v21 = vld [vmem:[%s12659_s10 + $0x10] sm:$0xff]  ;;  %v6775_v60 = vld [vmem:[%s12659_s10 + $0x28] sm:$0xff] }
0x1a38   : > { %v6783_v8 = vld [vmem:[%s12659_s10 + $0x68] sm:$0xff] }
0x1aeb   : > { %v6249_v2 = vpop.f32.mrb[140].mxu0 }
0x1aec   : > { %v9489_v31 = vadd.f32 %v6249_v2, %v6075_v49  ;;  %v6413_v19 = vpop.f32.mrb[152].mxu1  ;;  %v6251_v10 = vpop.f32.mrb[141].mxu0  ;;  %v6773_v49 = vld [vmem:[%s12659_s10 + $0x18] sm:$0xff] }
0x1aed   : > { %v9491_v46 = vadd.f32 %v6413_v19, %v6083_v52  ;;  %v9490_v50 = vadd.f32 %v6251_v10, %v6079_v29  ;;  %v6415_v34 = vpop.f32.mrb[153].mxu1  ;;  %v6253_v62 = vpop.f32.mrb[142].mxu0  ;;  %v8433_v52 = vcombine.low %v6772_v21, %v6780_v32  ;;  %v8434_v29 = vcombine.high %v6772_v21, %v6780_v32  ;;  %v6791_v21 = vld [vmem:[%s12659_s10 + $0xa8] sm:$0xff] }
0x1aee   : > { %v6420_v56 = vmul.f32 0.2, %v9489_v31  ;;  %v9492_v4 = vadd.f32 %v6415_v34, %v6087_v35  ;;  %v6417_v7 = vpop.f32.mrb[154].mxu1  ;;  %v6254_v13 = vpop.f32.mrb[143].mxu0  ;;  %v6781_v35 = vld [vmem:[%s12659_s10 + $0x58] sm:$0xff]  ;;  %v6799_v32 = vld [vmem:[%s12659_s10 + $0xe8] sm:$0xff] }
0x1aef   : > { %v6422_v30 = vmul.f32 0.2, %v9491_v46  ;;  %v6421_v11 = vmul.f32 0.2, %v9490_v50  ;;  %v6418_v55 = vpop.f32.mrb[155].mxu1  ;;  %v8435_v2 = vcombine.low %v6773_v49, %v6781_v35 }
0x1af0   : > { %v6424_v51 = vmax.f32 %v9489_v31, %v6420_v56  ;;  %v6423_v45 = vmul.f32 0.2, %v9492_v4  ;;  %v8436_v31 = vcombine.high %v6773_v49, %v6781_v35  ;;  %v6788_v55 = vld [vmem:[%s12659_s10 + $0x90] sm:$0xff]  ;;  %v8456_v35 = vcombine.high %v6791_v21, %v6799_v32 }
0x1af1   : > { %v6426_v44 = vmax.f32 %v9491_v46, %v6422_v30  ;;  %v6425_v6 = vmax.f32 %v9490_v50, %v6421_v11  ;;  %v6496_v46 = vld [vmem:[%s12652_s3 + $0x10] sm:$0x1] }
0x1af2   : > { %v6427_v63 = vmax.f32 %v9492_v4, %v6423_v45  ;;  %v6428_v12 = vpack.c.bf16 %v6424_v51, %v6424_v51  ;;  %v6796_v51 = vld [vmem:[%s12659_s10 + $0xd0] sm:$0xff]  ;;  %v6789_v45 = vld [vmem:[%s12659_s10 + $0x98] sm:$0xff] }
0x1af3   : > { %v6429_v0 = vpack.c.bf16 %v6425_v6, %v6425_v6  ;;  %v6430_v33 = vpack.c.bf16 %v6426_v44, %v6426_v44  ;;  %v6797_v44 = vld [vmem:[%s12659_s10 + $0xd8] sm:$0xff]  ;;  %v8450_v18 = vcombine.high %v6788_v55, %v6796_v51 }
0x1af4   : > { %v6431_v14 = vpack.c.bf16 %v6427_v63, %v6427_v63  ;;  %v8452_v63 = vcombine.high %v6789_v45, %v6797_v44 }
0x1af5   : > { %6721 = vmatprep.mubr.bf16.mxu0 %v6429_v0  ;;  %v6805_v0 = vld [vmem:[%s12659_s10 + $0x118] sm:$0xff] }
0x1af6   : > { %6761 = vmatprep.mubr.bf16.mxu1 %v6431_v14  ;;  %6722 = vmatmul.mubr.bf16.vlgmr.msra.gmra.mrb[144].mxu0 %v6428_v12  ;;  %v6813_v12 = vld [vmem:[%s12659_s10 + $0x158] sm:$0xff]  ;;  %v8449_v14 = vcombine.low %v6788_v55, %v6796_v51 }
0x1af7   : > { %6762 = vmatmul.mubr.bf16.vlgmr.msra.gmra.mrb[156].mxu1 %v6430_v33  ;;  %7242 = vmatpush1.bf16.msra.mxu0 %v8429_v17  ;;  %v6827_v17 = vld [vmem:[%s12659_s10 + $0x1c8] sm:$0xff]  ;;  %v8466_v33 = vcombine.high %v6804_v57, %v6812_v3 }
0x1af8   : > { %7283 = vmatpush1.bf16.msra.mxu1 %v8431_v48  ;;  %7243 = vmatprep.subr.bf16.mxu0 %v8446_v20  ;;  %v8479_v40 = vcombine.low %v6819_v47, %v6827_v17  ;;  %v8480_v48 = vcombine.high %v6819_v47, %v6827_v17  ;;  %v8451_v20 = vcombine.low %v6789_v45, %v6797_v44  ;;  %v6776_v45 = vld [vmem:[%s12659_s10 + $0x30] sm:$0xff] }
0x1af9   : > { %7284 = vmatprep.subr.bf16.mxu1 %v8448_v16  ;;  %7273 = vmatprep.mubr.bf16.mxu0 %v10187_v23  ;;  %v8468_v16 = vcombine.high %v6805_v0, %v6813_v12  ;;  %v6784_v44 = vld [vmem:[%s12659_s10 + $0x70] sm:$0xff] }
0x1afa   : > { %7314 = vmatprep.mubr.bf16.mxu1 %v10187_v23  ;;  %v8442_v3 = vcombine.high %v6776_v45, %v6784_v44 }
0x1afb   : > { %7244 = vmatpush1.bf16.msra.mxu0 %v8445_v24  ;;  %v6820_v24 = vld [vmem:[%s12659_s10 + $0x190] sm:$0xff] }
0x1afc   : > { %7285 = vmatpush1.bf16.msra.mxu1 %v8447_v25  ;;  %7245 = vmatprep.subr.bf16.mxu0 %v8462_v59  ;;  %v6828_v25 = vld [vmem:[%s12659_s10 + $0x1d0] sm:$0xff]  ;;  %v8467_v59 = vcombine.low %v6805_v0, %v6813_v12 }
0x1afd   : > { %7286 = vmatprep.subr.bf16.mxu1 %v8464_v58  ;;  %v8482_v41 = vcombine.high %v6820_v24, %v6828_v25  ;;  %v6782_v58 = vld [vmem:[%s12659_s10 + $0x60] sm:$0xff]  ;;  %v8481_v47 = vcombine.low %v6820_v24, %v6828_v25  ;;  %v6792_v12 = vld [vmem:[%s12659_s10 + $0xb0] sm:$0xff] }
0x1aff   : > { %7246 = vmatpush1.bf16.msra.mxu0 %v8461_v39  ;;  %v8484_v39 = vcombine.high %v6821_v37, %v6829_v38 }
0x1b00   : > { %7287 = vmatpush1.bf16.msra.mxu1 %v8463_v15  ;;  %7247 = vmatprep.subr.bf16.mxu0 %v8478_v22  ;;  %v6774_v15 = vld [vmem:[%s12659_s10 + $0x20] sm:$0xff]  ;;  %v8483_v22 = vcombine.low %v6821_v37, %v6829_v38  ;;  %v6808_v38 = vld [vmem:[%s12659_s10 + $0x130] sm:$0xff] }
0x1b01   : > { %7288 = vmatprep.subr.bf16.mxu1 %v8480_v48  ;;  %v8438_v17 = vcombine.high %v6774_v15, %v6782_v58  ;;  %v6798_v48 = vld [vmem:[%s12659_s10 + $0xe0] sm:$0xff]  ;;  %v8437_v49 = vcombine.low %v6774_v15, %v6782_v58 }
0x1b03   : > { %7248 = vmatpush1.bf16.msra.mxu0 %v8477_v27  ;;  %v8440_v27 = vcombine.high %v6775_v60, %v6783_v8 }
0x1b04   : > { %7289 = vmatpush1.bf16.msra.mxu1 %v8479_v40  ;;  %7323 = vmatprep.subr.bf16.mxu0 %v8434_v29  ;;  %v6790_v40 = vld [vmem:[%s12659_s10 + $0xa0] sm:$0xff] }
0x1b05   : > { %7364 = vmatprep.subr.bf16.mxu1 %v8436_v31  ;;  %v8454_v29 = vcombine.high %v6790_v40, %v6798_v48  ;;  %v6814_v31 = vld [vmem:[%s12659_s10 + $0x160] sm:$0xff] }
0x1bc9   : > { %v8756_v19 = vpop.f32.mrb[144].mxu0 }
0x1bca   : > { %v8778_v10 = vpop.f32.mrb[156].mxu1  ;;  %v8757_v50 = vpop.f32.mrb[145].mxu0 }
0x1bcb   : > { %v8758_v34 = vadd.f32 %v8757_v50, %v8756_v19  ;;  %v8779_v62 = vpop.f32.mrb[157].mxu1  ;;  %v8759_v56 = vpop.f32.mrb[146].mxu0  ;;  %v6807_v19 = vld [vmem:[%s12659_s10 + $0x128] sm:$0xff]  ;;  %v8455_v50 = vcombine.low %v6791_v21, %v6799_v32 }
0x1bcc   : > { %v8780_v4 = vadd.f32 %v8779_v62, %v8778_v10  ;;  %v8781_v7 = vpop.f32.mrb[158].mxu1  ;;  %v8760_v13 = vpop.f32.mrb[147].mxu0  ;;  %v6815_v10 = vld [vmem:[%s12659_s10 + $0x168] sm:$0xff]  ;;  %v6822_v56 = vld [vmem:[%s12659_s10 + $0x1a0] sm:$0xff] }
0x1bcd   : > { %v6724_v30 = vadd.f32 %v8758_v34, %v6496_v46  ;;  %v8782_v11 = vpop.f32.mrb[159].mxu1  ;;  %v8453_v46 = vcombine.low %v6790_v40, %v6798_v48  ;;  %v8472_v62 = vcombine.high %v6807_v19, %v6815_v10  ;;  %v6823_v7 = vld [vmem:[%s12659_s10 + $0x1a8] sm:$0xff] }
0x1bce   : > { %v6831_v13 = vld [vmem:[%s12659_s10 + $0x1e8] sm:$0xff]  ;;  %v8471_v11 = vcombine.low %v6807_v19, %v6815_v10 }
0x1bcf   : > { %v6764_v6 = vadd.f32 %v8780_v4, %v6724_v30  ;;  %v6830_v4 = vld [vmem:[%s12659_s10 + $0x1e0] sm:$0xff]  ;;  %v8488_v51 = vcombine.high %v6823_v7, %v6831_v13  ;;  %v8487_v57 = vcombine.low %v6823_v7, %v6831_v13 }
0x1bd0   : > { %v8486_v55 = vcombine.high %v6822_v56, %v6830_v4 }
0x1bd1   : > { %v12457_v42 = vpack.c.bf16 %v6764_v6, %v6764_v6  ;;  %v6777_v6 = vld [vmem:[%s12659_s10 + $0x38] sm:$0xff] }
0x1bd3   : > { %8493 = vmatmul.mubr.msk.bf16.vlgmr.msra.gmra.mrb[148].mxu0 %vm580_vm2, %v12457_v42  ;;  %8494 = vmatmul.mubr.msk.bf16.vlgmr.msra.gmra.mrb[160].mxu1 %vm580_vm2, %v12457_v42 }
0x1bd4   : > { %7324 = vmatpush1.bf16.msra.mxu0 %v8433_v52  ;;  %7365 = vmatpush1.bf16.msra.mxu1 %v8435_v2  ;;  %v8439_v52 = vcombine.low %v6775_v60, %v6783_v8  ;;  %v6806_v2 = vld [vmem:[%s12659_s10 + $0x120] sm:$0xff]  ;;  %v6824_v8 = vld [vmem:[%s12659_s10 + $0x1b0] sm:$0xff] }
0x1bd5   : > { %7325 = vmatprep.subr.bf16.mxu0 %v8450_v18  ;;  %7366 = vmatprep.subr.bf16.mxu1 %v8452_v63  ;;  %v8470_v34 = vcombine.high %v6806_v2, %v6814_v31  ;;  %v8469_v30 = vcombine.low %v6806_v2, %v6814_v31  ;;  %v6785_v18 = vld [vmem:[%s12659_s10 + $0x78] sm:$0xff]  ;;  %v8485_v63 = vcombine.low %v6822_v56, %v6830_v4 }
0x1bd6   : > { %7355 = vmatprep.mubr.bf16.mxu0 %v10187_v23  ;;  %7396 = vmatprep.mubr.bf16.mxu1 %v10187_v23  ;;  %v8444_v0 = vcombine.high %v6777_v6, %v6785_v18  ;;  %v8443_v24 = vcombine.low %v6777_v6, %v6785_v18 }
0x1bd8   : > { %7326 = vmatpush1.bf16.msra.mxu0 %v8449_v14  ;;  %7367 = vmatpush1.bf16.msra.mxu1 %v8451_v20  ;;  %v6800_v14 = vld [vmem:[%s12659_s10 + $0xf0] sm:$0xff]  ;;  %v6793_v20 = vld [vmem:[%s12659_s10 + $0xb8] sm:$0xff] }
0x1bd9   : > { %7327 = vmatprep.subr.bf16.mxu0 %v8466_v33  ;;  %7368 = vmatprep.subr.bf16.mxu1 %v8468_v16  ;;  %v6801_v33 = vld [vmem:[%s12659_s10 + $0xf8] sm:$0xff]  ;;  %v8441_v16 = vcombine.low %v6776_v45, %v6784_v44  ;;  %v8458_v25 = vcombine.high %v6792_v12, %v6800_v14 }
0x1bda   : > { %v8460_v37 = vcombine.high %v6793_v20, %v6801_v33  ;;  %v8459_v15 = vcombine.low %v6793_v20, %v6801_v33 }
0x1bdc   : > { %7328 = vmatpush1.bf16.msra.mxu0 %v8465_v9  ;;  %7369 = vmatpush1.bf16.msra.mxu1 %v8467_v59  ;;  %v6816_v9 = vld [vmem:[%s12659_s10 + $0x170] sm:$0xff]  ;;  %v6809_v59 = vld [vmem:[%s12659_s10 + $0x138] sm:$0xff] }
0x1bdd   : > { %7329 = vmatprep.subr.bf16.mxu0 %v8482_v41  ;;  %7370 = vmatprep.subr.bf16.mxu1 %v8484_v39  ;;  %v6817_v41 = vld [vmem:[%s12659_s10 + $0x178] sm:$0xff]  ;;  %v8457_v39 = vcombine.low %v6792_v12, %v6800_v14  ;;  %v8474_v58 = vcombine.high %v6808_v38, %v6816_v9 }
0x1bde   : > { %v8476_v60 = vcombine.high %v6809_v59, %v6817_v41  ;;  %v8475_v40 = vcombine.low %v6809_v59, %v6817_v41 }
0x1be0   : > { %7330 = vmatpush1.bf16.msra.mxu0 %v8481_v47  ;;  %7371 = vmatpush1.bf16.msra.mxu1 %v8483_v22  ;;  %v6832_v47 = vld [vmem:[%s12659_s10 + $0x1f0] sm:$0xff]  ;;  %v6825_v22 = vld [vmem:[%s12659_s10 + $0x1b8] sm:$0xff] }
0x1be1   : > { %7405 = vmatprep.subr.bf16.mxu0 %v8438_v17  ;;  %7446 = vmatprep.subr.bf16.mxu1 %v8440_v27  ;;  %v6833_v17 = vld [vmem:[%s12659_s10 + $0x1f8] sm:$0xff]  ;;  %v8473_v27 = vcombine.low %v6808_v38, %v6816_v9  ;;  %v8490_v48 = vcombine.high %v6824_v8, %v6832_v47  ;;  %v8489_v32 = vcombine.low %v6824_v8, %v6832_v47 }
0x1be2   : > { %v8492_v21 = vcombine.high %v6825_v22, %v6833_v17 }
0x1be3   : > { %8495 = vmatmul.mubr.msk.bf16.vlgmr.msra.gmra.mrb[152].mxu0 %vm580_vm2, %v12457_v42  ;;  %8496 = vmatmul.mubr.msk.bf16.vlgmr.msra.gmra.mrb[164].mxu1 %vm580_vm2, %v12457_v42 }
0x1be4   : > { %7406 = vmatpush1.bf16.msra.mxu0 %v8437_v49  ;;  %7447 = vmatpush1.bf16.msra.mxu1 %v8439_v52  ;;  %v8491_v49 = vcombine.low %v6825_v22, %v6833_v17  ;;  %v10188_v52 = vmov 1966171168   ;;  %v6835_v17 = vld [vmem:[%s12660_s11 + $0x14] sm:$0xff] }
0x1be5   : > { %7407 = vmatprep.subr.bf16.mxu0 %v8454_v29  ;;  %7448 = vmatprep.subr.bf16.mxu1 %v8456_v35  ;;  %v7590_v29 = vunpack.c.l.s4 %v10188_v52 }
0x1be6   : > { %7437 = vmatprep.mubr.bf16.mxu0 %v10187_v23  ;;  %7478 = vmatprep.mubr.bf16.mxu1 %v10187_v23 }
0x1be7   : > { %v7591_v19 = vunpack.c.0.s8 %v7590_v29 }
0x1be8   : > { %7408 = vmatpush1.bf16.msra.mxu0 %v8453_v46  ;;  %7449 = vmatpush1.bf16.msra.mxu1 %v8455_v50 }
0x1be9   : > { %7409 = vmatprep.subr.bf16.mxu0 %v8470_v34  ;;  %7450 = vmatprep.subr.bf16.mxu1 %v8472_v62  ;;  %v12609_v7 = vsub.s32 %v7591_v19, %v11645_v26 }
0x1bec   : > { %7410 = vmatpush1.bf16.msra.mxu0 %v8469_v30  ;;  %7451 = vmatpush1.bf16.msra.mxu1 %v8471_v11 }
0x1bed   : > { %7411 = vmatprep.subr.bf16.mxu0 %v8486_v55  ;;  %7452 = vmatprep.subr.bf16.mxu1 %v8488_v51 }
0x1bf0   : > { %7412 = vmatpush1.bf16.msra.mxu0 %v8485_v63  ;;  %7453 = vmatpush1.bf16.msra.mxu1 %v8487_v57 }
0x1bf1   : > { %7487 = vmatprep.subr.bf16.mxu0 %v8442_v3  ;;  %7528 = vmatprep.subr.bf16.mxu1 %v8444_v0 }
0x1bf3   : > { %8497 = vmatmul.mubr.msk.bf16.vlgmr.msra.gmra.mrb[156].mxu0 %vm580_vm2, %v12457_v42  ;;  %8498 = vmatmul.mubr.msk.bf16.vlgmr.msra.gmra.mrb[168].mxu1 %vm580_vm2, %v12457_v42 }
0x1bf4   : > { %7488 = vmatpush1.bf16.msra.mxu0 %v8441_v16  ;;  %7529 = vmatpush1.bf16.msra.mxu1 %v8443_v24 }
0x1bf5   : > { %7489 = vmatprep.subr.bf16.mxu0 %v8458_v25  ;;  %7530 = vmatprep.subr.bf16.mxu1 %v8460_v37 }
0x1bf6   : > { %7519 = vmatprep.mubr.bf16.mxu0 %v10187_v23  ;;  %7560 = vmatprep.mubr.bf16.mxu1 %v10187_v23  ;;  %v6834_v23 = vld [vmem:[%s12660_s11 + $0xc] sm:$0xff] }
0x1bf7   : > { %v7161_v35 = vrot.slane %v6834_v23, %v11648_v28  ;;  %v7169_v2 = vrot.slane %v6834_v23, %v11816_v53  ;;  %v7165_v31 = vrot.slane %v6834_v23, %v11656_v43  ;;  %v7173_v10 = vrot.slane %v6834_v23, %v11659_v36 }
0x1bf8   : > { %7490 = vmatpush1.bf16.msra.mxu0 %v8457_v39  ;;  %7531 = vmatpush1.bf16.msra.mxu1 %v8459_v15  ;;  %v7177_v57 = vrot.slane %v6834_v23, %v12017_v61  ;;  %v7185_v3 = vrot.slane %v6834_v23, %v12221_v5  ;;  %v7181_v0 = vrot.slane %v6834_v23, %v11825_v54 }
0x1bf9   : > { %7491 = vmatprep.subr.bf16.mxu0 %v8474_v58  ;;  %7532 = vmatprep.subr.bf16.mxu1 %v8476_v60  ;;  %v7189_v26 = vrot.slane %v6834_v23, %v12029_v1 }
0x1bfc   : > { %7492 = vmatpush1.bf16.msra.mxu0 %v8473_v27  ;;  %7533 = vmatpush1.bf16.msra.mxu1 %v8475_v40  ;;  %v7193_v40 = vrot.slane %v6835_v17, %v11648_v28 }
0x1bfd   : > { %7493 = vmatprep.subr.bf16.mxu0 %v8490_v48  ;;  %7534 = vmatprep.subr.bf16.mxu1 %v8492_v21  ;;  %v7201_v48 = vrot.slane %v6835_v17, %v11816_v53  ;;  %v7197_v21 = vrot.slane %v6835_v17, %v11656_v43 }
0x1c00   : > { %7494 = vmatpush1.bf16.msra.mxu0 %v8489_v32  ;;  %7535 = vmatpush1.bf16.msra.mxu1 %v8491_v49  ;;  %v7205_v32 = vrot.slane %v6835_v17, %v11659_v36  ;;  %v7209_v36 = vrot.slane %v6835_v17, %v12017_v61 }
0x1c03   : > { %8499 = vmatmul.mubr.msk.bf16.vlgmr.msra.gmra.mrb[160].mxu0 %vm580_vm2, %v12457_v42  ;;  %8500 = vmatmul.mubr.msk.bf16.vlgmr.msra.gmra.mrb[172].mxu1 %vm580_vm2, %v12457_v42 }
0x1ca6   : > { %v7275_v46 = vpop.f32.mrb[148].mxu0  ;;  %v7316_v50 = vpop.f32.mrb[160].mxu1 }
0x1ca7   : > { %v7276_v34 = vadd.f32 %v7275_v46, %v7161_v35  ;;  %v7317_v62 = vadd.f32 %v7316_v50, %v7169_v2  ;;  %v7277_v42 = vpop.f32.mrb[149].mxu0  ;;  %v7318_v56 = vpop.f32.mrb[161].mxu1 }
0x1ca8   : > { %v7278_v4 = vadd.f32 %v7277_v42, %v7165_v31  ;;  %v7319_v13 = vadd.f32 %v7318_v56, %v7173_v10  ;;  %v7279_v30 = vpop.f32.mrb[150].mxu0  ;;  %v7320_v11 = vpop.f32.mrb[162].mxu1  ;;  %v7217_v56 = vrot.slane %v6835_v17, %v12221_v5 }
0x1ca9   : > { %v7280_v55 = vpop.f32.mrb[151].mxu0  ;;  %v7321_v51 = vpop.f32.mrb[163].mxu1 }
0x1caa   : > { %v7585_v45 = vcombine.low %v7276_v34, %v7278_v4  ;;  %v7586_v44 = vcombine.low %v7317_v62, %v7319_v13  ;;  %v7213_v4 = vrot.slane %v6835_v17, %v11825_v54  ;;  %v7221_v13 = vrot.slane %v6835_v17, %v12029_v1 }
0x1cac   : > { %v7595_v6 = vrot.slane %v7585_v45, %v12609_v7  ;;  %v7602_v18 = vrot.slane %v7586_v44, %v12609_v7 }
0x1cae   : > { %v7617_v63 = vcombine.low %v7595_v6, %v7602_v18 }
0x1cb0   : > { %v7625_v47 = vrot.slane %v7617_v63, %v12609_v7 }
0x1cb6   : > { %v7357_v12 = vpop.f32.mrb[152].mxu0  ;;  %v7398_v14 = vpop.f32.mrb[164].mxu1 }
0x1cb7   : > { %v7358_v20 = vadd.f32 %v7357_v12, %v7177_v57  ;;  %v7399_v33 = vadd.f32 %v7398_v14, %v7185_v3  ;;  %v7359_v16 = vpop.f32.mrb[153].mxu0  ;;  %v7400_v24 = vpop.f32.mrb[165].mxu1 }
0x1cb8   : > { %v7360_v25 = vadd.f32 %v7359_v16, %v7181_v0  ;;  %v7401_v37 = vadd.f32 %v7400_v24, %v7189_v26  ;;  %v7361_v38 = vpop.f32.mrb[154].mxu0  ;;  %v7402_v9 = vpop.f32.mrb[166].mxu1 }
0x1cb9   : > { %v7362_v59 = vpop.f32.mrb[155].mxu0  ;;  %v7403_v41 = vpop.f32.mrb[167].mxu1 }
0x1cba   : > { %v7587_v39 = vcombine.low %v7358_v20, %v7360_v25  ;;  %v7588_v15 = vcombine.low %v7399_v33, %v7401_v37 }
0x1cbc   : > { %v7609_v58 = vrot.slane %v7587_v39, %v12609_v7  ;;  %v7616_v60 = vrot.slane %v7588_v15, %v12609_v7 }
0x1cbe   : > { %v7618_v8 = vcombine.low %v7609_v58, %v7616_v60 }
0x1cc0   : > { %v7632_v22 = vrot.slane %v7618_v8, %v12609_v7 }
0x1cc2   : > { %v7633_v27 = vcombine.low %v7625_v47, %v7632_v22 }
0x1cc4   : > { %7685 = vst [vmem:[%s12628_s26] sm:$0xff] %v7633_v27 }
0x1cc6   : > { %v7439_v49 = vpop.f32.mrb[156].mxu0  ;;  %v7480_v23 = vpop.f32.mrb[168].mxu1 }
0x1cc7   : > { %v7440_v52 = vadd.f32 %v7439_v49, %v7193_v40  ;;  %v7481_v29 = vadd.f32 %v7480_v23, %v7201_v48  ;;  %v7441_v35 = vpop.f32.mrb[157].mxu0  ;;  %v7482_v2 = vpop.f32.mrb[169].mxu1 }
0x1cc8   : > { %v7442_v31 = vadd.f32 %v7441_v35, %v7197_v21  ;;  %v7483_v19 = vadd.f32 %v7482_v2, %v7205_v32  ;;  %v7443_v10 = vpop.f32.mrb[158].mxu0  ;;  %v7484_v46 = vpop.f32.mrb[170].mxu1 }
0x1cc9   : > { %v7444_v50 = vpop.f32.mrb[159].mxu0  ;;  %v7485_v34 = vpop.f32.mrb[171].mxu1 }
0x1cca   : > { %v7634_v28 = vcombine.low %v7440_v52, %v7442_v31  ;;  %v7635_v62 = vcombine.low %v7481_v29, %v7483_v19 }
0x1ccc   : > { %v7644_v53 = vrot.slane %v7634_v28, %v12609_v7  ;;  %v7651_v43 = vrot.slane %v7635_v62, %v12609_v7 }
0x1cce   : > { %v7666_v42 = vcombine.low %v7644_v53, %v7651_v43 }
0x1cd0   : > { %v7674_v12 = vrot.slane %v7666_v42, %v12609_v7 }
0x1cd6   : > { %v7521_v30 = vpop.f32.mrb[160].mxu0  ;;  %v7562_v11 = vpop.f32.mrb[172].mxu1 }
0x1cd7   : > { %v7522_v55 = vadd.f32 %v7521_v30, %v7209_v36  ;;  %v7563_v51 = vadd.f32 %v7562_v11, %v7217_v56  ;;  %v7523_v45 = vpop.f32.mrb[161].mxu0  ;;  %v7564_v44 = vpop.f32.mrb[173].mxu1 }
0x1cd8   : > { %v7524_v6 = vadd.f32 %v7523_v45, %v7213_v4  ;;  %v7565_v18 = vadd.f32 %v7564_v44, %v7221_v13  ;;  %v7525_v63 = vpop.f32.mrb[162].mxu0  ;;  %v7566_v57 = vpop.f32.mrb[174].mxu1 }
0x1cd9   : > { %v7526_v3 = vpop.f32.mrb[163].mxu0  ;;  %v7567_v0 = vpop.f32.mrb[175].mxu1 }
0x1cda   : > { %v7636_v61 = vcombine.low %v7522_v55, %v7524_v6  ;;  %v7637_v26 = vcombine.low %v7563_v51, %v7565_v18 }
0x1cdc   : > { %v7658_v5 = vrot.slane %v7636_v61, %v12609_v7  ;;  %v7665_v54 = vrot.slane %v7637_v26, %v12609_v7 }
0x1cde   : > { %v7667_v1 = vcombine.low %v7658_v5, %v7665_v54 }
0x1ce0   : > { %v7681_v14 = vrot.slane %v7667_v1, %v12609_v7 }
0x1ce2   : > { %v7682_v20 = vcombine.low %v7674_v12, %v7681_v14 }
0x1ce4   : > { %7686 = vst [vmem:[%s12628_s26 + $0x8] sm:$0xff] %v7682_v20 }
0x1ce5 PF: > { %s22_s21 = sadd.s32 1, %s10182_s21  }
0x1ce6   : > { %p19_p4 = scmp.ge.s32.totalorder %s22_s21, 4  }
0x1ce8   :  { %21 = sbr.rel (!%p19_p4) target bundleno = 1 (0x1), region = 118 }

</bundles_post_ra>
